<compile_context>
chip_gen: v6e
topology: v6e:2x2x1
jax: 0.10.0
libtpu: 0.0.40
codegen_flags: <defaults>
</compile_context>

<pallas_src>
import functools

import numpy as np

import jax
import jax.numpy as jnp
from jax import lax
from jax.experimental import pallas as pl
from jax.experimental.pallas import tpu as pltpu

F32_EPS = float(jnp.finfo(jnp.float32).eps)   # nn.RMSNorm default eps (DownsampleNormFirst)
VMEM_LIMIT = 32 * 1024 * 1024                 # safe on v5e/v6e (128 MiB phys) and v7x (64 MiB)
TARGET_TM = 512                               # token-tile target (rows)

# Union of tap offsets of the 3x3, 1x11 and 11x1 inception branches (25 taps).
DW_PAD = 5
DW_TAPS = tuple(
    [(di, dj) for di in range(-1, 2) for dj in range(-1, 2)]
    + [(0, dj) for dj in list(range(-5, -1)) + list(range(2, 6))]
    + [(di, 0) for di in list(range(-5, -1)) + list(range(2, 6))]
)


# ---------------------------------------------------------------------------
# small helpers
# ---------------------------------------------------------------------------
def _round_up(x, m):
    return (x + m - 1) // m * m


def _silu(x):
    # overflow-safe sigmoid (exp argument clamped)
    return x * (1.0 / (1.0 + jnp.exp(-jnp.clip(x, -30.0, 30.0))))


def _plan_rows(m):
    """Pick (padded_row_count, row_tile) for a token-major (M, C) op.

    >=2 grid steps whenever m > 256 (v7x dual-TensorCore sharding), tiles are multiples of 8,
    and the fallback pads to a large tile instead of dropping to 128-row tiles.
    """
    if m <= 256:
        return m, m
    t = TARGET_TM
    while t >= 128:
        if t < m and m % t == 0:          # exact divisor, no padding
            return m, t
        t -= 8
    tm = min(TARGET_TM, _round_up((m + 1) // 2, 128))
    return _round_up(m, tm), tm


def _row_tile(h, w):
    """Largest divisor of h with tile_rows * w <= TARGET_TM (spatial-row tiling)."""
    cap = max(1, TARGET_TM // max(w, 1))
    best = 1
    for t in range(1, h + 1):
        if h % t == 0 and t <= cap:
            best = t
    return best


def _pad_rows(x, mp):
    m = x.shape[0]
    if m == mp:
        return x
    return jnp.pad(x, ((0, mp - m),) + ((0, 0),) * (x.ndim - 1))


def _pad_cols(a, n):
    return jnp.pad(a, ((0, 0), (0, n - a.shape[1])))


def _cparams(n_parallel):
    return pltpu.CompilerParams(
        dimension_semantics=("parallel",) * n_parallel,
        vmem_limit_bytes=VMEM_LIMIT,
    )


# ---------------------------------------------------------------------------
# Pallas kernels
# ---------------------------------------------------------------------------
def _rmsnorm_kernel(x_ref, w_ref, o_ref, *, eps):
    x = x_ref[...]
    ms = jnp.mean(x * x, axis=-1, keepdims=True)
    o_ref[...] = x * lax.rsqrt(ms + eps) * w_ref[...]


def _norm_fc1_kernel(x_ref, nw_ref, w1_ref, b1_ref, o_ref, *, eps):
    # Fused RMSNorm + fc1 (padded / permuted hidden layout); bf16 output (largest activation).
    x = x_ref[...]
    ms = jnp.mean(x * x, axis=-1, keepdims=True)
    xn = (x * lax.rsqrt(ms + eps) * nw_ref[...]).astype(jnp.bfloat16)
    y = jnp.dot(xn, w1_ref[...], preferred_element_type=jnp.float32) + b1_ref[...]
    o_ref[...] = y.astype(o_ref.dtype)


def _gate_fc2_kernel(gic_ref, cc_ref, sc_ref, w2m_ref, w2c_ref, b2_ref, gamma_ref,
                     *rest, hp, tgp, final_norm, norm_eps):
    # SiLU gate * values -> two partial fc2 dots (main path + 128-wide conv block) -> *gamma ->
    # +shortcut -> optional fused stage-boundary RMSNorm.
    if final_norm:
        nw_ref, o_ref = rest
    else:
        (o_ref,) = rest
    gic = gic_ref[...].astype(jnp.float32)           # (tm, 2*hp) : [gate | value]
    g = gic[:, :hp]
    v = gic[:, hp:]
    h_main = (_silu(g) * v).astype(jnp.bfloat16)                       # conv rows of w2m are zero
    h_conv = (_silu(g[:, :tgp]) * cc_ref[...].astype(jnp.float32)).astype(jnp.bfloat16)
    y = (jnp.dot(h_main, w2m_ref[...], preferred_element_type=jnp.float32)
         + jnp.dot(h_conv, w2c_ref[...], preferred_element_type=jnp.float32)
         + b2_ref[...])
    y = y * gamma_ref[...] + sc_ref[...]
    if final_norm:
        ms = jnp.mean(y * y, axis=-1, keepdims=True)
        y = y * lax.rsqrt(ms + norm_eps) * nw_ref[...]
    o_ref[...] = y.astype(o_ref.dtype)


def _conv_s2_kernel(x4_ref, w_ref, b_ref, *rest, th, wop, act, has_norm, norm_eps):
    # Fused-im2col 3x3 stride-2 conv: 9 shifted MXU dots over 2x2 parity slabs of the padded input.
    if has_norm:
        nw_ref, o_ref = rest
    else:
        (o_ref,) = rest
    cout = o_ref.shape[-1]
    cin = w_ref.shape[1]
    r0 = pl.program_id(1) * th
    # Load the 4 parity row-windows once (whole padded slab is cached in VMEM per batch item).
    wins = []
    for pi in range(2):
        row = []
        for pj in range(2):
            row.append(x4_ref[2 * pi + pj, pl.ds(r0, th + 1), :, :])   # (th+1, wop+1, cin) bf16
        wins.append(row)
    acc = jnp.zeros((th * wop, cout), jnp.float32)
    for di in range(3):
        for dj in range(3):
            win = wins[di % 2][dj % 2]
            patch = win[di // 2:di // 2 + th, dj // 2:dj // 2 + wop, :]
            acc = acc + jnp.dot(patch.reshape(th * wop, cin), w_ref[3 * di + dj],
                                preferred_element_type=jnp.float32)
    y = acc + b_ref[...]
    if act == "silu":
        y = _silu(y)
    if has_norm:
        ms = jnp.mean(y * y, axis=-1, keepdims=True)
        y = y * lax.rsqrt(ms + norm_eps) * nw_ref[...]
    o_ref[...] = y.reshape(1, th, wop, cout).astype(o_ref.dtype)


def _dwconv_kernel(x_ref, w_ref, b_ref, o_ref, *, th, W, pad):
    # All three inception depthwise branches in one tap loop over 128-lane-padded channels.
    r0 = pl.program_id(1) * th
    C = o_ref.shape[-1]
    win = x_ref[0, pl.ds(r0, th + 2 * pad), :, :].astype(jnp.float32)   # (th+2p, W+2p, C)
    w = w_ref[...]                                                      # (n_taps, C) f32
    acc = jnp.zeros((th, W, C), jnp.float32)
    for t, (di, dj) in enumerate(DW_TAPS):
        patch = win[pad + di:pad + di + th, pad + dj:pad + dj + W, :]
        acc = acc + patch * w[t:t + 1, :].reshape(1, 1, C)
    y = acc + b_ref[...].reshape(1, 1, C)
    o_ref[...] = y.reshape(1, th, W, C).astype(o_ref.dtype)


def _head_kernel(x_ref, w1_ref, b1_ref, w2_ref, b2_ref, o_ref):
    # Fused head: Linear -> Mish -> Linear.  Mish via single-exp identity:
    #   mish(x) = x * t*(t+2) / (t*(t+2)+2), t = exp(min(x, 20))
    h = jnp.dot(x_ref[...].astype(jnp.bfloat16), w1_ref[...],
                preferred_element_type=jnp.float32) + b1_ref[...]
    t = jnp.exp(jnp.minimum(h, 20.0))
    num = t * (t + 2.0)
    h = h * num * pl.reciprocal(num + 2.0, approx=True)
    o_ref[...] = jnp.dot(h.astype(jnp.bfloat16), w2_ref[...],
                         preferred_element_type=jnp.float32) + b2_ref[...]


# ---------------------------------------------------------------------------
# pallas_call builders (cached per shape)
# ---------------------------------------------------------------------------
@functools.lru_cache(maxsize=None)
def _build_rmsnorm(mp, tm, c, eps):
    return pl.pallas_call(
        functools.partial(_rmsnorm_kernel, eps=eps),
        out_shape=jax.ShapeDtypeStruct((mp, c), jnp.float32),
        grid=(mp // tm,),
        in_specs=[pl.BlockSpec((tm, c), lambda i: (i, 0)),
                  pl.BlockSpec((1, c), lambda i: (0, 0))],
        out_specs=pl.BlockSpec((tm, c), lambda i: (i, 0)),
        compiler_params=_cparams(1),
    )


@functools.lru_cache(maxsize=None)
def _build_norm_fc1(mp, tm, d, n, eps):
    return pl.pallas_call(
        functools.partial(_norm_fc1_kernel, eps=eps),
        out_shape=jax.ShapeDtypeStruct((mp, n), jnp.bfloat16),
        grid=(mp // tm,),
        in_specs=[pl.BlockSpec((tm, d), lambda i: (i, 0)),
                  pl.BlockSpec((1, d), lambda i: (0, 0)),
                  pl.BlockSpec((d, n), lambda i: (0, 0)),
                  pl.BlockSpec((1, n), lambda i: (0, 0))],
        out_specs=pl.BlockSpec((tm, n), lambda i: (i, 0)),
        compiler_params=_cparams(1),
    )


@functools.lru_cache(maxsize=None)
def _build_gate_fc2(mp, tm, hp, tgp, dim, final_norm, norm_eps):
    in_specs = [pl.BlockSpec((tm, 2 * hp), lambda i: (i, 0)),
                pl.BlockSpec((tm, tgp), lambda i: (i, 0)),
                pl.BlockSpec((tm, dim), lambda i: (i, 0)),
                pl.BlockSpec((hp, dim), lambda i: (0, 0)),
                pl.BlockSpec((tgp, dim), lambda i: (0, 0)),
                pl.BlockSpec((1, dim), lambda i: (0, 0)),
                pl.BlockSpec((1, dim), lambda i: (0, 0))]
    if final_norm:
        in_specs.append(pl.BlockSpec((1, dim), lambda i: (0, 0)))
    out_dtype = jnp.bfloat16 if final_norm else jnp.float32
    return pl.pallas_call(
        functools.partial(_gate_fc2_kernel, hp=hp, tgp=tgp,
                          final_norm=final_norm, norm_eps=norm_eps),
        out_shape=jax.ShapeDtypeStruct((mp, dim), out_dtype),
        grid=(mp // tm,),
        in_specs=in_specs,
        out_specs=pl.BlockSpec((tm, dim), lambda i: (i, 0)),
        compiler_params=_cparams(1),
    )


@functools.lru_cache(maxsize=None)
def _build_conv(B, ho, th, wop, cin, cout, act, has_norm, norm_eps, out_dtype):
    hp2, wp2 = ho + 1, wop + 1
    in_specs = [pl.BlockSpec((4, hp2, wp2, cin), lambda b, i: (b, 0, 0, 0)),
                pl.BlockSpec((9, cin, cout), lambda b, i: (0, 0, 0)),
                pl.BlockSpec((1, cout), lambda b, i: (0, 0))]
    if has_norm:
        in_specs.append(pl.BlockSpec((1, cout), lambda b, i: (0, 0)))
    return pl.pallas_call(
        functools.partial(_conv_s2_kernel, th=th, wop=wop, act=act,
                          has_norm=has_norm, norm_eps=norm_eps),
        out_shape=jax.ShapeDtypeStruct((B, ho, wop, cout), out_dtype),
        grid=(B, ho // th),
        in_specs=in_specs,
        out_specs=pl.BlockSpec((1, th, wop, cout), lambda b, i: (b, i, 0, 0)),
        compiler_params=_cparams(2),
    )


@functools.lru_cache(maxsize=None)
def _build_dwconv(B, H, W, C, th):
    Hp, Wp = H + 2 * DW_PAD, W + 2 * DW_PAD
    return pl.pallas_call(
        functools.partial(_dwconv_kernel, th=th, W=W, pad=DW_PAD),
        out_shape=jax.ShapeDtypeStruct((B, H, W, C), jnp.bfloat16),
        grid=(B, H // th),
        in_specs=[pl.BlockSpec((1, Hp, Wp, C), lambda b, i: (b, 0, 0, 0)),
                  pl.BlockSpec((len(DW_TAPS), C), lambda b, i: (0, 0)),
                  pl.BlockSpec((1, C), lambda b, i: (0, 0))],
        out_specs=pl.BlockSpec((1, th, W, C), lambda b, i: (b, i, 0, 0)),
        compiler_params=_cparams(2),
    )


@functools.lru_cache(maxsize=None)
def _build_head(mp, tm, d, h):
    return pl.pallas_call(
        _head_kernel,
        out_shape=jax.ShapeDtypeStruct((mp, d), jnp.float32),
        grid=(mp // tm,),
        in_specs=[pl.BlockSpec((tm, d), lambda i: (i, 0)),
                  pl.BlockSpec((d, h), lambda i: (0, 0)),
                  pl.BlockSpec((1, h), lambda i: (0, 0)),
                  pl.BlockSpec((h, d), lambda i: (0, 0)),
                  pl.BlockSpec((1, d), lambda i: (0, 0))],
        out_specs=pl.BlockSpec((tm, d), lambda i: (i, 0)),
        compiler_params=_cparams(1),
    )


# ---------------------------------------------------------------------------
# Op wrappers (Pallas path)
# ---------------------------------------------------------------------------
def rmsnorm_op(x, w, eps):
    m, c = x.shape
    mp, tm = _plan_rows(m)
    y = _build_rmsnorm(mp, tm, c, eps)(_pad_rows(x, mp), w.reshape(1, -1))
    return y if mp == m else y[:m]


def norm_fc1_op(x, nw, w1, b1, eps):
    m, d = x.shape
    n = w1.shape[1]
    mp, tm = _plan_rows(m)
    y = _build_norm_fc1(mp, tm, d, n, eps)(
        _pad_rows(x, mp), nw.reshape(1, -1), w1, b1.reshape(1, -1))
    return y if mp == m else y[:m]


def gate_fc2_op(gic, c_conv, shortcut, p, final_norm_w=None, final_norm_eps=F32_EPS):
    m = gic.shape[0]
    dim = p["fc2_main"].shape[1]
    hp, tgp = p["hp"], p["tgp"]
    mp, tm = _plan_rows(m)
    final_norm = final_norm_w is not None
    args = [_pad_rows(gic, mp), _pad_rows(c_conv, mp), _pad_rows(shortcut, mp),
            p["fc2_main"], p["fc2_conv"], p["fc2_b"].reshape(1, -1), p["gamma"].reshape(1, -1)]
    if final_norm:
        args.append(final_norm_w.reshape(1, -1))
    fn = _build_gate_fc2(mp, tm, hp, tgp, dim, final_norm,
                         float(final_norm_eps) if final_norm else 0.0)
    y = fn(*args)
    return y if mp == m else y[:m]


def dwconv_op(x_bhwc, w_taps, b):
    B, H, W, C = x_bhwc.shape
    xp = jnp.pad(x_bhwc, ((0, 0), (DW_PAD, DW_PAD), (DW_PAD, DW_PAD), (0, 0)))
    th = _row_tile(H, W)
    return _build_dwconv(B, H, W, C, th)(xp, w_taps, b.reshape(1, -1))


def head_op(x, hparams):
    m, d = x.shape
    h = hparams["w1"].shape[1]
    mp, tm = _plan_rows(m)
    y = _build_head(mp, tm, d, h)(
        _pad_rows(x, mp), hparams["w1"], hparams["b1"].reshape(1, -1),
        hparams["w2"], hparams["b2"].reshape(1, -1))
    return y if mp == m else y[:m]


def conv3x3_s2(x, w3, b, *, act=None, norm_w=None, norm_eps=1e-6, out_dtype=jnp.float32):
    """Fused-im2col 3x3 stride-2 pad-1 conv.  w3: (9, cin_p, cout) bf16 (zero-padded K rows)."""
    B, H, W, cin = x.shape
    cin_p, cout = w3.shape[1], w3.shape[2]
    ho, wo = (H + 1) // 2, (W + 1) // 2
    wop = _round_up(wo, 8)                       # lane/sublane-friendly output width
    th = _row_tile(ho, wop)
    # Zero-pad to parity-decomposable size, split into 2x2 parity slabs (single XLA pass).
    xpad = jnp.pad(x.astype(jnp.bfloat16),
                   ((0, 0), (1, 2 * ho + 1 - H), (1, 2 * wop + 1 - W), (0, cin_p - cin)))
    x4 = xpad.reshape(B, ho + 1, 2, wop + 1, 2, cin_p)
    x4 = x4.transpose(0, 2, 4, 1, 3, 5).reshape(B * 4, ho + 1, wop + 1, cin_p)
    has_norm = norm_w is not None
    args = [x4, w3, b.reshape(1, -1)]
    if has_norm:
        args.append(norm_w.reshape(1, -1))
    y = _build_conv(B, ho, th, wop, cin_p, cout, act, has_norm, float(norm_eps), out_dtype)(*args)
    if wop != wo:
        y = y[:, :, :wo, :]
    return y


# ---------------------------------------------------------------------------
# Model forward (Pallas path)
# ---------------------------------------------------------------------------
def gated_block_pallas(p, x, final_norm_w=None, final_norm_eps=F32_EPS):
    B, H, W, dim = x.shape
    hp, tgp = p["hp"], p["tgp"]
    m = B * H * W
    x2 = x.reshape(m, dim)
    gic = norm_fc1_op(x2, p["norm_w"], p["fc1_w"], p["fc1_b"], 1e-6)      # (m, 2*hp) bf16
    c_in = gic[:, hp:hp + tgp].reshape(B, H, W, tgp)                      # lane-aligned 128 slice
    c_conv = dwconv_op(c_in, p["dw_w"], p["dw_b"]).reshape(m, tgp)        # (m, tgp) bf16
    y = gate_fc2_op(gic, c_conv, x2, p, final_norm_w, final_norm_eps)
    return y.reshape(B, H, W, dim)


def metagan2_pallas(pp, x_nchw):
    x = jnp.transpose(x_nchw, (0, 2, 3, 1))        # NCHW -> NHWC
    stages = pp["stages"]
    prenormed = False
    for si, stage in enumerate(stages):
        d = stage["down"]
        if d["type"] == "stem":                    # conv s2 + SiLU -> conv s2 + fused RMSNorm
            x = conv3x3_s2(x, d["conv1_w"], d["conv1_b"], act="silu", out_dtype=jnp.bfloat16)
            x = conv3x3_s2(x, d["conv2_w"], d["conv2_b"], norm_w=d["norm2_w"], norm_eps=1e-6)
        else:                                      # DownsampleNormFirst: RMSNorm -> conv s2
            if not prenormed:                      # fallback (norm not fused upstream)
                B, H, W, C = x.shape
                x = rmsnorm_op(x.reshape(-1, C), d["norm_w"], F32_EPS).reshape(B, H, W, C)
            x = conv3x3_s2(x, d["conv_w"], d["conv_b"])
        prenormed = False
        nxt = stages[si + 1]["down"] if si + 1 < len(stages) else None
        fuse_norm = nxt is not None and nxt["type"] == "down"
        blocks = stage["blocks"]
        for bi, blk in enumerate(blocks):
            if fuse_norm and bi == len(blocks) - 1:
                x = gated_block_pallas(blk, x, final_norm_w=nxt["norm_w"],
                                       final_norm_eps=F32_EPS)
                prenormed = True
            else:
                x = gated_block_pallas(blk, x)
    B, H, W, C = x.shape
    y = head_op(x.reshape(-1, C), pp["head"])
    return y.reshape(B, H, W, -1)


# ---------------------------------------------------------------------------
# Pure-JAX reference (mirrors the PyTorch module with the ORIGINAL weight layout)
# ---------------------------------------------------------------------------
def _rmsnorm_ref(x, w, eps):
    ms = jnp.mean(x * x, axis=-1, keepdims=True)
    return x * lax.rsqrt(ms + eps) * w


def _conv3x3_s2_ref(x, wmat, b):
    cin = x.shape[-1]
    rhs = wmat.reshape(3, 3, cin, -1)
    y = lax.conv_general_dilated(x, rhs, window_strides=(2, 2), padding=((1, 1), (1, 1)),
                                 dimension_numbers=("NHWC", "HWIO", "NHWC"))
    return y + b


def _grouped_conv_ref(x, rhs, b, pad):
    y = lax.conv_general_dilated(x, rhs, (1, 1), padding=pad,
                                 dimension_numbers=("NHWC", "HWIO", "NHWC"),
                                 feature_group_count=x.shape[-1])
    return y + b


def gated_block_ref(p, x):
    dim = x.shape[-1]
    hidden = p["fc2_w"].shape[0]
    gc = p["dw_hw_w"].shape[-1]
    d0 = dim - 3 * gc
    shortcut = x
    xn = _rmsnorm_ref(x, p["norm_w"], 1e-6)
    y = xn @ p["fc1_w"] + p["fc1_b"]
    g = y[..., :hidden]
    i = y[..., hidden:2 * hidden - dim]
    c = y[..., 2 * hidden - dim:]
    c_id = c[..., :d0]
    c_hw = _grouped_conv_ref(c[..., d0:d0 + gc], p["dw_hw_w"][:, :, None, :],
                             p["dw_hw_b"], ((1, 1), (1, 1)))
    c_w = _grouped_conv_ref(c[..., d0 + gc:d0 + 2 * gc], p["dw_w_w"][None, :, None, :],
                            p["dw_w_b"], ((0, 0), (5, 5)))
    c_h = _grouped_conv_ref(c[..., d0 + 2 * gc:], p["dw_h_w"][:, None, None, :],
                            p["dw_h_b"], ((5, 5), (0, 0)))
    c_out = jnp.concatenate([c_id, c_hw, c_w, c_h], axis=-1)
    h = jax.nn.silu(g) * jnp.concatenate([i, c_out], axis=-1)
    return (h @ p["fc2_w"] + p["fc2_b"]) * p["gamma"] + shortcut


def metagan2_ref(params, x_nchw):
    x = jnp.transpose(x_nchw, (0, 2, 3, 1))
    for st in params["stages"]:
        d = st["down"]
        if d["type"] == "stem":
            x = _conv3x3_s2_ref(x, d["conv1_w"], d["conv1_b"])
            x = jax.nn.silu(x)
            x = _conv3x3_s2_ref(x, d["conv2_w"], d["conv2_b"])
            x = _rmsnorm_ref(x, d["norm2_w"], 1e-6)
        else:
            x = _rmsnorm_ref(x, d["norm_w"], F32_EPS)
            x = _conv3x3_s2_ref(x, d["conv_w"], d["conv_b"])
        for p in st["blocks"]:
            x = gated_block_ref(p, x)
    h = x @ params["head"]["w1"] + params["head"]["b1"]
    h = h * jnp.tanh(jax.nn.softplus(h))
    return h @ params["head"]["w2"] + params["head"]["b2"]


# ---------------------------------------------------------------------------
# Deterministic parameter construction + Pallas-layout preparation
# ---------------------------------------------------------------------------
def spectral_normalize(w, n_iter=50):
    # Approximates torch spectral_norm: divide weight by its largest singular value.
    # TODO(synk): PyTorch uses a random u and one stateful power-iteration step per forward;
    #             here we use a deterministic, converged power-iteration estimate of sigma.
    m = w.reshape(-1, w.shape[-1])
    u = jnp.ones((m.shape[0],), jnp.float32) / jnp.sqrt(float(m.shape[0]))
    v = m.T @ u
    for _ in range(n_iter):
        v = m.T @ u
        v = v / (jnp.linalg.norm(v) + 1e-12)
        u = m @ v
        u = u / (jnp.linalg.norm(u) + 1e-12)
    sigma = u @ (m @ v)
    return w / sigma


class _Keys:
    def __init__(self, seed):
        self._key = jax.random.PRNGKey(seed)

    def __call__(self):
        self._key, k = jax.random.split(self._key)
        return k


def _tn(kg, shape, std=0.02):
    # trunc_normal_(std=0.02, a=-2, b=2): with std=0.02 the +-2 truncation is inert -> plain normal
    return std * jax.random.normal(kg(), shape, jnp.float32)


def make_params(seed, in_ch, dims, blocks, downs):
    kg = _Keys(seed)
    all_dims = [in_ch, *dims]
    stages = []
    for idx, nblk in enumerate(blocks):
        ind, outd = all_dims[idx], all_dims[idx + 1]
        if downs[idx] == 2:
            down = {"type": "down",
                    "norm_w": jnp.ones((ind,), jnp.float32),
                    "conv_w": spectral_normalize(_tn(kg, (9 * ind, outd))),
                    "conv_b": 0.01 * jax.random.normal(kg(), (outd,), jnp.float32)}
        else:
            mid = outd // 2
            down = {"type": "stem",
                    "conv1_w": spectral_normalize(_tn(kg, (9 * ind, mid))),
                    "conv1_b": 0.01 * jax.random.normal(kg(), (mid,), jnp.float32),
                    "conv2_w": spectral_normalize(_tn(kg, (9 * mid, outd))),
                    "conv2_b": 0.01 * jax.random.normal(kg(), (outd,), jnp.float32),
                    "norm2_w": jnp.ones((outd,), jnp.float32)}
        blks = []
        for _ in range(nblk):
            dim = outd
            hidden = int(8 / 3 * dim)
            gc = int(dim * 0.125)
            blks.append({
                "norm_w": jnp.ones((dim,), jnp.float32),
                "fc1_w": spectral_normalize(_tn(kg, (dim, 2 * hidden))),
                "fc1_b": jnp.zeros((2 * hidden,), jnp.float32),
                "fc2_w": spectral_normalize(_tn(kg, (hidden, dim))),
                "fc2_b": jnp.zeros((dim,), jnp.float32),
                "gamma": jnp.full((dim,), 1e-6, jnp.float32),
                "dw_hw_w": _tn(kg, (3, 3, gc)), "dw_hw_b": jnp.zeros((gc,), jnp.float32),
                "dw_w_w": _tn(kg, (11, gc)), "dw_w_b": jnp.zeros((gc,), jnp.float32),
                "dw_h_w": _tn(kg, (11, gc)), "dw_h_b": jnp.zeros((gc,), jnp.float32),
            })
        stages.append({"down": down, "blocks": blks})
    head = {"w1": spectral_normalize(_tn(kg, (dims[-1], 4 * dims[-1]))),
            "b1": 0.01 * jax.random.normal(kg(), (4 * dims[-1],), jnp.float32),
            "w2": _tn(kg, (4 * dims[-1], dims[-1])),
            "b2": 0.01 * jax.random.normal(kg(), (dims[-1],), jnp.float32)}
    return {"stages": stages, "head": head}


def _combine_dw_weights(w_hw, w_w, w_h):
    """Merge the three inception depthwise branches into one (n_taps, 3*gc) tap matrix."""
    gc = w_hw.shape[-1]
    zeros = jnp.zeros((gc,), jnp.float32)
    rows = []
    for di, dj in DW_TAPS:
        hw = w_hw[di + 1, dj + 1] if (abs(di) <= 1 and abs(dj) <= 1) else zeros
        ww = w_w[dj + 5] if di == 0 else zeros
        hh = w_h[di + 5] if dj == 0 else zeros
        rows.append(jnp.concatenate([hw, ww, hh]))
    return jnp.stack(rows)


def _conv_weight(wmat):
    """(9*cin, cout) im2col layout -> (9, cin_p, cout) bf16 with sublane-padded K rows."""
    cout = wmat.shape[1]
    cin = wmat.shape[0] // 9
    w = wmat.reshape(9, cin, cout)
    cin_p = _round_up(cin, 8)
    if cin_p != cin:
        w = jnp.pad(w, ((0, 0), (0, cin_p - cin), (0, 0)))
    return w.astype(jnp.bfloat16)


def prepare_pallas_params(params):
    """Derive the lane-aligned / bf16 parameter layout used by the Pallas kernels."""
    stages = []
    for st in params["stages"]:
        d = st["down"]
        if d["type"] == "stem":
            down = {"type": "stem",
                    "conv1_w": _conv_weight(d["conv1_w"]), "conv1_b": d["conv1_b"],
                    "conv2_w": _conv_weight(d["conv2_w"]), "conv2_b": d["conv2_b"],
                    "norm2_w": d["norm2_w"]}
        else:
            down = {"type": "down", "norm_w": d["norm_w"],
                    "conv_w": _conv_weight(d["conv_w"]), "conv_b": d["conv_b"]}
        blks = []
        for p in st["blocks"]:
            dim = p["norm_w"].shape[0]
            hidden = p["fc2_w"].shape[0]
            gc = p["dw_hw_w"].shape[-1]
            tgc = 3 * gc
            d0 = dim - tgc
            hp = _round_up(hidden, 128)
            tgp = _round_up(tgc, 128)
            # Permute the hidden axis so the value block is [c_conv | c_id | i | zero-pad]:
            # conv channels sit at offset 0 of both the gate and value halves (lane-aligned).
            perm = np.concatenate([np.arange(hidden - dim + d0, hidden),       # c conv channels
                                   np.arange(hidden - dim, hidden - dim + d0),  # c identity
                                   np.arange(0, hidden - dim)])                 # i channels
            g_w = p["fc1_w"][:, :hidden][:, perm]
            v_w = p["fc1_w"][:, hidden:][:, perm]
            fc1_w_pad = jnp.concatenate([_pad_cols(g_w, hp), _pad_cols(v_w, hp)], axis=1)
            g_b = p["fc1_b"][:hidden][perm]
            v_b = p["fc1_b"][hidden:][perm]
            fc1_b_pad = jnp.concatenate([jnp.pad(g_b, (0, hp - hidden)),
                                         jnp.pad(v_b, (0, hp - hidden))])
            w2_perm = p["fc2_w"][perm, :]
            fc2_conv = jnp.pad(w2_perm[:tgc], ((0, tgp - tgc), (0, 0)))          # (tgp, dim)
            fc2_main = jnp.pad(w2_perm.at[:tgc].set(0.0), ((0, hp - hidden), (0, 0)))
            dw_w = _combine_dw_weights(p["dw_hw_w"], p["dw_w_w"], p["dw_h_w"])   # (25, tgc)
            dw_w = jnp.pad(dw_w, ((0, 0), (0, tgp - tgc)))                       # (25, tgp)
            dw_b = jnp.pad(jnp.concatenate([p["dw_hw_b"], p["dw_w_b"], p["dw_h_b"]]),
                           (0, tgp - tgc))
            blks.append({"dim": dim, "hp": hp, "tgp": tgp,
                         "norm_w": p["norm_w"],
                         "fc1_w": fc1_w_pad.astype(jnp.bfloat16), "fc1_b": fc1_b_pad,
                         "fc2_main": fc2_main.astype(jnp.bfloat16),
                         "fc2_conv": fc2_conv.astype(jnp.bfloat16),
                         "fc2_b": p["fc2_b"], "gamma": p["gamma"],
                         "dw_w": dw_w, "dw_b": dw_b})
        stages.append({"down": down, "blocks": blks})
    head = {"w1": params["head"]["w1"].astype(jnp.bfloat16), "b1": params["head"]["b1"],
            "w2": params["head"]["w2"].astype(jnp.bfloat16), "b2": params["head"]["b2"]}
    return {"stages": stages, "head": head}


# ---------------------------------------------------------------------------
if __name__ == "__main__":
    IN_CH = 3
    DIMS = (32, 64, 128, 192)
    BLOCKS = (1, 1, 2, 1)     # reduced block counts (same architecture) to keep the demo small
    DOWNS = (4, 2, 2, 2)

    params = make_params(0, IN_CH, DIMS, BLOCKS, DOWNS)
    pparams = prepare_pallas_params(params)
    x = jax.random.normal(jax.random.PRNGKey(0), (2, IN_CH, 64, 64), jnp.float32)  # NCHW input

    out = jax.block_until_ready(metagan2_pallas(pparams, x))
    ref = jax.block_until_ready(metagan2_ref(params, x))

    assert out.shape == (2, 2, 2, DIMS[-1]), out.shape
    assert bool(jnp.all(jnp.isfinite(out))), "non-finite output"
    err = float(jnp.max(jnp.abs(out - ref)))
    scale = float(jnp.max(jnp.abs(ref))) + 1e-6
    assert err <= 0.05 * scale + 1e-3, f"mismatch: max err {err}, ref scale {scale}"
    print("KERNEL_OK")
</pallas_src>

<mosaic_0001>
module attributes {stable_mosaic.version = 11 : i64} {
  func.func @_conv_s2_kernel(%arg0: i32, %arg1: i32, %arg2: memref<4x33x33x8xbf16, #tpu.memory_space<vmem>>, %arg3: memref<9x8x16xbf16, #tpu.memory_space<vmem>>, %arg4: memref<1x16xf32, #tpu.memory_space<vmem>>, %arg5: memref<1x16x32x16xbf16, #tpu.memory_space<vmem>>) attributes {dimension_semantics = [#tpu.dimension_semantics<parallel>, #tpu.dimension_semantics<parallel>], iteration_bounds = array<i64: 2, 2>, scalar_prefetch = 0 : i64, scratch_operands = 0 : i64, tpu.core_type = #tpu.core_type<tc>, window_params = [{transform_indices = @transform_0, window_bounds = array<i64: 4, 33, 33, 8>}, {pipeline_mode = #tpu.pipeline_mode<synchronous>, transform_indices = @transform_1, window_bounds = array<i64: 9, 8, 16>}, {pipeline_mode = #tpu.pipeline_mode<synchronous>, transform_indices = @transform_2, window_bounds = array<i64: 1, 16>}, {transform_indices = @transform_3, window_bounds = array<i64: 1, 16, 32, 16>}]} {
    %c16_i32 = arith.constant 16 : i32
    %0 = arith.muli %arg1, %c16_i32 : i32
    %c0 = arith.constant 0 : index
    %1 = arith.index_cast %0 : i32 to index
    %c0_0 = arith.constant 0 : index
    %c0_1 = arith.constant 0 : index
    %2 = vector.load %arg2[%c0, %1, %c0_0, %c0_1] : memref<4x33x33x8xbf16, #tpu.memory_space<vmem>>, vector<1x17x33x8xbf16>
    %3 = vector.shape_cast %2 : vector<1x17x33x8xbf16> to vector<17x33x8xbf16>
    %c1 = arith.constant 1 : index
    %4 = arith.index_cast %0 : i32 to index
    %c0_2 = arith.constant 0 : index
    %c0_3 = arith.constant 0 : index
    %5 = vector.load %arg2[%c1, %4, %c0_2, %c0_3] : memref<4x33x33x8xbf16, #tpu.memory_space<vmem>>, vector<1x17x33x8xbf16>
    %6 = vector.shape_cast %5 : vector<1x17x33x8xbf16> to vector<17x33x8xbf16>
    %c2 = arith.constant 2 : index
    %7 = arith.index_cast %0 : i32 to index
    %c0_4 = arith.constant 0 : index
    %c0_5 = arith.constant 0 : index
    %8 = vector.load %arg2[%c2, %7, %c0_4, %c0_5] : memref<4x33x33x8xbf16, #tpu.memory_space<vmem>>, vector<1x17x33x8xbf16>
    %9 = vector.shape_cast %8 : vector<1x17x33x8xbf16> to vector<17x33x8xbf16>
    %c3 = arith.constant 3 : index
    %10 = arith.index_cast %0 : i32 to index
    %c0_6 = arith.constant 0 : index
    %c0_7 = arith.constant 0 : index
    %11 = vector.load %arg2[%c3, %10, %c0_6, %c0_7] : memref<4x33x33x8xbf16, #tpu.memory_space<vmem>>, vector<1x17x33x8xbf16>
    %12 = vector.shape_cast %11 : vector<1x17x33x8xbf16> to vector<17x33x8xbf16>
    %cst = arith.constant 0.000000e+00 : f32
    %13 = vector.broadcast %cst : f32 to vector<512x16xf32>
    %14 = vector.extract_strided_slice %3 {offsets = [0, 0, 0], sizes = [16, 32, 8], strides = [1, 1, 1]} : vector<17x33x8xbf16> to vector<16x32x8xbf16>
    %15 = vector.shape_cast %14 : vector<16x32x8xbf16> to vector<512x8xbf16>
    %c0_8 = arith.constant 0 : index
    %c0_9 = arith.constant 0 : index
    %c0_10 = arith.constant 0 : index
    %16 = vector.load %arg3[%c0_8, %c0_9, %c0_10] : memref<9x8x16xbf16, #tpu.memory_space<vmem>>, vector<1x8x16xbf16>
    %17 = vector.shape_cast %16 : vector<1x8x16xbf16> to vector<8x16xbf16>
    %cst_11 = arith.constant dense<0.000000e+00> : vector<512x16xf32>
    %18 = tpu.matmul %15, %17, %cst_11 {dimension_numbers = #tpu.dot_dimension_numbers<[1], [0], [0], [1], [0, 0, 1, 1], [], []>} : vector<512x8xbf16>, vector<8x16xbf16>, vector<512x16xf32> -> vector<512x16xf32>
    %19 = arith.addf %13, %18 : vector<512x16xf32>
    %20 = vector.extract_strided_slice %6 {offsets = [0, 0, 0], sizes = [16, 32, 8], strides = [1, 1, 1]} : vector<17x33x8xbf16> to vector<16x32x8xbf16>
    %21 = vector.shape_cast %20 : vector<16x32x8xbf16> to vector<512x8xbf16>
    %c1_12 = arith.constant 1 : index
    %c0_13 = arith.constant 0 : index
    %c0_14 = arith.constant 0 : index
    %22 = vector.load %arg3[%c1_12, %c0_13, %c0_14] : memref<9x8x16xbf16, #tpu.memory_space<vmem>>, vector<1x8x16xbf16>
    %23 = vector.shape_cast %22 : vector<1x8x16xbf16> to vector<8x16xbf16>
    %cst_15 = arith.constant dense<0.000000e+00> : vector<512x16xf32>
    %24 = tpu.matmul %21, %23, %cst_15 {dimension_numbers = #tpu.dot_dimension_numbers<[1], [0], [0], [1], [0, 0, 1, 1], [], []>} : vector<512x8xbf16>, vector<8x16xbf16>, vector<512x16xf32> -> vector<512x16xf32>
    %25 = arith.addf %19, %24 : vector<512x16xf32>
    %26 = vector.extract_strided_slice %3 {offsets = [0, 1, 0], sizes = [16, 32, 8], strides = [1, 1, 1]} : vector<17x33x8xbf16> to vector<16x32x8xbf16>
    %27 = vector.shape_cast %26 : vector<16x32x8xbf16> to vector<512x8xbf16>
    %c2_16 = arith.constant 2 : index
    %c0_17 = arith.constant 0 : index
    %c0_18 = arith.constant 0 : index
    %28 = vector.load %arg3[%c2_16, %c0_17, %c0_18] : memref<9x8x16xbf16, #tpu.memory_space<vmem>>, vector<1x8x16xbf16>
    %29 = vector.shape_cast %28 : vector<1x8x16xbf16> to vector<8x16xbf16>
    %cst_19 = arith.constant dense<0.000000e+00> : vector<512x16xf32>
    %30 = tpu.matmul %27, %29, %cst_19 {dimension_numbers = #tpu.dot_dimension_numbers<[1], [0], [0], [1], [0, 0, 1, 1], [], []>} : vector<512x8xbf16>, vector<8x16xbf16>, vector<512x16xf32> -> vector<512x16xf32>
    %31 = arith.addf %25, %30 : vector<512x16xf32>
    %32 = vector.extract_strided_slice %9 {offsets = [0, 0, 0], sizes = [16, 32, 8], strides = [1, 1, 1]} : vector<17x33x8xbf16> to vector<16x32x8xbf16>
    %33 = vector.shape_cast %32 : vector<16x32x8xbf16> to vector<512x8xbf16>
    %c3_20 = arith.constant 3 : index
    %c0_21 = arith.constant 0 : index
    %c0_22 = arith.constant 0 : index
    %34 = vector.load %arg3[%c3_20, %c0_21, %c0_22] : memref<9x8x16xbf16, #tpu.memory_space<vmem>>, vector<1x8x16xbf16>
    %35 = vector.shape_cast %34 : vector<1x8x16xbf16> to vector<8x16xbf16>
    %cst_23 = arith.constant dense<0.000000e+00> : vector<512x16xf32>
    %36 = tpu.matmul %33, %35, %cst_23 {dimension_numbers = #tpu.dot_dimension_numbers<[1], [0], [0], [1], [0, 0, 1, 1], [], []>} : vector<512x8xbf16>, vector<8x16xbf16>, vector<512x16xf32> -> vector<512x16xf32>
    %37 = arith.addf %31, %36 : vector<512x16xf32>
    %38 = vector.extract_strided_slice %12 {offsets = [0, 0, 0], sizes = [16, 32, 8], strides = [1, 1, 1]} : vector<17x33x8xbf16> to vector<16x32x8xbf16>
    %39 = vector.shape_cast %38 : vector<16x32x8xbf16> to vector<512x8xbf16>
    %c4 = arith.constant 4 : index
    %c0_24 = arith.constant 0 : index
    %c0_25 = arith.constant 0 : index
    %40 = vector.load %arg3[%c4, %c0_24, %c0_25] : memref<9x8x16xbf16, #tpu.memory_space<vmem>>, vector<1x8x16xbf16>
    %41 = vector.shape_cast %40 : vector<1x8x16xbf16> to vector<8x16xbf16>
    %cst_26 = arith.constant dense<0.000000e+00> : vector<512x16xf32>
    %42 = tpu.matmul %39, %41, %cst_26 {dimension_numbers = #tpu.dot_dimension_numbers<[1], [0], [0], [1], [0, 0, 1, 1], [], []>} : vector<512x8xbf16>, vector<8x16xbf16>, vector<512x16xf32> -> vector<512x16xf32>
    %43 = arith.addf %37, %42 : vector<512x16xf32>
    %44 = vector.extract_strided_slice %9 {offsets = [0, 1, 0], sizes = [16, 32, 8], strides = [1, 1, 1]} : vector<17x33x8xbf16> to vector<16x32x8xbf16>
    %45 = vector.shape_cast %44 : vector<16x32x8xbf16> to vector<512x8xbf16>
    %c5 = arith.constant 5 : index
    %c0_27 = arith.constant 0 : index
    %c0_28 = arith.constant 0 : index
    %46 = vector.load %arg3[%c5, %c0_27, %c0_28] : memref<9x8x16xbf16, #tpu.memory_space<vmem>>, vector<1x8x16xbf16>
    %47 = vector.shape_cast %46 : vector<1x8x16xbf16> to vector<8x16xbf16>
    %cst_29 = arith.constant dense<0.000000e+00> : vector<512x16xf32>
    %48 = tpu.matmul %45, %47, %cst_29 {dimension_numbers = #tpu.dot_dimension_numbers<[1], [0], [0], [1], [0, 0, 1, 1], [], []>} : vector<512x8xbf16>, vector<8x16xbf16>, vector<512x16xf32> -> vector<512x16xf32>
    %49 = arith.addf %43, %48 : vector<512x16xf32>
    %50 = vector.extract_strided_slice %3 {offsets = [1, 0, 0], sizes = [16, 32, 8], strides = [1, 1, 1]} : vector<17x33x8xbf16> to vector<16x32x8xbf16>
    %51 = vector.shape_cast %50 : vector<16x32x8xbf16> to vector<512x8xbf16>
    %c6 = arith.constant 6 : index
    %c0_30 = arith.constant 0 : index
    %c0_31 = arith.constant 0 : index
    %52 = vector.load %arg3[%c6, %c0_30, %c0_31] : memref<9x8x16xbf16, #tpu.memory_space<vmem>>, vector<1x8x16xbf16>
    %53 = vector.shape_cast %52 : vector<1x8x16xbf16> to vector<8x16xbf16>
    %cst_32 = arith.constant dense<0.000000e+00> : vector<512x16xf32>
    %54 = tpu.matmul %51, %53, %cst_32 {dimension_numbers = #tpu.dot_dimension_numbers<[1], [0], [0], [1], [0, 0, 1, 1], [], []>} : vector<512x8xbf16>, vector<8x16xbf16>, vector<512x16xf32> -> vector<512x16xf32>
    %55 = arith.addf %49, %54 : vector<512x16xf32>
    %56 = vector.extract_strided_slice %6 {offsets = [1, 0, 0], sizes = [16, 32, 8], strides = [1, 1, 1]} : vector<17x33x8xbf16> to vector<16x32x8xbf16>
    %57 = vector.shape_cast %56 : vector<16x32x8xbf16> to vector<512x8xbf16>
    %c7 = arith.constant 7 : index
    %c0_33 = arith.constant 0 : index
    %c0_34 = arith.constant 0 : index
    %58 = vector.load %arg3[%c7, %c0_33, %c0_34] : memref<9x8x16xbf16, #tpu.memory_space<vmem>>, vector<1x8x16xbf16>
    %59 = vector.shape_cast %58 : vector<1x8x16xbf16> to vector<8x16xbf16>
    %cst_35 = arith.constant dense<0.000000e+00> : vector<512x16xf32>
    %60 = tpu.matmul %57, %59, %cst_35 {dimension_numbers = #tpu.dot_dimension_numbers<[1], [0], [0], [1], [0, 0, 1, 1], [], []>} : vector<512x8xbf16>, vector<8x16xbf16>, vector<512x16xf32> -> vector<512x16xf32>
    %61 = arith.addf %55, %60 : vector<512x16xf32>
    %62 = vector.extract_strided_slice %3 {offsets = [1, 1, 0], sizes = [16, 32, 8], strides = [1, 1, 1]} : vector<17x33x8xbf16> to vector<16x32x8xbf16>
    %63 = vector.shape_cast %62 : vector<16x32x8xbf16> to vector<512x8xbf16>
    %c8 = arith.constant 8 : index
    %c0_36 = arith.constant 0 : index
    %c0_37 = arith.constant 0 : index
    %64 = vector.load %arg3[%c8, %c0_36, %c0_37] : memref<9x8x16xbf16, #tpu.memory_space<vmem>>, vector<1x8x16xbf16>
    %65 = vector.shape_cast %64 : vector<1x8x16xbf16> to vector<8x16xbf16>
    %cst_38 = arith.constant dense<0.000000e+00> : vector<512x16xf32>
    %66 = tpu.matmul %63, %65, %cst_38 {dimension_numbers = #tpu.dot_dimension_numbers<[1], [0], [0], [1], [0, 0, 1, 1], [], []>} : vector<512x8xbf16>, vector<8x16xbf16>, vector<512x16xf32> -> vector<512x16xf32>
    %67 = arith.addf %61, %66 : vector<512x16xf32>
    %c0_39 = arith.constant 0 : index
    %c0_40 = arith.constant 0 : index
    %68 = vector.load %arg4[%c0_39, %c0_40] : memref<1x16xf32, #tpu.memory_space<vmem>>, vector<1x16xf32>
    %69 = vector.broadcast %68 : vector<1x16xf32> to vector<512x16xf32>
    %70 = arith.addf %67, %69 : vector<512x16xf32>
    %cst_41 = arith.constant -3.000000e+01 : f32
    %cst_42 = arith.constant 3.000000e+01 : f32
    %71 = vector.broadcast %cst_41 : f32 to vector<512x16xf32>
    %72 = arith.maximumf %71, %70 : vector<512x16xf32>
    %73 = vector.broadcast %cst_42 : f32 to vector<512x16xf32>
    %74 = arith.minimumf %73, %72 : vector<512x16xf32>
    %cst_43 = arith.constant 0.000000e+00 : f32
    %75 = vector.broadcast %cst_43 : f32 to vector<512x16xf32>
    %76 = arith.subf %75, %74 : vector<512x16xf32>
    %77 = math.exp %76 : vector<512x16xf32>
    %cst_44 = arith.constant 1.000000e+00 : f32
    %78 = vector.broadcast %cst_44 : f32 to vector<512x16xf32>
    %79 = arith.addf %78, %77 : vector<512x16xf32>
    %cst_45 = arith.constant 1.000000e+00 : f32
    %80 = vector.broadcast %cst_45 : f32 to vector<512x16xf32>
    %81 = arith.divf %80, %79 : vector<512x16xf32>
    %82 = arith.mulf %70, %81 : vector<512x16xf32>
    %83 = vector.shape_cast %82 : vector<512x16xf32> to vector<1x16x32x16xf32>
    %84 = arith.truncf %83 : vector<1x16x32x16xf32> to vector<1x16x32x16xbf16>
    %c0_46 = arith.constant 0 : index
    %c0_47 = arith.constant 0 : index
    %c0_48 = arith.constant 0 : index
    %c0_49 = arith.constant 0 : index
    %85 = vector.load %arg5[%c0_46, %c0_47, %c0_48, %c0_49] : memref<1x16x32x16xbf16, #tpu.memory_space<vmem>>, vector<1x16x32x16xbf16>
    tpu.vector_store %arg5[%c0_46, %c0_47, %c0_48, %c0_49], %84 {strides = array<i32>} : memref<1x16x32x16xbf16, #tpu.memory_space<vmem>>, vector<1x16x32x16xbf16>,
    return
  }
  func.func @transform_0(%arg0: i32, %arg1: i32) -> (i32, i32, i32, i32) {
    %c0_i32 = arith.constant 0 : i32
    %c0_i32_0 = arith.constant 0 : i32
    %c0_i32_1 = arith.constant 0 : i32
    %c0_i32_2 = arith.constant 0 : i32
    return %arg0, %c0_i32, %c0_i32_0, %c0_i32_1 : i32, i32, i32, i32
  }
  func.func @transform_1(%arg0: i32, %arg1: i32) -> (i32, i32, i32) {
    %c0_i32 = arith.constant 0 : i32
    %c0_i32_0 = arith.constant 0 : i32
    %c0_i32_1 = arith.constant 0 : i32
    %c0_i32_2 = arith.constant 0 : i32
    return %c0_i32, %c0_i32_0, %c0_i32_1 : i32, i32, i32
  }
  func.func @transform_2(%arg0: i32, %arg1: i32) -> (i32, i32) {
    %c0_i32 = arith.constant 0 : i32
    %c0_i32_0 = arith.constant 0 : i32
    %c0_i32_1 = arith.constant 0 : i32
    return %c0_i32, %c0_i32_0 : i32, i32
  }
  func.func @transform_3(%arg0: i32, %arg1: i32) -> (i32, i32, i32, i32) {
    %c0_i32 = arith.constant 0 : i32
    %c0_i32_0 = arith.constant 0 : i32
    %c0_i32_1 = arith.constant 0 : i32
    return %arg0, %arg1, %c0_i32, %c0_i32_0 : i32, i32, i32, i32
  }
}

</mosaic_0001>

<bundles_post_ra>
// kernel: tpu_custom_call.1
= control target key start
LH: loop header
LB: loop body
LE: loop exit
PB: predicated region body
PF: predicated region fallthrough
CT: control target
= control target key end

     0   :  { %s9936_s12 = smov 0   ;;  %s9938_s13 = smov 0   ;;  %s13712_s0 = inlined_call_operand.vmem [shape: bf16[8,33,33,8], index: 0, kind: input, shape index: {}]   ;;  %s13713_s1 = inlined_call_operand.vmem [shape: bf16[9,8,16], index: 1, kind: input, shape index: {}]   ;;  %s13714_s2 = inlined_call_operand.vmem [shape: f32[1,16], index: 2, kind: input, shape index: {}]   ;;  %s13715_s3 = inlined_call_operand.vmem [shape: bf16[2,32,32,16], index: 3, kind: output, shape index: {}]  }
   0x1   :  { %s9940_s14 = smov 0   ;;  %s9942_s15 = smov 0  }
   0x2   :  { %s9944_s16 = smov 0  }
   0x3 LB: > { %s22_s17 = sadd.s32 1, %s9906_s14  ;;  %s25_s18 = sadd.s32 1, %s9910_s15  ;;  %s9914_s16 = sphi %s9944_s16, %s13_s16   ;;  %s9910_s15 = sphi %s9942_s15, %s14380_s15   ;;  %s9906_s14 = sphi %s9940_s14, %s14379_s14   ;;  %s9902_s13 = sphi %s9938_s13, %s14378_s13   ;;  %s9898_s12 = sphi %s9936_s12, %s14377_s12  }
   0x4   : > { %p23_p0 = scmp.ge.s32.totalorder %s22_s17, 2  ;;  %p7590_p1 = scmp.ge.s32.totalorder %s9914_s16, 1 }
   0x5   : > { %p153_p2 = scmp.lt.s32.totalorder %s9914_s16, 5 }
   0x6   : > { %s14382_s17 = smov (%p23_p0, %s22_s17), 0  ;;  %s14384_s18 = smov (!%p23_p0, %s25_s18), %s9910_s15 }
   0x7   : > { %p154_p3 = pnand %p7590_p1, %p153_p2  ;;  %p27_p4 = scmp.ge.s32.totalorder %s14384_s18, 2 }
   0x9   : > { %s14386_s18 = smov (%p27_p4, %s14384_s18), 0  ;;  %157 = sbr.rel (%p154_p3) target bundleno = 887 (0x377), region = 32 }
   0xe   : > { %v7815_v0 = vld [vmem:[%s13713_s1 + $0x4] sm:$0xf]  ;;  %vm772_vm0 = vcmask 1043456   ;;  %s7591_s21 = sshll.u32 %s9902_s13, 2  ;;  %v512_v2 = vld [vmem:[%s13713_s1] sm:$0xf] }
   0xf   : > { %9399 = vmatprep.subr.msk.bf16.mxu1 %vm772_vm0, %v7815_v0  ;;  %9398 = vmatprep.subr.msk.bf16.mxu0 %vm772_vm0, %v7815_v0  ;;  %v774_v1 = vsel %vm772_vm0, %v7815_v0, 0  ;;  %p184_p5 = scmp.lt.s32.totalorder %s7591_s21, 7  ;;  %v7944_v3 = vld [vmem:[%s13713_s1 + $0x8] sm:$0xf]  ;;  %s8440_s26 = smul.u32 320, %s9898_s12  ;;  %vm675_vm1 = vcmask 64512  }
  0x10   : > { %9397 = vmatpush3.bf16.msra.mxu1 %v774_v1  ;;  %8803 = vmatpush3.bf16.msra.mxu0 %v774_v1  ;;  %v2515_v7 = vsel %vm772_vm0, %v7944_v3, 0  ;;  %v9999_v8 = vld [vmem:[%s13713_s1 + $0xc] sm:$0xf]  ;;  %v1322_v10 = vsel %vm772_vm0, %v512_v2, 0  ;;  %v10007_v11 = vld [vmem:[%s13713_s1 + $0x10] sm:$0xf] }
  0x11   : > { %s14388_s21 = smov (!%p184_p5, %s7591_s21), 7  ;;  %9400 = vmatprep.subr.msk.bf16.mxu1 %vm772_vm0, %v512_v2  ;;  %9401 = vmatprep.subr.msk.bf16.mxu0 %vm772_vm0, %v7944_v3  ;;  %vm1613_vm2 = vsmask.f32 3328  ;;  %vm1614_vm3 = vsmask.f32 7440  ;;  %s7593_s5 = sshll.u32 %s9898_s12, 4 }
  0x12   : > { %s9408_s27 = smul.u32 660, %s14388_s21  ;;  %vm10105_vm4 = vmor %vm1613_vm2, %vm1614_vm3  ;;  %p191_p6 = scmp.lt.s32.totalorder %s9902_s13, 1  ;;  %vm7417_vm5 = vcmask 125952  }
  0x13   : > { %p13001_p7 = scmp.lt.s32.totalorder %s7593_s5, 31 }
  0x14   : > { %s188_s30 = scalar_lea.vmem %s13712_s0, %s9408_s27  ;;  %s14390_s13 = smov (!%p191_p6, %s9902_s13), 1 }
  0x15   : > { %s9989_s4 = scalar_lea.vmem %s188_s30, %s8440_s26  ;;  %s14392_s5 = smov (!%p13001_p7, %s7593_s5), 31 }
  0x16   : > { %v9449_v4 = vld [vmem:[%s9989_s4 + $0x294] sm:$0xff]   ;;  %v9451_v6 = vld [vmem:[%s9989_s4 + $0x29c] sm:$0xff]   ;;  %v9453_v12 = vld [vmem:[%s9989_s4 + $0x2a8] sm:$0xff]   ;;  %s7594_s12 = sshll.u32 %s14392_s5, 2  ;;  %s7595_s7 = sshll.u32 %s14390_s13, 7 }
  0x17   : > { %v9450_v5 = vld [vmem:[%s9989_s4 + $0x334] sm:$0xff]   ;;  %8804 = vmatprep.mubr.msk.bf16.mxu0 %vm675_vm1, %v9449_v4  ;;  %v9452_v9 = vld [vmem:[%s9989_s4 + $0x33c] sm:$0xff]   ;;  %v9454_v13 = vld [vmem:[%s9989_s4 + $0x348] sm:$0xff]   ;;  %v10089_v4 = vsel %vm772_vm0, %v9999_v8, 0  ;;  %s13040_s13 = sadd.s32 %s7595_s7, %s7594_s12 }
  0x18   : > { %8836 = vmatprep.mubr.msk.bf16.mxu1 %vm675_vm1, %v9450_v5  ;;  %8805 = vmatmul.mubr.msk.bf16.vlgmr.msra.gmra.mxu0 %vm675_vm1, %v9451_v6  ;;  %v9455_v14 = vld [vmem:[%s9989_s4 + $0x2b0] sm:$0xff]   ;;  %v9457_v16 = vld [vmem:[%s9989_s4 + $0x2bc] sm:$0xff]   ;;  %v9459_v18 = vld [vmem:[%s9989_s4 + $0x2c4] sm:$0xff]   ;;  %s7596_s8 = sshll.u32 %s13040_s13, 2 }
  0x19   : > { %8837 = vmatmul.mubr.msk.bf16.vlgmr.msra.gmra.mxu1 %vm675_vm1, %v9452_v9  ;;  %8935 = vmatpush3.bf16.msra.mxu0 %v2515_v7  ;;  %v9456_v15 = vld [vmem:[%s9989_s4 + $0x350] sm:$0xff]   ;;  %v9458_v17 = vld [vmem:[%s9989_s4 + $0x35c] sm:$0xff]   ;;  %v9460_v19 = vld [vmem:[%s9989_s4 + $0x364] sm:$0xff]   ;;  %s13069_s11 = scalar_lea.vmem %s13715_s3, %s7596_s8 }
  0x1a   : > { %8869 = vmatpush3.bf16.msra.mxu1 %v1322_v10  ;;  %8808 = vmatprep.mubr.msk.bf16.mxu0 %vm675_vm1, %v9453_v12  ;;  %v9461_v20 = vld [vmem:[%s9989_s4 + $0x2d0] sm:$0xff]   ;;  %v9463_v22 = vld [vmem:[%s9989_s4 + $0x2d8] sm:$0xff]   ;;  %v9465_v24 = vld [vmem:[%s9989_s4 + $0x2e4] sm:$0xff]   ;;  %v10098_v12 = vsel %vm772_vm0, %v10007_v11, 0 }
  0x1b   : > { %8840 = vmatprep.mubr.msk.bf16.mxu1 %vm675_vm1, %v9454_v13  ;;  %9402 = vmatprep.subr.msk.bf16.mxu1 %vm772_vm0, %v9999_v8  ;;  %v9462_v21 = vld [vmem:[%s9989_s4 + $0x370] sm:$0xff]   ;;  %v9464_v23 = vld [vmem:[%s9989_s4 + $0x378] sm:$0xff]   ;;  %v9466_v25 = vld [vmem:[%s9989_s4 + $0x384] sm:$0xff]  }
  0x1c   : > { %9403 = vmatprep.subr.msk.bf16.mxu0 %vm772_vm0, %v10007_v11  ;;  %v9467_v26 = vld [vmem:[%s9989_s4 + $0x2ec] sm:$0xff]   ;;  %v10046_v28 = vld [vmem:[%s9989_s4] sm:$0xf]  ;;  %v10049_v29 = vld [vmem:[%s9989_s4 + $0x4] sm:$0xf] }
  0x1d   : > { %v9468_v27 = vld [vmem:[%s9989_s4 + $0x38c] sm:$0xff]   ;;  %v10052_v30 = vld [vmem:[%s9989_s4 + $0x8] sm:$0xf]  ;;  %v9469_v31 = vld [vmem:[%s9989_s4 + $0x2f8] sm:$0xff]   ;;  %v1617_v32 = vshrl.u32 %v10046_v28, 16  ;;  %v1620_v33 = vshll.u32 %v10046_v28, 16  ;;  %v7880_v7 = vcombine.low %v10046_v28, %v10049_v29 }
  0x1e   : > { %v1626_v34 = vshll.u32 %v10049_v29, 16  ;;  %v10059_v35 = vld [vmem:[%s9989_s4 + $0xc] sm:$0xf]  ;;  %v9470_v36 = vld [vmem:[%s9989_s4 + $0x398] sm:$0xff]   ;;  %v1630_v37 = vshrl.u32 %v10049_v29, 16  ;;  %v1636_v38 = vshll.u32 %v10052_v30, 16 }
  0x1f   : > { %v1640_v39 = vshrl.u32 %v10052_v30, 16  ;;  %v1646_v40 = vshll.u32 %v10059_v35, 16  ;;  %v211_v41 = vld [vmem:[%s9989_s4 + $0x14] sm:$0xf]  ;;  %v1619_v42 = vrot.slane %v1617_v32, 4  ;;  %v1622_v43 = vrot.slane %v1620_v33, 5 }
  0x20   : > { %8809 = vmatmul.mubr.msk.bf16.gmra.mxu0 %vm675_vm1, %v9455_v14  ;;  %v1650_v44 = vshrl.u32 %v10059_v35, 16  ;;  %v10071_v45 = vrot.slane %v1626_v34, 5  ;;  %v1632_v46 = vrot.slane %v1630_v37, 4  ;;  %v10073_v47 = vrot.slane %v1636_v38, 5  ;;  %v210_v49 = vld [vmem:[%s9989_s4 + $0x10] sm:$0x1] }
  0x21   : > { %8841 = vmatmul.mubr.msk.bf16.gmra.mxu1 %vm675_vm1, %v9456_v15  ;;  %8812 = vmatprep.mubr.msk.bf16.mxu0 %vm675_vm1, %v9457_v16  ;;  %v1642_v48 = vrot.slane %v1640_v39, 4  ;;  %v10077_v50 = vrot.slane %v1646_v40, 5  ;;  %v212_v52 = vld [vmem:[%s9989_s4 + $0x18] sm:$0xf]  ;;  %v1661_v53 = vshrl.u32 %v211_v41, 16  ;;  %v1664_v54 = vshll.u32 %v211_v41, 16 }
  0x22   : > { %8844 = vmatprep.mubr.msk.bf16.mxu1 %vm675_vm1, %v9458_v17  ;;  %v1652_v51 = vrot.slane %v1650_v44, 4  ;;  %v9471_v55 = vld [vmem:[%s9989_s4 + $0x300] sm:$0xff]   ;;  %v1623_v56 = vor.u32 %v1622_v43, %v1619_v42  ;;  %v1656_v57 = vshll.u32 %v210_v49, 16  ;;  %v9473_v59 = vld [vmem:[%s9989_s4 + $0x30c] sm:$0xff]   ;;  %v1633_v60 = vor.u32 %v1632_v46, %v10071_v45  ;;  %v213_v5 = vld [vmem:[%s9989_s4 + $0x1c] sm:$0xf] }
  0x23   : > { %v9472_v58 = vld [vmem:[%s9989_s4 + $0x3a0] sm:$0xff]   ;;  %v1643_v61 = vor.u32 %v1642_v48, %v10073_v47  ;;  %v1670_v62 = vshll.u32 %v212_v52, 16  ;;  %v1674_v63 = vshrl.u32 %v212_v52, 16  ;;  %v9474_v0 = vld [vmem:[%s9989_s4 + $0x3ac] sm:$0xff]   ;;  %v1663_v2 = vrot.slane %v1661_v53, 4  ;;  %v9476_v34 = vld [vmem:[%s9989_s4 + $0x3b4] sm:$0xff]  }
  0x24   : > { %v1653_v1 = vor.u32 %v1652_v51, %v10077_v50  ;;  %v1666_v3 = vrot.slane %v1664_v54, 5  ;;  %v214_v6 = vld [vmem:[%s9989_s4 + $0x20] sm:$0xf]  ;;  %v1624_v9 = vrot.slane %v1623_v56, 4  ;;  %v1658_v10 = vrot.slane %v1656_v57, 5 }
  0x25   : > { %v216_v13 = vld [vmem:[%s9989_s4 + $0x28] sm:$0xf]  ;;  %v1634_v14 = vrot.slane %v1633_v60, 4  ;;  %v1644_v15 = vrot.slane %v1643_v61, 4  ;;  %v10109_v16 = vrot.slane %v1670_v62, 5  ;;  %v1676_v17 = vrot.slane %v1674_v63, 4 }
  0x26   : > { %v217_v11 = vld [vmem:[%s9989_s4 + $0x2c] sm:$0xf]  ;;  %v1708_v32 = vshll.u32 %v216_v13, 16  ;;  %v215_v40 = vld [vmem:[%s9989_s4 + $0x24] sm:$0x1] }
  0x27   : > { %v1714_v33 = vshll.u32 %v217_v11, 16  ;;  %v1639_v37 = vsel %vm10105_vm4, %v1634_v14, %v10073_v47  ;;  %v1649_v38 = vsel %vm10105_vm4, %v1644_v15, %v10077_v50  ;;  %v1677_v39 = vor.u32 %v1676_v17, %v10109_v16  ;;  %v9478_v43 = vld [vmem:[%s9989_s4 + $0x3c0] sm:$0xff]   ;;  %v10141_v48 = vld [vmem:[%s9989_s4 + $0x34] sm:$0xf]  ;;  %v10156_v61 = vld [vmem:[%s9989_s4 + $0x3c] sm:$0xf] }
  0x28   : > { %8813 = vmatmul.mubr.msk.bf16.gmra.mxu0 %vm675_vm1, %v9459_v18  ;;  %v1654_v18 = vrot.slane %v1653_v1, 4  ;;  %v1718_v42 = vshrl.u32 %v217_v11, 16  ;;  %v1710_v51 = vrot.slane %v1708_v32, 5  ;;  %v1700_v54 = vshll.u32 %v215_v40, 16  ;;  %v220_v15 = vld [vmem:[%s9989_s4 + $0x38] sm:$0x1] }
  0x29   : > { %8845 = vmatmul.mubr.msk.bf16.gmra.mxu1 %vm675_vm1, %v9460_v19  ;;  %8816 = vmatprep.mubr.msk.bf16.mxu0 %vm675_vm1, %v9461_v20  ;;  %v1667_v19 = vor.u32 %v1666_v3, %v1663_v2  ;;  %v1680_v20 = vshll.u32 %v213_v5, 16  ;;  %v1678_v57 = vrot.slane %v1677_v39, 4  ;;  %v1738_v60 = vshrl.u32 %v10141_v48, 16  ;;  %v222_v2 = vld [vmem:[%s9989_s4 + $0x40] sm:$0xf] }
  0x2a   : > { %8848 = vmatprep.mubr.msk.bf16.mxu1 %vm675_vm1, %v9462_v21  ;;  %v1690_v21 = vshll.u32 %v214_v6, 16  ;;  %v1720_v56 = vrot.slane %v1718_v42, 4  ;;  %v10161_v63 = vcombine.low %v216_v13, %v217_v11  ;;  %v1749_v17 = vshrl.u32 %v10156_v61, 16  ;;  %v223_v32 = vld [vmem:[%s9989_s4 + $0x44] sm:$0xf] }
  0x2b   : > { %v10134_v44 = vrot.slane %v1667_v19, 4  ;;  %v1752_v11 = vshll.u32 %v10156_v61, 16  ;;  %v1744_v39 = vshll.u32 %v220_v15, 16 }
  0x2c   : > { %v10138_v46 = vrot.slane %v1690_v21, 5  ;;  %13809 = vst [vmem:[#allocation4_spill] sm:$0xff] %v10161_v63  ;;  %v1758_v21 = vshll.u32 %v222_v2, 16 }
  0x2d   : > { %v1673_v3 = vsel %vm10105_vm4, %v10134_v44, %v10109_v16  ;;  %v1768_v44 = vshll.u32 %v223_v32, 16 }
  0x2e   : > { %v10186_v40 = vrot.slane %v1758_v21, 5 }
  0x30   : > { %8817 = vmatmul.mubr.msk.bf16.gmra.mxu0 %vm675_vm1, %v9463_v22  ;;  %v7881_v22 = vcombine.low %v10052_v30, %v10059_v35 }
  0x31   : > { %8849 = vmatmul.mubr.msk.bf16.gmra.mxu1 %vm675_vm1, %v9464_v23  ;;  %8820 = vmatprep.mubr.msk.bf16.mxu0 %vm675_vm1, %v9465_v24  ;;  %v1694_v23 = vshrl.u32 %v214_v6, 16  ;;  %v1684_v24 = vshrl.u32 %v213_v5, 16 }
  0x32   : > { %8852 = vmatprep.mubr.msk.bf16.mxu1 %vm675_vm1, %v9466_v25  ;;  %v1705_v25 = vshrl.u32 %v216_v13, 16  ;;  %v1702_v13 = vrot.slane %v1700_v54, 5 }
  0x33   : > { %v1696_v47 = vrot.slane %v1694_v23, 4  ;;  %v1686_v49 = vrot.slane %v1684_v24, 4  ;;  %v224_v23 = vld [vmem:[%s9989_s4 + $0x48] sm:$0xf] }
  0x34   : > { %v1707_v50 = vrot.slane %v1705_v25, 4  ;;  %v1778_v42 = vshll.u32 %v224_v23, 16 }
  0x38   : > { %8821 = vmatmul.mubr.msk.bf16.gmra.mxu0 %vm675_vm1, %v9467_v26  ;;  %v9475_v26 = vld [vmem:[%s9989_s4 + $0x314] sm:$0xff]  }
  0x39   : > { %8853 = vmatmul.mubr.msk.bf16.gmra.mxu1 %vm675_vm1, %v9468_v27  ;;  %8824 = vmatprep.mubr.msk.bf16.mxu0 %vm675_vm1, %v9469_v31  ;;  %v1629_v27 = vsel %vm10105_vm4, %v1624_v9, %v10071_v45  ;;  %v10119_v31 = vcombine.low %v211_v41, %v212_v52  ;;  %v1659_v41 = vsel %vm10105_vm4, %v1654_v18, %v1658_v10  ;;  %v10136_v45 = vrot.slane %v1680_v20, 5  ;;  %v10144_v52 = vld [vmem:[%s9989_s4 + $0x30] sm:$0xf]  ;;  %v9479_v10 = vld [vmem:[%s9989_s4 + $0x328] sm:$0xff]  }
  0x3a   : > { %8856 = vmatprep.mubr.msk.bf16.mxu1 %vm675_vm1, %v9470_v36  ;;  %v9477_v36 = vld [vmem:[%s9989_s4 + $0x320] sm:$0xff]   ;;  %v7945_v53 = vcombine.low %v1629_v27, %v1639_v37  ;;  %v10159_v62 = vcombine.low %v1649_v38, %v1659_v41  ;;  %v1728_v1 = vshrl.u32 %v10144_v52, 16  ;;  %v1711_v9 = vor.u32 %v1710_v51, %v1707_v50  ;;  %v9480_v18 = vld [vmem:[%s9989_s4 + $0x3c8] sm:$0xff]  }
  0x3b   : > { %13807 = vst [vmem:[#allocation2_spill] sm:$0xff] %v10119_v31  ;;  %v1683_v16 = vsel %vm10105_vm4, %v1678_v57, %v10136_v45  ;;  %v1740_v20 = vrot.slane %v1738_v60, 4  ;;  %v1754_v27 = vrot.slane %v1752_v11, 5  ;;  %v1762_v37 = vshrl.u32 %v222_v2, 16  ;;  %v226_v60 = vld [vmem:[%s9989_s4 + $0x50] sm:$0xf] }
  0x3c   : > { %v1730_v25 = vrot.slane %v1728_v1, 4  ;;  %v1772_v51 = vshrl.u32 %v223_v32, 16  ;;  %v10207_v28 = vcombine.low %v10144_v52, %v10141_v48  ;;  %v10212_v57 = vrot.slane %v1778_v42, 5  ;;  %v10228_v11 = vld [vmem:[%s9989_s4 + $0x58] sm:$0xf] }
  0x3d   : > { %v1764_v41 = vrot.slane %v1762_v37, 4  ;;  %v1746_v1 = vrot.slane %v1744_v39, 5  ;;  %v1793_v15 = vshrl.u32 %v226_v60, 16  ;;  %v10268_v37 = vld [vmem:[%s9989_s4 + $0x68] sm:$0xf] }
  0x3e   : > { %13811 = vst [vmem:[#allocation6_spill] sm:$0xff] %v10207_v28 }
  0x40   : > { %8825 = vmatmul.mubr.msk.bf16.gmra.mxu0 %vm675_vm1, %v9471_v55  ;;  %v10147_v55 = vrot.slane %v1714_v33, 5 }
  0x41   : > { %8857 = vmatmul.mubr.msk.bf16.gmra.mxu1 %vm675_vm1, %v9472_v58  ;;  %8828 = vmatprep.mubr.msk.bf16.mxu0 %vm675_vm1, %v9473_v59  ;;  %v10151_v58 = vcombine.low %v213_v5, %v214_v6  ;;  %v1734_v59 = vshll.u32 %v10141_v48, 16  ;;  %v1687_v5 = vor.u32 %v1686_v49, %v10136_v45  ;;  %v1697_v6 = vor.u32 %v1696_v47, %v10138_v46 }
  0x42   : > { %8860 = vmatprep.mubr.msk.bf16.mxu1 %vm675_vm1, %v9474_v0  ;;  %v1724_v0 = vshll.u32 %v10144_v52, 16  ;;  %v1721_v14 = vor.u32 %v1720_v56, %v10147_v55  ;;  %v1782_v45 = vshrl.u32 %v224_v23, 16  ;;  %v10195_v47 = vcombine.low %v1673_v3, %v1683_v16 }
  0x43   : > { %13808 = vst [vmem:[#allocation3_spill] sm:$0xff] %v10151_v58  ;;  %v10181_v19 = vrot.slane %v1734_v59, 5  ;;  %v1688_v33 = vrot.slane %v1687_v5, 4  ;;  %v225_v59 = vld [vmem:[%s9989_s4 + $0x4c] sm:$0x1]  ;;  %v1770_v3 = vrot.slane %v1768_v44, 5  ;;  %v10220_v52 = vcombine.low %v10156_v61, %v222_v2 }
  0x44   : > { %v1726_v24 = vrot.slane %v1724_v0, 5  ;;  %v1722_v38 = vrot.slane %v1721_v14, 4  ;;  %13810 = vst [vmem:[#allocation5_spill] sm:$0xff] %v10195_v47  ;;  %v227_v5 = vld [vmem:[%s9989_s4 + $0x54] sm:$0xf]  ;;  %v1788_v14 = vshll.u32 %v225_v59, 16  ;;  %v10240_v2 = vcombine.low %v223_v32, %v224_v23 }
  0x45   : > { %13813 = vst [vmem:[#allocation8_spill] sm:$0xff] %v10220_v52  ;;  %v1806_v21 = vshrl.u32 %v227_v5, 16  ;;  %v1795_v23 = vrot.slane %v1793_v15, 4 }
  0x46   : > { %v1731_v49 = vor.u32 %v1730_v25, %v1726_v24  ;;  %v1727_v29 = vsel %vm10105_vm4, %v1722_v38, %v1726_v24  ;;  %13815 = vst [vmem:[#allocation10_spill] sm:$0xff] %v10240_v2 }
  0x48   : > { %8829 = vmatmul.mubr.msk.bf16.gmra.mxu0 %vm675_vm1, %v9475_v26  ;;  %v1751_v26 = vrot.slane %v1749_v17, 4  ;;  %v1732_v48 = vrot.slane %v1731_v49, 4  ;;  %v1796_v17 = vshll.u32 %v226_v60, 16 }
  0x49   : > { %8861 = vmatmul.mubr.msk.bf16.gmra.mxu1 %vm675_vm1, %v9476_v34  ;;  %8832 = vmatprep.mubr.msk.bf16.mxu0 %vm675_vm1, %v9477_v36  ;;  %v1698_v34 = vrot.slane %v1697_v6, 4  ;;  %v1712_v36 = vrot.slane %v1711_v9, 4 }
  0x4a   : > { %8864 = vmatprep.mubr.msk.bf16.mxu1 %vm675_vm1, %v9478_v43  ;;  %v1741_v43 = vor.u32 %v1740_v20, %v10181_v19  ;;  %v1755_v50 = vor.u32 %v1754_v27, %v1751_v26  ;;  %v1802_v20 = vshll.u32 %v227_v5, 16  ;;  %v1737_v30 = vsel %vm10105_vm4, %v1732_v48, %v10181_v19  ;;  %v10260_v27 = vld [vmem:[%s9989_s4 + $0x64] sm:$0xf] }
  0x4b   : > { %v1703_v54 = vsel %vm10105_vm4, %v1698_v34, %v1702_v13  ;;  %v1717_v56 = vsel %vm10105_vm4, %v1712_v36, %v10147_v55  ;;  %v1774_v55 = vrot.slane %v1772_v51, 4  ;;  %v1798_v25 = vrot.slane %v1796_v17, 5  ;;  %v230_v36 = vld [vmem:[%s9989_s4 + $0x60] sm:$0x1] }
  0x4c   : > { %v1742_v0 = vrot.slane %v1741_v43, 4  ;;  %v1756_v9 = vrot.slane %v1755_v50, 4  ;;  %v10225_v13 = vcombine.low %v1717_v56, %v1727_v29  ;;  %v1816_v26 = vshrl.u32 %v10228_v11, 16  ;;  %v10275_v43 = vld [vmem:[%s9989_s4 + $0x6c] sm:$0xf] }
  0x4d   : > { %v1775_v24 = vor.u32 %v1774_v55, %v1770_v3  ;;  %v1808_v34 = vrot.slane %v1806_v21, 4  ;;  %v1840_v49 = vshll.u32 %v10260_v27, 16  ;;  %v10282_v50 = vld [vmem:[%s9989_s4 + $0x70] sm:$0xf]  ;;  %v1850_v56 = vshrl.u32 %v10268_v37, 16 }
  0x4e   : > { %13814 = vst [vmem:[#allocation9_spill] sm:$0xff] %v10225_v13  ;;  %v1747_v61 = vsel %vm10105_vm4, %v1742_v0, %v1746_v1  ;;  %v1761_v35 = vsel %vm10105_vm4, %v1756_v9, %v10186_v40  ;;  %v1818_v44 = vrot.slane %v1816_v26, 4  ;;  %v1856_v59 = vshll.u32 %v10275_v43, 16 }
  0x4f   : > { %v10270_v38 = vcombine.low %v1737_v30, %v1747_v61  ;;  %v1776_v39 = vrot.slane %v1775_v24, 4  ;;  %v1832_v1 = vshll.u32 %v230_v36, 16  ;;  %v1842_v48 = vrot.slane %v1840_v49, 5 }
  0x50   : > { %8833 = vmatmul.mubr.msk.bf16.gmra.mxu0 %vm675_vm1, %v9479_v10  ;;  %v10223_v10 = vld [vmem:[%s9989_s4 + $0x5c] sm:$0xf]  ;;  %v1870_v9 = vshrl.u32 %v10282_v50, 16  ;;  %v10319_v61 = vrot.slane %v1856_v59, 5 }
  0x51   : > { %8865 = vmatmul.mubr.msk.bf16.gmra.mxu1 %vm675_vm1, %v9480_v18  ;;  %8936 = vmatprep.mubr.msk.bf16.mxu0 %vm675_vm1, %v7945_v53  ;;  %v1693_v53 = vsel %vm10105_vm4, %v1688_v33, %v10138_v46  ;;  %v1784_v46 = vrot.slane %v1782_v45, 4  ;;  %v10264_v33 = vrot.slane %v1802_v20, 5  ;;  %13816 = vst [vmem:[#allocation11_spill] sm:$0xff] %v10270_v38  ;;  %v1837_v45 = vshrl.u32 %v10260_v27, 16 }
  0x52   : > { %8870 = vmatprep.mubr.msk.bf16.mxu1 %vm675_vm1, %v7880_v7  ;;  %v1765_v7 = vor.u32 %v1764_v41, %v10186_v40  ;;  %v10217_v6 = vcombine.low %v1693_v53, %v1703_v54  ;;  %v10286_v53 = vcombine.low %v226_v60, %v227_v5  ;;  %v1846_v54 = vshll.u32 %v10268_v37, 16 }
  0x53   : > { %v1785_v16 = vor.u32 %v1784_v46, %v10212_v57  ;;  %v1809_v46 = vor.u32 %v1808_v34, %v10264_v33  ;;  %v1781_v60 = vsel %vm10105_vm4, %v1776_v39, %v10212_v57  ;;  %v1839_v5 = vrot.slane %v1837_v45, 4 }
  0x54   : > { %13812 = vst [vmem:[#allocation7_spill] sm:$0xff] %v10217_v6  ;;  %v1766_v18 = vrot.slane %v1765_v7, 4  ;;  %13818 = vst [vmem:[#allocation13_spill] sm:$0xff] %v10286_v53  ;;  %v1799_v7 = vor.u32 %v1798_v25, %v1795_v23  ;;  %v10313_v15 = vrot.slane %v1846_v54, 5  ;;  %v1852_v57 = vrot.slane %v1850_v56, 4 }
  0x55   : > { %v1786_v32 = vrot.slane %v1785_v16, 4  ;;  %v1860_v16 = vshrl.u32 %v10275_v43, 16  ;;  %v1810_v21 = vrot.slane %v1809_v46, 4  ;;  %v1872_v24 = vrot.slane %v1870_v9, 4  ;;  %v239_v56 = vld [vmem:[%s9989_s4 + $0x84] sm:$0xf] }
  0x56   : > { %v1771_v19 = vsel %vm10105_vm4, %v1766_v18, %v1770_v3  ;;  %v1866_v3 = vshll.u32 %v10282_v50, 16  ;;  %v235_v18 = vld [vmem:[%s9989_s4 + $0x74] sm:$0x1]  ;;  %v1800_v20 = vrot.slane %v1799_v7, 4  ;;  %v1843_v25 = vor.u32 %v1842_v48, %v1839_v5 }
  0x57   : > { %v10284_v51 = vcombine.low %v1761_v35, %v1771_v19  ;;  %v1834_v35 = vrot.slane %v1832_v1, 5  ;;  %v1853_v19 = vor.u32 %v1852_v57, %v10313_v15  ;;  %v1876_v34 = vshll.u32 %v235_v18, 16 }
  0x58   : > { %8937 = vmatmul.mubr.msk.bf16.vlgmr.msra.gmra.mxu0 %vm675_vm1, %v10159_v62  ;;  %v1822_v62 = vshll.u32 %v10223_v10, 16  ;;  %v10315_v17 = vrot.slane %v1866_v3, 5  ;;  %v1844_v7 = vrot.slane %v1843_v25, 4  ;;  %v1910_v9 = vshll.u32 %v239_v56, 16  ;;  %v10403_v25 = vld [vmem:[%s9989_s4 + $0x98] sm:$0xf] }
  0x59   : > { %8871 = vmatmul.mubr.msk.bf16.vlgmr.msra.gmra.mxu1 %vm675_vm1, %v7881_v22  ;;  %9067 = vmatpush3.bf16.msra.mxu0 %v10098_v12  ;;  %v1812_v12 = vshll.u32 %v10228_v11, 16  ;;  %v1826_v22 = vshrl.u32 %v10223_v10, 16  ;;  %13817 = vst [vmem:[#allocation12_spill] sm:$0xff] %v10284_v51  ;;  %v1878_v1 = vrot.slane %v1876_v34, 5  ;;  %v10377_v57 = vcombine.low %v10275_v43, %v10282_v50  ;;  %v10390_v43 = vld [vmem:[%s9989_s4 + $0x94] sm:$0xf] }
  0x5a   : > { %9001 = vmatpush3.bf16.msra.mxu1 %v10089_v4  ;;  %8874 = vmatprep.mubr.msk.bf16.mxu1 %vm675_vm1, %v10119_v31  ;;  %v10256_v4 = vrot.slane %v1788_v14, 5  ;;  %v10272_v40 = vrot.slane %v1822_v62, 5  ;;  %v10311_v14 = vld [vmem:[%s9989_s4 + $0x78] sm:$0xf]  ;;  %v10322_v62 = vld [vmem:[%s9989_s4 + $0x7c] sm:$0xf]  ;;  %v1849_v50 = vsel %vm10105_vm4, %v1844_v7, %v10313_v15 }
  0x5b   : > { %8940 = vmatprep.mubr.msk.bf16.mxu0 %vm675_vm1, %v10195_v47  ;;  %v1828_v42 = vrot.slane %v1826_v22, 4  ;;  %v10277_v41 = vrot.slane %v1812_v12, 5  ;;  %v1862_v12 = vrot.slane %v1860_v16, 4  ;;  %v1881_v22 = vshrl.u32 %v10311_v14, 16  ;;  %13823 = vst [vmem:[#allocation18_spill] sm:$0xff] %v10377_v57 }
  0x5c   : > { %v1791_v29 = vsel %vm10105_vm4, %v1786_v32, %v10256_v4  ;;  %v10327_v4 = vcombine.low %v10228_v11, %v10223_v10  ;;  %v1884_v26 = vshll.u32 %v10311_v14, 16  ;;  %v1873_v32 = vor.u32 %v1872_v24, %v10315_v17  ;;  %v11197_v31 = vld [vmem:[%s9989_s4 + $0x5a0] sm:$0xf] }
  0x5d   : > { %v1829_v0 = vor.u32 %v1828_v42, %v10272_v40  ;;  %v1819_v55 = vor.u32 %v1818_v44, %v10277_v41  ;;  %v1890_v36 = vshll.u32 %v10322_v62, 16  ;;  %v10335_v39 = vcombine.low %v1781_v60, %v1791_v29  ;;  %v10343_v44 = vld [vmem:[%s9989_s4 + $0x80] sm:$0xf]  ;;  %v10363_v60 = vld [vmem:[%s9989_s4 + $0x8c] sm:$0xf] }
  0x5e   : > { %13819 = vst [vmem:[#allocation14_spill] sm:$0xff] %v10327_v4  ;;  %v1805_v10 = vsel %vm10105_vm4, %v1800_v20, %v10264_v33  ;;  %v1863_v11 = vor.u32 %v1862_v12, %v10319_v61  ;;  %v1894_v42 = vshrl.u32 %v10322_v62, 16  ;;  %v1815_v45 = vsel %vm10105_vm4, %v1810_v21, %v10277_v41  ;;  %v8139_v21 = vld [vmem:[%s13713_s1 + $0x14] sm:$0xf] }
  0x5f   : > { %v1830_v30 = vrot.slane %v1829_v0, 4  ;;  %v1820_v23 = vrot.slane %v1819_v55, 4  ;;  %13820 = vst [vmem:[#allocation15_spill] sm:$0xff] %v10335_v39  ;;  %v1883_v49 = vrot.slane %v1881_v22, 4  ;;  %v1886_v54 = vrot.slane %v1884_v26, 5  ;;  %9404 = vmatprep.subr.msk.bf16.mxu1 %vm772_vm0, %v8139_v21 }
  0x60   : > { %8941 = vmatmul.mubr.msk.bf16.gmra.mxu0 %vm675_vm1, %v10217_v6  ;;  %v10360_v46 = vrot.slane %v1890_v36, 5  ;;  %v1896_v59 = vrot.slane %v1894_v42, 4  ;;  %v1854_v41 = vrot.slane %v1853_v19, 4  ;;  %v1874_v0 = vrot.slane %v1873_v32, 4  ;;  %v10367_v55 = vld [vmem:[%s9989_s4 + $0x90] sm:$0xf] }
  0x61   : > { %8875 = vmatmul.mubr.msk.bf16.gmra.mxu1 %vm675_vm1, %v10151_v58  ;;  %8944 = vmatprep.mubr.msk.bf16.mxu0 %vm675_vm1, %v10225_v13  ;;  %v1835_v33 = vsel %vm10105_vm4, %v1830_v30, %v1834_v35  ;;  %v1825_v29 = vsel %vm10105_vm4, %v1820_v23, %v10272_v40  ;;  %v1900_v3 = vshll.u32 %v10343_v44, 16  ;;  %v10369_v5 = vcombine.low %v1805_v10, %v1815_v45  ;;  %v10731_v13 = vld [vmem:[%s9989_s4 + $0x10c] sm:$0xf] }
  0x62   : > { %8878 = vmatprep.mubr.msk.bf16.mxu1 %vm675_vm1, %v10161_v63  ;;  %v10373_v40 = vcombine.low %v10260_v27, %v10268_v37  ;;  %v1864_v48 = vrot.slane %v1863_v11, 4  ;;  %v1887_v18 = vor.u32 %v1886_v54, %v1883_v49  ;;  %v1914_v16 = vshrl.u32 %v239_v56, 16  ;;  %v240_v37 = vld [vmem:[%s9989_s4 + $0x88] sm:$0x1]  ;;  %v10426_v49 = vld [vmem:[%s9989_s4 + $0xa0] sm:$0xf] }
  0x63   : > { %13821 = vst [vmem:[#allocation16_spill] sm:$0xff] %v10369_v5  ;;  %v1904_v20 = vshrl.u32 %v10343_v44, 16  ;;  %v10383_v24 = vcombine.low %v1825_v29, %v1835_v33  ;;  %v1897_v27 = vor.u32 %v1896_v59, %v10360_v46  ;;  %v1925_v30 = vshrl.u32 %v10363_v60, 16 }
  0x64   : > { %13822 = vst [vmem:[#allocation17_spill] sm:$0xff] %v10373_v40  ;;  %v1928_v35 = vshll.u32 %v10363_v60, 16  ;;  %v1859_v12 = vsel %vm10105_vm4, %v1854_v41, %v10319_v61  ;;  %v1879_v22 = vsel %vm10105_vm4, %v1874_v0, %v1878_v1  ;;  %v1934_v23 = vshll.u32 %v10367_v55, 16 }
  0x65   : > { %13824 = vst [vmem:[#allocation19_spill] sm:$0xff] %v10383_v24  ;;  %v1869_v26 = vsel %vm10105_vm4, %v1864_v48, %v10315_v17  ;;  %v1902_v15 = vrot.slane %v1900_v3, 5  ;;  %v10410_v19 = vrot.slane %v1910_v9, 5  ;;  %v1938_v61 = vshrl.u32 %v10367_v55, 16  ;;  %v10420_v17 = vld [vmem:[%s13713_s1 + $0x18] sm:$0xf] }
  0x66   : > { %v1888_v32 = vrot.slane %v1887_v18, 4  ;;  %v1916_v34 = vrot.slane %v1914_v16, 4  ;;  %v1906_v36 = vrot.slane %v1904_v20, 4  ;;  %v1920_v10 = vshll.u32 %v240_v37, 16  ;;  %9405 = vmatprep.subr.msk.bf16.mxu0 %vm772_vm0, %v10420_v17  ;;  %v10445_v48 = vld [vmem:[%s9989_s4 + $0xa4] sm:$0xf] }
  0x67   : > { %v1898_v11 = vrot.slane %v1897_v27, 4  ;;  %v1927_v42 = vrot.slane %v1925_v30, 4  ;;  %v1930_v45 = vrot.slane %v1928_v35, 5  ;;  %v1944_v33 = vshll.u32 %v10390_v43, 16  ;;  %v245_v20 = vld [vmem:[%s9989_s4 + $0x9c] sm:$0x1] }
  0x68   : > { %8945 = vmatmul.mubr.msk.bf16.gmra.mxu0 %vm675_vm1, %v10270_v38  ;;  %v10430_v54 = vcombine.low %v1849_v50, %v1859_v12  ;;  %v10434_v29 = vcombine.low %v10311_v14, %v10322_v62  ;;  %v10436_v7 = vrot.slane %v1934_v23, 5  ;;  %v1940_v59 = vrot.slane %v1938_v61, 4  ;;  %v10466_v50 = vld [vmem:[%s9989_s4 + $0xac] sm:$0xf] }
  0x69   : > { %8879 = vmatmul.mubr.msk.bf16.gmra.mxu1 %vm675_vm1, %v10207_v28  ;;  %8948 = vmatprep.mubr.msk.bf16.mxu0 %vm675_vm1, %v10284_v51  ;;  %v10439_v41 = vcombine.low %v10343_v44, %v239_v56  ;;  %v1954_v0 = vshll.u32 %v10403_v25, 16  ;;  %v1958_v1 = vshrl.u32 %v10403_v25, 16  ;;  %v1948_v3 = vshrl.u32 %v10390_v43, 16 }
  0x6a   : > { %8882 = vmatprep.mubr.msk.bf16.mxu1 %vm675_vm1, %v10220_v52  ;;  %13825 = vst [vmem:[#allocation20_spill] sm:$0xff] %v10430_v54  ;;  %13826 = vst [vmem:[#allocation21_spill] sm:$0xff] %v10434_v29  ;;  %v10447_v9 = vcombine.low %v1869_v26, %v1879_v22  ;;  %v1893_v14 = vsel %vm10105_vm4, %v1888_v32, %v10360_v46  ;;  %v1907_v62 = vor.u32 %v1906_v36, %v1902_v15  ;;  %v10463_v46 = vld [vmem:[%s9989_s4 + $0xa8] sm:$0xf] }
  0x6b   : > { %13827 = vst [vmem:[#allocation22_spill] sm:$0xff] %v10439_v41  ;;  %v10452_v18 = vrot.slane %v1920_v10, 5  ;;  %v1903_v44 = vsel %vm10105_vm4, %v1898_v11, %v1902_v15  ;;  %v1917_v56 = vor.u32 %v1916_v34, %v10410_v19  ;;  %v1931_v16 = vor.u32 %v1930_v45, %v1927_v42 }
  0x6c   : > { %13828 = vst [vmem:[#allocation23_spill] sm:$0xff] %v10447_v9  ;;  %v1969_v21 = vshrl.u32 %v10426_v49, 16  ;;  %v1941_v27 = vor.u32 %v1940_v59, %v10436_v7  ;;  %v1946_v37 = vrot.slane %v1944_v33, 5  ;;  %v1972_v30 = vshll.u32 %v10426_v49, 16 }
  0x6d   : > { %v1978_v35 = vshll.u32 %v10445_v48, 16  ;;  %v10470_v12 = vrot.slane %v1954_v0, 5  ;;  %v1960_v22 = vrot.slane %v1958_v1, 4  ;;  %v1950_v23 = vrot.slane %v1948_v3, 4 }
  0x6e   : > { %v1982_v26 = vshrl.u32 %v10445_v48, 16  ;;  %v10477_v15 = vcombine.low %v1893_v14, %v1903_v44  ;;  %v1971_v61 = vrot.slane %v1969_v21, 4  ;;  %v1974_v32 = vrot.slane %v1972_v30, 5  ;;  %v251_v21 = vld [vmem:[%s9989_s4 + $0xb4] sm:$0xf] }
  0x6f   : > { %v10479_v34 = vrot.slane %v1978_v35, 5  ;;  %v1908_v36 = vrot.slane %v1907_v62, 4  ;;  %v1918_v10 = vrot.slane %v1917_v56, 4  ;;  %v1932_v11 = vrot.slane %v1931_v16, 4 }
  0x70   : > { %8949 = vmatmul.mubr.msk.bf16.gmra.mxu0 %vm675_vm1, %v10335_v39  ;;  %13829 = vst [vmem:[#allocation24_spill] sm:$0xff] %v10477_v15  ;;  %v1984_v42 = vrot.slane %v1982_v26, 4  ;;  %v1942_v45 = vrot.slane %v1941_v27, 4  ;;  %v1964_v33 = vshll.u32 %v245_v20, 16  ;;  %v1998_v59 = vshll.u32 %v10466_v50, 16 }
  0x71   : > { %8883 = vmatmul.mubr.msk.bf16.gmra.mxu1 %vm675_vm1, %v10240_v2  ;;  %8952 = vmatprep.mubr.msk.bf16.mxu0 %vm675_vm1, %v10369_v5  ;;  %v2002_v0 = vshrl.u32 %v10466_v50, 16  ;;  %v1951_v1 = vor.u32 %v1950_v23, %v1946_v37  ;;  %v1961_v3 = vor.u32 %v1960_v22, %v10470_v12  ;;  %v1988_v14 = vshll.u32 %v10463_v46, 16  ;;  %v250_v23 = vld [vmem:[%s9989_s4 + $0xb0] sm:$0x1]  ;;  %v252_v26 = vld [vmem:[%s9989_s4 + $0xb8] sm:$0xf] }
  0x72   : > { %8886 = vmatprep.mubr.msk.bf16.mxu1 %vm675_vm1, %v10286_v53  ;;  %v1992_v44 = vshrl.u32 %v10463_v46, 16  ;;  %v1975_v62 = vor.u32 %v1974_v32, %v1971_v61  ;;  %v1985_v56 = vor.u32 %v1984_v42, %v10479_v34  ;;  %v10490_v16 = vrot.slane %v1998_v59, 5  ;;  %v9526_v2 = vld [vmem:[%s9989_s4 + $0x7f8] sm:$0xff]  }
  0x73   : > { %v2004_v20 = vrot.slane %v2002_v0, 4  ;;  %v1913_v27 = vsel %vm10105_vm4, %v1908_v36, %v10410_v19  ;;  %v1923_v30 = vsel %vm10105_vm4, %v1918_v10, %v10452_v18  ;;  %v10500_v35 = vcombine.low %v10363_v60, %v10367_v55 }
  0x74   : > { %v1937_v22 = vsel %vm10105_vm4, %v1932_v11, %v10436_v7  ;;  %v1947_v61 = vsel %vm10105_vm4, %v1942_v45, %v1946_v37  ;;  %v1966_v32 = vrot.slane %v1964_v33, 5  ;;  %v2013_v42 = vshrl.u32 %v251_v21, 16 }
  0x75   : > { %13830 = vst [vmem:[#allocation25_spill] sm:$0xff] %v10500_v35  ;;  %v2016_v19 = vshll.u32 %v251_v21, 16  ;;  %v1952_v18 = vrot.slane %v1951_v1, 4  ;;  %v1962_v36 = vrot.slane %v1961_v3, 4  ;;  %v1990_v10 = vrot.slane %v1988_v14, 5 }
  0x76   : > { %v1994_v60 = vrot.slane %v1992_v44, 4  ;;  %v1976_v55 = vrot.slane %v1975_v62, 4  ;;  %v1986_v7 = vrot.slane %v1985_v56, 4  ;;  %v2005_v37 = vor.u32 %v2004_v20, %v10490_v16  ;;  %v254_v62 = vld [vmem:[%s9989_s4 + $0xc0] sm:$0xf] }
  0x77   : > { %v2008_v11 = vshll.u32 %v250_v23, 16  ;;  %v10518_v45 = vcombine.low %v1913_v27, %v1923_v30  ;;  %v10522_v33 = vcombine.low %v10390_v43, %v10403_v25  ;;  %v2022_v59 = vshll.u32 %v252_v26, 16  ;;  %v253_v27 = vld [vmem:[%s9989_s4 + $0xbc] sm:$0xf]  ;;  %v10554_v23 = vld [vmem:[%s9989_s4 + $0xcc] sm:$0xf] }
  0x78   : > { %8953 = vmatmul.mubr.msk.bf16.gmra.mxu0 %vm675_vm1, %v10383_v24  ;;  %v2026_v0 = vshrl.u32 %v252_v26, 16  ;;  %v10524_v1 = vcombine.low %v1937_v22, %v1947_v61  ;;  %v10528_v3 = vcombine.low %v10426_v49, %v10445_v48  ;;  %v2015_v14 = vrot.slane %v2013_v42, 4  ;;  %v10551_v22 = vld [vmem:[%s9989_s4 + $0xc8] sm:$0xf] }
  0x79   : > { %8887 = vmatmul.mubr.msk.bf16.gmra.mxu1 %vm675_vm1, %v10327_v4  ;;  %8956 = vmatprep.mubr.msk.bf16.mxu0 %vm675_vm1, %v10430_v54  ;;  %13831 = vst [vmem:[#allocation26_spill] sm:$0xff] %v10518_v45  ;;  %13832 = vst [vmem:[#allocation27_spill] sm:$0xff] %v10522_v33  ;;  %v2018_v44 = vrot.slane %v2016_v19, 5  ;;  %v1957_v56 = vsel %vm10105_vm4, %v1952_v18, %v10470_v12  ;;  %v1967_v43 = vsel %vm10105_vm4, %v1962_v36, %v1966_v32  ;;  %v255_v18 = vld [vmem:[%s9989_s4 + $0xc4] sm:$0x1] }
  0x7a   : > { %8890 = vmatprep.mubr.msk.bf16.mxu1 %vm675_vm1, %v10373_v40  ;;  %13833 = vst [vmem:[#allocation28_spill] sm:$0xff] %v10524_v1  ;;  %13834 = vst [vmem:[#allocation29_spill] sm:$0xff] %v10528_v3  ;;  %v10538_v25 = vcombine.low %v10463_v46, %v10466_v50  ;;  %v1995_v20 = vor.u32 %v1994_v60, %v1990_v10  ;;  %v1981_v49 = vsel %vm10105_vm4, %v1976_v55, %v10479_v34  ;;  %v10643_v24 = vld [vmem:[%s9989_s4 + $0xe8] sm:$0xf]  ;;  %v11111_v40 = vld [vmem:[%s9989_s4 + $0x578] sm:$0xf] }
  0x7b   : > { %v1991_v48 = vsel %vm10105_vm4, %v1986_v7, %v1990_v10  ;;  %v10546_v30 = vrot.slane %v2005_v37, 4  ;;  %v10548_v12 = vrot.slane %v2008_v11, 5  ;;  %v10556_v46 = vrot.slane %v2022_v59, 5  ;;  %v10569_v37 = vld [vmem:[%s9989_s4 + $0xd0] sm:$0xf] }
  0x7c   : > { %13835 = vst [vmem:[#allocation30_spill] sm:$0xff] %v10538_v25  ;;  %v2028_v50 = vrot.slane %v2026_v0, 4  ;;  %v2042_v61 = vshll.u32 %v254_v62, 16  ;;  %v2046_v32 = vshrl.u32 %v254_v62, 16  ;;  %v10558_v42 = vcombine.low %v1957_v56, %v1967_v43  ;;  %v10583_v0 = vld [vmem:[%s9989_s4 + $0xd4] sm:$0xf] }
  0x7d   : > { %v2019_v34 = vor.u32 %v2018_v44, %v2015_v14  ;;  %v2032_v19 = vshll.u32 %v253_v27, 16  ;;  %v2036_v36 = vshrl.u32 %v253_v27, 16  ;;  %v10563_v10 = vcombine.low %v1981_v49, %v1991_v48 }
  0x7e   : > { %13836 = vst [vmem:[#allocation31_spill] sm:$0xff] %v10558_v42  ;;  %v1996_v60 = vrot.slane %v1995_v20, 4  ;;  %v10565_v55 = vcombine.low %v251_v21, %v252_v26  ;;  %v2057_v7 = vshrl.u32 %v10551_v22, 16  ;;  %v2011_v11 = vsel %vm10105_vm4, %v10546_v30, %v10548_v12 }
  0x7f   : > { %13837 = vst [vmem:[#allocation32_spill] sm:$0xff] %v10563_v10  ;;  %v2060_v59 = vshll.u32 %v10551_v22, 16  ;;  %v2066_v21 = vshll.u32 %v10554_v23, 16  ;;  %v2070_v26 = vshrl.u32 %v10554_v23, 16  ;;  %v2029_v14 = vor.u32 %v2028_v50, %v10556_v46  ;;  %v10598_v50 = vld [vmem:[%s9989_s4 + $0xdc] sm:$0xf] }
  0x80   : > { %8957 = vmatmul.mubr.msk.bf16.gmra.mxu0 %vm675_vm1, %v10447_v9  ;;  %13838 = vst [vmem:[#allocation33_spill] sm:$0xff] %v10565_v55  ;;  %v10588_v44 = vrot.slane %v2042_v61, 5  ;;  %v2048_v56 = vrot.slane %v2046_v32, 4  ;;  %v2052_v43 = vshll.u32 %v255_v18, 16  ;;  %v2020_v20 = vrot.slane %v2019_v34, 4 }
  0x81   : > { %8891 = vmatmul.mubr.msk.bf16.gmra.mxu1 %vm675_vm1, %v10377_v57  ;;  %8960 = vmatprep.mubr.msk.bf16.mxu0 %vm675_vm1, %v10477_v15  ;;  %v2034_v49 = vrot.slane %v2032_v19, 5  ;;  %v2038_v48 = vrot.slane %v2036_v36, 4  ;;  %v2076_v30 = vshll.u32 %v10569_v37, 16  ;;  %v2001_v12 = vsel %vm10105_vm4, %v1996_v60, %v10490_v16 }
  0x82   : > { %8894 = vmatprep.mubr.msk.bf16.mxu1 %vm675_vm1, %v10434_v29  ;;  %v2086_v15 = vshll.u32 %v10583_v0, 16  ;;  %v2062_v61 = vrot.slane %v2060_v59, 5  ;;  %v10600_v32 = vrot.slane %v2066_v21, 5  ;;  %v2072_v34 = vrot.slane %v2070_v26, 4  ;;  %v260_v26 = vld [vmem:[%s9989_s4 + $0xd8] sm:$0x1] }
  0x83   : > { %v2090_v19 = vshrl.u32 %v10583_v0, 16  ;;  %v2030_v18 = vrot.slane %v2029_v14, 4  ;;  %v2049_v36 = vor.u32 %v2048_v56, %v10588_v44  ;;  %v10604_v9 = vrot.slane %v2052_v43, 5 }
  0x84   : > { %v2080_v16 = vshrl.u32 %v10569_v37, 16  ;;  %v2039_v60 = vor.u32 %v2038_v48, %v2034_v49  ;;  %v10615_v59 = vrot.slane %v2086_v15, 5  ;;  %v2101_v56 = vshrl.u32 %v10598_v50, 16 }
  0x85   : > { %v2092_v21 = vrot.slane %v2090_v19, 4  ;;  %v2104_v43 = vshll.u32 %v10598_v50, 16  ;;  %v2073_v15 = vor.u32 %v2072_v34, %v10600_v32  ;;  %v2035_v19 = vsel %vm10105_vm4, %v2030_v18, %v2034_v49 }
  0x86   : > { %v2082_v14 = vrot.slane %v2080_v16, 4  ;;  %v2050_v16 = vrot.slane %v2049_v36, 4  ;;  %v2096_v34 = vshll.u32 %v260_v26, 16 }
  0x87   : > { %v2106_v54 = vrot.slane %v2104_v43, 5  ;;  %v2093_v39 = vor.u32 %v2092_v21, %v10615_v59  ;;  %v2130_v21 = vshll.u32 %v10643_v24, 16 }
  0x88   : > { %8961 = vmatmul.mubr.msk.bf16.gmra.mxu0 %vm675_vm1, %v10518_v45  ;;  %v2059_v45 = vrot.slane %v2057_v7, 4  ;;  %v10613_v7 = vrot.slane %v2076_v30, 5  ;;  %v10630_v30 = vld [vmem:[%s9989_s4 + $0xe4] sm:$0xf]  ;;  %v2098_v43 = vrot.slane %v2096_v34, 5 }
  0x89   : > { %8895 = vmatmul.mubr.msk.bf16.gmra.mxu1 %vm675_vm1, %v10439_v41  ;;  %8964 = vmatprep.mubr.msk.bf16.mxu0 %vm675_vm1, %v10524_v1  ;;  %v10594_v1 = vcombine.low %v253_v27, %v254_v62  ;;  %v10608_v62 = vld [vmem:[%s9989_s4 + $0xe0] sm:$0xf]  ;;  %v2025_v27 = vsel %vm10105_vm4, %v2020_v20, %v10556_v46 }
  0x8a   : > { %8898 = vmatprep.mubr.msk.bf16.mxu1 %vm675_vm1, %v10500_v35  ;;  %v2063_v46 = vor.u32 %v2062_v61, %v2059_v45  ;;  %v2110_v20 = vshll.u32 %v10608_v62, 16  ;;  %v2114_v48 = vshrl.u32 %v10608_v62, 16  ;;  %v2040_v45 = vrot.slane %v2039_v60, 4 }
  0x8b   : > { %13839 = vst [vmem:[#allocation34_spill] sm:$0xff] %v10594_v1  ;;  %v10640_v61 = vcombine.low %v10551_v22, %v10554_v23  ;;  %v2083_v5 = vor.u32 %v2082_v14, %v10613_v7  ;;  %v10649_v36 = vcombine.low %v2025_v27, %v2035_v19  ;;  %v2120_v60 = vshll.u32 %v10630_v30, 16  ;;  %v10653_v22 = vld [vmem:[%s9989_s4 + $0xf0] sm:$0xf] }
  0x8c   : > { %v10647_v49 = vrot.slane %v2110_v20, 5  ;;  %v2116_v18 = vrot.slane %v2114_v48, 4  ;;  %v2055_v23 = vsel %vm10105_vm4, %v2050_v16, %v10604_v9  ;;  %v2134_v14 = vshrl.u32 %v10643_v24, 16  ;;  %v10676_v20 = vld [vmem:[%s9989_s4 + $0xf8] sm:$0xf] }
  0x8d   : > { %13841 = vst [vmem:[#allocation36_spill] sm:$0xff] %v10640_v61  ;;  %13842 = vst [vmem:[#allocation37_spill] sm:$0xff] %v10649_v36  ;;  %v2045_v27 = vsel %vm10105_vm4, %v2040_v45, %v10588_v44  ;;  %v2094_v9 = vrot.slane %v2093_v39, 4  ;;  %v2145_v44 = vshrl.u32 %v10653_v22, 16  ;;  %v2148_v48 = vshll.u32 %v10653_v22, 16 }
  0x8e   : > { %v10692_v16 = vrot.slane %v2130_v21, 5  ;;  %v2136_v45 = vrot.slane %v2134_v14, 4 }
  0x8f   : > { %v2099_v14 = vsel %vm10105_vm4, %v2094_v9, %v2098_v43 }
  0x90   : > { %8965 = vmatmul.mubr.msk.bf16.gmra.mxu0 %vm675_vm1, %v10558_v42  ;;  %v2103_v42 = vrot.slane %v2101_v56, 4  ;;  %v10665_v56 = vcombine.low %v10569_v37, %v10583_v0  ;;  %v265_v0 = vld [vmem:[%s9989_s4 + $0xec] sm:$0x1] }
  0x91   : > { %8899 = vmatmul.mubr.msk.bf16.gmra.mxu1 %vm675_vm1, %v10522_v33  ;;  %8968 = vmatprep.mubr.msk.bf16.mxu0 %vm675_vm1, %v10563_v10  ;;  %v10636_v10 = vcombine.low %v2001_v12, %v2011_v11  ;;  %v2064_v11 = vrot.slane %v2063_v46, 4  ;;  %v2074_v12 = vrot.slane %v2073_v15, 4  ;;  %v2124_v46 = vshrl.u32 %v10630_v30, 16  ;;  %v10669_v15 = vld [vmem:[%s9989_s4 + $0xf4] sm:$0xf] }
  0x92   : > { %8902 = vmatprep.mubr.msk.bf16.mxu1 %vm675_vm1, %v10528_v3  ;;  %v2107_v26 = vor.u32 %v2106_v54, %v2103_v42  ;;  %13843 = vst [vmem:[#allocation38_spill] sm:$0xff] %v10665_v56  ;;  %v2084_v54 = vrot.slane %v2083_v5, 4  ;;  %v2117_v42 = vor.u32 %v2116_v18, %v10647_v49  ;;  %v2122_v5 = vrot.slane %v2120_v60, 5  ;;  %v10696_v18 = vld [vmem:[%s9989_s4 + $0xfc] sm:$0xf] }
  0x93   : > { %13840 = vst [vmem:[#allocation35_spill] sm:$0xff] %v10636_v10  ;;  %v2069_v37 = vsel %vm10105_vm4, %v2064_v11, %v10600_v32  ;;  %v2079_v39 = vsel %vm10105_vm4, %v2074_v12, %v10613_v7  ;;  %v2154_v34 = vshll.u32 %v10669_v15, 16  ;;  %v2126_v32 = vrot.slane %v2124_v46, 4 }
  0x94   : > { %v2108_v19 = vrot.slane %v2107_v26, 4  ;;  %v2147_v11 = vrot.slane %v2145_v44, 4  ;;  %v2158_v7 = vshrl.u32 %v10669_v15, 16  ;;  %v10699_v12 = vcombine.low %v2045_v27, %v2055_v23  ;;  %v10710_v44 = vld [vmem:[%s9989_s4 + $0x104] sm:$0xf] }
  0x95   : > { %v2118_v60 = vrot.slane %v2117_v42, 4  ;;  %v2164_v26 = vshll.u32 %v10676_v20, 16  ;;  %v10704_v21 = vcombine.low %v2069_v37, %v2079_v39  ;;  %v2174_v46 = vshll.u32 %v10696_v18, 16 }
  0x96   : > { %13844 = vst [vmem:[#allocation39_spill] sm:$0xff] %v10699_v12  ;;  %v2160_v51 = vrot.slane %v2158_v7, 4  ;;  %v2089_v23 = vsel %vm10105_vm4, %v2084_v54, %v10615_v59  ;;  %v2140_v27 = vshll.u32 %v265_v0, 16  ;;  %v2178_v42 = vshrl.u32 %v10696_v18, 16  ;;  %v270_v7 = vld [vmem:[%s9989_s4 + $0x100] sm:$0x1] }
  0x97   : > { %13845 = vst [vmem:[#allocation40_spill] sm:$0xff] %v10704_v21  ;;  %v2168_v37 = vshrl.u32 %v10676_v20, 16  ;;  %v2113_v43 = vsel %vm10105_vm4, %v2108_v19, %v10647_v49  ;;  %v2127_v9 = vor.u32 %v2126_v32, %v2122_v5  ;;  %v2137_v39 = vor.u32 %v2136_v45, %v10692_v16  ;;  %v10742_v45 = vld [vmem:[%s9989_s4 + $0x110] sm:$0xf] }
  0x98   : > { %8969 = vmatmul.mubr.msk.bf16.gmra.mxu0 %vm675_vm1, %v10636_v10  ;;  %v10701_v10 = vrot.slane %v2154_v34, 5  ;;  %v10722_v34 = vld [vmem:[%s9989_s4 + $0x108] sm:$0xf]  ;;  %v2123_v59 = vsel %vm10105_vm4, %v2118_v60, %v2122_v5  ;;  %v2166_v0 = vrot.slane %v2164_v26, 5  ;;  %v10737_v49 = vrot.slane %v2174_v46, 5 }
  0x99   : > { %8903 = vmatmul.mubr.msk.bf16.gmra.mxu1 %vm675_vm1, %v10538_v25  ;;  %8972 = vmatprep.mubr.msk.bf16.mxu0 %vm675_vm1, %v10649_v36  ;;  %v2150_v36 = vrot.slane %v2148_v48, 5  ;;  %v2170_v38 = vrot.slane %v2168_v37, 4  ;;  %v2189_v19 = vshrl.u32 %v10710_v44, 16  ;;  %v2192_v5 = vshll.u32 %v10710_v44, 16 }
  0x9a   : > { %8906 = vmatprep.mubr.msk.bf16.mxu1 %vm675_vm1, %v10565_v55  ;;  %v2161_v54 = vor.u32 %v2160_v51, %v10701_v10  ;;  %v10746_v51 = vcombine.low %v2089_v23, %v2099_v14  ;;  %v10750_v32 = vcombine.low %v10598_v50, %v10608_v62  ;;  %v2198_v60 = vshll.u32 %v10722_v34, 16 }
  0x9b   : > { %v2151_v48 = vor.u32 %v2150_v36, %v2147_v11  ;;  %v2180_v36 = vrot.slane %v2178_v42, 4  ;;  %v2142_v11 = vrot.slane %v2140_v27, 5  ;;  %v2128_v26 = vrot.slane %v2127_v9, 4 }
  0x9c   : > { %13846 = vst [vmem:[#allocation41_spill] sm:$0xff] %v10746_v51  ;;  %13847 = vst [vmem:[#allocation42_spill] sm:$0xff] %v10750_v32  ;;  %v2138_v46 = vrot.slane %v2137_v39, 4  ;;  %v2202_v37 = vshrl.u32 %v10722_v34, 16  ;;  %v2171_v6 = vor.u32 %v2170_v38, %v2166_v0  ;;  %v2184_v14 = vshll.u32 %v270_v7, 16 }
  0x9d   : > { %v2152_v42 = vrot.slane %v2151_v48, 4  ;;  %v2181_v23 = vor.u32 %v2180_v36, %v10737_v49  ;;  %v2191_v50 = vrot.slane %v2189_v19, 4  ;;  %v2194_v62 = vrot.slane %v2192_v5, 5  ;;  %v275_v7 = vld [vmem:[%s9989_s4 + $0x114] sm:$0x1] }
  0x9e   : > { %v2208_v27 = vshll.u32 %v10731_v13, 16  ;;  %v10758_v47 = vrot.slane %v2198_v60, 5  ;;  %v2204_v9 = vrot.slane %v2202_v37, 4  ;;  %v2218_v39 = vshll.u32 %v10742_v45, 16  ;;  %v10776_v19 = vld [vmem:[%s9989_s4 + $0x11c] sm:$0xf] }
  0x9f   : > { %v2222_v48 = vshrl.u32 %v10742_v45, 16  ;;  %v2133_v38 = vsel %vm10105_vm4, %v2128_v26, %v10692_v16  ;;  %v2212_v36 = vshrl.u32 %v10731_v13, 16  ;;  %v2186_v60 = vrot.slane %v2184_v14, 5 }
  0xa0   : > { %8973 = vmatmul.mubr.msk.bf16.gmra.mxu0 %vm675_vm1, %v10699_v12  ;;  %v2162_v12 = vrot.slane %v2161_v54, 4  ;;  %v2157_v54 = vsel %vm10105_vm4, %v2152_v42, %v10701_v10  ;;  %v10782_v16 = vrot.slane %v2218_v39, 5  ;;  %v2172_v10 = vrot.slane %v2171_v6, 4 }
  0xa1   : > { %8907 = vmatmul.mubr.msk.bf16.gmra.mxu1 %vm675_vm1, %v10594_v1  ;;  %8976 = vmatprep.mubr.msk.bf16.mxu0 %vm675_vm1, %v10704_v21  ;;  %v10754_v21 = vcombine.low %v2113_v43, %v2123_v59  ;;  %v10763_v43 = vld [vmem:[%s9989_s4 + $0x118] sm:$0xf]  ;;  %v2143_v59 = vsel %vm10105_vm4, %v2138_v46, %v2142_v11  ;;  %v2224_v26 = vrot.slane %v2222_v48, 4  ;;  %v2182_v11 = vrot.slane %v2181_v23, 4  ;;  %v10805_v48 = vld [vmem:[%s9989_s4 + $0x120] sm:$0xf] }
  0xa2   : > { %8910 = vmatprep.mubr.msk.bf16.mxu1 %vm675_vm1, %v10640_v61  ;;  %v2167_v5 = vsel %vm10105_vm4, %v2162_v12, %v2166_v0  ;;  %v2195_v46 = vor.u32 %v2194_v62, %v2191_v50  ;;  %v2233_v42 = vshrl.u32 %v10763_v43, 16  ;;  %v2205_v12 = vor.u32 %v2204_v9, %v10758_v47  ;;  %v10862_v61 = vld [vmem:[%s9989_s4 + $0x138] sm:$0xf] }
  0xa3   : > { %13848 = vst [vmem:[#allocation43_spill] sm:$0xff] %v10754_v21  ;;  %v2210_v0 = vrot.slane %v2208_v27, 5  ;;  %v2236_v37 = vshll.u32 %v10763_v43, 16  ;;  %v2242_v14 = vshll.u32 %v10776_v19, 16  ;;  %v10796_v39 = vcombine.low %v10630_v30, %v10643_v24  ;;  %v10810_v30 = vld [vmem:[%s9989_s4 + $0x124] sm:$0xf] }
  0xa4   : > { %v2214_v6 = vrot.slane %v2212_v36, 4  ;;  %v2246_v23 = vshrl.u32 %v10776_v19, 16  ;;  %v10799_v50 = vcombine.low %v2133_v38, %v2143_v59  ;;  %v10801_v62 = vcombine.low %v2157_v54, %v2167_v5 }
  0xa5   : > { %13849 = vst [vmem:[#allocation44_spill] sm:$0xff] %v10796_v39  ;;  %v2225_v9 = vor.u32 %v2224_v26, %v10782_v16  ;;  %v2228_v27 = vshll.u32 %v275_v7, 16  ;;  %v10814_v38 = vcombine.low %v10653_v22, %v10669_v15  ;;  %v2196_v59 = vrot.slane %v2195_v46, 4  ;;  %v10822_v26 = vld [vmem:[%s9989_s4 + $0x12c] sm:$0xf] }
  0xa6   : > { %13850 = vst [vmem:[#allocation45_spill] sm:$0xff] %v10799_v50  ;;  %13851 = vst [vmem:[#allocation46_spill] sm:$0xff] %v10801_v62  ;;  %v2248_v24 = vrot.slane %v2246_v23, 4  ;;  %v2206_v54 = vrot.slane %v2205_v12, 4  ;;  %v2177_v36 = vsel %vm10105_vm4, %v2172_v10, %v10737_v49  ;;  %v2187_v7 = vsel %vm10105_vm4, %v2182_v11, %v2186_v60 }
  0xa7   : > { %13852 = vst [vmem:[#allocation47_spill] sm:$0xff] %v10814_v38  ;;  %v2215_v5 = vor.u32 %v2214_v6, %v2210_v0  ;;  %v2252_v22 = vshll.u32 %v10805_v48, 16  ;;  %v2262_v15 = vshll.u32 %v10810_v30, 16  ;;  %v2266_v46 = vshrl.u32 %v10810_v30, 16  ;;  %v280_v6 = vld [vmem:[%s9989_s4 + $0x128] sm:$0x1] }
  0xa8   : > { %8977 = vmatmul.mubr.msk.bf16.gmra.mxu0 %vm675_vm1, %v10746_v51  ;;  %v2238_v51 = vrot.slane %v2236_v37, 5  ;;  %v2256_v49 = vshrl.u32 %v10805_v48, 16  ;;  %v2226_v60 = vrot.slane %v2225_v9, 4  ;;  %v2230_v10 = vrot.slane %v2228_v27, 5 }
  0xa9   : > { %8911 = vmatmul.mubr.msk.bf16.gmra.mxu1 %vm675_vm1, %v10665_v56  ;;  %8980 = vmatprep.mubr.msk.bf16.mxu0 %vm675_vm1, %v10754_v21  ;;  %v2235_v21 = vrot.slane %v2233_v42, 4  ;;  %v10825_v42 = vld [vmem:[%s9989_s4 + $0x130] sm:$0xf]  ;;  %v2201_v37 = vsel %vm10105_vm4, %v2196_v59, %v10758_v47  ;;  %v2277_v23 = vshrl.u32 %v10822_v26, 16  ;;  %v2280_v9 = vshll.u32 %v10822_v26, 16 }
  0xaa   : > { %8914 = vmatprep.mubr.msk.bf16.mxu1 %vm675_vm1, %v10750_v32  ;;  %v10807_v32 = vrot.slane %v2242_v14, 5  ;;  %v2211_v14 = vsel %vm10105_vm4, %v2206_v54, %v2210_v0  ;;  %v2216_v27 = vrot.slane %v2215_v5, 4  ;;  %v2254_v47 = vrot.slane %v2252_v22, 5 }
  0xab   : > { %v2239_v11 = vor.u32 %v2238_v51, %v2235_v21  ;;  %v10850_v21 = vcombine.low %v10676_v20, %v10696_v18  ;;  %v10852_v51 = vcombine.low %v2177_v36, %v2187_v7  ;;  %v2264_v59 = vrot.slane %v2262_v15, 5 }
  0xac   : > { %v2249_v12 = vor.u32 %v2248_v24, %v10807_v32  ;;  %v2286_v24 = vshll.u32 %v10825_v42, 16  ;;  %v2268_v0 = vrot.slane %v2266_v46, 4  ;;  %v2258_v54 = vrot.slane %v2256_v49, 4 }
  0xad   : > { %13853 = vst [vmem:[#allocation48_spill] sm:$0xff] %v10850_v21  ;;  %13854 = vst [vmem:[#allocation49_spill] sm:$0xff] %v10852_v51  ;;  %v2290_v56 = vshrl.u32 %v10825_v42, 16  ;;  %v10866_v20 = vcombine.low %v10710_v44, %v10722_v34  ;;  %v2279_v18 = vrot.slane %v2277_v23, 4  ;;  %v2282_v36 = vrot.slane %v2280_v9, 5 }
  0xae   : > { %v2288_v7 = vrot.slane %v2286_v24, 5  ;;  %v2221_v5 = vsel %vm10105_vm4, %v2216_v27, %v10782_v16  ;;  %v2231_v22 = vsel %vm10105_vm4, %v2226_v60, %v2230_v10  ;;  %v2272_v15 = vshll.u32 %v280_v6, 16 }
  0xaf   : > { %13856 = vst [vmem:[#allocation51_spill] sm:$0xff] %v10866_v20  ;;  %v2292_v46 = vrot.slane %v2290_v56, 4  ;;  %v2259_v49 = vor.u32 %v2258_v54, %v2254_v47  ;;  %v2306_v34 = vshll.u32 %v10862_v61, 16  ;;  %v2310_v60 = vshrl.u32 %v10862_v61, 16 }
  0xb0   : > { %8981 = vmatmul.mubr.msk.bf16.gmra.mxu0 %vm675_vm1, %v10799_v50  ;;  %v10858_v50 = vcombine.low %v2201_v37, %v2211_v14  ;;  %v10892_v14 = vcombine.low %v10731_v13, %v10742_v45  ;;  %v10894_v6 = vcombine.low %v2221_v5, %v2231_v22  ;;  %v2274_v23 = vrot.slane %v2272_v15, 5 }
  0xb1   : > { %8915 = vmatmul.mubr.msk.bf16.gmra.mxu1 %vm675_vm1, %v10796_v39  ;;  %8984 = vmatprep.mubr.msk.bf16.mxu0 %vm675_vm1, %v10801_v62  ;;  %v10856_v62 = vld [vmem:[%s9989_s4 + $0x134] sm:$0xf]  ;;  %v2250_v39 = vrot.slane %v2249_v12, 4  ;;  %v2283_v12 = vor.u32 %v2282_v36, %v2279_v18  ;;  %v2293_v37 = vor.u32 %v2292_v46, %v2288_v7  ;;  %v2308_v27 = vrot.slane %v2306_v34, 5  ;;  %v285_v36 = vld [vmem:[%s9989_s4 + $0x13c] sm:$0x1] }
  0xb2   : > { %8918 = vmatprep.mubr.msk.bf16.mxu1 %vm675_vm1, %v10814_v38  ;;  %13855 = vst [vmem:[#allocation50_spill] sm:$0xff] %v10858_v50  ;;  %v2240_v38 = vrot.slane %v2239_v11, 4  ;;  %v2269_v11 = vor.u32 %v2268_v0, %v2264_v59  ;;  %v2296_v44 = vshll.u32 %v10856_v62, 16  ;;  %v2300_v10 = vshrl.u32 %v10856_v62, 16  ;;  %13857 = vst [vmem:[#allocation52_spill] sm:$0xff] %v10892_v14 }
  0xb3   : > { %v2255_v56 = vsel %vm10105_vm4, %v2250_v39, %v2254_v47  ;;  %13858 = vst [vmem:[#allocation53_spill] sm:$0xff] %v10894_v6  ;;  %v2312_v24 = vrot.slane %v2310_v60, 4  ;;  %v10900_v0 = vcombine.low %v10763_v43, %v10776_v19  ;;  %v2284_v54 = vrot.slane %v2283_v12, 4  ;;  %v9514_v60 = vld [vmem:[%s9989_s4 + $0x7bc] sm:$0xff]   ;;  %v10959_v12 = vld [vmem:[%s9989_s4 + $0x530] sm:$0xf] }
  0xb4   : > { %v2245_v16 = vsel %vm10105_vm4, %v2240_v38, %v10807_v32  ;;  %v2260_v38 = vrot.slane %v2259_v49, 4  ;;  %v2270_v39 = vrot.slane %v2269_v11, 4  ;;  %v2298_v9 = vrot.slane %v2296_v44, 5 }
  0xb5   : > { %v10896_v32 = vcombine.low %v2245_v16, %v2255_v56  ;;  %v2302_v47 = vrot.slane %v2300_v10, 4  ;;  %13860 = vst [vmem:[#allocation55_spill] sm:$0xff] %v10900_v0  ;;  %v2294_v18 = vrot.slane %v2293_v37, 4  ;;  %v2313_v19 = vor.u32 %v2312_v24, %v2308_v27  ;;  %v10962_v37 = vld [vmem:[%s9989_s4 + $0x534] sm:$0xf] }
  0xb6   : > { %v2275_v13 = vsel %vm10105_vm4, %v2270_v39, %v2274_v23  ;;  %v2265_v45 = vsel %vm10105_vm4, %v2260_v38, %v2264_v59  ;;  %v2316_v5 = vshll.u32 %v285_v36, 16  ;;  %v2289_v22 = vsel %vm10105_vm4, %v2284_v54, %v2288_v7  ;;  %13867 = vst [vmem:[#allocation62_spill] sm:$0xff] %v10962_v37  ;;  %v7675_v38 = vld [vmem:[%s9989_s4 + $0x53c] sm:$0xf]  ;;  %v9516_v23 = vld [vmem:[%s9989_s4 + $0x7c4] sm:$0xff]  }
  0xb7   : > { %13859 = vst [vmem:[#allocation54_spill] sm:$0xff] %v10896_v32  ;;  %v2303_v43 = vor.u32 %v2302_v47, %v2298_v9  ;;  %v2299_v15 = vsel %vm10105_vm4, %v2294_v18, %v2298_v9  ;;  %v10921_v46 = vcombine.low %v10805_v48, %v10810_v30  ;;  %v10923_v49 = vcombine.low %v2265_v45, %v2275_v13  ;;  %v10970_v47 = vld [vmem:[%s9989_s4 + $0x544] sm:$0xf]  ;;  %v9837_v45 = vld [vmem:[%s13713_s1 + $0x14] sm:$0xf] }
  0xb8   : > { %8985 = vmatmul.mubr.msk.bf16.gmra.mxu0 %vm675_vm1, %v10852_v51  ;;  %v10925_v59 = vcombine.low %v2289_v22, %v2299_v15  ;;  %v2314_v44 = vrot.slane %v2313_v19, 4  ;;  %v2318_v34 = vrot.slane %v2316_v5, 5  ;;  %v10929_v16 = vcombine.low %v10822_v26, %v10825_v42  ;;  %v7670_v26 = vld [vmem:[%s9989_s4 + $0x528] sm:$0xf]  ;;  %v7671_v42 = vld [vmem:[%s9989_s4 + $0x52c] sm:$0xf] }
  0xb9   : > { %8919 = vmatmul.mubr.msk.bf16.gmra.mxu1 %vm675_vm1, %v10850_v21  ;;  %8988 = vmatprep.mubr.msk.bf16.mxu0 %vm675_vm1, %v10858_v50  ;;  %13861 = vst [vmem:[#allocation56_spill] sm:$0xff] %v10921_v46  ;;  %13862 = vst [vmem:[#allocation57_spill] sm:$0xff] %v10923_v49  ;;  %v2304_v11 = vrot.slane %v2303_v43, 4  ;;  %v10949_v56 = vcombine.low %v10856_v62, %v10862_v61  ;;  %v8010_v10 = vcombine.low %v7670_v26, %v7671_v42  ;;  %v7676_v61 = vld [vmem:[%s9989_s4 + $0x540] sm:$0xf]  ;;  %v9518_v22 = vld [vmem:[%s9989_s4 + $0x7d0] sm:$0xff]  }
  0xba   : > { %8922 = vmatprep.mubr.msk.bf16.mxu1 %vm675_vm1, %v10866_v20  ;;  %13863 = vst [vmem:[#allocation58_spill] sm:$0xff] %v10925_v59  ;;  %13864 = vst [vmem:[#allocation59_spill] sm:$0xff] %v10929_v16  ;;  %v2319_v30 = vsel %vm10105_vm4, %v2314_v44, %v2318_v34  ;;  %v4099_v62 = vshrl.u32 %v7670_v26, 16  ;;  %v4102_v39 = vshll.u32 %v7670_v26, 16  ;;  %v4108_v9 = vshll.u32 %v7671_v42, 16 }
  0xbb   : > { %v2309_v48 = vsel %vm10105_vm4, %v2304_v11, %v2308_v27  ;;  %13866 = vst [vmem:[#allocation61_spill] sm:$0xff] %v10949_v56  ;;  %v4112_v27 = vshrl.u32 %v7671_v42, 16  ;;  %v8011_v24 = vcombine.low %v10959_v12, %v10962_v37  ;;  %v5371_v54 = vsel %vm772_vm0, %v10420_v17, 0  ;;  %v10982_v15 = vld [vmem:[%s9989_s4 + $0x548] sm:$0xf] }
  0xbc   : > { %v10945_v7 = vcombine.low %v2309_v48, %v2319_v30  ;;  %v8012_v18 = vcombine.low %v7675_v38, %v7676_v61  ;;  %v4162_v36 = vshll.u32 %v10970_v47, 16  ;;  %v4166_v13 = vshrl.u32 %v10970_v47, 16  ;;  %v10992_v30 = vld [vmem:[%s9989_s4 + $0x550] sm:$0xf] }
  0xbd   : > { %v4997_v43 = vsel %vm772_vm0, %v9837_v45, 0  ;;  %v4143_v19 = vshrl.u32 %v7675_v38, 16  ;;  %v4146_v5 = vshll.u32 %v7675_v38, 16  ;;  %v10984_v17 = vrot.slane %v4099_v62, 4  ;;  %v11004_v62 = vld [vmem:[%s9989_s4 + $0x554] sm:$0xf] }
  0xbe   : > { %13865 = vst [vmem:[#allocation60_spill] sm:$0xff] %v10945_v7  ;;  %v10986_v11 = vrot.slane %v4102_v39, 5  ;;  %v4152_v34 = vshll.u32 %v7676_v61, 16  ;;  %v4156_v48 = vshrl.u32 %v7676_v61, 16  ;;  %v10994_v26 = vrot.slane %v4108_v9, 5 }
  0xbf   : > { %v10996_v42 = vrot.slane %v4112_v27, 4  ;;  %v4176_v38 = vshrl.u32 %v10982_v15, 16  ;;  %v11007_v39 = vld [vmem:[%s9989_s4 + $0x558] sm:$0xf]  ;;  %v11014_v27 = vrot.slane %v4162_v36, 5  ;;  %v4187_v36 = vshrl.u32 %v10992_v30, 16 }
  0xc0   : > { %8989 = vmatmul.mubr.msk.bf16.gmra.mxu0 %vm675_vm1, %v10894_v6  ;;  %v11036_v61 = vrot.slane %v4152_v34, 5  ;;  %v8014_v51 = vcombine.low %v10992_v30, %v11004_v62 }
  0xc1   : > { %8923 = vmatmul.mubr.msk.bf16.gmra.mxu1 %vm675_vm1, %v10892_v14  ;;  %8992 = vmatprep.mubr.msk.bf16.mxu0 %vm675_vm1, %v10896_v32  ;;  %v9522_v32 = vld [vmem:[%s9989_s4 + $0x7e4] sm:$0xff]  }
  0xc2   : > { %8926 = vmatprep.mubr.msk.bf16.mxu1 %vm675_vm1, %v10900_v0  ;;  %v4200_v0 = vshrl.u32 %v11004_v62, 16 }
  0xc8   : > { %8993 = vmatmul.mubr.msk.bf16.gmra.mxu0 %vm675_vm1, %v10923_v49 }
  0xc9   : > { %8927 = vmatmul.mubr.msk.bf16.gmra.mxu1 %vm675_vm1, %v10921_v46  ;;  %8996 = vmatprep.mubr.msk.bf16.mxu0 %vm675_vm1, %v10925_v59  ;;  %v11023_v59 = vrot.slane %v4146_v5, 5  ;;  %v4206_v5 = vshll.u32 %v11007_v39, 16  ;;  %v11065_v46 = vrot.slane %v4187_v36, 4 }
  0xca   : > { %8930 = vmatprep.mubr.msk.bf16.mxu1 %vm675_vm1, %v10929_v16  ;;  %v11061_v16 = vld [vmem:[%s9989_s4 + $0x56c] sm:$0xf] }
  0xcb   : > { %v4254_v14 = vshrl.u32 %v11061_v16, 16 }
  0xd0   : > { %8997 = vmatmul.mubr.msk.bf16.gmra.mxu0 %vm675_vm1, %v10945_v7  ;;  %v11021_v7 = vrot.slane %v4143_v19, 4  ;;  %v11038_v19 = vrot.slane %v4156_v48, 4 }
  0xd1   : > { %8931 = vmatmul.mubr.msk.bf16.gmra.mxu1 %vm675_vm1, %v10949_v56  ;;  %9068 = vmatprep.mubr.msk.bf16.mxu0 %vm675_vm1, %v9514_v60  ;;  %v4190_v56 = vshll.u32 %v10992_v30, 16  ;;  %v11076_v30 = vrot.slane %v4206_v5, 5 }
  0xd2   : > { %9002 = vmatprep.mubr.msk.bf16.mxu1 %vm675_vm1, %v8010_v10  ;;  %v4172_v10 = vshll.u32 %v10982_v15, 16 }
  0xd4   : > { %v11047_v49 = vrot.slane %v4172_v10, 5  ;;  %v4196_v10 = vshll.u32 %v11004_v62, 16 }
  0xd8   : > { %v10988_v44 = vpop.f32.mrf.mxu0  ;;  %9069 = vmatmul.mubr.msk.bf16.vlgmr.msra.gmra.mxu0 %vm675_vm1, %v9516_v23 }
  0xd9   : > { %13868 = vst [vmem:[#allocation63_spill] sm:$0xff] %v10988_v44  ;;  %v10998_v60 = vpop.f32.mrf.mxu1  ;;  %9003 = vmatmul.mubr.msk.bf16.vlgmr.msra.gmra.mxu1 %vm675_vm1, %v8011_v24  ;;  %9199 = vmatpush3.bf16.msra.mxu0 %v5371_v54  ;;  %v4168_v24 = vrot.slane %v4166_v13, 4  ;;  %v8239_v54 = vld [vmem:[%s13713_s1 + $0x1c] sm:$0xf] }
  0xda   : > { %13869 = vst [vmem:[#allocation64_spill] sm:$0xff] %v10998_v60  ;;  %9133 = vmatpush3.bf16.msra.mxu1 %v4997_v43  ;;  %v11011_v9 = vpop.f32.mrf.mxu0  ;;  %9006 = vmatprep.mubr.msk.bf16.mxu1 %vm675_vm1, %v8012_v18  ;;  %v8013_v43 = vcombine.low %v10970_v47, %v10982_v15  ;;  %v9520_v18 = vld [vmem:[%s9989_s4 + $0x7d8] sm:$0xff]   ;;  %v8274_v47 = vld [vmem:[%s13713_s1 + $0x20] sm:$0xf] }
  0xdb   : > { %13870 = vst [vmem:[#allocation65_spill] sm:$0xff] %v11011_v9  ;;  %v11019_v45 = vpop.f32.mrf.mxu1  ;;  %9072 = vmatprep.mubr.msk.bf16.mxu0 %vm675_vm1, %v9518_v22  ;;  %v11031_v13 = vld [vmem:[%s9989_s4 + $0x55c] sm:$0xf]  ;;  %9406 = vmatprep.subr.msk.bf16.mxu1 %vm772_vm0, %v8239_v54  ;;  %v4210_v22 = vshrl.u32 %v11007_v39, 16  ;;  %v4178_v54 = vrot.slane %v4176_v38, 4  ;;  %v4169_v50 = vor.u32 %v4168_v24, %v11014_v27  ;;  %v4250_v24 = vshll.u32 %v11061_v16, 16 }
  0xdc   : > { %13871 = vst [vmem:[#allocation66_spill] sm:$0xff] %v11019_v45  ;;  %v11034_v23 = vpop.f32.mrf.mxu0  ;;  %v4216_v34 = vshll.u32 %v11031_v13, 16  ;;  %v4220_v48 = vshrl.u32 %v11031_v13, 16  ;;  %9407 = vmatprep.subr.msk.bf16.mxu0 %vm772_vm0, %v8274_v47  ;;  %v11069_v47 = vld [vmem:[%s9989_s4 + $0x570] sm:$0xf]  ;;  %v8015_v25 = vcombine.low %v11007_v39, %v11031_v13 }
  0xdd   : > { %13872 = vst [vmem:[#allocation67_spill] sm:$0xff] %v11034_v23  ;;  %v11045_v15 = vpop.f32.mrf.mxu1  ;;  %v4212_v21 = vrot.slane %v4210_v22, 4  ;;  %v4260_v36 = vshll.u32 %v11069_v47, 16  ;;  %v4264_v1 = vshrl.u32 %v11069_v47, 16  ;;  %v4179_v55 = vor.u32 %v4178_v54, %v11047_v49  ;;  %v7685_v22 = vld [vmem:[%s9989_s4 + $0x564] sm:$0xf] }
  0xde   : > { %13873 = vst [vmem:[#allocation68_spill] sm:$0xff] %v11045_v15  ;;  %v11053_v6 = vpop.f32.mrf.mxu0  ;;  %v4222_v5 = vrot.slane %v4220_v48, 4  ;;  %v11090_v3 = vrot.slane %v4169_v50, 4  ;;  %v11097_v54 = vrot.slane %v4196_v10, 5  ;;  %v4231_v35 = vshrl.u32 %v7685_v22, 16 }
  0xdf   : > { %13874 = vst [vmem:[#allocation69_spill] sm:$0xff] %v11053_v6  ;;  %v11063_v38 = vpop.f32.mrf.mxu1  ;;  %v4234_v39 = vshll.u32 %v7685_v22, 16  ;;  %v4256_v50 = vrot.slane %v4254_v14, 4  ;;  %v4213_v29 = vor.u32 %v4212_v21, %v11076_v30  ;;  %v11108_v10 = vrot.slane %v4260_v36, 5  ;;  %v11231_v9 = vld [vmem:[%s9989_s4 + $0x5ac] sm:$0xf] }
  0xe0   : > { %13875 = vst [vmem:[#allocation70_spill] sm:$0xff] %v11063_v38  ;;  %v11073_v20 = vpop.f32.mrf.mxu0  ;;  %9073 = vmatmul.mubr.msk.bf16.gmra.mxu0 %vm675_vm1, %v9520_v18  ;;  %v11087_v18 = vrot.slane %v4216_v34, 5  ;;  %v11102_v34 = vrot.slane %v4250_v24, 5  ;;  %v4266_v57 = vrot.slane %v4264_v1, 4  ;;  %v11113_v4 = vrot.slane %v4179_v55, 4 }
  0xe1   : > { %13876 = vst [vmem:[#allocation71_spill] sm:$0xff] %v11073_v20  ;;  %v11080_v62 = vpop.f32.mrf.mxu1  ;;  %9007 = vmatmul.mubr.msk.bf16.gmra.mxu1 %vm675_vm1, %v8013_v43  ;;  %9076 = vmatprep.mubr.msk.bf16.mxu0 %vm675_vm1, %v9522_v32  ;;  %v11095_v43 = vrot.slane %v4190_v56, 5  ;;  %v7686_v32 = vld [vmem:[%s9989_s4 + $0x568] sm:$0xf]  ;;  %v11117_v24 = vrot.slane %v4200_v0, 4  ;;  %v4275_v21 = vshrl.u32 %v11111_v40, 16 }
  0xe2   : > { %13877 = vst [vmem:[#allocation72_spill] sm:$0xff] %v11080_v62  ;;  %v11092_v33 = vpop.f32.mrf.mxu0  ;;  %9010 = vmatprep.mubr.msk.bf16.mxu1 %vm675_vm1, %v8014_v51  ;;  %v4240_v13 = vshll.u32 %v7686_v32, 16  ;;  %13880 = vst [vmem:[#allocation75_spill] sm:$0xff] %v11102_v34  ;;  %v9524_v51 = vld [vmem:[%s9989_s4 + $0x7ec] sm:$0xff]   ;;  %v4244_v56 = vshrl.u32 %v7686_v32, 16  ;;  %v4223_v14 = vor.u32 %v4222_v5, %v11087_v18  ;;  %v8016_v62 = vcombine.low %v7685_v22, %v7686_v32 }
  0xe3   : > { %13878 = vst [vmem:[#allocation73_spill] sm:$0xff] %v11092_v33  ;;  %v11100_v41 = vpop.f32.mrf.mxu1  ;;  %v11124_v36 = vrot.slane %v4231_v35, 4  ;;  %v11129_v55 = vld [vmem:[%s9989_s4 + $0x57c] sm:$0xf]  ;;  %v4278_v0 = vshll.u32 %v11111_v40, 16  ;;  %v11137_v5 = vrot.slane %v4234_v39, 5  ;;  %v4257_v22 = vor.u32 %v4256_v50, %v11102_v34 }
  0xe4   : > { %13879 = vst [vmem:[#allocation74_spill] sm:$0xff] %v11100_v41  ;;  %v11104_v48 = vpop.f32.mrf.mxu0  ;;  %v11139_v28 = vrot.slane %v4240_v13, 5  ;;  %v4284_v35 = vshll.u32 %v11129_v55, 16  ;;  %v11144_v32 = vld [vmem:[%s9989_s4 + $0x584] sm:$0xf]  ;;  %v11148_v38 = vrot.slane %v4213_v29, 4  ;;  %v4267_v39 = vor.u32 %v4266_v57, %v11108_v10 }
  0xe5   : > { %13881 = vst [vmem:[#allocation76_spill] sm:$0xff] %v11104_v48  ;;  %v11115_v53 = vpop.f32.mrf.mxu1  ;;  %v11151_v15 = vrot.slane %v4244_v56, 4  ;;  %v4288_v13 = vshrl.u32 %v11129_v55, 16  ;;  %v11161_v45 = vrot.slane %v4223_v14, 4  ;;  %v8018_v29 = vcombine.low %v11111_v40, %v11129_v55  ;;  %v11170_v56 = vld [vmem:[%s9989_s4 + $0x590] sm:$0xf] }
  0xe6   : > { %13882 = vst [vmem:[#allocation77_spill] sm:$0xff] %v11115_v53  ;;  %v11122_v41 = vpop.f32.mrf.mxu0  ;;  %v11133_v53 = vld [vmem:[%s9989_s4 + $0x580] sm:$0xf]  ;;  %v4304_v57 = vshll.u32 %v11144_v32, 16  ;;  %v4308_v40 = vshrl.u32 %v11144_v32, 16  ;;  %v11190_v58 = vrot.slane %v4257_v22, 4 }
  0xe7   : > { %13883 = vst [vmem:[#allocation78_spill] sm:$0xff] %v11122_v41  ;;  %v11135_v52 = vpop.f32.mrf.mxu1  ;;  %v11186_v55 = vld [vmem:[%s9989_s4 + $0x598] sm:$0xf]  ;;  %v4332_v22 = vshrl.u32 %v11170_v56, 16  ;;  %v11220_v33 = vld [vmem:[%s9989_s4 + $0x5a8] sm:$0xf] }
  0xe8   : > { %13884 = vst [vmem:[#allocation79_spill] sm:$0xff] %v11135_v52  ;;  %v11146_v1 = vpop.f32.mrf.mxu0  ;;  %9077 = vmatmul.mubr.msk.bf16.gmra.mxu0 %vm675_vm1, %v9524_v51  ;;  %v11156_v52 = vld [vmem:[%s9989_s4 + $0x58c] sm:$0xf]  ;;  %v11166_v51 = vrot.slane %v4275_v21, 4  ;;  %v11183_v21 = vld [vmem:[%s9989_s4 + $0x594] sm:$0xf] }
  0xe9   : > { %13885 = vst [vmem:[#allocation80_spill] sm:$0xff] %v11146_v1  ;;  %v11158_v50 = vpop.f32.mrf.mxu1  ;;  %9011 = vmatmul.mubr.msk.bf16.gmra.mxu1 %vm675_vm1, %v8015_v25  ;;  %9080 = vmatprep.mubr.msk.bf16.mxu0 %vm675_vm1, %v9526_v2  ;;  %v11176_v25 = vrot.slane %v4278_v0, 5  ;;  %v4319_v14 = vshrl.u32 %v11156_v52, 16  ;;  %v4322_v2 = vshll.u32 %v11156_v52, 16  ;;  %v11203_v1 = vrot.slane %v4288_v13, 4  ;;  %v9530_v0 = vld [vmem:[%s9989_s4 + $0x80c] sm:$0xff]  }
  0xea   : > { %13886 = vst [vmem:[#allocation81_spill] sm:$0xff] %v11158_v50  ;;  %13887 = vst [vmem:[#allocation82_spill] sm:$0xff] %v11166_v51  ;;  %v11172_v63 = vpop.f32.mrf.mxu0  ;;  %9014 = vmatprep.mubr.msk.bf16.mxu1 %vm675_vm1, %v8016_v62  ;;  %v9528_v50 = vld [vmem:[%s9989_s4 + $0x800] sm:$0xff]   ;;  %v11192_v62 = vrot.slane %v4284_v35, 5  ;;  %v11213_v48 = vrot.slane %v4304_v57, 5  ;;  %v4352_v13 = vshrl.u32 %v11186_v55, 16 }
  0xeb   : > { %13888 = vst [vmem:[#allocation83_spill] sm:$0xff] %v11172_v63  ;;  %13889 = vst [vmem:[#allocation84_spill] sm:$0xff] %v11176_v25  ;;  %v11188_v60 = vpop.f32.mrf.mxu1  ;;  %v11201_v63 = vrot.slane %v4267_v39, 4  ;;  %v11208_v35 = vld [vmem:[%s9989_s4 + $0x5a4] sm:$0xf]  ;;  %v4348_v39 = vshll.u32 %v11186_v55, 16 }
  0xec   : > { %13890 = vst [vmem:[#allocation85_spill] sm:$0xff] %v11188_v60  ;;  %13891 = vst [vmem:[#allocation86_spill] sm:$0xff] %v11192_v62  ;;  %v11199_v37 = vpop.f32.mrf.mxu0  ;;  %v4328_v60 = vshll.u32 %v11170_v56, 16  ;;  %v11224_v6 = vrot.slane %v4308_v40, 4  ;;  %v11226_v23 = vrot.slane %v4319_v14, 4  ;;  %v4363_v57 = vshrl.u32 %v11197_v31, 16 }
  0xed   : > { %13892 = vst [vmem:[#allocation87_spill] sm:$0xff] %v11199_v37  ;;  %13893 = vst [vmem:[#allocation88_spill] sm:$0xff] %v11201_v63  ;;  %v11210_v41 = vpop.f32.mrf.mxu1  ;;  %v11235_v44 = vrot.slane %v4322_v2, 5  ;;  %v4372_v40 = vshll.u32 %v11208_v35, 16  ;;  %v11242_v14 = vld [vmem:[%s9989_s4 + $0x5b4] sm:$0xf]  ;;  %v13906_v63 = vcombine.low %v11061_v16, %v11069_v47 }
  0xee   : > { %13894 = vst [vmem:[#allocation89_spill] sm:$0xff] %v11203_v1  ;;  %13895 = vst [vmem:[#allocation90_spill] sm:$0xff] %v11210_v41  ;;  %v11222_v20 = vpop.f32.mrf.mxu0  ;;  %v4366_v41 = vshll.u32 %v11197_v31, 16  ;;  %v11249_v2 = vrot.slane %v4332_v22, 4  ;;  %v11280_v47 = vrot.slane %v4363_v57, 4 }
  0xef   : > { %13896 = vst [vmem:[#allocation91_spill] sm:$0xff] %v11213_v48  ;;  %13897 = vst [vmem:[#allocation92_spill] sm:$0xff] %v11222_v20  ;;  %v11233_v37 = vpop.f32.mrf.mxu1  ;;  %v4392_v48 = vshll.u32 %v11231_v9, 16  ;;  %v11254_v20 = vld [vmem:[%s9989_s4 + $0x5b8] sm:$0xf] }
  0xf0   : > { %13898 = vst [vmem:[#allocation93_spill] sm:$0xff] %v11224_v6  ;;  %13899 = vst [vmem:[#allocation94_spill] sm:$0xff] %v11226_v23  ;;  %v11244_v23 = vpop.f32.mrf.mxu0  ;;  %9081 = vmatmul.mubr.msk.bf16.gmra.mxu0 %vm675_vm1, %v9528_v50  ;;  %v11247_v6 = vrot.slane %v4328_v60, 5  ;;  %v11263_v60 = vrot.slane %v4348_v39, 5  ;;  %v11265_v50 = vrot.slane %v4352_v13, 4  ;;  %v4407_v13 = vshrl.u32 %v11242_v14, 16 }
  0xf1   : > { %13900 = vst [vmem:[#allocation95_spill] sm:$0xff] %v11233_v37  ;;  %13901 = vst [vmem:[#allocation96_spill] sm:$0xff] %v11235_v44  ;;  %v4376_v37 = vshrl.u32 %v11208_v35, 16  ;;  %v11256_v44 = vpop.f32.mrf.mxu1  ;;  %9015 = vmatmul.mubr.msk.bf16.gmra.mxu1 %vm675_vm1, %v13906_v63  ;;  %9084 = vmatprep.mubr.msk.bf16.mxu0 %vm675_vm1, %v9530_v0  ;;  %v9532_v63 = vld [vmem:[%s9989_s4 + $0x814] sm:$0xff]   ;;  %v11282_v0 = vrot.slane %v4366_v41, 5  ;;  %v4416_v41 = vshll.u32 %v11254_v20, 16 }
  0xf2   : > { %13902 = vst [vmem:[#allocation97_spill] sm:$0xff] %v11244_v23  ;;  %13903 = vst [vmem:[#allocation98_spill] sm:$0xff] %v11247_v6  ;;  %v4396_v23 = vshrl.u32 %v11231_v9, 16  ;;  %v11276_v16 = vpop.f32.mrf.mxu0  ;;  %9018 = vmatprep.mubr.msk.bf16.mxu1 %vm675_vm1, %v8018_v29  ;;  %v11288_v22 = vld [vmem:[%s9989_s4 + $0x5c8] sm:$0xf]  ;;  %v4410_v29 = vshll.u32 %v11242_v14, 16 }
  0xf3   : > { %13904 = vst [vmem:[#allocation99_spill] sm:$0xff] %v11249_v2  ;;  %13905 = vst [vmem:[#allocation100_spill] sm:$0xff] %v11256_v44  ;;  %v11271_v2 = vld [vmem:[%s9989_s4 + $0x5bc] sm:$0xf]  ;;  %v11274_v44 = vld [vmem:[%s9989_s4 + $0x5c0] sm:$0xf] }
  0xf4   : > { %13907 = vst [vmem:[#allocation101_spill] sm:$0xff] %v11263_v60  ;;  %13908 = vst [vmem:[#allocation102_spill] sm:$0xff] %v11265_v50  ;;  %v11290_v50 = vpop.f32.mrf.mxu1  ;;  %v11292_v60 = vrot.slane %v4372_v40, 5  ;;  %v11298_v57 = vld [vmem:[%s9989_s4 + $0x5cc] sm:$0xf]  ;;  %v9534_v39 = vld [vmem:[%s9989_s4 + $0x820] sm:$0xff]  }
  0xf5   : > { %13909 = vst [vmem:[#allocation103_spill] sm:$0xff] %v11276_v16  ;;  %13910 = vst [vmem:[#allocation104_spill] sm:$0xff] %v11280_v47  ;;  %v11303_v47 = vrot.slane %v4376_v37, 4  ;;  %v11305_v6 = vrot.slane %v4392_v48, 5  ;;  %v11311_v16 = vld [vmem:[%s9989_s4 + $0x5d0] sm:$0xf] }
  0xf6   : > { %13911 = vst [vmem:[#allocation105_spill] sm:$0xff] %v11282_v0  ;;  %13912 = vst [vmem:[#allocation106_spill] sm:$0xff] %v11290_v50  ;;  %v11300_v0 = vpop.f32.mrf.mxu0  ;;  %v4420_v50 = vshrl.u32 %v11254_v20, 16  ;;  %v11315_v34 = vrot.slane %v4396_v23, 4  ;;  %v4436_v1 = vshll.u32 %v11274_v44, 16  ;;  %v4451_v37 = vshrl.u32 %v11288_v22, 16 }
  0xf7   : > { %13913 = vst [vmem:[#allocation107_spill] sm:$0xff] %v11292_v60  ;;  %13914 = vst [vmem:[#allocation108_spill] sm:$0xff] %v11300_v0  ;;  %v11313_v60 = vpop.f32.mrf.mxu1  ;;  %v4440_v0 = vshrl.u32 %v11274_v44, 16  ;;  %v11321_v48 = vld [vmem:[%s9989_s4 + $0x5d4] sm:$0xf]  ;;  %v11325_v40 = vrot.slane %v4407_v13, 4 }
  0xf8   : > { %13915 = vst [vmem:[#allocation109_spill] sm:$0xff] %v11303_v47  ;;  %13916 = vst [vmem:[#allocation110_spill] sm:$0xff] %v11305_v6  ;;  %v11323_v6 = vpop.f32.mrf.mxu0  ;;  %v11333_v62 = vrot.slane %v4410_v29, 5  ;;  %v11335_v25 = vrot.slane %v4416_v41, 5  ;;  %v4460_v51 = vshll.u32 %v11298_v57, 16  ;;  %v4464_v13 = vshrl.u32 %v11298_v57, 16  ;;  %9085 = vmatmul.mubr.msk.bf16.gmra.mxu0 %vm675_vm1, %v9532_v63 }
  0xf9   : > { %13917 = vst [vmem:[#allocation111_spill] sm:$0xff] %v11311_v16  ;;  %13918 = vst [vmem:[#allocation112_spill] sm:$0xff] %v11313_v60  ;;  %v4454_v60 = vshll.u32 %v11288_v22, 16  ;;  %v11345_v23 = vrot.slane %v4420_v50, 4  ;;  %v4480_v47 = vshll.u32 %v11321_v48, 16  ;;  %v13932_v63 = vcombine.low %v11133_v53, %v11144_v32  ;;  %9088 = vmatprep.mubr.msk.bf16.mxu0 %vm675_vm1, %v9534_v39 }
  0xfa   : > { %13919 = vst [vmem:[#allocation113_spill] sm:$0xff] %v11315_v34  ;;  %13920 = vst [vmem:[#allocation114_spill] sm:$0xff] %v11321_v48  ;;  %v11331_v34 = vpop.f32.mrf.mxu1  ;;  %v11365_v50 = vrot.slane %v4436_v1, 5  ;;  %v11367_v29 = vrot.slane %v4440_v0, 4  ;;  %v11369_v41 = vrot.slane %v4451_v37, 4  ;;  %v13938_v32 = vcombine.low %v11156_v52, %v11170_v56 }
  0xfb   : > { %13921 = vst [vmem:[#allocation115_spill] sm:$0xff] %v11323_v6  ;;  %13922 = vst [vmem:[#allocation116_spill] sm:$0xff] %v11325_v40  ;;  %v11340_v6 = vld [vmem:[%s9989_s4 + $0x5dc] sm:$0xf]  ;;  %v11342_v40 = vpop.f32.mrf.mxu0  ;;  %9019 = vmatmul.mubr.msk.bf16.gmra.mxu1 %vm675_vm1, %v13932_v63  ;;  %v9536_v63 = vld [vmem:[%s9989_s4 + $0x828] sm:$0xff]   ;;  %v11382_v1 = vrot.slane %v4454_v60, 5 }
  0xfc   : > { %13923 = vst [vmem:[#allocation117_spill] sm:$0xff] %v11331_v34  ;;  %13924 = vst [vmem:[#allocation118_spill] sm:$0xff] %v11333_v62  ;;  %v11353_v34 = vld [vmem:[%s9989_s4 + $0x5e0] sm:$0xf]  ;;  %v11358_v62 = vpop.f32.mrf.mxu1  ;;  %9022 = vmatprep.mubr.msk.bf16.mxu1 %vm675_vm1, %v13938_v32  ;;  %v4495_v39 = vshrl.u32 %v11340_v6, 16  ;;  %v4498_v37 = vshll.u32 %v11340_v6, 16 }
  0xfd   : > { %13925 = vst [vmem:[#allocation119_spill] sm:$0xff] %v11335_v25  ;;  %13926 = vst [vmem:[#allocation120_spill] sm:$0xff] %v11340_v6  ;;  %v11356_v25 = vld [vmem:[%s9989_s4 + $0x5e4] sm:$0xf]  ;;  %v4504_v52 = vshll.u32 %v11353_v34, 16  ;;  %v4508_v56 = vshrl.u32 %v11353_v34, 16 }
  0xfe   : > { %13927 = vst [vmem:[#allocation121_spill] sm:$0xff] %v11342_v40  ;;  %13928 = vst [vmem:[#allocation122_spill] sm:$0xff] %v11345_v23  ;;  %v4484_v40 = vshrl.u32 %v11321_v48, 16  ;;  %v11373_v23 = vld [vmem:[%s9989_s4 + $0x5e8] sm:$0xf]  ;;  %v11401_v0 = vrot.slane %v4480_v47, 5 }
  0xff   : > { %13929 = vst [vmem:[#allocation123_spill] sm:$0xff] %v11353_v34  ;;  %13930 = vst [vmem:[#allocation124_spill] sm:$0xff] %v11356_v25  ;;  %v11397_v60 = vld [vmem:[%s9989_s4 + $0x5f0] sm:$0xf]  ;;  %v11428_v25 = vrot.slane %v4498_v37, 5  ;;  %v11439_v6 = vrot.slane %v4504_v52, 5 }
 0x100   : > { %13931 = vst [vmem:[#allocation125_spill] sm:$0xff] %v11358_v62  ;;  %13933 = vst [vmem:[#allocation126_spill] sm:$0xff] %v11365_v50  ;;  %v11375_v62 = vpop.f32.mrf.mxu0  ;;  %v11392_v50 = vrot.slane %v4464_v13, 4  ;;  %v11408_v13 = vld [vmem:[%s9989_s4 + $0x5f4] sm:$0xf]  ;;  %v11416_v48 = vrot.slane %v4484_v40, 4  ;;  %v4105_v40 = vor.u32 %v10986_v11, %v10984_v17  ;;  %9089 = vmatmul.mubr.msk.bf16.gmra.mxu0 %vm675_vm1, %v9536_v63  ;;  %v13952_v11 = vcombine.low %v11197_v31, %v11208_v35 }
 0x101   : > { %13934 = vst [vmem:[#allocation127_spill] sm:$0xff] %v11367_v29  ;;  %13935 = vst [vmem:[#allocation128_spill] sm:$0xff] %v11369_v41  ;;  %v11387_v41 = vpop.f32.mrf.mxu1  ;;  %v9538_v29 = vld [vmem:[%s9989_s4 + $0x834] sm:$0xff]   ;;  %v4542_v47 = vshll.u32 %v11397_v60, 16  ;;  %v11431_v34 = vld [vmem:[%s9989_s4 + $0x604] sm:$0xf] }
 0x102   : > { %13936 = vst [vmem:[#allocation129_spill] sm:$0xff] %v11373_v23  ;;  %13937 = vst [vmem:[#allocation130_spill] sm:$0xff] %v11375_v62  ;;  %v11390_v62 = vrot.slane %v4460_v51, 5  ;;  %v11399_v32 = vpop.f32.mrf.mxu0  ;;  %v11426_v23 = vrot.slane %v4495_v39, 4  ;;  %v11441_v16 = vrot.slane %v4508_v56, 4  ;;  %v13951_v39 = vcombine.low %v11183_v21, %v11186_v55  ;;  %9092 = vmatprep.mubr.msk.bf16.mxu0 %vm675_vm1, %v9538_v29  ;;  %v9542_v35 = vld [vmem:[%s9989_s4 + $0x848] sm:$0xff]  }
 0x103   : > { %13939 = vst [vmem:[#allocation131_spill] sm:$0xff] %v11382_v1  ;;  %13940 = vst [vmem:[#allocation132_spill] sm:$0xff] %v11387_v41  ;;  %v11414_v1 = vpop.f32.mrf.mxu1  ;;  %v4552_v41 = vshrl.u32 %v11408_v13, 16  ;;  %v11446_v37 = vld [vmem:[%s9989_s4 + $0x608] sm:$0xf]  ;;  %v4149_v29 = vor.u32 %v11023_v59, %v11021_v7 }
 0x104   : > { %13941 = vst [vmem:[#allocation133_spill] sm:$0xff] %v11390_v62  ;;  %13942 = vst [vmem:[#allocation134_spill] sm:$0xff] %v11392_v50  ;;  %v4539_v50 = vshrl.u32 %v11397_v60, 16  ;;  %v11412_v62 = vld [vmem:[%s9989_s4 + $0x5f8] sm:$0xf]  ;;  %v11424_v51 = vpop.f32.mrf.mxu0  ;;  %9023 = vmatmul.mubr.msk.bf16.gmra.mxu1 %vm675_vm1, %v13951_v39 }
 0x105   : > { %13943 = vst [vmem:[#allocation135_spill] sm:$0xff] %v11399_v32  ;;  %13944 = vst [vmem:[#allocation136_spill] sm:$0xff] %v11401_v0  ;;  %v4548_v32 = vshll.u32 %v11408_v13, 16  ;;  %v11422_v0 = vld [vmem:[%s9989_s4 + $0x5fc] sm:$0xf]  ;;  %v11468_v63 = vrot.slane %v4552_v41, 4  ;;  %9026 = vmatprep.mubr.msk.bf16.mxu1 %vm675_vm1, %v13952_v11  ;;  %v4159_v41 = vor.u32 %v11038_v19, %v11036_v61  ;;  %v4193_v11 = vor.u32 %v11095_v43, %v11065_v46 }
 0x106   : > { %13945 = vst [vmem:[#allocation137_spill] sm:$0xff] %v11414_v1  ;;  %13946 = vst [vmem:[#allocation138_spill] sm:$0xff] %v11416_v48  ;;  %v4115_v1 = vor.u32 %v10996_v42, %v10994_v26  ;;  %v11437_v48 = vpop.f32.mrf.mxu1  ;;  %v11452_v17 = vrot.slane %v4539_v50, 4  ;;  %v4106_v42 = vrot.slane %v4105_v40, 4  ;;  %v7679_v56 = vld [vmem:[%s9989_s4 + $0x54c] sm:$0x1] }
 0x107   : > { %13947 = vst [vmem:[#allocation139_spill] sm:$0xff] %v11424_v51  ;;  %13948 = vst [vmem:[#allocation140_spill] sm:$0xff] %v11428_v25  ;;  %v4118_v51 = vshll.u32 %v10959_v12, 16  ;;  %v11449_v25 = vpop.f32.mrf.mxu0  ;;  %v11464_v12 = vrot.slane %v4542_v47, 5  ;;  %v11466_v50 = vrot.slane %v4548_v32, 5  ;;  %v4175_v32 = vsel %vm10105_vm4, %v11090_v3, %v11047_v49  ;;  %v9540_v19 = vld [vmem:[%s9989_s4 + $0x83c] sm:$0xff]  }
 0x108   : > { %13949 = vst [vmem:[#allocation141_spill] sm:$0xff] %v11437_v48  ;;  %v4116_v52 = vrot.slane %v4115_v1, 4  ;;  %v11457_v48 = vpop.f32.mrf.mxu1  ;;  %v4111_v55 = vsel %vm10105_vm4, %v4106_v42, %v10994_v26  ;;  %v4182_v7 = vshll.u32 %v7679_v56, 16  ;;  %v7684_v26 = vld [vmem:[%s9989_s4 + $0x560] sm:$0x1]  ;;  %v4150_v3 = vrot.slane %v4149_v29, 4  ;;  %9093 = vmatmul.mubr.msk.bf16.gmra.mxu0 %vm675_vm1, %v9540_v19 }
 0x109   : > { %13950 = vst [vmem:[#allocation142_spill] sm:$0xff] %v11457_v48  ;;  %v11470_v40 = vrot.slane %v4118_v51, 5  ;;  %v11472_v1 = vpop.f32.mrf.mxu0  ;;  %v4160_v49 = vrot.slane %v4159_v41, 4  ;;  %v4219_v56 = vsel %vm10105_vm4, %v11148_v38, %v11087_v18  ;;  %v4194_v29 = vrot.slane %v4193_v11, 4  ;;  %9096 = vmatprep.mubr.msk.bf16.mxu0 %vm675_vm1, %v9542_v35 }
 0x10a   : > { %v11489_v51 = vpop.f32.mrf.mxu1  ;;  %v4155_v46 = vsel %vm10105_vm4, %v4150_v3, %v11036_v61  ;;  %v4226_v41 = vshll.u32 %v7684_v26, 16  ;;  %v13957_v11 = vcombine.low %v11220_v33, %v11231_v9  ;;  %v13958_v9 = vcombine.low %v11242_v14, %v11254_v20 }
 0x10b   : > { %13953 = vst [vmem:[#allocation143_spill] sm:$0xff] %v11489_v51  ;;  %v4121_v59 = vsel %vm10105_vm4, %v4116_v52, %v11470_v40  ;;  %v11498_v47 = vpop.f32.mrf.mxu0  ;;  %v4184_v51 = vrot.slane %v4182_v7, 5  ;;  %v4203_v52 = vor.u32 %v11117_v24, %v11097_v54  ;;  %v4165_v43 = vsel %vm10105_vm4, %v4160_v49, %v11014_v27  ;;  %v13973_v24 = vld [vmem:[#allocation96_spill] sm:$0xff] }
 0x10c   : > { %v11501_v39 = vcombine.low %v4111_v55, %v4121_v59  ;;  %v11505_v42 = vpop.f32.mrf.mxu1  ;;  %v7689_v59 = vld [vmem:[%s9989_s4 + $0x574] sm:$0x1]  ;;  %v11527_v31 = vcombine.low %v4155_v46, %v4165_v43  ;;  %v4199_v26 = vsel %vm10105_vm4, %v4194_v29, %v11097_v54  ;;  %v4228_v3 = vrot.slane %v4226_v41, 5  ;;  %9027 = vmatmul.mubr.msk.bf16.gmra.mxu1 %vm675_vm1, %v13957_v11  ;;  %v7694_v11 = vld [vmem:[%s9989_s4 + $0x588] sm:$0x1] }
 0x10d   : > { %13954 = vst [vmem:[#allocation144_spill] sm:$0xff] %v11505_v42  ;;  %v11515_v55 = vpop.f32.mrf.mxu0  ;;  %v4185_v38 = vsel %vm10105_vm4, %v11113_v4, %v4184_v51  ;;  %v4204_v18 = vrot.slane %v4203_v52, 4  ;;  %v4247_v54 = vor.u32 %v11151_v15, %v11139_v28  ;;  %v4270_v51 = vshll.u32 %v7689_v59, 16  ;;  %9030 = vmatprep.mubr.msk.bf16.mxu1 %vm675_vm1, %v13958_v9  ;;  %v9544_v59 = vld [vmem:[%s9989_s4 + $0x850] sm:$0xff]  }
 0x10e   : > { %v11524_v7 = vpop.f32.mrf.mxu1  ;;  %v11536_v27 = vcombine.low %v4175_v32, %v4185_v38  ;;  %v4237_v32 = vor.u32 %v11137_v5, %v11124_v36  ;;  %v4263_v15 = vsel %vm10105_vm4, %v11190_v58, %v11108_v10  ;;  %v13959_v36 = vld [vmem:[#allocation82_spill] sm:$0xff]  ;;  %v13960_v5 = vld [vmem:[#allocation84_spill] sm:$0xff]  ;;  %v13964_v58 = vshrl.u32 %v11133_v53, 16 }
 0x10f   : > { %13955 = vst [vmem:[#allocation145_spill] sm:$0xff] %v11524_v7  ;;  %v11532_v42 = vpop.f32.mrf.mxu0  ;;  %v4209_v4 = vsel %vm10105_vm4, %v4204_v18, %v11076_v30  ;;  %v4229_v30 = vsel %vm10105_vm4, %v11161_v45, %v4228_v3  ;;  %v4281_v52 = vor.u32 %v13960_v5, %v13959_v36  ;;  %v4248_v43 = vrot.slane %v4247_v54, 4  ;;  %v13962_v38 = vld [vmem:[#allocation86_spill] sm:$0xff]  ;;  %v13963_v18 = vld [vmem:[#allocation89_spill] sm:$0xff]  ;;  %v13966_v54 = vld [vmem:[#allocation75_spill] sm:$0xff] }
 0x110   : > { %v11541_v49 = vpop.f32.mrf.mxu1  ;;  %v11561_v35 = vcombine.low %v4199_v26, %v4209_v4  ;;  %v11574_v20 = vcombine.low %v4219_v56, %v4229_v30  ;;  %v4238_v14 = vrot.slane %v4237_v32, 4  ;;  %v4272_v29 = vrot.slane %v4270_v51, 5  ;;  %v9546_v56 = vld [vmem:[%s9989_s4 + $0x85c] sm:$0xff]   ;;  %v13967_v9 = vld [vmem:[#allocation88_spill] sm:$0xff]  ;;  %v13968_v36 = vld [vmem:[#allocation91_spill] sm:$0xff]  ;;  %9097 = vmatmul.mubr.msk.bf16.gmra.mxu0 %vm675_vm1, %v9544_v59 }
 0x111   : > { %13956 = vst [vmem:[#allocation146_spill] sm:$0xff] %v11541_v49  ;;  %v11555_v19 = vpop.f32.mrf.mxu0  ;;  %v4282_v45 = vrot.slane %v4281_v52, 4  ;;  %v4291_v26 = vor.u32 %v13963_v18, %v13962_v38  ;;  %v4294_v3 = vshll.u32 %v11133_v53, 16  ;;  %v4300_v10 = vrot.slane %v13964_v58, 4  ;;  %v13969_v5 = vld [vmem:[#allocation93_spill] sm:$0xff]  ;;  %9100 = vmatprep.mubr.msk.bf16.mxu0 %vm675_vm1, %v9546_v56 }
 0x112   : > { %v11572_v46 = vpop.f32.mrf.mxu1  ;;  %v4243_v32 = vsel %vm10105_vm4, %v4238_v14, %v11139_v28  ;;  %v4253_v51 = vsel %vm10105_vm4, %v4248_v43, %v13966_v54  ;;  %v4273_v30 = vsel %vm10105_vm4, %v13967_v9, %v4272_v29  ;;  %v4311_v53 = vor.u32 %v13969_v5, %v13968_v36  ;;  %v13972_v9 = vld [vmem:[#allocation94_spill] sm:$0xff] }
 0x113   : > { %13961 = vst [vmem:[#allocation82_spill] sm:$0xff] %v11572_v46  ;;  %v11576_v41 = vpop.f32.mrf.mxu0  ;;  %v11601_v18 = vcombine.low %v4243_v32, %v4253_v51  ;;  %v11603_v58 = vcombine.low %v4263_v15, %v4273_v30  ;;  %v4287_v28 = vsel %vm10105_vm4, %v4282_v45, %v13962_v38  ;;  %v4292_v14 = vrot.slane %v4291_v26, 4  ;;  %v13974_v32 = vld [vmem:[#allocation98_spill] sm:$0xff]  ;;  %v13975_v15 = vld [vmem:[#allocation99_spill] sm:$0xff]  ;;  %v7699_v26 = vld [vmem:[%s9989_s4 + $0x59c] sm:$0x1] }
 0x114   : > { %v11585_v4 = vpop.f32.mrf.mxu1  ;;  %v4296_v54 = vrot.slane %v4294_v3, 5  ;;  %v4312_v61 = vrot.slane %v4311_v53, 4  ;;  %v4314_v29 = vshll.u32 %v7694_v11, 16  ;;  %v4325_v5 = vor.u32 %v13973_v24, %v13972_v9  ;;  %v13978_v3 = vld [vmem:[#allocation102_spill] sm:$0xff] }
 0x115   : > { %13965 = vst [vmem:[#allocation84_spill] sm:$0xff] %v11585_v4  ;;  %v11599_v52 = vpop.f32.mrf.mxu0  ;;  %13970 = vst [vmem:[#allocation86_spill] sm:$0xff] %v11603_v58  ;;  %v4335_v51 = vor.u32 %v13975_v15, %v13974_v32  ;;  %v4338_v30 = vshll.u32 %v11183_v21, 16  ;;  %v13976_v45 = vshrl.u32 %v11183_v21, 16  ;;  %v13980_v24 = vcombine.low %v11271_v2, %v11274_v44 }
 0x116   : > { %v11608_v43 = vpop.f32.mrf.mxu1  ;;  %v4297_v59 = vsel %vm10105_vm4, %v4292_v14, %v4296_v54  ;;  %v4301_v9 = vor.u32 %v4300_v10, %v4296_v54  ;;  %v4316_v21 = vrot.slane %v4314_v29, 5  ;;  %v4326_v15 = vrot.slane %v4325_v5, 4 }
 0x117   : > { %13971 = vst [vmem:[#allocation89_spill] sm:$0xff] %v11608_v43  ;;  %v11612_v4 = vpop.f32.mrf.mxu0  ;;  %v4344_v38 = vrot.slane %v13976_v45, 4  ;;  %v13977_v43 = vld [vmem:[#allocation101_spill] sm:$0xff]  ;;  %9031 = vmatmul.mubr.msk.bf16.gmra.mxu1 %vm675_vm1, %v13980_v24  ;;  %v4336_v44 = vrot.slane %v4335_v51, 4  ;;  %v4340_v24 = vrot.slane %v4338_v30, 5  ;;  %v13984_v51 = vld [vmem:[#allocation104_spill] sm:$0xff] }
 0x118   : > { %v4355_v53 = vor.u32 %v13978_v3, %v13977_v43  ;;  %v11623_v11 = vpop.f32.mrf.mxu1  ;;  %v13981_v3 = vcombine.low %v11288_v22, %v11298_v57  ;;  %v4302_v14 = vrot.slane %v4301_v9, 4  ;;  %v4317_v10 = vsel %vm10105_vm4, %v4312_v61, %v4316_v21  ;;  %v13985_v30 = vld [vmem:[#allocation105_spill] sm:$0xff]  ;;  %v9550_v61 = vld [vmem:[%s9989_s4 + $0x870] sm:$0xff]  }
 0x119   : > { %13979 = vst [vmem:[#allocation75_spill] sm:$0xff] %v11623_v11  ;;  %v11632_v45 = vpop.f32.mrf.mxu0  ;;  %v11638_v11 = vcombine.low %v4287_v28, %v4297_v59  ;;  %v4331_v54 = vsel %vm10105_vm4, %v4326_v15, %v13974_v32  ;;  %v4358_v22 = vshll.u32 %v7699_v26, 16  ;;  %v9548_v28 = vld [vmem:[%s9989_s4 + $0x864] sm:$0xff]   ;;  %v4341_v29 = vsel %vm10105_vm4, %v4336_v44, %v4340_v24  ;;  %v13987_v9 = vld [vmem:[#allocation109_spill] sm:$0xff]  ;;  %v7704_v44 = vld [vmem:[%s9989_s4 + $0x5b0] sm:$0x1] }
 0x11a   : > { %9034 = vmatprep.mubr.msk.bf16.mxu1 %vm675_vm1, %v13981_v3  ;;  %v4356_v56 = vrot.slane %v4355_v53, 4  ;;  %v11640_v46 = vpop.f32.mrf.mxu1  ;;  %v4345_v5 = vor.u32 %v4344_v38, %v4340_v24  ;;  %v4369_v53 = vor.u32 %v13985_v30, %v13984_v51  ;;  %v13986_v59 = vld [vmem:[#allocation107_spill] sm:$0xff]  ;;  %v4307_v32 = vsel %vm10105_vm4, %v4302_v14, %v13968_v36  ;;  %9101 = vmatmul.mubr.msk.bf16.gmra.mxu0 %vm675_vm1, %v9548_v28 }
 0x11b   : > { %13982 = vst [vmem:[#allocation88_spill] sm:$0xff] %v11638_v11  ;;  %13983 = vst [vmem:[#allocation91_spill] sm:$0xff] %v11640_v46  ;;  %v11647_v57 = vpop.f32.mrf.mxu0  ;;  %v4379_v3 = vor.u32 %v13987_v9, %v13986_v59  ;;  %v11662_v26 = vcombine.low %v4331_v54, %v4341_v29  ;;  %v4360_v21 = vrot.slane %v4358_v22, 5  ;;  %v4382_v15 = vshll.u32 %v11220_v33, 16  ;;  %v13993_v54 = vld [vmem:[#allocation110_spill] sm:$0xff]  ;;  %v13994_v22 = vld [vmem:[#allocation113_spill] sm:$0xff]  ;;  %9104 = vmatprep.mubr.msk.bf16.mxu0 %vm675_vm1, %v9550_v61 }
 0x11c   : > { %v11656_v46 = vpop.f32.mrf.mxu1  ;;  %v11668_v24 = vcombine.low %v4307_v32, %v4317_v10  ;;  %v4346_v51 = vrot.slane %v4345_v5, 4  ;;  %v4370_v30 = vrot.slane %v4369_v53, 4  ;;  %v13992_v36 = vshrl.u32 %v11220_v33, 16 }
 0x11d   : > { %13988 = vst [vmem:[#allocation93_spill] sm:$0xff] %v11656_v46  ;;  %13989 = vst [vmem:[#allocation94_spill] sm:$0xff] %v11662_v26  ;;  %v11666_v38 = vpop.f32.mrf.mxu0  ;;  %v4380_v9 = vrot.slane %v4379_v3, 4  ;;  %v4361_v46 = vsel %vm10105_vm4, %v4356_v56, %v4360_v21  ;;  %v4384_v7 = vrot.slane %v4382_v15, 5  ;;  %v4399_v29 = vor.u32 %v13994_v22, %v13993_v54  ;;  %v13995_v56 = vld [vmem:[#allocation116_spill] sm:$0xff]  ;;  %v13996_v3 = vld [vmem:[#allocation118_spill] sm:$0xff] }
 0x11e   : > { %13990 = vst [vmem:[#allocation96_spill] sm:$0xff] %v11668_v24  ;;  %v11670_v49 = vpop.f32.mrf.mxu1  ;;  %v4388_v14 = vrot.slane %v13992_v36, 4  ;;  %v4351_v10 = vsel %vm10105_vm4, %v4346_v51, %v13977_v43  ;;  %v4375_v5 = vsel %vm10105_vm4, %v4370_v30, %v13986_v59  ;;  %v4402_v53 = vshll.u32 %v7704_v44, 16  ;;  %v13997_v21 = vld [vmem:[#allocation111_spill] sm:$0xff]  ;;  %v13998_v15 = vld [vmem:[#allocation114_spill] sm:$0xff] }
 0x11f   : > { %13991 = vst [vmem:[#allocation98_spill] sm:$0xff] %v11670_v49  ;;  %v8938_v48 = vpop.f32.mrf.mxu0  ;;  %v4413_v32 = vor.u32 %v13996_v3, %v13995_v56  ;;  %v13999_v36 = vcombine.low %v13997_v21, %v13998_v15  ;;  %v11692_v28 = vcombine.low %v4351_v10, %v4361_v46  ;;  %v4385_v43 = vsel %vm10105_vm4, %v4380_v9, %v4384_v7  ;;  %v14001_v44 = vld [vmem:[#allocation63_spill] sm:$0xff]  ;;  %v14002_v56 = vld [vmem:[#allocation120_spill] sm:$0xff]  ;;  %v14007_v9 = vld [vmem:[#allocation122_spill] sm:$0xff] }
 0x120   : > { %v8872_v33 = vpop.f32.mrf.mxu1  ;;  %v4389_v51 = vor.u32 %v4388_v14, %v4384_v7  ;;  %v4400_v59 = vrot.slane %v4399_v29, 4  ;;  %v14003_v3 = vld [vmem:[#allocation123_spill] sm:$0xff]  ;;  %v11701_v15 = vcombine.low %v4375_v5, %v4385_v43  ;;  %v4404_v61 = vrot.slane %v4402_v53, 5  ;;  %v9552_v43 = vld [vmem:[%s9989_s4 + $0x878] sm:$0xff]  }
 0x121   : > { %9035 = vmatmul.mubr.msk.bf16.gmra.mxu1 %vm675_vm1, %v13999_v36  ;;  %14000 = vst [vmem:[#allocation99_spill] sm:$0xff] %v11692_v28  ;;  %v1367_v30 = vadd.f32 %v8872_v33, %v14001_v44  ;;  %v2551_v22 = vpop.f32.mrf.mxu0  ;;  %v14004_v49 = vcombine.low %v14002_v56, %v14003_v3  ;;  %v4414_v46 = vrot.slane %v4413_v32, 4  ;;  %v14006_v28 = vld [vmem:[#allocation119_spill] sm:$0xff]  ;;  %v4426_v14 = vshll.u32 %v11271_v2, 16  ;;  %v7709_v44 = vld [vmem:[%s9989_s4 + $0x5c4] sm:$0x1] }
 0x122   : > { %14005 = vst [vmem:[#allocation101_spill] sm:$0xff] %v11701_v15  ;;  %v1358_v10 = vpop.f32.mrf.mxu1  ;;  %v4390_v36 = vrot.slane %v4389_v51, 4  ;;  %v4423_v7 = vor.u32 %v14007_v9, %v14006_v28  ;;  %v14008_v29 = vshrl.u32 %v11271_v2, 16  ;;  %v14010_v56 = vld [vmem:[#allocation65_spill] sm:$0xff]  ;;  %v4405_v53 = vsel %vm10105_vm4, %v4400_v59, %v4404_v61  ;;  %v9554_v3 = vld [vmem:[%s9989_s4 + $0x884] sm:$0xff]   ;;  %9105 = vmatmul.mubr.msk.bf16.gmra.mxu0 %vm675_vm1, %v9552_v43 }
 0x123   : > { %9038 = vmatprep.mubr.msk.bf16.mxu1 %vm675_vm1, %v14004_v49  ;;  %v11709_v26 = vadd.f32 %v8938_v48, %v1367_v30  ;;  %v1359_v49 = vadd.f32 %v1358_v10, %v14010_v56  ;;  %v8939_v5 = vpop.f32.mrf.mxu0  ;;  %v4419_v32 = vsel %vm10105_vm4, %v4414_v46, %v14006_v28  ;;  %v4428_v48 = vrot.slane %v4426_v14, 5  ;;  %v14011_v30 = vld [vmem:[#allocation126_spill] sm:$0xff]  ;;  %9108 = vmatprep.mubr.msk.bf16.mxu0 %vm675_vm1, %v9554_v3 }
 0x124   : > { %v4432_v33 = vrot.slane %v14008_v29, 4  ;;  %v8873_v51 = vpop.f32.mrf.mxu1  ;;  %v4395_v2 = vsel %vm10105_vm4, %v4390_v36, %v13993_v54  ;;  %v4424_v9 = vrot.slane %v4423_v7, 4  ;;  %v14012_v29 = vld [vmem:[#allocation127_spill] sm:$0xff]  ;;  %v4446_v24 = vshll.u32 %v7709_v44, 16  ;;  %v14015_v54 = vld [vmem:[#allocation128_spill] sm:$0xff] }
 0x125   : > { %14009 = vst [vmem:[#allocation102_spill] sm:$0xff] %v11709_v26  ;;  %v4443_v10 = vor.u32 %v14012_v29, %v14011_v30  ;;  %v11724_v56 = vadd.f32 %v2551_v22, %v1359_v49  ;;  %v14014_v26 = vld [vmem:[#allocation67_spill] sm:$0xff]  ;;  %v2554_v59 = vpop.f32.mrf.mxu0  ;;  %v11727_v61 = vcombine.low %v4395_v2, %v4405_v53  ;;  %v14018_v29 = vld [vmem:[#allocation69_spill] sm:$0xff]  ;;  %v14027_v3 = vshrl.u32 %v13997_v21, 16 }
 0x126   : > { %v1370_v15 = vadd.f32 %v8873_v51, %v14014_v26  ;;  %v1361_v28 = vpop.f32.mrf.mxu1  ;;  %v4429_v46 = vsel %vm10105_vm4, %v4424_v9, %v4428_v48  ;;  %v4433_v11 = vor.u32 %v4432_v33, %v4428_v48  ;;  %v14016_v36 = vld [vmem:[#allocation131_spill] sm:$0xff]  ;;  %v4448_v44 = vrot.slane %v4446_v24, 5  ;;  %v14019_v51 = vld [vmem:[#allocation124_spill] sm:$0xff]  ;;  %v14020_v2 = vld [vmem:[#allocation129_spill] sm:$0xff] }
 0x127   : > { %14013 = vst [vmem:[#allocation104_spill] sm:$0xff] %v11724_v56  ;;  %v4444_v58 = vrot.slane %v4443_v10, 4  ;;  %v4457_v7 = vor.u32 %v14016_v36, %v14015_v54  ;;  %v1362_v22 = vadd.f32 %v1361_v28, %v14018_v29  ;;  %v8942_v49 = vpop.f32.mrf.mxu0  ;;  %v11737_v26 = vcombine.low %v4419_v32, %v4429_v46  ;;  %v14023_v48 = vld [vmem:[#allocation134_spill] sm:$0xff]  ;;  %v14025_v32 = vld [vmem:[#allocation71_spill] sm:$0xff] }
 0x128   : > { %v11733_v14 = vadd.f32 %v8939_v5, %v1370_v15  ;;  %v8876_v53 = vpop.f32.mrf.mxu1  ;;  %v14021_v9 = vcombine.low %v14019_v51, %v14020_v2  ;;  %v4434_v33 = vrot.slane %v4433_v11, 4  ;;  %v14022_v5 = vld [vmem:[#allocation133_spill] sm:$0xff]  ;;  %v4470_v28 = vshll.u32 %v13997_v21, 16  ;;  %v9556_v2 = vld [vmem:[%s9989_s4 + $0x88c] sm:$0xff]  }
 0x129   : > { %v4458_v15 = vrot.slane %v4457_v7, 4  ;;  %v4467_v10 = vor.u32 %v14023_v48, %v14022_v5  ;;  %v11747_v43 = vadd.f32 %v2554_v59, %v1362_v22  ;;  %v1383_v24 = vadd.f32 %v8876_v53, %v14025_v32  ;;  %v2567_v46 = vpop.f32.mrf.mxu0  ;;  %v7714_v7 = vld [vmem:[%s9989_s4 + $0x5d8] sm:$0x1]  ;;  %v14031_v48 = vld [vmem:[#allocation136_spill] sm:$0xff]  ;;  %v14032_v32 = vld [vmem:[#allocation138_spill] sm:$0xff] }
 0x12a   : > { %14017 = vst [vmem:[#allocation105_spill] sm:$0xff] %v11733_v14  ;;  %9039 = vmatmul.mubr.msk.bf16.gmra.mxu1 %vm675_vm1, %v14021_v9  ;;  %v14026_v54 = vcombine.low %v11397_v60, %v11408_v13  ;;  %v4449_v11 = vsel %vm10105_vm4, %v4444_v58, %v4448_v44  ;;  %v4476_v36 = vrot.slane %v14027_v3, 4  ;;  %v1374_v59 = vpop.f32.mrf.mxu1  ;;  %v4439_v29 = vsel %vm10105_vm4, %v4434_v33, %v14011_v30  ;;  %v14029_v58 = vld [vmem:[#allocation73_spill] sm:$0xff]  ;;  %v11775_v30 = vld [vmem:[%s9989_s4 + $0x60c] sm:$0xf] }
 0x12b   : > { %14024 = vst [vmem:[#allocation107_spill] sm:$0xff] %v11747_v43  ;;  %v4463_v60 = vsel %vm10105_vm4, %v4458_v15, %v14022_v5  ;;  %v4468_v13 = vrot.slane %v4467_v10, 4  ;;  %v4472_v22 = vrot.slane %v4470_v28, 5  ;;  %v11765_v53 = vadd.f32 %v8942_v49, %v1383_v24  ;;  %v8943_v21 = vpop.f32.mrf.mxu0  ;;  %v9558_v43 = vld [vmem:[%s9989_s4 + $0x898] sm:$0xff]   ;;  %v11778_v33 = vld [vmem:[%s9989_s4 + $0x610] sm:$0xf]  ;;  %9109 = vmatmul.mubr.msk.bf16.gmra.mxu0 %vm675_vm1, %v9556_v2 }
 0x12c   : > { %9042 = vmatprep.mubr.msk.bf16.mxu1 %vm675_vm1, %v14026_v54  ;;  %v1375_v44 = vadd.f32 %v1374_v59, %v14029_v58  ;;  %v11769_v9 = vcombine.low %v4439_v29, %v4449_v11  ;;  %v4487_v54 = vor.u32 %v14032_v32, %v14031_v48  ;;  %v8877_v3 = vpop.f32.mrf.mxu1  ;;  %v4490_v5 = vshll.u32 %v7714_v7, 16  ;;  %v14033_v10 = vld [vmem:[#allocation140_spill] sm:$0xff]  ;;  %v14037_v7 = vld [vmem:[#allocation78_spill] sm:$0xff]  ;;  %9112 = vmatprep.mubr.msk.bf16.mxu0 %vm675_vm1, %v9558_v43 }
 0x12d   : > { %14028 = vst [vmem:[#allocation109_spill] sm:$0xff] %v11765_v53  ;;  %v4473_v15 = vsel %vm10105_vm4, %v4468_v13, %v4472_v22  ;;  %v4477_v49 = vor.u32 %v4476_v36, %v4472_v22  ;;  %v4501_v28 = vor.u32 %v14033_v10, %v11426_v23  ;;  %v14035_v11 = vld [vmem:[#allocation76_spill] sm:$0xff]  ;;  %v2570_v29 = vpop.f32.mrf.mxu0  ;;  %v4511_v13 = vor.u32 %v11441_v16, %v11439_v6 }
 0x12e   : > { %14030 = vst [vmem:[#allocation110_spill] sm:$0xff] %v11769_v9  ;;  %v11784_v24 = vadd.f32 %v2567_v46, %v1375_v44  ;;  %v1386_v59 = vadd.f32 %v8877_v3, %v14035_v11  ;;  %v11787_v58 = vcombine.low %v4463_v60, %v4473_v15  ;;  %v4488_v32 = vrot.slane %v4487_v54, 4  ;;  %v1377_v53 = vpop.f32.mrf.mxu1  ;;  %v14040_v3 = vld [vmem:[#allocation80_spill] sm:$0xff] }
 0x12f   : > { %v4478_v14 = vrot.slane %v4477_v49, 4  ;;  %v4492_v56 = vrot.slane %v4490_v5, 5  ;;  %v4502_v9 = vrot.slane %v4501_v28, 4  ;;  %v1378_v22 = vadd.f32 %v1377_v53, %v14037_v7  ;;  %v8946_v23 = vpop.f32.mrf.mxu0 }
 0x130   : > { %14034 = vst [vmem:[#allocation113_spill] sm:$0xff] %v11784_v24  ;;  %v11791_v36 = vadd.f32 %v8943_v21, %v1386_v59  ;;  %v8033_v46 = vcombine.low %v11775_v30, %v11778_v33  ;;  %v4514_v60 = vshll.u32 %v14019_v51, 16  ;;  %v8880_v44 = vpop.f32.mrf.mxu1  ;;  %v14038_v54 = vcombine.low %v11412_v62, %v11422_v0 }
 0x131   : > { %v4483_v16 = vsel %vm10105_vm4, %v4478_v14, %v14031_v48  ;;  %v4493_v53 = vsel %vm10105_vm4, %v4488_v32, %v4492_v56  ;;  %v4507_v21 = vsel %vm10105_vm4, %v4502_v9, %v11439_v6  ;;  %v4512_v51 = vrot.slane %v4511_v13, 4  ;;  %v2583_v15 = vpop.f32.mrf.mxu0  ;;  %v7730_v14 = vld [vmem:[%s9989_s4 + $0x618] sm:$0xf]  ;;  %v11820_v48 = vld [vmem:[%s9989_s4 + $0x61c] sm:$0xf]  ;;  %v14046_v32 = vld [vmem:[#allocation83_spill] sm:$0xff] }
 0x132   : > { %14036 = vst [vmem:[#allocation116_spill] sm:$0xff] %v11791_v36  ;;  %9043 = vmatmul.mubr.msk.bf16.gmra.mxu1 %vm675_vm1, %v14038_v54  ;;  %v11811_v2 = vadd.f32 %v2570_v29, %v1378_v22  ;;  %v1399_v0 = vadd.f32 %v8880_v44, %v14040_v3  ;;  %v14041_v43 = vcombine.low %v11431_v34, %v11446_v37  ;;  %v11824_v49 = vrot.slane %v4514_v60, 5  ;;  %v1390_v6 = vpop.f32.mrf.mxu1  ;;  %v9560_v44 = vld [vmem:[%s9989_s4 + $0x8a0] sm:$0xff]   ;;  %v9562_v54 = vld [vmem:[%s9989_s4 + $0x8ac] sm:$0xff]   ;;  %v11907_v36 = vld [vmem:[%s9989_s4 + $0x638] sm:$0xf] }
 0x133   : > { %v11822_v56 = vcombine.low %v4483_v16, %v4493_v53  ;;  %v14043_v9 = vshrl.u32 %v11431_v34, 16  ;;  %v14044_v10 = vshll.u32 %v11431_v34, 16  ;;  %v4545_v11 = vor.u32 %v11464_v12, %v11452_v17  ;;  %v8947_v7 = vpop.f32.mrf.mxu0  ;;  %9113 = vmatmul.mubr.msk.bf16.gmra.mxu0 %vm675_vm1, %v9560_v44  ;;  %14064 = vst [vmem:[#allocation67_spill] sm:$0xff] %v11907_v36 }
 0x134   : > { %14039 = vst [vmem:[#allocation118_spill] sm:$0xff] %v11811_v2  ;;  %9046 = vmatprep.mubr.msk.bf16.mxu1 %vm675_vm1, %v14041_v43  ;;  %v4555_v59 = vor.u32 %v11468_v63, %v11466_v50  ;;  %v11834_v29 = vadd.f32 %v8946_v23, %v1399_v0  ;;  %v1391_v13 = vadd.f32 %v1390_v6, %v14046_v32  ;;  %v14047_v22 = vshll.u32 %v11446_v37, 16  ;;  %v8881_v17 = vpop.f32.mrf.mxu1  ;;  %v14051_v0 = vld [vmem:[#allocation87_spill] sm:$0xff]  ;;  %v11855_v32 = vld [vmem:[%s9989_s4 + $0x620] sm:$0xf] }
 0x135   : > { %14042 = vst [vmem:[#allocation111_spill] sm:$0xff] %v11822_v56  ;;  %v4585_v5 = vrot.slane %v14043_v9, 4  ;;  %v4588_v28 = vrot.slane %v14044_v10, 5  ;;  %v4517_v34 = vsel %vm10105_vm4, %v4512_v51, %v11824_v49  ;;  %v14048_v12 = vshrl.u32 %v11446_v37, 16  ;;  %v2586_v6 = vpop.f32.mrf.mxu0  ;;  %v11858_v51 = vld [vmem:[%s9989_s4 + $0x624] sm:$0xf]  ;;  %9116 = vmatprep.mubr.msk.bf16.mxu0 %vm675_vm1, %v9562_v54 }
 0x136   : > { %14045 = vst [vmem:[#allocation114_spill] sm:$0xff] %v11834_v29  ;;  %v11839_v60 = vrot.slane %v14047_v22, 5  ;;  %v8034_v23 = vcombine.low %v7730_v14, %v11820_v48  ;;  %v11849_v16 = vcombine.low %v4507_v21, %v4517_v34  ;;  %v4546_v53 = vrot.slane %v4545_v11, 4  ;;  %14052 = vst [vmem:[#allocation123_spill] sm:$0xff] %v11858_v51  ;;  %v1393_v22 = vpop.f32.mrf.mxu1  ;;  %v14053_v11 = vld [vmem:[#allocation62_spill] sm:$0xff] }
 0x137   : > { %v4598_v63 = vrot.slane %v14048_v12, 4  ;;  %v11851_v3 = vadd.f32 %v2583_v15, %v1391_v13  ;;  %v1402_v43 = vadd.f32 %v8881_v17, %v14051_v0  ;;  %v4627_v9 = vshrl.u32 %v7730_v14, 16  ;;  %v8950_v2 = vpop.f32.mrf.mxu0 }
 0x138   : > { %14049 = vst [vmem:[#allocation63_spill] sm:$0xff] %v11849_v16  ;;  %v4630_v10 = vshll.u32 %v7730_v14, 16  ;;  %v4636_v37 = vshll.u32 %v11820_v48, 16  ;;  %v4551_v21 = vsel %vm10105_vm4, %v4546_v53, %v11466_v50  ;;  %v4556_v34 = vrot.slane %v4555_v59, 4  ;;  %v8884_v50 = vpop.f32.mrf.mxu1 }
 0x139   : > { %14050 = vst [vmem:[#allocation120_spill] sm:$0xff] %v11851_v3  ;;  %v4558_v15 = vshll.u32 %v11412_v62, 16  ;;  %v14054_v13 = vshll.u32 %v14053_v11, 16  ;;  %v14055_v14 = vshrl.u32 %v14053_v11, 16  ;;  %v11873_v0 = vadd.f32 %v8947_v7, %v1402_v43  ;;  %v14057_v3 = vld [vmem:[#allocation92_spill] sm:$0xff]  ;;  %v2599_v44 = vpop.f32.mrf.mxu0 }
 0x13a   : > { %v1394_v29 = vadd.f32 %v1393_v22, %v14057_v3  ;;  %9047 = vmatmul.mubr.msk.bf16.gmra.mxu1 %vm675_vm1, %v8033_v46  ;;  %v4640_v62 = vshrl.u32 %v11820_v48, 16  ;;  %v8035_v59 = vcombine.low %v11855_v32, %v11858_v51  ;;  %v4589_v7 = vor.u32 %v4588_v28, %v4585_v5  ;;  %v14060_v3 = vld [vmem:[#allocation97_spill] sm:$0xff]  ;;  %v7735_v11 = vld [vmem:[%s9989_s4 + $0x62c] sm:$0xf]  ;;  %v1406_v54 = vpop.f32.mrf.mxu1  ;;  %v7736_v5 = vld [vmem:[%s9989_s4 + $0x630] sm:$0xf] }
 0x13b   : > { %v11867_v17 = vrot.slane %v14054_v13, 5  ;;  %v11871_v12 = vrot.slane %v14055_v14, 4  ;;  %14056 = vst [vmem:[#allocation119_spill] sm:$0xff] %v11873_v0  ;;  %v11882_v53 = vrot.slane %v4558_v15, 5  ;;  %v1415_v22 = vadd.f32 %v8884_v50, %v14060_v3  ;;  %9050 = vmatprep.mubr.msk.bf16.mxu1 %vm675_vm1, %v8034_v23  ;;  %v14062_v14 = vld [vmem:[#allocation103_spill] sm:$0xff]  ;;  %v9564_v50 = vld [vmem:[%s9989_s4 + $0x8b4] sm:$0xff]  }
 0x13c   : > { %v11884_v43 = vadd.f32 %v2586_v6, %v1394_v29  ;;  %v4629_v46 = vrot.slane %v4627_v9, 4  ;;  %v4599_v48 = vor.u32 %v4598_v63, %v11839_v60  ;;  %v4632_v13 = vrot.slane %v4630_v10, 5  ;;  %v8951_v9 = vpop.f32.mrf.mxu0  ;;  %v11901_v63 = vld [vmem:[%s9989_s4 + $0x634] sm:$0xf]  ;;  %v8885_v10 = vpop.f32.mrf.mxu1  ;;  %v9566_v0 = vld [vmem:[%s9989_s4 + $0x8c0] sm:$0xff]   ;;  %9117 = vmatmul.mubr.msk.bf16.gmra.mxu0 %vm675_vm1, %v9564_v50 }
 0x13d   : > { %14058 = vst [vmem:[#allocation122_spill] sm:$0xff] %v11882_v53  ;;  %v11890_v15 = vrot.slane %v4636_v37, 5  ;;  %v4561_v28 = vsel %vm10105_vm4, %v4556_v34, %v11882_v53  ;;  %v4590_v29 = vrot.slane %v4589_v7, 4  ;;  %v11896_v6 = vadd.f32 %v8950_v2, %v1415_v22  ;;  %9120 = vmatprep.mubr.msk.bf16.mxu0 %vm675_vm1, %v9566_v0 }
 0x13e   : > { %14059 = vst [vmem:[#allocation65_spill] sm:$0xff] %v11884_v43  ;;  %v1407_v23 = vadd.f32 %v1406_v54, %v14062_v14  ;;  %v4671_v3 = vshrl.u32 %v7735_v11, 16  ;;  %v11903_v43 = vcombine.low %v4551_v21, %v4561_v28  ;;  %v4674_v37 = vshll.u32 %v7735_v11, 16  ;;  %v14066_v54 = vld [vmem:[#allocation108_spill] sm:$0xff] }
 0x13f   : > { %14061 = vst [vmem:[#allocation126_spill] sm:$0xff] %v11896_v6  ;;  %v4595_v34 = vsel %vm10105_vm4, %v4590_v29, %v11839_v60  ;;  %v4600_v2 = vrot.slane %v4599_v48, 4  ;;  %v4602_v7 = vshll.u32 %v11775_v30, 16  ;;  %v1418_v14 = vadd.f32 %v8885_v10, %v14066_v54  ;;  %v2602_v6 = vpop.f32.mrf.mxu0  ;;  %v14069_v60 = vld [vmem:[#allocation115_spill] sm:$0xff] }
 0x140   : > { %14063 = vst [vmem:[#allocation127_spill] sm:$0xff] %v11903_v43  ;;  %v11913_v22 = vadd.f32 %v2599_v44, %v1407_v23  ;;  %v4642_v24 = vrot.slane %v4640_v62, 4  ;;  %v8036_v21 = vcombine.low %v7735_v11, %v7736_v5  ;;  %v1409_v43 = vpop.f32.mrf.mxu1  ;;  %v4680_v51 = vshll.u32 %v7736_v5, 16  ;;  %v9568_v54 = vld [vmem:[%s9989_s4 + $0x8c8] sm:$0xff]  }
 0x141   : > { %v11918_v16 = vrot.slane %v4602_v7, 5  ;;  %v4633_v53 = vor.u32 %v4632_v13, %v4629_v46  ;;  %v11920_v56 = vadd.f32 %v8951_v9, %v1418_v14  ;;  %v1410_v48 = vadd.f32 %v1409_v43, %v14069_v60  ;;  %v8954_v44 = vpop.f32.mrf.mxu0  ;;  %v14071_v9 = vld [vmem:[#allocation121_spill] sm:$0xff]  ;;  %v7740_v7 = vld [vmem:[%s9989_s4 + $0x640] sm:$0xf] }
 0x142   : > { %14065 = vst [vmem:[#allocation128_spill] sm:$0xff] %v11913_v22  ;;  %v4684_v29 = vshrl.u32 %v7736_v5, 16  ;;  %v8037_v62 = vcombine.low %v11901_v63, %v11907_v36  ;;  %v8888_v11 = vpop.f32.mrf.mxu1  ;;  %9051 = vmatmul.mubr.msk.bf16.gmra.mxu1 %vm675_vm1, %v8035_v59  ;;  %v4673_v23 = vrot.slane %v4671_v3, 4  ;;  %v4676_v10 = vrot.slane %v4674_v37, 5  ;;  %v7741_v59 = vld [vmem:[%s9989_s4 + $0x644] sm:$0xf] }
 0x143   : > { %14067 = vst [vmem:[#allocation131_spill] sm:$0xff] %v11918_v16  ;;  %14068 = vst [vmem:[#allocation69_spill] sm:$0xff] %v11920_v56  ;;  %v4605_v43 = vsel %vm10105_vm4, %v4600_v2, %v11918_v16  ;;  %v4634_v46 = vrot.slane %v4633_v53, 4  ;;  %v11931_v13 = vadd.f32 %v2602_v6, %v1410_v48  ;;  %v1431_v5 = vadd.f32 %v8888_v11, %v14071_v9  ;;  %v2615_v50 = vpop.f32.mrf.mxu0 }
 0x144   : > { %9054 = vmatprep.mubr.msk.bf16.mxu1 %vm675_vm1, %v8036_v21  ;;  %v11937_v3 = vcombine.low %v4595_v34, %v4605_v43  ;;  %v4643_v0 = vor.u32 %v4642_v24, %v11890_v15  ;;  %v1422_v37 = vpop.f32.mrf.mxu1  ;;  %v4715_v2 = vshrl.u32 %v7740_v7, 16  ;;  %v4718_v53 = vshll.u32 %v7740_v7, 16  ;;  %v14074_v21 = vld [vmem:[#allocation130_spill] sm:$0xff]  ;;  %v11951_v43 = vld [vmem:[%s9989_s4 + $0x648] sm:$0xf]  ;;  %9121 = vmatmul.mubr.msk.bf16.gmra.mxu0 %vm675_vm1, %v9568_v54 }
 0x145   : > { %14070 = vst [vmem:[#allocation124_spill] sm:$0xff] %v11931_v13  ;;  %v4639_v6 = vsel %vm10105_vm4, %v4634_v46, %v11890_v15  ;;  %v4646_v14 = vshll.u32 %v11855_v32, 16  ;;  %v11945_v60 = vadd.f32 %v8954_v44, %v1431_v5  ;;  %v1423_v48 = vadd.f32 %v1422_v37, %v14074_v21  ;;  %v8955_v11 = vpop.f32.mrf.mxu0  ;;  %v11954_v24 = vld [vmem:[%s9989_s4 + $0x64c] sm:$0xf] }
 0x146   : > { %14072 = vst [vmem:[#allocation129_spill] sm:$0xff] %v11937_v3  ;;  %v11948_v34 = vrot.slane %v4680_v51, 5  ;;  %14075 = vst [vmem:[#allocation134_spill] sm:$0xff] %v11954_v24  ;;  %v4644_v9 = vrot.slane %v4643_v0, 4  ;;  %v8889_v28 = vpop.f32.mrf.mxu1  ;;  %v4686_v13 = vrot.slane %v4684_v29, 4  ;;  %v8038_v56 = vcombine.low %v7740_v7, %v7741_v59  ;;  %v9570_v3 = vld [vmem:[%s9989_s4 + $0x8d4] sm:$0xff]  }
 0x147   : > { %14073 = vst [vmem:[#allocation133_spill] sm:$0xff] %v11945_v60  ;;  %v4724_v22 = vshll.u32 %v7741_v59, 16  ;;  %v11957_v15 = vrot.slane %v4646_v14, 5  ;;  %v11959_v44 = vadd.f32 %v2615_v50, %v1423_v48  ;;  %v14077_v46 = vld [vmem:[#allocation135_spill] sm:$0xff]  ;;  %v2618_v37 = vpop.f32.mrf.mxu0  ;;  %v4728_v51 = vshrl.u32 %v7741_v59, 16  ;;  %9124 = vmatprep.mubr.msk.bf16.mxu0 %vm675_vm1, %v9570_v3 }
 0x148   : > { %v1434_v5 = vadd.f32 %v8889_v28, %v14077_v46  ;;  %v4677_v21 = vor.u32 %v4676_v10, %v4673_v23  ;;  %v1425_v60 = vpop.f32.mrf.mxu1  ;;  %v4717_v36 = vrot.slane %v4715_v2, 4  ;;  %v4720_v16 = vrot.slane %v4718_v53, 5  ;;  %v14079_v14 = vld [vmem:[#allocation139_spill] sm:$0xff]  ;;  %v11972_v28 = vld [vmem:[%s9989_s4 + $0x654] sm:$0xf] }
 0x149   : > { %14076 = vst [vmem:[#allocation71_spill] sm:$0xff] %v11959_v44  ;;  %v8039_v0 = vcombine.low %v11951_v43, %v11954_v24  ;;  %v4649_v29 = vsel %vm10105_vm4, %v4644_v9, %v11957_v15  ;;  %v1426_v50 = vadd.f32 %v1425_v60, %v14079_v14  ;;  %v8958_v48 = vpop.f32.mrf.mxu0  ;;  %v11977_v2 = vrot.slane %v4724_v22, 5  ;;  %v7746_v46 = vld [vmem:[%s9989_s4 + $0x658] sm:$0xf] }
 0x14a   : > { %v11967_v7 = vadd.f32 %v8955_v11, %v1434_v5  ;;  %v11974_v23 = vcombine.low %v4639_v6, %v4649_v29  ;;  %v4678_v10 = vrot.slane %v4677_v21, 4  ;;  %v8892_v59 = vpop.f32.mrf.mxu1  ;;  %9055 = vmatmul.mubr.msk.bf16.gmra.mxu1 %vm675_vm1, %v8037_v62  ;;  %v4759_v53 = vshrl.u32 %v11972_v28, 16  ;;  %v9838_v62 = vld [vmem:[%s9989_s4 + $0x530] sm:$0xf] }
 0x14b   : > { %v4687_v60 = vor.u32 %v4686_v13, %v11948_v34  ;;  %v4690_v11 = vshll.u32 %v11901_v63, 16  ;;  %v11983_v54 = vadd.f32 %v2618_v37, %v1426_v50  ;;  %v1447_v6 = vadd.f32 %v8892_v59, %v11449_v25  ;;  %v2631_v9 = vpop.f32.mrf.mxu0  ;;  %9058 = vmatprep.mubr.msk.bf16.mxu1 %vm675_vm1, %v8038_v56  ;;  %v9572_v50 = vld [vmem:[%s9989_s4 + $0x8dc] sm:$0xff]  }
 0x14c   : > { %14078 = vst [vmem:[#allocation73_spill] sm:$0xff] %v11967_v7  ;;  %14080 = vst [vmem:[#allocation136_spill] sm:$0xff] %v11974_v23  ;;  %v4122_v22 = vshrl.u32 %v9838_v62, 16  ;;  %v4683_v3 = vsel %vm10105_vm4, %v4678_v10, %v11948_v34  ;;  %v1438_v5 = vpop.f32.mrf.mxu1  ;;  %v4730_v13 = vrot.slane %v4728_v51, 4  ;;  %v4762_v21 = vshll.u32 %v11972_v28, 16  ;;  %v9574_v10 = vld [vmem:[%s9989_s4 + $0x8e8] sm:$0xff]   ;;  %9125 = vmatmul.mubr.msk.bf16.gmra.mxu0 %vm675_vm1, %v9572_v50 }
 0x14d   : > { %14081 = vst [vmem:[#allocation138_spill] sm:$0xff] %v11983_v54  ;;  %v4688_v37 = vrot.slane %v4687_v60, 4  ;;  %v11993_v29 = vrot.slane %v4690_v11, 5  ;;  %v11995_v25 = vadd.f32 %v8958_v48, %v1447_v6  ;;  %v1439_v56 = vadd.f32 %v1438_v5, %v11472_v1  ;;  %v8959_v14 = vpop.f32.mrf.mxu0  ;;  %v7674_v1 = vld [vmem:[%s9989_s4 + $0x538] sm:$0x1]  ;;  %9128 = vmatprep.mubr.msk.bf16.mxu0 %vm675_vm1, %v9574_v10 }
 0x14e   : > { %v4768_v59 = vshll.u32 %v7746_v46, 16  ;;  %v4772_v62 = vshrl.u32 %v7746_v46, 16  ;;  %v8893_v54 = vpop.f32.mrf.mxu1  ;;  %v8040_v7 = vcombine.low %v11972_v28, %v7746_v46  ;;  %v4761_v34 = vrot.slane %v4759_v53, 4 }
 0x14f   : > { %14082 = vst [vmem:[#allocation140_spill] sm:$0xff] %v11995_v25  ;;  %v4693_v51 = vsel %vm10105_vm4, %v4688_v37, %v11993_v29  ;;  %v4721_v60 = vor.u32 %v4720_v16, %v4717_v36  ;;  %v12004_v11 = vadd.f32 %v2631_v9, %v1439_v56  ;;  %v1450_v48 = vadd.f32 %v8893_v54, %v11498_v47  ;;  %v2634_v6 = vpop.f32.mrf.mxu0  ;;  %v12028_v56 = vld [vmem:[%s9989_s4 + $0x65c] sm:$0xf] }
 0x150   : > { %v4124_v5 = vrot.slane %v4122_v22, 4  ;;  %v12008_v25 = vcombine.low %v4683_v3, %v4693_v51  ;;  %v1441_v44 = vpop.f32.mrf.mxu1  ;;  %v4764_v23 = vrot.slane %v4762_v21, 5  ;;  %v4731_v28 = vor.u32 %v4730_v13, %v11977_v2  ;;  %v9576_v51 = vld [vmem:[%s9989_s4 + $0x8f0] sm:$0xff]  }
 0x151   : > { %v4722_v24 = vrot.slane %v4721_v60, 4  ;;  %v4734_v53 = vshll.u32 %v11951_v43, 16  ;;  %v12012_v46 = vadd.f32 %v8959_v14, %v1450_v48  ;;  %v1442_v36 = vadd.f32 %v1441_v44, %v11515_v55  ;;  %v8962_v16 = vpop.f32.mrf.mxu0 }
 0x152   : > { %v4770_v47 = vrot.slane %v4768_v59, 5  ;;  %v4774_v54 = vrot.slane %v4772_v62, 4  ;;  %v8896_v9 = vpop.f32.mrf.mxu1  ;;  %9059 = vmatmul.mubr.msk.bf16.gmra.mxu1 %vm675_vm1, %v8039_v0  ;;  %v4138_v22 = vshll.u32 %v7674_v1, 16  ;;  %v4732_v13 = vrot.slane %v4731_v28, 4  ;;  %v12031_v0 = vld [vmem:[%s9989_s4 + $0x660] sm:$0xf] }
 0x153   : > { %v4727_v3 = vsel %vm10105_vm4, %v4722_v24, %v11977_v2  ;;  %v12021_v55 = vrot.slane %v4734_v53, 5  ;;  %v12023_v44 = vadd.f32 %v2634_v6, %v1442_v36  ;;  %v1463_v21 = vadd.f32 %v8896_v9, %v11532_v42  ;;  %v2647_v37 = vpop.f32.mrf.mxu0  ;;  %9062 = vmatprep.mubr.msk.bf16.mxu1 %vm675_vm1, %v8040_v7 }
 0x154   : > { %v4125_v14 = vor.u32 %v4124_v5, %v11470_v40  ;;  %v1454_v50 = vpop.f32.mrf.mxu1  ;;  %v4765_v2 = vor.u32 %v4764_v23, %v4761_v34  ;;  %v14083_v59 = vor.u32 %v11871_v12, %v11867_v17  ;;  %v8041_v40 = vcombine.low %v12028_v56, %v12031_v0  ;;  %9129 = vmatmul.mubr.msk.bf16.gmra.mxu0 %vm675_vm1, %v9576_v51 }
 0x155   : > { %v4737_v24 = vsel %vm10105_vm4, %v4732_v13, %v12021_v55  ;;  %v12040_v42 = vadd.f32 %v8962_v16, %v1463_v21  ;;  %v1455_v7 = vadd.f32 %v1454_v50, %v11555_v19  ;;  %v8963_v10 = vpop.f32.mrf.mxu0  ;;  %v4140_v6 = vrot.slane %v4138_v22, 5  ;;  %v14084_v21 = vld [vmem:[#allocation2_spill] sm:$0xff] }
 0x156   : > { %v4136_v62 = vrot.slane %v14083_v59, 4  ;;  %v12044_v60 = vcombine.low %v4727_v3, %v4737_v24  ;;  %v8897_v48 = vpop.f32.mrf.mxu1  ;;  %v4766_v1 = vrot.slane %v4765_v2, 4  ;;  %v4775_v5 = vor.u32 %v4774_v54, %v4770_v47  ;;  %9200 = vmatprep.mubr.msk.bf16.mxu0 %vm675_vm1, %v14084_v21 }
 0x157   : > { %v12048_v23 = vadd.f32 %v2647_v37, %v1455_v7  ;;  %v1466_v12 = vadd.f32 %v8897_v48, %v11576_v41  ;;  %v2650_v34 = vpop.f32.mrf.mxu0  ;;  %v4126_v28 = vrot.slane %v4125_v14, 4  ;;  %v4778_v53 = vshll.u32 %v12028_v56, 16 }
 0x158   : > { %v1457_v19 = vpop.f32.mrf.mxu1  ;;  %v4771_v36 = vsel %vm10105_vm4, %v4766_v1, %v4770_v47  ;;  %v4776_v16 = vrot.slane %v4775_v5, 4  ;;  %v4141_v41 = vsel %vm10105_vm4, %v4136_v62, %v4140_v6  ;;  %v9840_v1 = vld [vmem:[%s13713_s1 + $0x1c] sm:$0xf] }
 0x159   : > { %v12054_v9 = vadd.f32 %v8963_v10, %v1466_v12  ;;  %v1458_v3 = vadd.f32 %v1457_v19, %v11599_v52  ;;  %v8966_v22 = vpop.f32.mrf.mxu0  ;;  %v12058_v54 = vrot.slane %v4778_v53, 5  ;;  %v4131_v52 = vsel %vm10105_vm4, %v4126_v28, %v11867_v17  ;;  %v14086_v19 = vld [vmem:[#allocation64_spill] sm:$0xff] }
 0x15a   : > { %v8900_v13 = vpop.f32.mrf.mxu1  ;;  %9063 = vmatmul.mubr.msk.bf16.gmra.mxu1 %vm675_vm1, %v8041_v40  ;;  %v8141_v10 = vcombine.low %v4131_v52, %v4141_v41  ;;  %v14089_v52 = vld [vmem:[#allocation68_spill] sm:$0xff] }
 0x15b   : > { %v12065_v47 = vadd.f32 %v2650_v34, %v1458_v3  ;;  %v1479_v37 = vadd.f32 %v8900_v13, %v11612_v4  ;;  %v2663_v14 = vpop.f32.mrf.mxu0  ;;  %9134 = vmatprep.mubr.msk.bf16.mxu1 %vm675_vm1, %v11501_v39  ;;  %v4781_v50 = vsel %vm10105_vm4, %v4776_v16, %v12058_v54  ;;  %v9839_v39 = vld [vmem:[%s13713_s1 + $0x20] sm:$0xf] }
 0x15c   : > { %v1470_v24 = vpop.f32.mrf.mxu1  ;;  %v12076_v2 = vcombine.low %v4771_v36, %v4781_v50  ;;  %v6159_v40 = vsel %vm772_vm0, %v9839_v39, 0  ;;  %v14088_v13 = vld [vmem:[#allocation66_spill] sm:$0xff]  ;;  %v14092_v39 = vld [vmem:[#allocation8_spill] sm:$0xff] }
 0x15d   : > { %v12078_v59 = vadd.f32 %v8966_v22, %v1479_v37  ;;  %v1471_v62 = vadd.f32 %v1470_v24, %v11632_v45  ;;  %v8967_v4 = vpop.f32.mrf.mxu0  ;;  %v5745_v45 = vsel %vm772_vm0, %v9840_v1, 0  ;;  %v14087_v22 = vld [vmem:[#allocation4_spill] sm:$0xff] }
 0x15e   : > { %v8901_v7 = vpop.f32.mrf.mxu1 }
 0x15f   : > { %v12081_v51 = vadd.f32 %v2663_v14, %v1471_v62  ;;  %v1482_v17 = vadd.f32 %v8901_v7, %v11647_v57  ;;  %v2666_v48 = vpop.f32.mrf.mxu0  ;;  %v14085_v57 = vld [vmem:[#allocation3_spill] sm:$0xff]  ;;  %v14090_v7 = vld [vmem:[#allocation70_spill] sm:$0xff] }
 0x160   : > { %v1473_v6 = vpop.f32.mrf.mxu1  ;;  %9201 = vmatmul.mubr.msk.bf16.vlgmr.msra.gmra.mxu0 %vm675_vm1, %v14085_v57  ;;  %v14094_v57 = vld [vmem:[#allocation74_spill] sm:$0xff] }
 0x161   : > { %v12092_v5 = vadd.f32 %v8967_v4, %v1482_v17  ;;  %v1474_v12 = vadd.f32 %v1473_v6, %v11666_v38  ;;  %v8970_v34 = vpop.f32.mrf.mxu0  ;;  %9331 = vmatpush3.bf16.msra.mxu0 %v6159_v40  ;;  %9204 = vmatprep.mubr.msk.bf16.mxu0 %vm675_vm1, %v14087_v22  ;;  %v14091_v17 = vld [vmem:[#allocation6_spill] sm:$0xff]  ;;  %v14093_v6 = vld [vmem:[#allocation72_spill] sm:$0xff] }
 0x162   : > { %v8904_v28 = vpop.f32.mrf.mxu1  ;;  %9135 = vmatmul.mubr.msk.bf16.vlgmr.msra.gmra.mxu1 %vm675_vm1, %v8141_v10 }
 0x163   : > { %v12098_v53 = vadd.f32 %v2666_v48, %v1474_v12  ;;  %v1495_v36 = vadd.f32 %v8904_v28, %v14086_v19  ;;  %9265 = vmatpush3.bf16.msra.mxu1 %v5745_v45  ;;  %v2679_v16 = vpop.f32.mrf.mxu0  ;;  %9138 = vmatprep.mubr.msk.bf16.mxu1 %vm675_vm1, %v11527_v31 }
 0x164   : > { %v1486_v3 = vpop.f32.mrf.mxu1 }
 0x165   : > { %v12105_v38 = vadd.f32 %v8970_v34, %v1495_v36  ;;  %v1487_v41 = vadd.f32 %v1486_v3, %v14088_v13  ;;  %v8971_v21 = vpop.f32.mrf.mxu0 }
 0x166   : > { %v8905_v37 = vpop.f32.mrf.mxu1 }
 0x167   : > { %v12108_v14 = vadd.f32 %v2679_v16, %v1487_v41  ;;  %v1498_v50 = vadd.f32 %v8905_v37, %v14089_v52  ;;  %v2682_v24 = vpop.f32.mrf.mxu0 }
 0x168   : > { %v1489_v62 = vpop.f32.mrf.mxu1  ;;  %9205 = vmatmul.mubr.msk.bf16.gmra.mxu0 %vm675_vm1, %v14091_v17 }
 0x169   : > { %v12111_v4 = vadd.f32 %v8971_v21, %v1498_v50  ;;  %v1490_v31 = vadd.f32 %v1489_v62, %v14090_v7  ;;  %v8974_v10 = vpop.f32.mrf.mxu0  ;;  %9208 = vmatprep.mubr.msk.bf16.mxu0 %vm675_vm1, %v14092_v39  ;;  %v14096_v21 = vld [vmem:[#allocation79_spill] sm:$0xff]  ;;  %v14097_v50 = vld [vmem:[#allocation10_spill] sm:$0xff]  ;;  %v14099_v7 = vld [vmem:[#allocation81_spill] sm:$0xff] }
 0x16a   : > { %v8908_v48 = vpop.f32.mrf.mxu1  ;;  %9139 = vmatmul.mubr.msk.bf16.gmra.mxu1 %vm675_vm1, %v11536_v27  ;;  %v14095_v27 = vld [vmem:[#allocation77_spill] sm:$0xff] }
 0x16b   : > { %v12120_v40 = vadd.f32 %v2682_v24, %v1490_v31  ;;  %v1511_v1 = vadd.f32 %v8908_v48, %v14093_v6  ;;  %v2695_v45 = vpop.f32.mrf.mxu0  ;;  %9142 = vmatprep.mubr.msk.bf16.mxu1 %vm675_vm1, %v11561_v35  ;;  %v14098_v24 = vld [vmem:[#allocation13_spill] sm:$0xff] }
 0x16c   : > { %v1502_v12 = vpop.f32.mrf.mxu1  ;;  %v14100_v39 = vld [vmem:[#allocation85_spill] sm:$0xff] }
 0x16d   : > { %v12125_v34 = vadd.f32 %v8974_v10, %v1511_v1  ;;  %v1503_v28 = vadd.f32 %v1502_v12, %v14094_v57  ;;  %v8975_v19 = vpop.f32.mrf.mxu0 }
 0x16e   : > { %v8909_v36 = vpop.f32.mrf.mxu1 }
 0x16f   : > { %v12128_v16 = vadd.f32 %v2695_v45, %v1503_v28  ;;  %v1514_v3 = vadd.f32 %v8909_v36, %v14095_v27  ;;  %v2698_v22 = vpop.f32.mrf.mxu0  ;;  %v14103_v27 = vld [vmem:[#allocation95_spill] sm:$0xff] }
 0x170   : > { %v1505_v13 = vpop.f32.mrf.mxu1  ;;  %9209 = vmatmul.mubr.msk.bf16.gmra.mxu0 %vm675_vm1, %v14097_v50  ;;  %v14108_v50 = vld [vmem:[#allocation100_spill] sm:$0xff] }
 0x171   : > { %v12131_v41 = vadd.f32 %v8975_v19, %v1514_v3  ;;  %v1506_v37 = vadd.f32 %v1505_v13, %v14096_v21  ;;  %v8978_v52 = vpop.f32.mrf.mxu0  ;;  %9212 = vmatprep.mubr.msk.bf16.mxu0 %vm675_vm1, %v14098_v24  ;;  %v14104_v13 = vld [vmem:[#allocation14_spill] sm:$0xff] }
 0x172   : > { %v8912_v35 = vpop.f32.mrf.mxu1  ;;  %9143 = vmatmul.mubr.msk.bf16.gmra.mxu1 %vm675_vm1, %v11574_v20  ;;  %v14101_v20 = vld [vmem:[#allocation90_spill] sm:$0xff] }
 0x173   : > { %v12140_v62 = vadd.f32 %v2698_v22, %v1506_v37  ;;  %v1527_v31 = vadd.f32 %v8912_v35, %v14099_v7  ;;  %v2711_v10 = vpop.f32.mrf.mxu0  ;;  %9146 = vmatprep.mubr.msk.bf16.mxu1 %vm675_vm1, %v11601_v18  ;;  %v14105_v21 = vld [vmem:[#allocation86_spill] sm:$0xff]  ;;  %v14106_v37 = vld [vmem:[#allocation17_spill] sm:$0xff]  ;;  %v14109_v7 = vld [vmem:[#allocation88_spill] sm:$0xff] }
 0x174   : > { %v1518_v17 = vpop.f32.mrf.mxu1 }
 0x175   : > { %v12145_v48 = vadd.f32 %v8978_v52, %v1527_v31  ;;  %v1519_v6 = vadd.f32 %v1518_v17, %v14100_v39  ;;  %v8979_v1 = vpop.f32.mrf.mxu0  ;;  %v14111_v17 = vld [vmem:[#allocation106_spill] sm:$0xff] }
 0x176   : > { %v8913_v45 = vpop.f32.mrf.mxu1 }
 0x177   : > { %v12148_v12 = vadd.f32 %v2711_v10, %v1519_v6  ;;  %v1530_v57 = vadd.f32 %v8913_v45, %v14101_v20  ;;  %v2714_v28 = vpop.f32.mrf.mxu0  ;;  %v14113_v20 = vld [vmem:[#allocation112_spill] sm:$0xff] }
 0x178   : > { %v1521_v19 = vpop.f32.mrf.mxu1  ;;  %9213 = vmatmul.mubr.msk.bf16.gmra.mxu0 %vm675_vm1, %v14104_v13 }
 0x179   : > { %v12151_v36 = vadd.f32 %v8979_v1, %v1530_v57  ;;  %v1522_v3 = vadd.f32 %v1521_v19, %v14103_v27  ;;  %v8982_v22 = vpop.f32.mrf.mxu0  ;;  %9216 = vmatprep.mubr.msk.bf16.mxu0 %vm675_vm1, %v14106_v37  ;;  %v14117_v37 = vld [vmem:[#allocation96_spill] sm:$0xff] }
 0x17a   : > { %v8916_v18 = vpop.f32.mrf.mxu1  ;;  %9147 = vmatmul.mubr.msk.bf16.gmra.mxu1 %vm675_vm1, %v14105_v21  ;;  %v14116_v21 = vld [vmem:[#allocation18_spill] sm:$0xff] }
 0x17b   : > { %14102 = vst [vmem:[#allocation76_spill] sm:$0xff] %v12151_v36  ;;  %v12160_v52 = vadd.f32 %v2714_v28, %v1522_v3  ;;  %v1543_v35 = vadd.f32 %v8916_v18, %v14108_v50  ;;  %v2727_v24 = vpop.f32.mrf.mxu0  ;;  %9150 = vmatprep.mubr.msk.bf16.mxu1 %vm675_vm1, %v14109_v7  ;;  %v14115_v3 = vld [vmem:[#allocation117_spill] sm:$0xff] }
 0x17c   : > { %v1534_v31 = vpop.f32.mrf.mxu1  ;;  %v14118_v50 = vld [vmem:[#allocation21_spill] sm:$0xff] }
 0x17d   : > { %14107 = vst [vmem:[#allocation78_spill] sm:$0xff] %v12160_v52  ;;  %v12165_v10 = vadd.f32 %v8982_v22, %v1543_v35  ;;  %v1535_v39 = vadd.f32 %v1534_v31, %v14111_v17  ;;  %v8983_v6 = vpop.f32.mrf.mxu0  ;;  %v14121_v17 = vld [vmem:[#allocation94_spill] sm:$0xff] }
 0x17e   : > { %v8917_v1 = vpop.f32.mrf.mxu1 }
 0x17f   : > { %14110 = vst [vmem:[#allocation80_spill] sm:$0xff] %v12165_v10  ;;  %v12168_v45 = vadd.f32 %v2727_v24, %v1535_v39  ;;  %v1546_v57 = vadd.f32 %v8917_v1, %v14113_v20  ;;  %v2730_v19 = vpop.f32.mrf.mxu0  ;;  %v14120_v24 = vld [vmem:[#allocation125_spill] sm:$0xff]  ;;  %v14123_v1 = vld [vmem:[#allocation132_spill] sm:$0xff] }
 0x180   : > { %v1537_v28 = vpop.f32.mrf.mxu1  ;;  %9217 = vmatmul.mubr.msk.bf16.gmra.mxu0 %vm675_vm1, %v14116_v21  ;;  %v14125_v21 = vld [vmem:[#allocation137_spill] sm:$0xff] }
 0x181   : > { %14112 = vst [vmem:[#allocation83_spill] sm:$0xff] %v12168_v45  ;;  %v12171_v27 = vadd.f32 %v8983_v6, %v1546_v57  ;;  %v1538_v13 = vadd.f32 %v1537_v28, %v14115_v3  ;;  %v8986_v18 = vpop.f32.mrf.mxu0  ;;  %9220 = vmatprep.mubr.msk.bf16.mxu0 %vm675_vm1, %v14118_v50 }
 0x182   : > { %v8920_v22 = vpop.f32.mrf.mxu1  ;;  %9151 = vmatmul.mubr.msk.bf16.gmra.mxu1 %vm675_vm1, %v14117_v37 }
 0x183   : > { %14114 = vst [vmem:[#allocation87_spill] sm:$0xff] %v12171_v27  ;;  %v12180_v35 = vadd.f32 %v2730_v19, %v1538_v13  ;;  %v1559_v7 = vadd.f32 %v8920_v22, %v14120_v24  ;;  %v2743_v31 = vpop.f32.mrf.mxu0  ;;  %9154 = vmatprep.mubr.msk.bf16.mxu1 %vm675_vm1, %v14121_v17  ;;  %v14127_v22 = vld [vmem:[#allocation141_spill] sm:$0xff]  ;;  %v14128_v27 = vld [vmem:[#allocation22_spill] sm:$0xff] }
 0x184   : > { %v1550_v39 = vpop.f32.mrf.mxu1  ;;  %v14130_v17 = vld [vmem:[#allocation25_spill] sm:$0xff] }
 0x185   : > { %14119 = vst [vmem:[#allocation62_spill] sm:$0xff] %v12180_v35  ;;  %v12185_v6 = vadd.f32 %v8986_v18, %v1559_v7  ;;  %v1551_v20 = vadd.f32 %v1550_v39, %v14123_v1  ;;  %v8987_v57 = vpop.f32.mrf.mxu0  ;;  %v14129_v7 = vld [vmem:[#allocation99_spill] sm:$0xff]  ;;  %v14132_v39 = vld [vmem:[#allocation142_spill] sm:$0xff] }
 0x186   : > { %v8921_v28 = vpop.f32.mrf.mxu1 }
 0x187   : > { %14122 = vst [vmem:[#allocation92_spill] sm:$0xff] %v12185_v6  ;;  %v12188_v3 = vadd.f32 %v2743_v31, %v1551_v20  ;;  %v1562_v37 = vadd.f32 %v8921_v28, %v14125_v21  ;;  %v2746_v50 = vpop.f32.mrf.mxu0 }
 0x188   : > { %v1553_v19 = vpop.f32.mrf.mxu1  ;;  %9221 = vmatmul.mubr.msk.bf16.gmra.mxu0 %vm675_vm1, %v14128_v27  ;;  %v14135_v27 = vld [vmem:[#allocation143_spill] sm:$0xff] }
 0x189   : > { %14124 = vst [vmem:[#allocation97_spill] sm:$0xff] %v12188_v3  ;;  %v12191_v13 = vadd.f32 %v8987_v57, %v1562_v37  ;;  %v1554_v24 = vadd.f32 %v1553_v19, %v14127_v22  ;;  %v8990_v35 = vpop.f32.mrf.mxu0  ;;  %9224 = vmatprep.mubr.msk.bf16.mxu0 %vm675_vm1, %v14130_v17  ;;  %v14133_v57 = vld [vmem:[#allocation101_spill] sm:$0xff]  ;;  %v14137_v17 = vld [vmem:[#allocation144_spill] sm:$0xff] }
 0x18a   : > { %v8924_v18 = vpop.f32.mrf.mxu1  ;;  %9155 = vmatmul.mubr.msk.bf16.gmra.mxu1 %vm675_vm1, %v14129_v7 }
 0x18b   : > { %14126 = vst [vmem:[#allocation103_spill] sm:$0xff] %v12191_v13  ;;  %v12200_v31 = vadd.f32 %v2746_v50, %v1554_v24  ;;  %v1575_v1 = vadd.f32 %v8924_v18, %v14132_v39  ;;  %v2759_v20 = vpop.f32.mrf.mxu0  ;;  %9158 = vmatprep.mubr.msk.bf16.mxu1 %vm675_vm1, %v14133_v57  ;;  %v14139_v39 = vld [vmem:[#allocation145_spill] sm:$0xff]  ;;  %v14140_v57 = vld [vmem:[#allocation27_spill] sm:$0xff] }
 0x18c   : > { %v1566_v28 = vpop.f32.mrf.mxu1 }
 0x18d   : > { %14131 = vst [vmem:[#allocation108_spill] sm:$0xff] %v12200_v31  ;;  %v12205_v21 = vadd.f32 %v8990_v35, %v1575_v1  ;;  %v1567_v37 = vadd.f32 %v1566_v28, %v14135_v27  ;;  %v8991_v19 = vpop.f32.mrf.mxu0  ;;  %v9841_v35 = vld [vmem:[%s9989_s4 + $0x5e8] sm:$0xf] }
 0x18e   : > { %v8925_v22 = vpop.f32.mrf.mxu1  ;;  %v4524_v1 = vshll.u32 %v9841_v35, 16  ;;  %v4528_v28 = vshrl.u32 %v9841_v35, 16  ;;  %v14145_v35 = vld [vmem:[#allocation82_spill] sm:$0xff] }
 0x18f   : > { %14134 = vst [vmem:[#allocation115_spill] sm:$0xff] %v12205_v21  ;;  %v12208_v7 = vadd.f32 %v2759_v20, %v1567_v37  ;;  %v1578_v50 = vadd.f32 %v8925_v22, %v14137_v17  ;;  %v2762_v24 = vpop.f32.mrf.mxu0  ;;  %v14141_v20 = vld [vmem:[#allocation29_spill] sm:$0xff]  ;;  %v9842_v37 = vld [vmem:[%s9989_s4 + $0x5e4] sm:$0xf] }
 0x190   : > { %v1569_v31 = vpop.f32.mrf.mxu1  ;;  %9225 = vmatmul.mubr.msk.bf16.gmra.mxu0 %vm675_vm1, %v14140_v57  ;;  %v4518_v22 = vshrl.u32 %v9842_v37, 16  ;;  %v14143_v17 = vld [vmem:[#allocation146_spill] sm:$0xff]  ;;  %v4530_v37 = vrot.slane %v4528_v28, 4  ;;  %v9844_v28 = vld [vmem:[%s9989_s4 + $0x5fc] sm:$0xf] }
 0x191   : > { %14136 = vst [vmem:[#allocation121_spill] sm:$0xff] %v12208_v7  ;;  %v12211_v18 = vadd.f32 %v8991_v19, %v1578_v50  ;;  %v1570_v13 = vadd.f32 %v1569_v31, %v14139_v39  ;;  %v8994_v3 = vpop.f32.mrf.mxu0  ;;  %9228 = vmatprep.mubr.msk.bf16.mxu0 %vm675_vm1, %v14141_v20  ;;  %v12230_v20 = vrot.slane %v4524_v1, 5  ;;  %v9843_v1 = vld [vmem:[%s9989_s4 + $0x5f8] sm:$0xf]  ;;  %v4568_v45 = vshll.u32 %v9844_v28, 16 }
 0x192   : > { %v8928_v27 = vpop.f32.mrf.mxu1  ;;  %9159 = vmatmul.mubr.msk.bf16.gmra.mxu1 %vm675_vm1, %v11727_v61  ;;  %v4520_v7 = vrot.slane %v4518_v22, 4  ;;  %v14152_v22 = vld [vmem:[#allocation33_spill] sm:$0xff] }
 0x193   : > { %14138 = vst [vmem:[#allocation130_spill] sm:$0xff] %v12211_v18  ;;  %v12222_v19 = vadd.f32 %v2762_v24, %v1570_v13  ;;  %v1591_v31 = vadd.f32 %v8928_v27, %v14143_v17  ;;  %v2775_v50 = vpop.f32.mrf.mxu0  ;;  %9162 = vmatprep.mubr.msk.bf16.mxu1 %vm675_vm1, %v11737_v26  ;;  %v7719_v26 = vld [vmem:[%s9989_s4 + $0x5ec] sm:$0x1]  ;;  %v12257_v10 = vrot.slane %v4568_v45, 5  ;;  %v14160_v45 = vld [vmem:[#allocation98_spill] sm:$0xff] }
 0x194   : > { %v1582_v39 = vpop.f32.mrf.mxu1 }
 0x195   : > { %14142 = vst [vmem:[#allocation135_spill] sm:$0xff] %v12222_v19  ;;  %v12227_v57 = vadd.f32 %v8994_v3, %v1591_v31  ;;  %v1583_v61 = vadd.f32 %v1582_v39, %v14145_v35  ;;  %v8995_v18 = vpop.f32.mrf.mxu0  ;;  %v14147_v19 = vld [vmem:[#allocation84_spill] sm:$0xff]  ;;  %v14149_v3 = vld [vmem:[#allocation89_spill] sm:$0xff]  ;;  %v14150_v39 = vld [vmem:[#allocation30_spill] sm:$0xff]  ;;  %v4562_v35 = vshrl.u32 %v9843_v1, 16 }
 0x196   : > { %v8929_v13 = vpop.f32.mrf.mxu1 }
 0x197   : > { %14144 = vst [vmem:[#allocation139_spill] sm:$0xff] %v12227_v57  ;;  %v12232_v24 = vadd.f32 %v2775_v50, %v1583_v61  ;;  %v1594_v27 = vadd.f32 %v8929_v13, %v14147_v19  ;;  %v2778_v17 = vpop.f32.mrf.mxu0  ;;  %v4572_v50 = vshrl.u32 %v9844_v28, 16 }
 0x198   : > { %v1585_v21 = vpop.f32.mrf.mxu1  ;;  %9229 = vmatmul.mubr.msk.bf16.gmra.mxu0 %vm675_vm1, %v14150_v39  ;;  %v4534_v39 = vshll.u32 %v7719_v26, 16  ;;  %v7724_v26 = vld [vmem:[%s9989_s4 + $0x600] sm:$0x1] }
 0x199   : > { %14146 = vst [vmem:[#allocation2_spill] sm:$0xff] %v12232_v24  ;;  %v12236_v6 = vadd.f32 %v8995_v18, %v1594_v27  ;;  %v1586_v31 = vadd.f32 %v1585_v21, %v14149_v3  ;;  %v8998_v57 = vpop.f32.mrf.mxu0  ;;  %v14151_v24 = vld [vmem:[#allocation110_spill] sm:$0xff]  ;;  %9232 = vmatprep.mubr.msk.bf16.mxu0 %vm675_vm1, %v14152_v22  ;;  %v4531_v18 = vor.u32 %v4530_v37, %v12230_v20  ;;  %v14154_v21 = vld [vmem:[#allocation75_spill] sm:$0xff]  ;;  %v4574_v37 = vrot.slane %v4572_v50, 4 }
 0x19a   : > { %v8932_v61 = vpop.f32.mrf.mxu1  ;;  %9163 = vmatmul.mubr.msk.bf16.gmra.mxu1 %vm675_vm1, %v14151_v24  ;;  %v4521_v3 = vor.u32 %v4520_v7, %v11824_v49  ;;  %v14156_v24 = vld [vmem:[#allocation91_spill] sm:$0xff]  ;;  %v4536_v7 = vrot.slane %v4534_v39, 5 }
 0x19b   : > { %14148 = vst [vmem:[#allocation3_spill] sm:$0xff] %v12236_v6  ;;  %v12248_v19 = vadd.f32 %v2778_v17, %v1586_v31  ;;  %v1607_v13 = vadd.f32 %v8932_v61, %v14154_v21  ;;  %v2791_v27 = vpop.f32.mrf.mxu0  ;;  %9166 = vmatprep.mubr.msk.bf16.mxu1 %vm675_vm1, %v11787_v58  ;;  %v4532_v31 = vrot.slane %v4531_v18, 4  ;;  %v4564_v61 = vrot.slane %v4562_v35, 4  ;;  %v14161_v18 = vld [vmem:[#allocation34_spill] sm:$0xff] }
 0x19c   : > { %v1598_v1 = vpop.f32.mrf.mxu1  ;;  %v4522_v49 = vrot.slane %v4521_v3, 4  ;;  %v14164_v3 = vld [vmem:[#allocation122_spill] sm:$0xff] }
 0x19d   : > { %14153 = vst [vmem:[#allocation64_spill] sm:$0xff] %v12248_v19  ;;  %v12254_v28 = vadd.f32 %v8998_v57, %v1607_v13  ;;  %v1599_v6 = vadd.f32 %v1598_v1, %v14156_v24  ;;  %v8999_v22 = vpop.f32.mrf.mxu0  ;;  %v14158_v19 = vld [vmem:[#allocation93_spill] sm:$0xff]  ;;  %v4612_v57 = vshll.u32 %v11778_v33, 16  ;;  %v4616_v13 = vshrl.u32 %v11778_v33, 16 }
 0x19e   : > { %v8933_v17 = vpop.f32.mrf.mxu1  ;;  %v4565_v39 = vor.u32 %v4564_v61, %v14164_v3  ;;  %v4575_v33 = vor.u32 %v4574_v37, %v12257_v10 }
 0x19f   : > { %14155 = vst [vmem:[#allocation4_spill] sm:$0xff] %v12254_v28  ;;  %v12259_v21 = vadd.f32 %v2791_v27, %v1599_v6  ;;  %v1610_v58 = vadd.f32 %v8933_v17, %v14158_v19  ;;  %v2794_v52 = vpop.f32.mrf.mxu0  ;;  %v4606_v6 = vshrl.u32 %v11775_v30, 16  ;;  %v14162_v19 = vld [vmem:[#allocation111_spill] sm:$0xff]  ;;  %v14163_v27 = vld [vmem:[#allocation36_spill] sm:$0xff]  ;;  %v4527_v30 = vsel %vm10105_vm4, %v4522_v49, %v12230_v20  ;;  %v14171_v20 = vld [vmem:[#allocation105_spill] sm:$0xff] }
 0x1a0   : > { %v1601_v36 = vpop.f32.mrf.mxu1  ;;  %9233 = vmatmul.mubr.msk.bf16.gmra.mxu0 %vm675_vm1, %v14161_v18  ;;  %v14167_v18 = vld [vmem:[#allocation63_spill] sm:$0xff]  ;;  %v12287_v61 = vrot.slane %v4612_v57, 5  ;;  %v4618_v37 = vrot.slane %v4616_v13, 4  ;;  %v7729_v57 = vld [vmem:[%s9989_s4 + $0x614] sm:$0x1]  ;;  %v4650_v13 = vshrl.u32 %v11855_v32, 16 }
 0x1a1   : > { %14157 = vst [vmem:[#allocation66_spill] sm:$0xff] %v12259_v21  ;;  %v12265_v1 = vadd.f32 %v8999_v22, %v1610_v58  ;;  %v1602_v50 = vadd.f32 %v1601_v36, %v14160_v45  ;;  %v9070_v24 = vpop.f32.mrf.mxu0  ;;  %9236 = vmatprep.mubr.msk.bf16.mxu0 %vm675_vm1, %v14163_v27  ;;  %v4578_v22 = vshll.u32 %v7724_v26, 16  ;;  %v14166_v36 = vld [vmem:[#allocation102_spill] sm:$0xff]  ;;  %v14169_v26 = vld [vmem:[#allocation104_spill] sm:$0xff] }
 0x1a2   : > { %v9004_v35 = vpop.f32.mrf.mxu1  ;;  %9167 = vmatmul.mubr.msk.bf16.gmra.mxu1 %vm675_vm1, %v14162_v19  ;;  %v4537_v19 = vsel %vm10105_vm4, %v4532_v31, %v4536_v7  ;;  %v4608_v7 = vrot.slane %v4606_v6, 4  ;;  %v14176_v6 = vld [vmem:[#allocation42_spill] sm:$0xff] }
 0x1a3   : > { %14159 = vst [vmem:[#allocation68_spill] sm:$0xff] %v12265_v1  ;;  %v12277_v17 = vadd.f32 %v2794_v52, %v1602_v50  ;;  %v3422_v58 = vadd.f32 %v9004_v35, %v14166_v36  ;;  %v3779_v45 = vpop.f32.mrf.mxu0  ;;  %9170 = vmatprep.mubr.msk.bf16.mxu1 %vm675_vm1, %v14167_v18  ;;  %v8159_v36 = vcombine.low %v4527_v30, %v4537_v19  ;;  %v4566_v18 = vrot.slane %v4565_v39, 4  ;;  %v14175_v39 = vld [vmem:[#allocation38_spill] sm:$0xff] }
 0x1a4   : > { %v3165_v27 = vpop.f32.mrf.mxu1  ;;  %v4580_v1 = vrot.slane %v4578_v22, 5 }
 0x1a5   : > { %14165 = vst [vmem:[#allocation70_spill] sm:$0xff] %v12277_v17  ;;  %v12289_v52 = vadd.f32 %v9070_v24, %v3422_v58  ;;  %v3420_v50 = vadd.f32 %v3165_v27, %v14169_v26  ;;  %v9071_v35 = vpop.f32.mrf.mxu0  ;;  %v4576_v17 = vrot.slane %v4575_v33, 4  ;;  %v14172_v24 = vld [vmem:[#allocation123_spill] sm:$0xff]  ;;  %v4571_v32 = vsel %vm10105_vm4, %v4566_v18, %v12257_v10 }
 0x1a6   : > { %v9005_v3 = vpop.f32.mrf.mxu1  ;;  %v4656_v58 = vshll.u32 %v14172_v24, 16  ;;  %v14174_v27 = vld [vmem:[#allocation107_spill] sm:$0xff]  ;;  %v4660_v33 = vshrl.u32 %v14172_v24, 16  ;;  %v4622_v24 = vshll.u32 %v7729_v57, 16 }
 0x1a7   : > { %14168 = vst [vmem:[#allocation6_spill] sm:$0xff] %v12289_v52  ;;  %v12292_v21 = vadd.f32 %v3779_v45, %v3420_v50  ;;  %v3423_v49 = vadd.f32 %v9005_v3, %v14171_v20  ;;  %v3782_v31 = vpop.f32.mrf.mxu0  ;;  %v4581_v45 = vsel %vm10105_vm4, %v4576_v17, %v4580_v1  ;;  %v14178_v50 = vld [vmem:[#allocation109_spill] sm:$0xff]  ;;  %v14179_v20 = vld [vmem:[#allocation127_spill] sm:$0xff] }
 0x1a8   : > { %v3168_v28 = vpop.f32.mrf.mxu1  ;;  %9237 = vmatmul.mubr.msk.bf16.gmra.mxu0 %vm675_vm1, %v14175_v39  ;;  %v12319_v39 = vrot.slane %v4656_v58, 5  ;;  %v14181_v1 = vld [vmem:[#allocation113_spill] sm:$0xff]  ;;  %v4662_v18 = vrot.slane %v4660_v33, 4  ;;  %v14184_v33 = vld [vmem:[#allocation118_spill] sm:$0xff] }
 0x1a9   : > { %14170 = vst [vmem:[#allocation8_spill] sm:$0xff] %v12292_v21  ;;  %v12298_v52 = vadd.f32 %v9071_v35, %v3423_v49  ;;  %v3421_v26 = vadd.f32 %v3168_v28, %v14174_v27  ;;  %v9074_v30 = vpop.f32.mrf.mxu0  ;;  %9240 = vmatprep.mubr.msk.bf16.mxu0 %vm675_vm1, %v14176_v6  ;;  %v4619_v28 = vor.u32 %v4618_v37, %v12287_v61  ;;  %v4652_v6 = vrot.slane %v4650_v13, 4  ;;  %v14183_v21 = vld [vmem:[#allocation67_spill] sm:$0xff] }
 0x1aa   : > { %v9008_v22 = vpop.f32.mrf.mxu1  ;;  %9171 = vmatmul.mubr.msk.bf16.gmra.mxu1 %vm675_vm1, %v8159_v36  ;;  %v14180_v36 = vld [vmem:[#allocation131_spill] sm:$0xff]  ;;  %v4694_v13 = vshrl.u32 %v11901_v63, 16 }
 0x1ab   : > { %14173 = vst [vmem:[#allocation72_spill] sm:$0xff] %v12298_v52  ;;  %v12313_v19 = vadd.f32 %v3782_v31, %v3421_v26  ;;  %v3426_v35 = vadd.f32 %v9008_v22, %v14178_v50  ;;  %v3795_v3 = vpop.f32.mrf.mxu0  ;;  %9174 = vmatprep.mubr.msk.bf16.mxu1 %vm675_vm1, %v14179_v20  ;;  %v4609_v49 = vor.u32 %v4608_v7, %v14180_v36  ;;  %v4620_v22 = vrot.slane %v4619_v28, 4  ;;  %v14182_v20 = vld [vmem:[#allocation116_spill] sm:$0xff]  ;;  %v7734_v52 = vld [vmem:[%s9989_s4 + $0x628] sm:$0x1] }
 0x1ac   : > { %v3181_v27 = vpop.f32.mrf.mxu1  ;;  %v8161_v26 = vcombine.low %v4571_v32, %v4581_v45  ;;  %v4624_v36 = vrot.slane %v4622_v24, 5  ;;  %v14185_v45 = vld [vmem:[#allocation44_spill] sm:$0xff] }
 0x1ad   : > { %14177 = vst [vmem:[#allocation74_spill] sm:$0xff] %v12313_v19  ;;  %v12321_v10 = vadd.f32 %v9074_v30, %v3426_v35  ;;  %v3424_v17 = vadd.f32 %v3181_v27, %v14181_v1  ;;  %v9075_v37 = vpop.f32.mrf.mxu0  ;;  %v4610_v57 = vrot.slane %v4609_v49, 4  ;;  %v4700_v30 = vshll.u32 %v14183_v21, 16 }
 0x1ae   : > { %v9009_v31 = vpop.f32.mrf.mxu1  ;;  %v4704_v35 = vshrl.u32 %v14183_v21, 16  ;;  %v4653_v49 = vor.u32 %v4652_v6, %v11957_v15  ;;  %v4663_v21 = vor.u32 %v4662_v18, %v12319_v39  ;;  %v14190_v6 = vld [vmem:[#allocation120_spill] sm:$0xff] }
 0x1af   : > { %v12324_v50 = vadd.f32 %v3795_v3, %v3424_v17  ;;  %v3427_v19 = vadd.f32 %v9009_v31, %v14182_v20  ;;  %v3798_v7 = vpop.f32.mrf.mxu0  ;;  %v14186_v3 = vld [vmem:[#allocation47_spill] sm:$0xff]  ;;  %v14187_v17 = vld [vmem:[#allocation114_spill] sm:$0xff]  ;;  %v14188_v20 = vld [vmem:[#allocation129_spill] sm:$0xff]  ;;  %v4615_v63 = vsel %vm10105_vm4, %v4610_v57, %v12287_v61  ;;  %v12351_v15 = vrot.slane %v4700_v30, 5 }
 0x1b0   : > { %v3184_v58 = vpop.f32.mrf.mxu1  ;;  %9241 = vmatmul.mubr.msk.bf16.gmra.mxu0 %vm675_vm1, %v14185_v45  ;;  %v4706_v18 = vrot.slane %v4704_v35, 4  ;;  %v14191_v61 = vld [vmem:[#allocation119_spill] sm:$0xff]  ;;  %v4738_v30 = vshrl.u32 %v11951_v43, 16  ;;  %v14192_v35 = vld [vmem:[#allocation134_spill] sm:$0xff] }
 0x1b1   : > { %v12330_v27 = vadd.f32 %v9075_v37, %v3427_v19  ;;  %v3425_v1 = vadd.f32 %v3184_v58, %v14184_v33  ;;  %v9078_v32 = vpop.f32.mrf.mxu0  ;;  %9244 = vmatprep.mubr.msk.bf16.mxu0 %vm675_vm1, %v14186_v3  ;;  %v4666_v19 = vshll.u32 %v7734_v52, 16  ;;  %v4664_v3 = vrot.slane %v4663_v21, 4 }
 0x1b2   : > { %v9012_v28 = vpop.f32.mrf.mxu1  ;;  %9175 = vmatmul.mubr.msk.bf16.gmra.mxu1 %vm675_vm1, %v8161_v26  ;;  %v4625_v26 = vsel %vm10105_vm4, %v4620_v22, %v4624_v36  ;;  %v4696_v36 = vrot.slane %v4694_v13, 4  ;;  %v14196_v13 = vld [vmem:[#allocation51_spill] sm:$0xff] }
 0x1b3   : > { %v12341_v24 = vadd.f32 %v3798_v7, %v3425_v1  ;;  %v3430_v37 = vadd.f32 %v9012_v28, %v14187_v17  ;;  %v3811_v31 = vpop.f32.mrf.mxu0  ;;  %9178 = vmatprep.mubr.msk.bf16.mxu1 %vm675_vm1, %v14188_v20  ;;  %v8163_v45 = vcombine.low %v4615_v63, %v4625_v26  ;;  %v4654_v28 = vrot.slane %v4653_v49, 4  ;;  %v14194_v63 = vld [vmem:[#allocation65_spill] sm:$0xff] }
 0x1b4   : > { %v3197_v58 = vpop.f32.mrf.mxu1  ;;  %v4668_v17 = vrot.slane %v4666_v19, 5  ;;  %v14195_v19 = vld [vmem:[#allocation48_spill] sm:$0xff] }
 0x1b5   : > { %v12353_v52 = vadd.f32 %v9078_v32, %v3430_v37  ;;  %v3428_v7 = vadd.f32 %v3197_v58, %v14190_v6  ;;  %v9079_v33 = vpop.f32.mrf.mxu0  ;;  %v4744_v32 = vshll.u32 %v14192_v35, 16  ;;  %v4748_v37 = vshrl.u32 %v14192_v35, 16  ;;  %v7739_v58 = vld [vmem:[%s9989_s4 + $0x63c] sm:$0x1] }
 0x1b6   : > { %v9013_v1 = vpop.f32.mrf.mxu1  ;;  %v4659_v43 = vsel %vm10105_vm4, %v4654_v28, %v12319_v39  ;;  %v4669_v26 = vsel %vm10105_vm4, %v4664_v3, %v4668_v17  ;;  %v4710_v35 = vshll.u32 %v7739_v58, 16 }
 0x1b7   : > { %14189 = vst [vmem:[#allocation77_spill] sm:$0xff] %v12353_v52  ;;  %v12356_v20 = vadd.f32 %v3811_v31, %v3428_v7  ;;  %v3431_v57 = vadd.f32 %v9013_v1, %v14191_v61  ;;  %v3814_v22 = vpop.f32.mrf.mxu0  ;;  %v4707_v7 = vor.u32 %v4706_v18, %v12351_v15  ;;  %v4750_v39 = vrot.slane %v4748_v37, 4  ;;  %v14200_v18 = vld [vmem:[#allocation128_spill] sm:$0xff] }
 0x1b8   : > { %v3200_v52 = vpop.f32.mrf.mxu1  ;;  %9245 = vmatmul.mubr.msk.bf16.gmra.mxu0 %vm675_vm1, %v14195_v19  ;;  %v4740_v19 = vrot.slane %v4738_v30, 4 }
 0x1b9   : > { %v12363_v6 = vadd.f32 %v9079_v33, %v3431_v57  ;;  %v3429_v49 = vadd.f32 %v3200_v52, %v14194_v63  ;;  %v9082_v21 = vpop.f32.mrf.mxu0  ;;  %9248 = vmatprep.mubr.msk.bf16.mxu0 %vm675_vm1, %v14196_v13  ;;  %v14198_v33 = vld [vmem:[#allocation126_spill] sm:$0xff]  ;;  %v14199_v57 = vld [vmem:[#allocation136_spill] sm:$0xff]  ;;  %v12383_v63 = vrot.slane %v4744_v32, 5  ;;  %v8165_v13 = vcombine.low %v4659_v43, %v4669_v26 }
 0x1ba   : > { %v9016_v31 = vpop.f32.mrf.mxu1  ;;  %9179 = vmatmul.mubr.msk.bf16.gmra.mxu1 %vm675_vm1, %v8163_v45  ;;  %v4697_v45 = vor.u32 %v4696_v36, %v11993_v29  ;;  %v4712_v32 = vrot.slane %v4710_v35, 5  ;;  %v4741_v37 = vor.u32 %v4740_v19, %v12021_v55  ;;  %v14204_v55 = vld [vmem:[#allocation55_spill] sm:$0xff] }
 0x1bb   : > { %14193 = vst [vmem:[#allocation79_spill] sm:$0xff] %v12363_v6  ;;  %v12377_v52 = vadd.f32 %v3814_v22, %v3429_v49  ;;  %v3434_v1 = vadd.f32 %v9016_v31, %v14198_v33  ;;  %v3827_v61 = vpop.f32.mrf.mxu0  ;;  %9182 = vmatprep.mubr.msk.bf16.mxu1 %vm675_vm1, %v14199_v57  ;;  %v4708_v31 = vrot.slane %v4707_v7, 4  ;;  %v7744_v33 = vld [vmem:[%s9989_s4 + $0x650] sm:$0x1]  ;;  %v14201_v57 = vld [vmem:[#allocation69_spill] sm:$0xff]  ;;  %v4751_v30 = vor.u32 %v4750_v39, %v12383_v63 }
 0x1bc   : > { %v3213_v28 = vpop.f32.mrf.mxu1  ;;  %v4698_v36 = vrot.slane %v4697_v45, 4  ;;  %v14203_v7 = vld [vmem:[#allocation52_spill] sm:$0xff]  ;;  %v4792_v45 = vshrl.u32 %v12031_v0, 16 }
 0x1bd   : > { %14197 = vst [vmem:[#allocation10_spill] sm:$0xff] %v12377_v52  ;;  %v12385_v3 = vadd.f32 %v9082_v21, %v3434_v1  ;;  %v3432_v17 = vadd.f32 %v3213_v28, %v14200_v18  ;;  %v9083_v22 = vpop.f32.mrf.mxu0  ;;  %v4782_v21 = vshrl.u32 %v12028_v56, 16  ;;  %v14202_v28 = vld [vmem:[#allocation124_spill] sm:$0xff]  ;;  %v4788_v18 = vshll.u32 %v12031_v0, 16 }
 0x1be   : > { %v9017_v49 = vpop.f32.mrf.mxu1  ;;  %v4713_v0 = vsel %vm10105_vm4, %v4708_v31, %v4712_v32  ;;  %v14207_v31 = vld [vmem:[#allocation73_spill] sm:$0xff] }
 0x1bf   : > { %v12389_v52 = vadd.f32 %v3827_v61, %v3432_v17  ;;  %v3435_v6 = vadd.f32 %v9017_v49, %v14201_v57  ;;  %v3830_v29 = vpop.f32.mrf.mxu0  ;;  %v4754_v61 = vshll.u32 %v7744_v33, 16  ;;  %v4703_v17 = vsel %vm10105_vm4, %v4698_v36, %v12351_v15  ;;  %v14206_v57 = vld [vmem:[#allocation71_spill] sm:$0xff] }
 0x1c0   : > { %v3216_v58 = vpop.f32.mrf.mxu1  ;;  %9249 = vmatmul.mubr.msk.bf16.gmra.mxu0 %vm675_vm1, %v14203_v7  ;;  %v4742_v49 = vrot.slane %v4741_v37, 4  ;;  %v4794_v15 = vrot.slane %v4792_v45, 4 }
 0x1c1   : > { %v12395_v1 = vadd.f32 %v9083_v22, %v3435_v6  ;;  %v3433_v43 = vadd.f32 %v3216_v58, %v14202_v28  ;;  %v9086_v26 = vpop.f32.mrf.mxu0  ;;  %9252 = vmatprep.mubr.msk.bf16.mxu0 %vm675_vm1, %v14204_v55  ;;  %v14205_v6 = vld [vmem:[#allocation133_spill] sm:$0xff]  ;;  %v4756_v28 = vrot.slane %v4754_v61, 5  ;;  %v7749_v55 = vld [vmem:[%s9989_s4 + $0x664] sm:$0x1] }
 0x1c2   : > { %v9020_v35 = vpop.f32.mrf.mxu1  ;;  %9183 = vmatmul.mubr.msk.bf16.gmra.mxu1 %vm675_vm1, %v8165_v13  ;;  %v4752_v13 = vrot.slane %v4751_v30, 4 }
 0x1c3   : > { %v12405_v56 = vadd.f32 %v3830_v29, %v3433_v43  ;;  %v3438_v39 = vadd.f32 %v9020_v35, %v14205_v6  ;;  %v3843_v19 = vpop.f32.mrf.mxu0  ;;  %9186 = vmatprep.mubr.msk.bf16.mxu1 %vm675_vm1, %v12008_v25  ;;  %v4784_v43 = vrot.slane %v4782_v21, 4  ;;  %v8167_v25 = vcombine.low %v4703_v17, %v4713_v0  ;;  %v14209_v21 = vld [vmem:[#allocation138_spill] sm:$0xff]  ;;  %v14210_v17 = vld [vmem:[#allocation56_spill] sm:$0xff] }
 0x1c4   : > { %v3229_v22 = vpop.f32.mrf.mxu1  ;;  %v12418_v35 = vrot.slane %v4788_v18, 5  ;;  %v4757_v18 = vsel %vm10105_vm4, %v4752_v13, %v4756_v28  ;;  %v287_v0 = vld [vmem:[%s9989_s4 + $0x144] sm:$0xf]  ;;  %v4798_v13 = vshll.u32 %v7749_v55, 16 }
 0x1c5   : > { %v12415_v33 = vadd.f32 %v9086_v26, %v3438_v39  ;;  %v3436_v29 = vadd.f32 %v3229_v22, %v14206_v57  ;;  %v9087_v58 = vpop.f32.mrf.mxu0  ;;  %v4747_v26 = vsel %vm10105_vm4, %v4742_v49, %v12383_v63  ;;  %v4785_v45 = vor.u32 %v4784_v43, %v12058_v54  ;;  %v14211_v63 = vld [vmem:[#allocation59_spill] sm:$0xff] }
 0x1c6   : > { %v9021_v7 = vpop.f32.mrf.mxu1  ;;  %v4795_v54 = vor.u32 %v4794_v15, %v12418_v35  ;;  %v8169_v43 = vcombine.low %v4747_v26, %v4757_v18  ;;  %v4800_v18 = vrot.slane %v4798_v13, 5 }
 0x1c7   : > { %v12420_v36 = vadd.f32 %v3843_v19, %v3436_v29  ;;  %v3439_v32 = vadd.f32 %v9021_v7, %v14207_v31  ;;  %v3846_v37 = vpop.f32.mrf.mxu0  ;;  %v286_v19 = vld [vmem:[%s9989_s4 + $0x140] sm:$0xf]  ;;  %v6110_v29 = vshll.u32 %v287_v0, 16  ;;  %v14213_v31 = vld [vmem:[#allocation140_spill] sm:$0xff] }
 0x1c8   : > { %v3232_v30 = vpop.f32.mrf.mxu1  ;;  %9253 = vmatmul.mubr.msk.bf16.gmra.mxu0 %vm675_vm1, %v14210_v17  ;;  %v6101_v49 = vshrl.u32 %v286_v19, 16  ;;  %v6104_v57 = vshll.u32 %v286_v19, 16  ;;  %v4796_v26 = vrot.slane %v4795_v54, 4 }
 0x1c9   : > { %v12427_v61 = vadd.f32 %v9087_v58, %v3439_v32  ;;  %v3437_v6 = vadd.f32 %v3232_v30, %v14209_v21  ;;  %v9090_v39 = vpop.f32.mrf.mxu0  ;;  %9256 = vmatprep.mubr.msk.bf16.mxu0 %vm675_vm1, %v14211_v63  ;;  %v6114_v58 = vshrl.u32 %v287_v0, 16  ;;  %v4786_v63 = vrot.slane %v4785_v45, 4 }
 0x1ca   : > { %v9024_v22 = vpop.f32.mrf.mxu1  ;;  %9187 = vmatmul.mubr.msk.bf16.gmra.mxu1 %vm675_vm1, %v8167_v25 }
 0x1cb   : > { %14208 = vst [vmem:[#allocation13_spill] sm:$0xff] %v12427_v61  ;;  %v12440_v7 = vadd.f32 %v3846_v37, %v3437_v6  ;;  %v3442_v32 = vadd.f32 %v9024_v22, %v14213_v31  ;;  %v3859_v30 = vpop.f32.mrf.mxu0  ;;  %9190 = vmatprep.mubr.msk.bf16.mxu1 %vm675_vm1, %v12044_v60  ;;  %v8205_v37 = vcombine.low %v286_v19, %v287_v0  ;;  %v6106_v22 = vrot.slane %v6104_v57, 5 }
 0x1cc   : > { %v3245_v28 = vpop.f32.mrf.mxu1  ;;  %v6112_v31 = vrot.slane %v6110_v29, 5  ;;  %v6116_v61 = vrot.slane %v6114_v58, 4 }
 0x1cd   : > { %14212 = vst [vmem:[#allocation81_spill] sm:$0xff] %v12440_v7  ;;  %v12446_v25 = vadd.f32 %v9090_v39, %v3442_v32  ;;  %v3440_v21 = vadd.f32 %v3245_v28, %v12004_v11  ;;  %v9091_v17 = vpop.f32.mrf.mxu0  ;;  %v6103_v7 = vrot.slane %v6101_v49, 4  ;;  %v12453_v39 = vld [vmem:[%s9989_s4 + $0x148] sm:$0xf]  ;;  %v14214_v49 = vld [vmem:[#allocation61_spill] sm:$0xff]  ;;  %v4801_v28 = vsel %vm10105_vm4, %v4796_v26, %v4800_v18 }
 0x1ce   : > { %v9025_v6 = vpop.f32.mrf.mxu1  ;;  %v6120_v11 = vshll.u32 %v12453_v39, 16  ;;  %v6117_v58 = vor.u32 %v6116_v61, %v6112_v31 }
 0x1cf   : > { %v12449_v60 = vadd.f32 %v3859_v30, %v3440_v21  ;;  %v3443_v15 = vadd.f32 %v9025_v6, %v12012_v46  ;;  %v3862_v55 = vpop.f32.mrf.mxu0  ;;  %v12464_v46 = vld [vmem:[%s9989_s4 + $0x14c] sm:$0xf]  ;;  %v6107_v29 = vor.u32 %v6106_v22, %v6103_v7 }
 0x1d0   : > { %v3248_v32 = vpop.f32.mrf.mxu1  ;;  %9257 = vmatmul.mubr.msk.bf16.gmra.mxu0 %vm675_vm1, %v14214_v49  ;;  %v12476_v7 = vrot.slane %v6120_v11, 5 }
 0x1d1   : > { %v12456_v45 = vadd.f32 %v9091_v17, %v3443_v15  ;;  %v3441_v19 = vadd.f32 %v3248_v32, %v12023_v44  ;;  %v9094_v0 = vpop.f32.mrf.mxu0  ;;  %9260 = vmatprep.mubr.msk.bf16.mxu0 %vm675_vm1, %v8205_v37  ;;  %v4791_v44 = vsel %vm10105_vm4, %v4786_v63, %v12418_v35  ;;  %v6108_v21 = vrot.slane %v6107_v29, 4  ;;  %v9845_v29 = vld [vmem:[%s9989_s4 + $0x2a8] sm:$0xff]  }
 0x1d2   : > { %v9028_v57 = vpop.f32.mrf.mxu1  ;;  %9191 = vmatmul.mubr.msk.bf16.gmra.mxu1 %vm675_vm1, %v8169_v43  ;;  %v6118_v17 = vrot.slane %v6117_v58, 4  ;;  %v8171_v22 = vcombine.low %v4791_v44, %v4801_v28 }
 0x1d3   : > { %v12466_v30 = vadd.f32 %v3862_v55, %v3441_v19  ;;  %v3446_v54 = vadd.f32 %v9028_v57, %v12040_v42  ;;  %v3875_v13 = vpop.f32.mrf.mxu0  ;;  %9194 = vmatprep.mubr.msk.bf16.mxu1 %vm675_vm1, %v12076_v2  ;;  %v8206_v2 = vcombine.low %v12453_v39, %v12464_v46  ;;  %v6113_v35 = vsel %vm10105_vm4, %v6108_v21, %v6112_v31 }
 0x1d4   : > { %v3261_v43 = vpop.f32.mrf.mxu1  ;;  %v6123_v63 = vsel %vm10105_vm4, %v6118_v17, %v12476_v7 }
 0x1d5   : > { %v12478_v61 = vadd.f32 %v9094_v0, %v3446_v54  ;;  %v3444_v42 = vadd.f32 %v3261_v43, %v12048_v23  ;;  %v9095_v37 = vpop.f32.mrf.mxu0  ;;  %v12491_v23 = vcombine.low %v6113_v35, %v6123_v63  ;;  %v14215_v0 = vld [vmem:[#allocation5_spill] sm:$0xff] }
 0x1d6   : > { %v9029_v6 = vpop.f32.mrf.mxu1 }
 0x1d7   : > { %v12488_v15 = vadd.f32 %v3875_v13, %v3444_v42  ;;  %v3447_v55 = vadd.f32 %v9029_v6, %v12054_v9  ;;  %v3878_v26 = vpop.f32.mrf.mxu0 }
 0x1d8   : > { %v3264_v18 = vpop.f32.mrf.mxu1  ;;  %9261 = vmatmul.mubr.msk.bf16.gmra.mxu0 %vm675_vm1, %v8206_v2  ;;  %v14216_v2 = vld [vmem:[#allocation7_spill] sm:$0xff] }
 0x1d9   : > { %v12493_v32 = vadd.f32 %v9095_v37, %v3447_v55  ;;  %v3445_v11 = vadd.f32 %v3264_v18, %v12065_v47  ;;  %v9098_v19 = vpop.f32.mrf.mxu0  ;;  %9332 = vmatprep.mubr.msk.bf16.mxu0 %vm675_vm1, %v14215_v0  ;;  %v9847_v55 = vld [vmem:[%s9989_s4 + $0x2bc] sm:$0xff]  }
 0x1da   : > { %v9032_v31 = vpop.f32.mrf.mxu1  ;;  %9195 = vmatmul.mubr.msk.bf16.gmra.mxu1 %vm675_vm1, %v8171_v22  ;;  %v9846_v22 = vld [vmem:[%s9989_s4 + $0x2b0] sm:$0xff]  }
 0x1db   : > { %v12500_v49 = vadd.f32 %v3878_v26, %v3445_v11  ;;  %v3450_v9 = vadd.f32 %v9032_v31, %v12078_v59  ;;  %v3891_v57 = vpop.f32.mrf.mxu0  ;;  %9266 = vmatprep.mubr.msk.bf16.mxu1 %vm675_vm1, %v9845_v29 }
 0x1dc   : > { %v3277_v58 = vpop.f32.mrf.mxu1 }
 0x1dd   : > { %v12505_v47 = vadd.f32 %v9098_v19, %v3450_v9  ;;  %v3448_v54 = vadd.f32 %v3277_v58, %v12081_v51  ;;  %v9099_v13 = vpop.f32.mrf.mxu0  ;;  %v14217_v51 = vld [vmem:[#allocation9_spill] sm:$0xff] }
 0x1de   : > { %v9033_v44 = vpop.f32.mrf.mxu1 }
 0x1df   : > { %v12508_v28 = vadd.f32 %v3891_v57, %v3448_v54  ;;  %v3451_v43 = vadd.f32 %v9033_v44, %v12092_v5  ;;  %v3894_v21 = vpop.f32.mrf.mxu0  ;;  %v14218_v54 = vld [vmem:[#allocation11_spill] sm:$0xff] }
 0x1e0   : > { %v3280_v17 = vpop.f32.mrf.mxu1  ;;  %9333 = vmatmul.mubr.msk.bf16.vlgmr.msra.gmra.mxu0 %vm675_vm1, %v14216_v2  ;;  %v9848_v44 = vld [vmem:[%s9989_s4 + $0x2c4] sm:$0xff]  }
 0x1e1   : > { %v12511_v59 = vadd.f32 %v9099_v13, %v3451_v43  ;;  %v3449_v42 = vadd.f32 %v3280_v17, %v12098_v53  ;;  %v9102_v37 = vpop.f32.mrf.mxu0  ;;  %9336 = vmatprep.mubr.msk.bf16.mxu0 %vm675_vm1, %v14217_v51  ;;  %v9849_v17 = vld [vmem:[%s9989_s4 + $0x2d0] sm:$0xff]  }
 0x1e2   : > { %v9036_v6 = vpop.f32.mrf.mxu1  ;;  %9267 = vmatmul.mubr.msk.bf16.vlgmr.msra.gmra.mxu1 %vm675_vm1, %v9846_v22 }
 0x1e3   : > { %v12520_v35 = vadd.f32 %v3894_v21, %v3449_v42  ;;  %v3454_v5 = vadd.f32 %v9036_v6, %v12105_v38  ;;  %v3907_v63 = vpop.f32.mrf.mxu0  ;;  %9270 = vmatprep.mubr.msk.bf16.mxu1 %vm675_vm1, %v9847_v55 }
 0x1e4   : > { %v3293_v53 = vpop.f32.mrf.mxu1 }
 0x1e5   : > { %v12525_v26 = vadd.f32 %v9102_v37, %v3454_v5  ;;  %v3452_v18 = vadd.f32 %v3293_v53, %v12108_v14  ;;  %v9103_v11 = vpop.f32.mrf.mxu0  ;;  %v14219_v14 = vld [vmem:[#allocation12_spill] sm:$0xff] }
 0x1e6   : > { %v9037_v19 = vpop.f32.mrf.mxu1 }
 0x1e7   : > { %v12528_v31 = vadd.f32 %v3907_v63, %v3452_v18  ;;  %v3455_v0 = vadd.f32 %v9037_v19, %v12111_v4  ;;  %v3910_v9 = vpop.f32.mrf.mxu0  ;;  %v14220_v18 = vld [vmem:[#allocation15_spill] sm:$0xff]  ;;  %v9850_v19 = vld [vmem:[%s9989_s4 + $0x2d8] sm:$0xff]  }
 0x1e8   : > { %v3296_v57 = vpop.f32.mrf.mxu1  ;;  %9337 = vmatmul.mubr.msk.bf16.gmra.mxu0 %vm675_vm1, %v14218_v54 }
 0x1e9   : > { %v12531_v38 = vadd.f32 %v9103_v11, %v3455_v0  ;;  %v3453_v29 = vadd.f32 %v3296_v57, %v12120_v40  ;;  %v9106_v58 = vpop.f32.mrf.mxu0  ;;  %9340 = vmatprep.mubr.msk.bf16.mxu0 %vm675_vm1, %v14219_v14  ;;  %v9851_v57 = vld [vmem:[%s9989_s4 + $0x2e4] sm:$0xff]   ;;  %v14222_v14 = vld [vmem:[#allocation76_spill] sm:$0xff] }
 0x1ea   : > { %v9040_v13 = vpop.f32.mrf.mxu1  ;;  %9271 = vmatmul.mubr.msk.bf16.gmra.mxu1 %vm675_vm1, %v9848_v44 }
 0x1eb   : > { %v12540_v43 = vadd.f32 %v3910_v9, %v3453_v29  ;;  %v3458_v4 = vadd.f32 %v9040_v13, %v12125_v34  ;;  %v3923_v21 = vpop.f32.mrf.mxu0  ;;  %9274 = vmatprep.mubr.msk.bf16.mxu1 %vm675_vm1, %v9849_v17 }
 0x1ec   : > { %v3309_v40 = vpop.f32.mrf.mxu1 }
 0x1ed   : > { %v12545_v42 = vadd.f32 %v9106_v58, %v3458_v4  ;;  %v3456_v37 = vadd.f32 %v3309_v40, %v12128_v16  ;;  %v9107_v2 = vpop.f32.mrf.mxu0  ;;  %v14221_v16 = vld [vmem:[#allocation16_spill] sm:$0xff]  ;;  %v14223_v40 = vld [vmem:[#allocation78_spill] sm:$0xff] }
 0x1ee   : > { %v9041_v6 = vpop.f32.mrf.mxu1 }
 0x1ef   : > { %v12548_v22 = vadd.f32 %v3923_v21, %v3456_v37  ;;  %v3459_v51 = vadd.f32 %v9041_v6, %v12131_v41  ;;  %v3926_v5 = vpop.f32.mrf.mxu0  ;;  %v14224_v6 = vld [vmem:[#allocation19_spill] sm:$0xff] }
 0x1f0   : > { %v3312_v63 = vpop.f32.mrf.mxu1  ;;  %9341 = vmatmul.mubr.msk.bf16.gmra.mxu0 %vm675_vm1, %v14220_v18 }
 0x1f1   : > { %v12551_v34 = vadd.f32 %v9107_v2, %v3459_v51  ;;  %v3457_v55 = vadd.f32 %v3312_v63, %v12140_v62  ;;  %v9110_v53 = vpop.f32.mrf.mxu0  ;;  %9344 = vmatprep.mubr.msk.bf16.mxu0 %vm675_vm1, %v14221_v16 }
 0x1f2   : > { %v9044_v11 = vpop.f32.mrf.mxu1  ;;  %9275 = vmatmul.mubr.msk.bf16.gmra.mxu1 %vm675_vm1, %v9850_v19 }
 0x1f3   : > { %v12560_v0 = vadd.f32 %v3926_v5, %v3457_v55  ;;  %v3462_v41 = vadd.f32 %v9044_v11, %v12145_v48  ;;  %v3939_v9 = vpop.f32.mrf.mxu0  ;;  %9278 = vmatprep.mubr.msk.bf16.mxu1 %vm675_vm1, %v9851_v57  ;;  %v9852_v5 = vld [vmem:[%s9989_s4 + $0x2ec] sm:$0xff]   ;;  %v9853_v11 = vld [vmem:[%s9989_s4 + $0x2f8] sm:$0xff]  }
 0x1f4   : > { %v3325_v62 = vpop.f32.mrf.mxu1  ;;  %v14226_v55 = vld [vmem:[#allocation80_spill] sm:$0xff] }
 0x1f5   : > { %v12565_v29 = vadd.f32 %v9110_v53, %v3462_v41  ;;  %v3460_v58 = vadd.f32 %v3325_v62, %v12148_v12  ;;  %v9111_v54 = vpop.f32.mrf.mxu0  ;;  %v14225_v12 = vld [vmem:[#allocation20_spill] sm:$0xff]  ;;  %v14227_v41 = vld [vmem:[#allocation83_spill] sm:$0xff] }
 0x1f6   : > { %v9045_v13 = vpop.f32.mrf.mxu1 }
 0x1f7   : > { %v12568_v44 = vadd.f32 %v3939_v9, %v3460_v58  ;;  %v3463_v4 = vadd.f32 %v9045_v13, %v14222_v14  ;;  %v3942_v21 = vpop.f32.mrf.mxu0 }
 0x1f8   : > { %v3328_v17 = vpop.f32.mrf.mxu1  ;;  %9345 = vmatmul.mubr.msk.bf16.gmra.mxu0 %vm675_vm1, %v14224_v6  ;;  %v14230_v6 = vld [vmem:[#allocation23_spill] sm:$0xff] }
 0x1f9   : > { %v12571_v48 = vadd.f32 %v9111_v54, %v3463_v4  ;;  %v3461_v37 = vadd.f32 %v3328_v17, %v14223_v40  ;;  %v9114_v2 = vpop.f32.mrf.mxu0  ;;  %9348 = vmatprep.mubr.msk.bf16.mxu0 %vm675_vm1, %v14225_v12  ;;  %v14228_v54 = vld [vmem:[#allocation87_spill] sm:$0xff]  ;;  %v14229_v17 = vld [vmem:[#allocation62_spill] sm:$0xff] }
 0x1fa   : > { %v9048_v51 = vpop.f32.mrf.mxu1  ;;  %9279 = vmatmul.mubr.msk.bf16.gmra.mxu1 %vm675_vm1, %v9852_v5  ;;  %v14231_v5 = vld [vmem:[#allocation24_spill] sm:$0xff] }
 0x1fb   : > { %v12580_v63 = vadd.f32 %v3942_v21, %v3461_v37  ;;  %v3466_v53 = vadd.f32 %v9048_v51, %v14226_v55  ;;  %v3955_v18 = vpop.f32.mrf.mxu0  ;;  %9282 = vmatprep.mubr.msk.bf16.mxu1 %vm675_vm1, %v9853_v11  ;;  %v9854_v51 = vld [vmem:[%s9989_s4 + $0x300] sm:$0xff]   ;;  %v14232_v55 = vld [vmem:[#allocation92_spill] sm:$0xff] }
 0x1fc   : > { %v3341_v19 = vpop.f32.mrf.mxu1  ;;  %v9855_v11 = vld [vmem:[%s9989_s4 + $0x30c] sm:$0xff]  }
 0x1fd   : > { %v12585_v16 = vadd.f32 %v9114_v2, %v3466_v53  ;;  %v3464_v9 = vadd.f32 %v3341_v19, %v14227_v41  ;;  %v9115_v57 = vpop.f32.mrf.mxu0 }
 0x1fe   : > { %v9049_v62 = vpop.f32.mrf.mxu1 }
 0x1ff   : > { %v12588_v58 = vadd.f32 %v3955_v18, %v3464_v9  ;;  %v3467_v13 = vadd.f32 %v9049_v62, %v14228_v54  ;;  %v3958_v14 = vpop.f32.mrf.mxu0  ;;  %v14233_v9 = vld [vmem:[#allocation97_spill] sm:$0xff] }
 0x200   : > { %v3344_v4 = vpop.f32.mrf.mxu1  ;;  %9349 = vmatmul.mubr.msk.bf16.gmra.mxu0 %vm675_vm1, %v14230_v6 }
 0x201   : > { %v12591_v21 = vadd.f32 %v9115_v57, %v3467_v13  ;;  %v3465_v40 = vadd.f32 %v3344_v4, %v14229_v17  ;;  %v9118_v37 = vpop.f32.mrf.mxu0  ;;  %9352 = vmatprep.mubr.msk.bf16.mxu0 %vm675_vm1, %v14231_v5  ;;  %v14235_v4 = vld [vmem:[#allocation103_spill] sm:$0xff] }
 0x202   : > { %v9052_v2 = vpop.f32.mrf.mxu1  ;;  %9283 = vmatmul.mubr.msk.bf16.gmra.mxu1 %vm675_vm1, %v9854_v51 }
 0x203   : > { %v12600_v12 = vadd.f32 %v3958_v14, %v3465_v40  ;;  %v3470_v53 = vadd.f32 %v9052_v2, %v14232_v55  ;;  %v3971_v18 = vpop.f32.mrf.mxu0  ;;  %9286 = vmatprep.mubr.msk.bf16.mxu1 %vm675_vm1, %v9855_v11  ;;  %v14237_v2 = vld [vmem:[#allocation108_spill] sm:$0xff]  ;;  %v14238_v55 = vld [vmem:[#allocation26_spill] sm:$0xff] }
 0x204   : > { %v3357_v19 = vpop.f32.mrf.mxu1  ;;  %v14239_v11 = vld [vmem:[#allocation28_spill] sm:$0xff] }
 0x205   : > { %v12605_v41 = vadd.f32 %v9118_v37, %v3470_v53  ;;  %v3468_v57 = vadd.f32 %v3357_v19, %v14233_v9  ;;  %v9119_v62 = vpop.f32.mrf.mxu0  ;;  %v9856_v53 = vld [vmem:[%s9989_s4 + $0x314] sm:$0xff]   ;;  %v14241_v19 = vld [vmem:[#allocation115_spill] sm:$0xff] }
 0x206   : > { %v9053_v54 = vpop.f32.mrf.mxu1 }
 0x207   : > { %v12608_v13 = vadd.f32 %v3971_v18, %v3468_v57  ;;  %v3471_v14 = vadd.f32 %v9053_v54, %v14235_v4  ;;  %v3974_v17 = vpop.f32.mrf.mxu0 }
 0x208   : > { %v3360_v40 = vpop.f32.mrf.mxu1  ;;  %9353 = vmatmul.mubr.msk.bf16.gmra.mxu0 %vm675_vm1, %v14238_v55 }
 0x209   : > { %14234 = vst [vmem:[#allocation85_spill] sm:$0xff] %v12608_v13  ;;  %v12611_v6 = vadd.f32 %v9119_v62, %v3471_v14  ;;  %v3469_v51 = vadd.f32 %v3360_v40, %v14237_v2  ;;  %v9122_v5 = vpop.f32.mrf.mxu0  ;;  %9356 = vmatprep.mubr.msk.bf16.mxu0 %vm675_vm1, %v14239_v11  ;;  %v9857_v62 = vld [vmem:[%s9989_s4 + $0x320] sm:$0xff]   ;;  %v14243_v14 = vld [vmem:[#allocation121_spill] sm:$0xff] }
 0x20a   : > { %v9056_v37 = vpop.f32.mrf.mxu1  ;;  %9287 = vmatmul.mubr.msk.bf16.gmra.mxu1 %vm675_vm1, %v9856_v53  ;;  %v14245_v11 = vld [vmem:[#allocation130_spill] sm:$0xff] }
 0x20b   : > { %14236 = vst [vmem:[#allocation90_spill] sm:$0xff] %v12611_v6  ;;  %v12620_v18 = vadd.f32 %v3974_v17, %v3469_v51  ;;  %v3474_v9 = vadd.f32 %v9056_v37, %v14241_v19  ;;  %v3987_v57 = vpop.f32.mrf.mxu0  ;;  %9290 = vmatprep.mubr.msk.bf16.mxu1 %vm675_vm1, %v9857_v62  ;;  %v14247_v19 = vld [vmem:[#allocation135_spill] sm:$0xff] }
 0x20c   : > { %v3373_v54 = vpop.f32.mrf.mxu1  ;;  %v14248_v62 = vld [vmem:[#allocation31_spill] sm:$0xff] }
 0x20d   : > { %14240 = vst [vmem:[#allocation95_spill] sm:$0xff] %v12620_v18  ;;  %v12625_v4 = vadd.f32 %v9122_v5, %v3474_v9  ;;  %v3472_v40 = vadd.f32 %v3373_v54, %v14243_v14  ;;  %v9123_v2 = vpop.f32.mrf.mxu0  ;;  %v9858_v9 = vld [vmem:[%s9989_s4 + $0x328] sm:$0xff]   ;;  %v14249_v54 = vld [vmem:[#allocation32_spill] sm:$0xff] }
 0x20e   : > { %v9057_v55 = vpop.f32.mrf.mxu1  ;;  %v14251_v14 = vld [vmem:[#allocation139_spill] sm:$0xff] }
 0x20f   : > { %14242 = vst [vmem:[#allocation14_spill] sm:$0xff] %v12625_v4  ;;  %v12628_v53 = vadd.f32 %v3987_v57, %v3472_v40  ;;  %v3475_v17 = vadd.f32 %v9057_v55, %v14245_v11  ;;  %v3990_v51 = vpop.f32.mrf.mxu0 }
 0x210   : > { %v3376_v18 = vpop.f32.mrf.mxu1  ;;  %9357 = vmatmul.mubr.msk.bf16.gmra.mxu0 %vm675_vm1, %v14248_v62 }
 0x211   : > { %14244 = vst [vmem:[#allocation86_spill] sm:$0xff] %v12628_v53  ;;  %v12631_v37 = vadd.f32 %v9123_v2, %v3475_v17  ;;  %v3473_v6 = vadd.f32 %v3376_v18, %v14247_v19  ;;  %v9126_v13 = vpop.f32.mrf.mxu0  ;;  %9360 = vmatprep.mubr.msk.bf16.mxu0 %vm675_vm1, %v14249_v54  ;;  %v9859_v2 = vld [vmem:[%s9989_s4 + $0x334] sm:$0xff]   ;;  %v14253_v17 = vld [vmem:[#allocation2_spill] sm:$0xff]  ;;  %v14255_v54 = vld [vmem:[#allocation3_spill] sm:$0xff] }
 0x212   : > { %v9060_v5 = vpop.f32.mrf.mxu1  ;;  %9291 = vmatmul.mubr.msk.bf16.gmra.mxu1 %vm675_vm1, %v9858_v9 }
 0x213   : > { %14246 = vst [vmem:[#allocation17_spill] sm:$0xff] %v12631_v37  ;;  %v12640_v57 = vadd.f32 %v3990_v51, %v3473_v6  ;;  %v3478_v40 = vadd.f32 %v9060_v5, %v14251_v14  ;;  %v4003_v55 = vpop.f32.mrf.mxu0  ;;  %9294 = vmatprep.mubr.msk.bf16.mxu1 %vm675_vm1, %v9859_v2  ;;  %v14257_v14 = vld [vmem:[#allocation64_spill] sm:$0xff]  ;;  %v14258_v2 = vld [vmem:[#allocation35_spill] sm:$0xff] }
 0x214   : > { %v3389_v18 = vpop.f32.mrf.mxu1 }
 0x215   : > { %14250 = vst [vmem:[#allocation100_spill] sm:$0xff] %v12640_v57  ;;  %v12645_v11 = vadd.f32 %v9126_v13, %v3478_v40  ;;  %v3476_v19 = vadd.f32 %v3389_v18, %v14253_v17  ;;  %v9127_v62 = vpop.f32.mrf.mxu0  ;;  %v9860_v40 = vld [vmem:[%s9989_s4 + $0x33c] sm:$0xff]  }
 0x216   : > { %v9061_v37 = vpop.f32.mrf.mxu1  ;;  %v14259_v18 = vld [vmem:[#allocation37_spill] sm:$0xff] }
 0x217   : > { %14252 = vst [vmem:[#allocation88_spill] sm:$0xff] %v12645_v11  ;;  %v12648_v9 = vadd.f32 %v4003_v55, %v3476_v19  ;;  %v3479_v6 = vadd.f32 %v9061_v37, %v14255_v54  ;;  %v4006_v51 = vpop.f32.mrf.mxu0  ;;  %v14261_v37 = vld [vmem:[#allocation4_spill] sm:$0xff] }
 0x218   : > { %v3392_v57 = vpop.f32.mrf.mxu1  ;;  %9361 = vmatmul.mubr.msk.bf16.gmra.mxu0 %vm675_vm1, %v14258_v2 }
 0x219   : > { %14254 = vst [vmem:[#allocation106_spill] sm:$0xff] %v12648_v9  ;;  %v12651_v5 = vadd.f32 %v9127_v62, %v3479_v6  ;;  %v3477_v53 = vadd.f32 %v3392_v57, %v14257_v14  ;;  %v9130_v4 = vpop.f32.mrf.mxu0  ;;  %9364 = vmatprep.mubr.msk.bf16.mxu0 %vm675_vm1, %v14259_v18  ;;  %v9861_v62 = vld [vmem:[%s9989_s4 + $0x348] sm:$0xff]   ;;  %v14263_v6 = vld [vmem:[#allocation66_spill] sm:$0xff]  ;;  %v14265_v18 = vld [vmem:[#allocation68_spill] sm:$0xff] }
 0x21a   : > { %v9064_v13 = vpop.f32.mrf.mxu1  ;;  %9295 = vmatmul.mubr.msk.bf16.gmra.mxu1 %vm675_vm1, %v9860_v40 }
 0x21b   : > { %14256 = vst [vmem:[#allocation112_spill] sm:$0xff] %v12651_v5  ;;  %v12660_v55 = vadd.f32 %v4006_v51, %v3477_v53  ;;  %v3482_v17 = vadd.f32 %v9064_v13, %v14261_v37  ;;  %v4019_v19 = vpop.f32.mrf.mxu0  ;;  %9298 = vmatprep.mubr.msk.bf16.mxu1 %vm675_vm1, %v9861_v62  ;;  %v14267_v37 = vld [vmem:[#allocation70_spill] sm:$0xff]  ;;  %v14268_v62 = vld [vmem:[#allocation39_spill] sm:$0xff] }
 0x21c   : > { %v3405_v57 = vpop.f32.mrf.mxu1 }
 0x21d   : > { %14260 = vst [vmem:[#allocation117_spill] sm:$0xff] %v12660_v55  ;;  %v12665_v54 = vadd.f32 %v9130_v4, %v3482_v17  ;;  %v3480_v14 = vadd.f32 %v3405_v57, %v14263_v6  ;;  %v9131_v2 = vpop.f32.mrf.mxu0  ;;  %v9862_v17 = vld [vmem:[%s9989_s4 + $0x350] sm:$0xff]  }
 0x21e   : > { %v9065_v5 = vpop.f32.mrf.mxu1  ;;  %v14269_v57 = vld [vmem:[#allocation40_spill] sm:$0xff] }
 0x21f   : > { %14262 = vst [vmem:[#allocation18_spill] sm:$0xff] %v12665_v54  ;;  %v12668_v40 = vadd.f32 %v4019_v19, %v3480_v14  ;;  %v3483_v53 = vadd.f32 %v9065_v5, %v14265_v18  ;;  %v4022_v51 = vpop.f32.mrf.mxu0  ;;  %v14271_v5 = vld [vmem:[#allocation6_spill] sm:$0xff] }
 0x220   : > { %v3408_v55 = vpop.f32.mrf.mxu1  ;;  %9365 = vmatmul.mubr.msk.bf16.gmra.mxu0 %vm675_vm1, %v14268_v62 }
 0x221   : > { %14264 = vst [vmem:[#allocation96_spill] sm:$0xff] %v12668_v40  ;;  %v12671_v13 = vadd.f32 %v9131_v2, %v3483_v53  ;;  %v3481_v9 = vadd.f32 %v3408_v55, %v14267_v37  ;;  %v9202_v11 = vpop.f32.mrf.mxu0  ;;  %9368 = vmatprep.mubr.msk.bf16.mxu0 %vm675_vm1, %v14269_v57  ;;  %v9863_v2 = vld [vmem:[%s9989_s4 + $0x35c] sm:$0xff]   ;;  %v14272_v53 = vld [vmem:[#allocation8_spill] sm:$0xff] }
 0x222   : > { %v9136_v4 = vpop.f32.mrf.mxu1  ;;  %9299 = vmatmul.mubr.msk.bf16.gmra.mxu1 %vm675_vm1, %v9862_v17  ;;  %v14273_v57 = vld [vmem:[#allocation72_spill] sm:$0xff] }
 0x223   : > { %14266 = vst [vmem:[#allocation21_spill] sm:$0xff] %v12671_v13  ;;  %v12680_v19 = vadd.f32 %v4022_v51, %v3481_v9  ;;  %v5290_v6 = vadd.f32 %v9136_v4, %v14271_v5  ;;  %v5407_v14 = vpop.f32.mrf.mxu0  ;;  %9302 = vmatprep.mubr.msk.bf16.mxu1 %vm675_vm1, %v9863_v2  ;;  %v14274_v5 = vld [vmem:[#allocation74_spill] sm:$0xff]  ;;  %v14275_v2 = vld [vmem:[#allocation41_spill] sm:$0xff] }
 0x224   : > { %v5033_v55 = vpop.f32.mrf.mxu1 }
 0x225   : > { %14270 = vst [vmem:[#allocation125_spill] sm:$0xff] %v12680_v19  ;;  %v12685_v18 = vadd.f32 %v9202_v11, %v5290_v6  ;;  %v5288_v37 = vadd.f32 %v5033_v55, %v14272_v53  ;;  %v9203_v62 = vpop.f32.mrf.mxu0  ;;  %v9864_v6 = vld [vmem:[%s9989_s4 + $0x364] sm:$0xff]  }
 0x226   : > { %v9137_v13 = vpop.f32.mrf.mxu1  ;;  %v14276_v55 = vld [vmem:[#allocation43_spill] sm:$0xff] }
 0x227   : > { %v12688_v17 = vadd.f32 %v5407_v14, %v5288_v37  ;;  %v5291_v9 = vadd.f32 %v9137_v13, %v14273_v57  ;;  %v5410_v51 = vpop.f32.mrf.mxu0  ;;  %v9865_v37 = vld [vmem:[%s9989_s4 + $0x370] sm:$0xff]  }
 0x228   : > { %v5036_v19 = vpop.f32.mrf.mxu1  ;;  %9369 = vmatmul.mubr.msk.bf16.gmra.mxu0 %vm675_vm1, %v14275_v2 }
 0x229   : > { %v12691_v4 = vadd.f32 %v9203_v62, %v5291_v9  ;;  %v5289_v40 = vadd.f32 %v5036_v19, %v14274_v5  ;;  %v9206_v54 = vpop.f32.mrf.mxu0  ;;  %9372 = vmatprep.mubr.msk.bf16.mxu0 %vm675_vm1, %v14276_v55 }
 0x22a   : > { %v9140_v11 = vpop.f32.mrf.mxu1  ;;  %9303 = vmatmul.mubr.msk.bf16.gmra.mxu1 %vm675_vm1, %v9864_v6 }
 0x22b   : > { %v12700_v14 = vadd.f32 %v5410_v51, %v5289_v40  ;;  %v5294_v13 = vadd.f32 %v9140_v11, %v12321_v10  ;;  %v5423_v53 = vpop.f32.mrf.mxu0  ;;  %9306 = vmatprep.mubr.msk.bf16.mxu1 %vm675_vm1, %v9865_v37  ;;  %v14279_v37 = vld [vmem:[#allocation45_spill] sm:$0xff] }
 0x22c   : > { %v5049_v19 = vpop.f32.mrf.mxu1 }
 0x22d   : > { %v12705_v62 = vadd.f32 %v9206_v54, %v5294_v13  ;;  %v5292_v57 = vadd.f32 %v5049_v19, %v12324_v50  ;;  %v9207_v9 = vpop.f32.mrf.mxu0  ;;  %v9866_v13 = vld [vmem:[%s9989_s4 + $0x378] sm:$0xff]   ;;  %v14280_v50 = vld [vmem:[#allocation46_spill] sm:$0xff] }
 0x22e   : > { %v9141_v5 = vpop.f32.mrf.mxu1 }
 0x22f   : > { %v12708_v2 = vadd.f32 %v5423_v53, %v5292_v57  ;;  %v5295_v40 = vadd.f32 %v9141_v5, %v12330_v27  ;;  %v5426_v51 = vpop.f32.mrf.mxu0  ;;  %v14282_v27 = vld [vmem:[#allocation77_spill] sm:$0xff] }
 0x230   : > { %v5052_v6 = vpop.f32.mrf.mxu1  ;;  %9373 = vmatmul.mubr.msk.bf16.gmra.mxu0 %vm675_vm1, %v14279_v37 }
 0x231   : > { %14277 = vst [vmem:[#allocation94_spill] sm:$0xff] %v12708_v2  ;;  %v12711_v10 = vadd.f32 %v9207_v9, %v5295_v40  ;;  %v5293_v11 = vadd.f32 %v5052_v6, %v12341_v24  ;;  %v9210_v55 = vpop.f32.mrf.mxu0  ;;  %9376 = vmatprep.mubr.msk.bf16.mxu0 %vm675_vm1, %v14280_v50  ;;  %v9867_v9 = vld [vmem:[%s9989_s4 + $0x384] sm:$0xff]  }
 0x232   : > { %v9144_v54 = vpop.f32.mrf.mxu1  ;;  %9307 = vmatmul.mubr.msk.bf16.gmra.mxu1 %vm675_vm1, %v9866_v13  ;;  %v14283_v50 = vld [vmem:[#allocation79_spill] sm:$0xff] }
 0x233   : > { %14278 = vst [vmem:[#allocation132_spill] sm:$0xff] %v12711_v10  ;;  %v12720_v53 = vadd.f32 %v5426_v51, %v5293_v11  ;;  %v5298_v19 = vadd.f32 %v9144_v54, %v14282_v27  ;;  %v5439_v57 = vpop.f32.mrf.mxu0  ;;  %9310 = vmatprep.mubr.msk.bf16.mxu1 %vm675_vm1, %v9867_v9  ;;  %v14284_v27 = vld [vmem:[#allocation10_spill] sm:$0xff]  ;;  %v14285_v9 = vld [vmem:[#allocation49_spill] sm:$0xff] }
 0x234   : > { %v5065_v24 = vpop.f32.mrf.mxu1 }
 0x235   : > { %14281 = vst [vmem:[#allocation137_spill] sm:$0xff] %v12720_v53  ;;  %v12725_v5 = vadd.f32 %v9210_v55, %v5298_v19  ;;  %v5296_v40 = vadd.f32 %v5065_v24, %v12356_v20  ;;  %v9211_v6 = vpop.f32.mrf.mxu0  ;;  %v9868_v19 = vld [vmem:[%s9989_s4 + $0x38c] sm:$0xff]   ;;  %v14286_v20 = vld [vmem:[#allocation50_spill] sm:$0xff] }
 0x236   : > { %v9145_v37 = vpop.f32.mrf.mxu1 }
 0x237   : > { %v12728_v13 = vadd.f32 %v5439_v57, %v5296_v40  ;;  %v5299_v51 = vadd.f32 %v9145_v37, %v14283_v50  ;;  %v5442_v11 = vpop.f32.mrf.mxu0 }
 0x238   : > { %v5068_v53 = vpop.f32.mrf.mxu1  ;;  %9377 = vmatmul.mubr.msk.bf16.gmra.mxu0 %vm675_vm1, %v14285_v9 }
 0x239   : > { %v12731_v54 = vadd.f32 %v9211_v6, %v5299_v51  ;;  %v5297_v10 = vadd.f32 %v5068_v53, %v14284_v27  ;;  %v9214_v2 = vpop.f32.mrf.mxu0  ;;  %9380 = vmatprep.mubr.msk.bf16.mxu0 %vm675_vm1, %v14286_v20  ;;  %v9869_v6 = vld [vmem:[%s9989_s4 + $0x398] sm:$0xff]  }
 0x23a   : > { %v9148_v55 = vpop.f32.mrf.mxu1  ;;  %9311 = vmatmul.mubr.msk.bf16.gmra.mxu1 %vm675_vm1, %v9868_v19 }
 0x23b   : > { %v12740_v57 = vadd.f32 %v5442_v11, %v5297_v10  ;;  %v5302_v24 = vadd.f32 %v9148_v55, %v12385_v3  ;;  %v5455_v40 = vpop.f32.mrf.mxu0  ;;  %9314 = vmatprep.mubr.msk.bf16.mxu1 %vm675_vm1, %v9869_v6  ;;  %v14289_v6 = vld [vmem:[#allocation53_spill] sm:$0xff] }
 0x23c   : > { %v5081_v53 = vpop.f32.mrf.mxu1 }
 0x23d   : > { %v12745_v37 = vadd.f32 %v9214_v2, %v5302_v24  ;;  %v5300_v50 = vadd.f32 %v5081_v53, %v12389_v52  ;;  %v9215_v51 = vpop.f32.mrf.mxu0  ;;  %v6124_v2 = vshrl.u32 %v12453_v39, 16  ;;  %v6130_v52 = vshll.u32 %v12464_v46, 16  ;;  %v9870_v53 = vld [vmem:[%s9989_s4 + $0x3a0] sm:$0xff]  }
 0x23e   : > { %v9149_v27 = vpop.f32.mrf.mxu1  ;;  %v6134_v24 = vshrl.u32 %v12464_v46, 16 }
 0x23f   : > { %v12748_v9 = vadd.f32 %v5455_v40, %v5300_v50  ;;  %v5303_v19 = vadd.f32 %v9149_v27, %v12395_v1  ;;  %v5458_v10 = vpop.f32.mrf.mxu0  ;;  %v14290_v1 = vld [vmem:[#allocation54_spill] sm:$0xff]  ;;  %v9871_v27 = vld [vmem:[%s9989_s4 + $0x3ac] sm:$0xff]  }
 0x240   : > { %v5084_v11 = vpop.f32.mrf.mxu1  ;;  %9381 = vmatmul.mubr.msk.bf16.gmra.mxu0 %vm675_vm1, %v14289_v6  ;;  %v6132_v6 = vrot.slane %v6130_v52, 5 }
 0x241   : > { %14287 = vst [vmem:[#allocation141_spill] sm:$0xff] %v12748_v9  ;;  %v12751_v3 = vadd.f32 %v9215_v51, %v5303_v19  ;;  %v5301_v55 = vadd.f32 %v5084_v11, %v12405_v56  ;;  %v9218_v20 = vpop.f32.mrf.mxu0  ;;  %9384 = vmatprep.mubr.msk.bf16.mxu0 %vm675_vm1, %v14290_v1  ;;  %v6126_v1 = vrot.slane %v6124_v2, 4  ;;  %v14296_v2 = vld [vmem:[#allocation58_spill] sm:$0xff] }
 0x242   : > { %v9152_v40 = vpop.f32.mrf.mxu1  ;;  %9315 = vmatmul.mubr.msk.bf16.gmra.mxu1 %vm675_vm1, %v9870_v53  ;;  %v6136_v53 = vrot.slane %v6134_v24, 4  ;;  %v9872_v24 = vld [vmem:[%s9989_s4 + $0x3b4] sm:$0xff]  }
 0x243   : > { %14288 = vst [vmem:[#allocation22_spill] sm:$0xff] %v12751_v3  ;;  %v12763_v50 = vadd.f32 %v5458_v10, %v5301_v55  ;;  %v5306_v56 = vadd.f32 %v9152_v40, %v12415_v33  ;;  %v5471_v51 = vpop.f32.mrf.mxu0  ;;  %9318 = vmatprep.mubr.msk.bf16.mxu1 %vm675_vm1, %v9871_v27  ;;  %v14293_v55 = vld [vmem:[#allocation13_spill] sm:$0xff]  ;;  %v290_v40 = vld [vmem:[%s9989_s4 + $0x150] sm:$0x1] }
 0x244   : > { %v5097_v39 = vpop.f32.mrf.mxu1 }
 0x245   : > { %14291 = vst [vmem:[#allocation99_spill] sm:$0xff] %v12763_v50  ;;  %v12768_v19 = vadd.f32 %v9218_v20, %v5306_v56  ;;  %v5304_v46 = vadd.f32 %v5097_v39, %v12420_v36  ;;  %v9219_v11 = vpop.f32.mrf.mxu0  ;;  %v14294_v20 = vld [vmem:[#allocation81_spill] sm:$0xff]  ;;  %v6140_v39 = vshll.u32 %v290_v40, 16 }
 0x246   : > { %v9153_v3 = vpop.f32.mrf.mxu1  ;;  %v14295_v36 = vld [vmem:[#allocation57_spill] sm:$0xff] }
 0x247   : > { %14292 = vst [vmem:[#allocation25_spill] sm:$0xff] %v12768_v19  ;;  %v12771_v10 = vadd.f32 %v5471_v51, %v5304_v46  ;;  %v5307_v50 = vadd.f32 %v9153_v3, %v14293_v55  ;;  %v5474_v33 = vpop.f32.mrf.mxu0  ;;  %v6127_v3 = vor.u32 %v6126_v1, %v12476_v7  ;;  %v6137_v51 = vor.u32 %v6136_v53, %v6132_v6 }
 0x248   : > { %v5100_v9 = vpop.f32.mrf.mxu1  ;;  %9385 = vmatmul.mubr.msk.bf16.gmra.mxu0 %vm675_vm1, %v14295_v36  ;;  %v6142_v1 = vrot.slane %v6140_v39, 5 }
 0x249   : > { %v12775_v27 = vadd.f32 %v9219_v11, %v5307_v50  ;;  %v5305_v56 = vadd.f32 %v5100_v9, %v14294_v20  ;;  %v9222_v19 = vpop.f32.mrf.mxu0  ;;  %9388 = vmatprep.mubr.msk.bf16.mxu0 %vm675_vm1, %v14296_v2  ;;  %v9873_v11 = vld [vmem:[%s9989_s4 + $0x3c0] sm:$0xff]   ;;  %v6128_v7 = vrot.slane %v6127_v3, 4  ;;  %v6138_v53 = vrot.slane %v6137_v51, 4  ;;  %v9874_v3 = vld [vmem:[%s9989_s4 + $0x3c8] sm:$0xff]  }
 0x24a   : > { %v9156_v52 = vpop.f32.mrf.mxu1  ;;  %9319 = vmatmul.mubr.msk.bf16.gmra.mxu1 %vm675_vm1, %v9872_v24 }
 0x24b   : > { %v12785_v46 = vadd.f32 %v5474_v33, %v5305_v56  ;;  %v5310_v9 = vadd.f32 %v9156_v52, %v12446_v25  ;;  %v5487_v50 = vpop.f32.mrf.mxu0  ;;  %9322 = vmatprep.mubr.msk.bf16.mxu1 %vm675_vm1, %v9873_v11  ;;  %v9579_v56 = vld [vmem:[%s9989_s4 + $0x3d4] sm:$0xff]   ;;  %v6143_v51 = vsel %vm10105_vm4, %v6138_v53, %v6142_v1 }
 0x24c   : > { %v5113_v55 = vpop.f32.mrf.mxu1  ;;  %v14298_v11 = vld [vmem:[#allocation60_spill] sm:$0xff] }
 0x24d   : > { %14297 = vst [vmem:[#allocation142_spill] sm:$0xff] %v12785_v46  ;;  %v12790_v20 = vadd.f32 %v9222_v19, %v5310_v9  ;;  %v5308_v36 = vadd.f32 %v5113_v55, %v12449_v60  ;;  %v9223_v24 = vpop.f32.mrf.mxu0 }
 0x24e   : > { %v9157_v2 = vpop.f32.mrf.mxu1 }
 0x24f   : > { %v12793_v33 = vadd.f32 %v5487_v50, %v5308_v36  ;;  %v5311_v40 = vadd.f32 %v9157_v2, %v12456_v45  ;;  %v5490_v25 = vpop.f32.mrf.mxu0  ;;  %v6133_v45 = vsel %vm10105_vm4, %v6128_v7, %v6132_v6 }
 0x250   : > { %v5116_v52 = vpop.f32.mrf.mxu1  ;;  %9389 = vmatmul.mubr.msk.bf16.gmra.mxu0 %vm675_vm1, %v14298_v11 }
 0x251   : > { %v12797_v46 = vadd.f32 %v9223_v24, %v5311_v40  ;;  %v5309_v19 = vadd.f32 %v5116_v52, %v12466_v30  ;;  %v9226_v9 = vpop.f32.mrf.mxu0  ;;  %9392 = vmatprep.mubr.msk.bf16.mxu0 %vm675_vm1, %v12491_v23  ;;  %v8276_v23 = vcombine.low %v6133_v45, %v6143_v51  ;;  %v9580_v52 = vld [vmem:[%s9989_s4 + $0x3dc] sm:$0xff]  }
 0x252   : > { %v9160_v60 = vpop.f32.mrf.mxu1  ;;  %9323 = vmatmul.mubr.msk.bf16.gmra.mxu1 %vm675_vm1, %v9874_v3 }
 0x253   : > { %v12810_v39 = vadd.f32 %v5490_v25, %v5309_v19  ;;  %v5314_v30 = vadd.f32 %v9160_v60, %v12478_v61  ;;  %v5503_v50 = vpop.f32.mrf.mxu0  ;;  %9326 = vmatprep.mubr.msk.bf16.mxu1 %vm675_vm1, %v9579_v56 }
 0x254   : > { %v5129_v55 = vpop.f32.mrf.mxu1 }
 0x255   : > { %v12814_v36 = vadd.f32 %v9226_v9, %v5314_v30  ;;  %v5312_v24 = vadd.f32 %v5129_v55, %v12488_v15  ;;  %v9227_v2 = vpop.f32.mrf.mxu0 }
 0x256   : > { %v9161_v40 = vpop.f32.mrf.mxu1 }
 0x257   : > { %v12818_v6 = vadd.f32 %v5503_v50, %v5312_v24  ;;  %v5315_v8 = vadd.f32 %v9161_v40, %v12493_v32  ;;  %v5506_v7 = vpop.f32.mrf.mxu0 }
 0x258   : > { %v5132_v53 = vpop.f32.mrf.mxu1  ;;  %9393 = vmatmul.mubr.msk.bf16.gmra.mxu0 %vm675_vm1, %v8276_v23 }
 0x259   : > { %v12821_v1 = vadd.f32 %v9227_v2, %v5315_v8  ;;  %v5313_v61 = vadd.f32 %v5132_v53, %v12500_v49  ;;  %v9230_v25 = vpop.f32.mrf.mxu0 }
 0x25a   : > { %v9164_v56 = vpop.f32.mrf.mxu1  ;;  %9327 = vmatmul.mubr.msk.bf16.gmra.mxu1 %vm675_vm1, %v9580_v52 }
 0x25b   : > { %v12826_v15 = vadd.f32 %v5506_v7, %v5313_v61  ;;  %v5318_v19 = vadd.f32 %v9164_v56, %v12505_v47  ;;  %v5519_v9 = vpop.f32.mrf.mxu0 }
 0x25c   : > { %v5145_v11 = vpop.f32.mrf.mxu1 }
 0x25d   : > { %v12829_v60 = vadd.f32 %v9230_v25, %v5318_v19  ;;  %v5316_v32 = vadd.f32 %v5145_v11, %v12508_v28  ;;  %v9231_v3 = vpop.f32.mrf.mxu0 }
 0x25e   : > { %v9165_v45 = vpop.f32.mrf.mxu1 }
 0x25f   : > { %v12832_v51 = vadd.f32 %v5519_v9, %v5316_v32  ;;  %v5319_v49 = vadd.f32 %v9165_v45, %v12511_v59  ;;  %v5522_v30 = vpop.f32.mrf.mxu0 }
 0x260   : > { %v5148_v50 = vpop.f32.mrf.mxu1 }
 0x261   : > { %v12835_v55 = vadd.f32 %v9231_v3, %v5319_v49  ;;  %v5317_v24 = vadd.f32 %v5148_v50, %v12520_v35  ;;  %v9234_v2 = vpop.f32.mrf.mxu0 }
 0x262   : > { %v9168_v47 = vpop.f32.mrf.mxu1 }
 0x263   : > { %v12838_v23 = vadd.f32 %v5522_v30, %v5317_v24  ;;  %v5322_v40 = vadd.f32 %v9168_v47, %v12525_v26  ;;  %v5535_v52 = vpop.f32.mrf.mxu0 }
 0x264   : > { %v5161_v28 = vpop.f32.mrf.mxu1 }
 0x265   : > { %v12841_v8 = vadd.f32 %v9234_v2, %v5322_v40  ;;  %v5320_v7 = vadd.f32 %v5161_v28, %v12528_v31  ;;  %v9235_v53 = vpop.f32.mrf.mxu0 }
 0x266   : > { %v9169_v59 = vpop.f32.mrf.mxu1 }
 0x267   : > { %v12844_v61 = vadd.f32 %v5535_v52, %v5320_v7  ;;  %v5323_v25 = vadd.f32 %v9169_v59, %v12531_v38  ;;  %v5538_v56 = vpop.f32.mrf.mxu0 }
 0x268   : > { %v5164_v35 = vpop.f32.mrf.mxu1 }
 0x269   : > { %v12847_v19 = vadd.f32 %v9235_v53, %v5323_v25  ;;  %v5321_v9 = vadd.f32 %v5164_v35, %v12540_v43  ;;  %v9238_v11 = vpop.f32.mrf.mxu0 }
 0x26a   : > { %v9172_v26 = vpop.f32.mrf.mxu1 }
 0x26b   : > { %v12850_v32 = vadd.f32 %v5538_v56, %v5321_v9  ;;  %v5326_v3 = vadd.f32 %v9172_v26, %v12545_v42  ;;  %v5551_v45 = vpop.f32.mrf.mxu0 }
 0x26c   : > { %v5177_v31 = vpop.f32.mrf.mxu1 }
 0x26d   : > { %v12853_v49 = vadd.f32 %v9238_v11, %v5326_v3  ;;  %v5324_v30 = vadd.f32 %v5177_v31, %v12548_v22  ;;  %v9239_v50 = vpop.f32.mrf.mxu0 }
 0x26e   : > { %v9173_v38 = vpop.f32.mrf.mxu1 }
 0x26f   : > { %v12856_v24 = vadd.f32 %v5551_v45, %v5324_v30  ;;  %v5327_v2 = vadd.f32 %v9173_v38, %v12551_v34  ;;  %v5554_v47 = vpop.f32.mrf.mxu0 }
 0x270   : > { %v5180_v43 = vpop.f32.mrf.mxu1 }
 0x271   : > { %14299 = vst [vmem:[#allocation101_spill] sm:$0xff] %v12856_v24  ;;  %v12859_v40 = vadd.f32 %v9239_v50, %v5327_v2  ;;  %v5325_v52 = vadd.f32 %v5180_v43, %v12560_v0  ;;  %v9242_v28 = vpop.f32.mrf.mxu0 }
 0x272   : > { %v9176_v42 = vpop.f32.mrf.mxu1 }
 0x273   : > { %14300 = vst [vmem:[#allocation143_spill] sm:$0xff] %v12859_v40  ;;  %v12862_v7 = vadd.f32 %v5554_v47, %v5325_v52  ;;  %v5330_v53 = vadd.f32 %v9176_v42, %v12565_v29  ;;  %v5567_v59 = vpop.f32.mrf.mxu0 }
 0x274   : > { %v5193_v22 = vpop.f32.mrf.mxu1 }
 0x275   : > { %14301 = vst [vmem:[#allocation144_spill] sm:$0xff] %v12862_v7  ;;  %v12865_v25 = vadd.f32 %v9242_v28, %v5330_v53  ;;  %v5328_v56 = vadd.f32 %v5193_v22, %v12568_v44  ;;  %v9243_v35 = vpop.f32.mrf.mxu0 }
 0x276   : > { %v9177_v34 = vpop.f32.mrf.mxu1 }
 0x277   : > { %14302 = vst [vmem:[#allocation145_spill] sm:$0xff] %v12865_v25  ;;  %v12868_v9 = vadd.f32 %v5567_v59, %v5328_v56  ;;  %v5331_v11 = vadd.f32 %v9177_v34, %v12571_v48  ;;  %v5570_v26 = vpop.f32.mrf.mxu0 }
 0x278   : > { %v5196_v0 = vpop.f32.mrf.mxu1 }
 0x279   : > { %14303 = vst [vmem:[#allocation27_spill] sm:$0xff] %v12868_v9  ;;  %v12871_v3 = vadd.f32 %v9243_v35, %v5331_v11  ;;  %v5329_v45 = vadd.f32 %v5196_v0, %v12580_v63  ;;  %v9246_v31 = vpop.f32.mrf.mxu0 }
 0x27a   : > { %v9180_v29 = vpop.f32.mrf.mxu1 }
 0x27b   : > { %14304 = vst [vmem:[#allocation29_spill] sm:$0xff] %v12871_v3  ;;  %v12874_v30 = vadd.f32 %v5570_v26, %v5329_v45  ;;  %v5334_v50 = vadd.f32 %v9180_v29, %v12585_v16  ;;  %v5583_v38 = vpop.f32.mrf.mxu0  ;;  %v14311_v26 = vld [vmem:[#allocation85_spill] sm:$0xff]  ;;  %v14313_v29 = vld [vmem:[#allocation90_spill] sm:$0xff] }
 0x27c   : > { %v5209_v44 = vpop.f32.mrf.mxu1 }
 0x27d   : > { %14305 = vst [vmem:[#allocation146_spill] sm:$0xff] %v12874_v30  ;;  %v12877_v2 = vadd.f32 %v9246_v31, %v5334_v50  ;;  %v5332_v47 = vadd.f32 %v5209_v44, %v12588_v58  ;;  %v9247_v43 = vpop.f32.mrf.mxu0 }
 0x27e   : > { %v9181_v48 = vpop.f32.mrf.mxu1 }
 0x27f   : > { %14306 = vst [vmem:[#allocation82_spill] sm:$0xff] %v12877_v2  ;;  %v12880_v52 = vadd.f32 %v5583_v38, %v5332_v47  ;;  %v5335_v28 = vadd.f32 %v9181_v48, %v12591_v21  ;;  %v5586_v42 = vpop.f32.mrf.mxu0  ;;  %v14315_v47 = vld [vmem:[#allocation95_spill] sm:$0xff] }
 0x280   : > { %v5212_v63 = vpop.f32.mrf.mxu1 }
 0x281   : > { %14307 = vst [vmem:[#allocation84_spill] sm:$0xff] %v12880_v52  ;;  %v12883_v53 = vadd.f32 %v9247_v43, %v5335_v28  ;;  %v5333_v59 = vadd.f32 %v5212_v63, %v12600_v12  ;;  %v9250_v22 = vpop.f32.mrf.mxu0 }
 0x282   : > { %v9184_v16 = vpop.f32.mrf.mxu1 }
 0x283   : > { %14308 = vst [vmem:[#allocation89_spill] sm:$0xff] %v12883_v53  ;;  %v12886_v56 = vadd.f32 %v5586_v42, %v5333_v59  ;;  %v5338_v35 = vadd.f32 %v9184_v16, %v12605_v41  ;;  %v5599_v34 = vpop.f32.mrf.mxu0  ;;  %v14317_v42 = vld [vmem:[#allocation14_spill] sm:$0xff] }
 0x284   : > { %v5225_v58 = vpop.f32.mrf.mxu1 }
 0x285   : > { %14309 = vst [vmem:[#allocation30_spill] sm:$0xff] %v12886_v56  ;;  %v12889_v11 = vadd.f32 %v9250_v22, %v5338_v35  ;;  %v5336_v0 = vadd.f32 %v5225_v58, %v14311_v26  ;;  %v9251_v45 = vpop.f32.mrf.mxu0  ;;  %v14319_v35 = vld [vmem:[#allocation86_spill] sm:$0xff] }
 0x286   : > { %v9185_v21 = vpop.f32.mrf.mxu1 }
 0x287   : > { %14310 = vst [vmem:[#allocation110_spill] sm:$0xff] %v12889_v11  ;;  %v12892_v31 = vadd.f32 %v5599_v34, %v5336_v0  ;;  %v5339_v50 = vadd.f32 %v9185_v21, %v14313_v29  ;;  %v5602_v38 = vpop.f32.mrf.mxu0 }
 0x288   : > { %v5228_v12 = vpop.f32.mrf.mxu1 }
 0x289   : > { %14312 = vst [vmem:[#allocation33_spill] sm:$0xff] %v12892_v31  ;;  %v12895_v44 = vadd.f32 %v9251_v45, %v5339_v50  ;;  %v5337_v43 = vadd.f32 %v5228_v12, %v14315_v47  ;;  %v9254_v48 = vpop.f32.mrf.mxu0  ;;  %v14321_v45 = vld [vmem:[#allocation17_spill] sm:$0xff] }
 0x28a   : > { %v9188_v41 = vpop.f32.mrf.mxu1 }
 0x28b   : > { %14314 = vst [vmem:[#allocation75_spill] sm:$0xff] %v12895_v44  ;;  %v12898_v28 = vadd.f32 %v5602_v38, %v5337_v43  ;;  %v5342_v63 = vadd.f32 %v9188_v41, %v14317_v42  ;;  %v5615_v59 = vpop.f32.mrf.mxu0  ;;  %v14323_v38 = vld [vmem:[#allocation100_spill] sm:$0xff] }
 0x28c   : > { %v5241_v22 = vpop.f32.mrf.mxu1 }
 0x28d   : > { %14316 = vst [vmem:[#allocation91_spill] sm:$0xff] %v12898_v28  ;;  %v12901_v16 = vadd.f32 %v9254_v48, %v5342_v63  ;;  %v5340_v34 = vadd.f32 %v5241_v22, %v14319_v35  ;;  %v9255_v58 = vpop.f32.mrf.mxu0  ;;  %v14325_v48 = vld [vmem:[#allocation88_spill] sm:$0xff] }
 0x28e   : > { %v9189_v26 = vpop.f32.mrf.mxu1 }
 0x28f   : > { %14318 = vst [vmem:[#allocation93_spill] sm:$0xff] %v12901_v16  ;;  %v12904_v0 = vadd.f32 %v5615_v59, %v5340_v34  ;;  %v5343_v21 = vadd.f32 %v9189_v26, %v14321_v45  ;;  %v5618_v29 = vpop.f32.mrf.mxu0  ;;  %v14327_v59 = vld [vmem:[#allocation106_spill] sm:$0xff] }
 0x290   : > { %v5244_v50 = vpop.f32.mrf.mxu1 }
 0x291   : > { %14320 = vst [vmem:[#allocation98_spill] sm:$0xff] %v12904_v0  ;;  %v12907_v12 = vadd.f32 %v9255_v58, %v5343_v21  ;;  %v5341_v47 = vadd.f32 %v5244_v50, %v14323_v38  ;;  %v9258_v43 = vpop.f32.mrf.mxu0  ;;  %v14329_v58 = vld [vmem:[#allocation112_spill] sm:$0xff] }
 0x292   : > { %v9192_v41 = vpop.f32.mrf.mxu1 }
 0x293   : > { %14322 = vst [vmem:[#allocation34_spill] sm:$0xff] %v12907_v12  ;;  %v12910_v42 = vadd.f32 %v5618_v29, %v5341_v47  ;;  %v5346_v63 = vadd.f32 %v9192_v41, %v14325_v48  ;;  %v5631_v16 = vpop.f32.mrf.mxu0  ;;  %v14331_v29 = vld [vmem:[#allocation117_spill] sm:$0xff] }
 0x294   : > { %v5257_v22 = vpop.f32.mrf.mxu1 }
 0x295   : > { %14324 = vst [vmem:[#allocation111_spill] sm:$0xff] %v12910_v42  ;;  %v12913_v35 = vadd.f32 %v9258_v43, %v5346_v63  ;;  %v5344_v34 = vadd.f32 %v5257_v22, %v14327_v59  ;;  %v9259_v0 = vpop.f32.mrf.mxu0  ;;  %v14333_v43 = vld [vmem:[#allocation18_spill] sm:$0xff] }
 0x296   : > { %v9193_v26 = vpop.f32.mrf.mxu1 }
 0x297   : > { %14326 = vst [vmem:[#allocation36_spill] sm:$0xff] %v12913_v35  ;;  %v12916_v45 = vadd.f32 %v5631_v16, %v5344_v34  ;;  %v5347_v21 = vadd.f32 %v9193_v26, %v14329_v58  ;;  %v5634_v12 = vpop.f32.mrf.mxu0  ;;  %v14335_v16 = vld [vmem:[#allocation96_spill] sm:$0xff] }
 0x298   : > { %v5260_v50 = vpop.f32.mrf.mxu1 }
 0x299   : > { %14328 = vst [vmem:[#allocation122_spill] sm:$0xff] %v12916_v45  ;;  %v12919_v38 = vadd.f32 %v9259_v0, %v5347_v21  ;;  %v5345_v47 = vadd.f32 %v5260_v50, %v14331_v29  ;;  %v9262_v42 = vpop.f32.mrf.mxu0  ;;  %v14337_v0 = vld [vmem:[#allocation21_spill] sm:$0xff] }
 0x29a   : > { %v9196_v41 = vpop.f32.mrf.mxu1 }
 0x29b   : > { %14330 = vst [vmem:[#allocation102_spill] sm:$0xff] %v12919_v38  ;;  %v12922_v48 = vadd.f32 %v5634_v12, %v5345_v47  ;;  %v5350_v63 = vadd.f32 %v9196_v41, %v14333_v43  ;;  %v5647_v35 = vpop.f32.mrf.mxu0  ;;  %v14339_v12 = vld [vmem:[#allocation125_spill] sm:$0xff] }
 0x29c   : > { %v5273_v22 = vpop.f32.mrf.mxu1 }
 0x29d   : > { %14332 = vst [vmem:[#allocation63_spill] sm:$0xff] %v12922_v48  ;;  %v12925_v59 = vadd.f32 %v9262_v42, %v5350_v63  ;;  %v5348_v34 = vadd.f32 %v5273_v22, %v14335_v16  ;;  %v9263_v45 = vpop.f32.mrf.mxu0 }
 0x29e   : > { %v9197_v26 = vpop.f32.mrf.mxu1 }
 0x29f   : > { %14334 = vst [vmem:[#allocation104_spill] sm:$0xff] %v12925_v59  ;;  %v12928_v58 = vadd.f32 %v5647_v35, %v5348_v34  ;;  %v5351_v21 = vadd.f32 %v9197_v26, %v14337_v0  ;;  %v5650_v38 = vpop.f32.mrf.mxu0  ;;  %v12940_v35 = vld [vmem:[%s13714_s2] ss:$0 sm:$0xff] }
 0x2a0   : > { %v5276_v50 = vpop.f32.mrf.mxu1 }
 0x2a1   : > { %14336 = vst [vmem:[#allocation105_spill] sm:$0xff] %v12928_v58  ;;  %v12931_v29 = vadd.f32 %v9263_v45, %v5351_v21  ;;  %v5349_v47 = vadd.f32 %v5276_v50, %v14339_v12  ;;  %v9334_v48 = vpop.f32.mrf.mxu0 }
 0x2a2   : > { %v9268_v41 = vpop.f32.mrf.mxu1 }
 0x2a3   : > { %14338 = vst [vmem:[#allocation123_spill] sm:$0xff] %v12931_v29  ;;  %v12934_v43 = vadd.f32 %v5650_v38, %v5349_v47  ;;  %v6038_v42 = vadd.f32 %v9268_v41, %v12685_v18  ;;  %v6195_v63 = vpop.f32.mrf.mxu0 }
 0x2a4   : > { %v5781_v22 = vpop.f32.mrf.mxu1 }
 0x2a5   : > { %14340 = vst [vmem:[#allocation107_spill] sm:$0xff] %v12934_v43  ;;  %v6452_v16 = vadd.f32 %v9334_v48, %v6038_v42  ;;  %v6036_v34 = vadd.f32 %v5781_v22, %v12688_v17  ;;  %v9335_v45 = vpop.f32.mrf.mxu0 }
 0x2a6   : > { %v9269_v26 = vpop.f32.mrf.mxu1 }
 0x2a7   : > { %v12944_v0 = vadd.f32 %v12940_v35, %v6452_v16  ;;  %v6450_v21 = vadd.f32 %v6195_v63, %v6036_v34  ;;  %v6039_v38 = vadd.f32 %v9269_v26, %v12691_v4  ;;  %v6198_v50 = vpop.f32.mrf.mxu0 }
 0x2a8   : > { %v5784_v18 = vpop.f32.mrf.mxu1 }
 0x2a9   : > { %v8312_v12 = vclamps-f32 %v12944_v0, 30.0  ;;  %v12949_v47 = vadd.f32 %v12940_v35, %v6450_v21  ;;  %v6453_v41 = vadd.f32 %v9335_v45, %v6039_v38  ;;  %v6037_v48 = vadd.f32 %v5784_v18, %v12700_v14  ;;  %v9338_v42 = vpop.f32.mrf.mxu0  ;;  %v14341_v18 = vld [vmem:[#allocation94_spill] sm:$0xff] }
 0x2aa   : > { %v9272_v17 = vpop.f32.mrf.mxu1 }
 0x2ab   : > { %v6715_v22 = vsub.f32 0.0, %v8312_v12  ;;  %v8310_v43 = vclamps-f32 %v12949_v47, 30.0  ;;  %v12954_v16 = vadd.f32 %v12940_v35, %v6453_v41  ;;  %v6451_v63 = vadd.f32 %v6198_v50, %v6037_v48  ;;  %v6211_v4 = vpop.f32.mrf.mxu0 }
 0x2ac   : > { %v6042_v34 = vadd.f32 %v9272_v17, %v12705_v62  ;;  %v5797_v26 = vpop.f32.mrf.mxu1  ;;  %v14342_v17 = vld [vmem:[#allocation132_spill] sm:$0xff] }
 0x2ad   : > { %v6781_v29 = vmul.f32 1.442695, %v6715_v22  ;;  %v6713_v58 = vsub.f32 0.0, %v8310_v43  ;;  %v8313_v21 = vclamps-f32 %v12954_v16, 30.0  ;;  %v12959_v45 = vadd.f32 %v12940_v35, %v6451_v63  ;;  %v9339_v14 = vpop.f32.mrf.mxu0 }
 0x2ae   : > { %v6456_v38 = vadd.f32 %v9338_v42, %v6042_v34  ;;  %v6040_v12 = vadd.f32 %v5797_v26, %v14341_v18  ;;  %v9273_v59 = vpop.f32.mrf.mxu1  ;;  %v14343_v42 = vld [vmem:[#allocation137_spill] sm:$0xff] }
 0x2af   : > { %9581 = vpow2.f32 %v6781_v29  ;;  %v6777_v41 = vmul.f32 1.442695, %v6713_v58  ;;  %v6716_v28 = vsub.f32 0.0, %v8313_v21  ;;  %v8311_v50 = vclamps-f32 %v12959_v45, 30.0  ;;  %v6214_v48 = vpop.f32.mrf.mxu0 }
 0x2b0   : > { %v12964_v62 = vadd.f32 %v12940_v35, %v6456_v38  ;;  %v6454_v43 = vadd.f32 %v6211_v4, %v6040_v12  ;;  %v6043_v22 = vadd.f32 %v9273_v59, %v14342_v17  ;;  %v5800_v44 = vpop.f32.mrf.mxu1 }
 0x2b1   : > { %9583 = vpow2.f32 %v6777_v41  ;;  %v6783_v63 = vmul.f32 1.442695, %v6716_v28  ;;  %v6714_v31 = vsub.f32 0.0, %v8311_v50  ;;  %v6041_v34 = vadd.f32 %v5800_v44, %v14343_v42  ;;  %v9342_v26 = vpop.f32.mrf.mxu0 }
 0x2b2   : > { %v8316_v29 = vclamps-f32 %v12964_v62, 30.0  ;;  %v12970_v58 = vadd.f32 %v12940_v35, %v6454_v43  ;;  %v6457_v21 = vadd.f32 %v9339_v14, %v6043_v22  ;;  %v9276_v18 = vpop.f32.mrf.mxu1 }
 0x2b3   : > { %9585 = vpow2.f32 %v6783_v63  ;;  %v6779_v38 = vmul.f32 1.442695, %v6714_v31  ;;  %v6455_v11 = vadd.f32 %v6214_v48, %v6041_v34  ;;  %v6046_v4 = vadd.f32 %v9276_v18, %v12725_v5  ;;  %v6227_v59 = vpop.f32.mrf.mxu0 }
 0x2b4   : > { %v6719_v12 = vsub.f32 0.0, %v8316_v29  ;;  %v8314_v28 = vclamps-f32 %v12970_v58, 30.0  ;;  %v12975_v41 = vadd.f32 %v12940_v35, %v6457_v21  ;;  %v5813_v44 = vpop.f32.mrf.mxu1 }
 0x2b5   : > { %9587 = vpow2.f32 %v6779_v38  ;;  %v12978_v50 = vadd.f32 %v12940_v35, %v6455_v11  ;;  %v6460_v43 = vadd.f32 %v9342_v26, %v6046_v4  ;;  %v6044_v14 = vadd.f32 %v5813_v44, %v12728_v13  ;;  %v9343_v17 = vpop.f32.mrf.mxu0 }
 0x2b6   : > { %v6789_v31 = vmul.f32 1.442695, %v6719_v12  ;;  %v6717_v48 = vsub.f32 0.0, %v8314_v28  ;;  %v8317_v5 = vclamps-f32 %v12975_v41, 30.0  ;;  %v9277_v22 = vpop.f32.mrf.mxu1 }
 0x2b7   : > { %v8315_v63 = vclamps-f32 %v12978_v50, 30.0  ;;  %v12984_v42 = vadd.f32 %v12940_v35, %v6460_v43  ;;  %v6458_v34 = vadd.f32 %v6227_v59, %v6044_v14  ;;  %v6047_v29 = vadd.f32 %v9277_v22, %v12731_v54  ;;  %v6230_v11 = vpop.f32.mrf.mxu0 }
 0x2b8   : > { %9589 = vpow2.f32 %v6789_v31  ;;  %v6785_v26 = vmul.f32 1.442695, %v6717_v48  ;;  %v6720_v21 = vsub.f32 0.0, %v8317_v5  ;;  %v5816_v13 = vpop.f32.mrf.mxu1 }
 0x2b9   : > { %v6718_v18 = vsub.f32 0.0, %v8315_v63  ;;  %v8320_v38 = vclamps-f32 %v12984_v42, 30.0  ;;  %v12989_v4 = vadd.f32 %v12940_v35, %v6458_v34  ;;  %v6461_v12 = vadd.f32 %v9343_v17, %v6047_v29  ;;  %v9346_v28 = vpop.f32.mrf.mxu0 }
 0x2ba   : > { %9591 = vpow2.f32 %v6785_v26  ;;  %v6791_v59 = vmul.f32 1.442695, %v6720_v21  ;;  %v6045_v54 = vadd.f32 %v5816_v13, %v12740_v57  ;;  %v9280_v44 = vpop.f32.mrf.mxu1 }
 0x2bb   : > { %v6787_v43 = vmul.f32 1.442695, %v6718_v18  ;;  %v6723_v14 = vsub.f32 0.0, %v8320_v38  ;;  %v8318_v31 = vclamps-f32 %v12989_v4, 30.0  ;;  %v12995_v48 = vadd.f32 %v12940_v35, %v6461_v12  ;;  %v6243_v5 = vpop.f32.mrf.mxu0  ;;  %v14345_v38 = vld [vmem:[#allocation141_spill] sm:$0xff] }
 0x2bc   : > { %v9582_v22 = vpop.eup %9581  ;;  %9593 = vpow2.f32 %v6791_v59  ;;  %v6459_v17 = vadd.f32 %v6230_v11, %v6045_v54  ;;  %v6050_v63 = vadd.f32 %v9280_v44, %v12745_v37  ;;  %v5829_v34 = vpop.f32.mrf.mxu1 }
 0x2bd   : > { %v6907_v57 = vadd.f32 1.0, %v9582_v22  ;;  %9595 = vpow2.f32 %v6787_v43  ;;  %v6797_v29 = vmul.f32 1.442695, %v6723_v14  ;;  %v6721_v26 = vsub.f32 0.0, %v8318_v31  ;;  %v9347_v21 = vpop.f32.mrf.mxu0  ;;  %v14346_v43 = vld [vmem:[#allocation22_spill] sm:$0xff] }
 0x2be   : > { %v9584_v13 = vpop.eup %9583  ;;  %v8321_v18 = vclamps-f32 %v12995_v48, 30.0  ;;  %v13007_v11 = vadd.f32 %v12940_v35, %v6459_v17  ;;  %v6464_v37 = vadd.f32 %v9346_v28, %v6050_v63  ;;  %v6048_v12 = vadd.f32 %v5829_v34, %v14345_v38  ;;  %v9281_v59 = vpop.f32.mrf.mxu1 }
 0x2bf   : > { %9597 = vrcp.f32 %v6907_v57  ;;  %v6905_v54 = vadd.f32 1.0, %v9584_v13  ;;  %v6793_v44 = vmul.f32 1.442695, %v6721_v26  ;;  %v6051_v22 = vadd.f32 %v9281_v59, %v14346_v43  ;;  %v6246_v14 = vpop.f32.mrf.mxu0 }
 0x2c0   : > { %v9586_v31 = vpop.eup %9585  ;;  %9599 = vpow2.f32 %v6797_v29  ;;  %v6724_v56 = vsub.f32 0.0, %v8321_v18  ;;  %v8319_v17 = vclamps-f32 %v13007_v11, 30.0  ;;  %v13018_v53 = vadd.f32 %v12940_v35, %v6464_v37  ;;  %v5832_v28 = vpop.f32.mrf.mxu1 }
 0x2c1   : > { %9601 = vrcp.f32 %v6905_v54  ;;  %v6908_v63 = vadd.f32 1.0, %v9586_v31  ;;  %v6462_v34 = vadd.f32 %v6243_v5, %v6048_v12  ;;  %v6465_v57 = vadd.f32 %v9347_v21, %v6051_v22  ;;  %v9350_v26 = vpop.f32.mrf.mxu0 }
 0x2c2   : > { %v9588_v13 = vpop.eup %9587  ;;  %9603 = vpow2.f32 %v6793_v44  ;;  %v6799_v29 = vmul.f32 1.442695, %v6724_v56  ;;  %v6722_v18 = vsub.f32 0.0, %v8319_v17  ;;  %v8324_v38 = vclamps-f32 %v13018_v53, 30.0  ;;  %v9284_v37 = vpop.f32.mrf.mxu1  ;;  %v14347_v44 = vld [vmem:[#allocation99_spill] sm:$0xff] }
 0x2c3   : > { %9605 = vrcp.f32 %v6908_v63  ;;  %v6906_v59 = vadd.f32 1.0, %v9588_v13  ;;  %v13028_v43 = vadd.f32 %v12940_v35, %v6462_v34  ;;  %v13031_v54 = vadd.f32 %v12940_v35, %v6465_v57  ;;  %v6259_v5 = vpop.f32.mrf.mxu0  ;;  %v14348_v34 = vld [vmem:[#allocation25_spill] sm:$0xff] }
 0x2c4   : > { %9607 = vpow2.f32 %v6799_v29  ;;  %v6795_v21 = vmul.f32 1.442695, %v6722_v18  ;;  %v6727_v12 = vsub.f32 0.0, %v8324_v38  ;;  %v6049_v22 = vadd.f32 %v5832_v28, %v14347_v44  ;;  %v5845_v56 = vpop.f32.mrf.mxu1 }
 0x2c5   : > { %v9590_v31 = vpop.eup %9589  ;;  %9609 = vrcp.f32 %v6906_v59  ;;  %v8322_v17 = vclamps-f32 %v13028_v43, 30.0  ;;  %v8325_v63 = vclamps-f32 %v13031_v54, 30.0  ;;  %v6054_v13 = vadd.f32 %v9284_v37, %v14348_v34  ;;  %v9351_v52 = vpop.f32.mrf.mxu0 }
 0x2c6   : > { %v6911_v57 = vadd.f32 1.0, %v9590_v31  ;;  %9611 = vpow2.f32 %v6795_v21  ;;  %v6805_v29 = vmul.f32 1.442695, %v6727_v12  ;;  %v6463_v18 = vadd.f32 %v6246_v14, %v6049_v22  ;;  %v9285_v38 = vpop.f32.mrf.mxu1 }
 0x2c7   : > { %v9592_v2 = vpop.eup %9591  ;;  %v6725_v28 = vsub.f32 0.0, %v8322_v17  ;;  %v6728_v44 = vsub.f32 0.0, %v8325_v63  ;;  %v6468_v30 = vadd.f32 %v9350_v26, %v6054_v13  ;;  %v6052_v3 = vadd.f32 %v5845_v56, %v12771_v10  ;;  %v6262_v59 = vpop.f32.mrf.mxu0 }
 0x2c8   : > { %9613 = vrcp.f32 %v6911_v57  ;;  %v6909_v9 = vadd.f32 1.0, %v9592_v2  ;;  %v13043_v37 = vadd.f32 %v12940_v35, %v6463_v18  ;;  %v6055_v21 = vadd.f32 %v9285_v38, %v12775_v27  ;;  %v5848_v12 = vpop.f32.mrf.mxu1 }
 0x2c9   : > { %v9594_v14 = vpop.eup %9593  ;;  %9615 = vpow2.f32 %v6805_v29  ;;  %v6801_v22 = vmul.f32 1.442695, %v6725_v28  ;;  %v6807_v31 = vmul.f32 1.442695, %v6728_v44  ;;  %v13047_v26 = vadd.f32 %v12940_v35, %v6468_v30  ;;  %v13049_v10 = vpop.f32.mrf.mxu0 }
 0x2ca   : > { %v9596_v56 = vpop.eup %9595  ;;  %9617 = vrcp.f32 %v6909_v9  ;;  %v6912_v17 = vadd.f32 1.0, %v9594_v14  ;;  %v8323_v2 = vclamps-f32 %v13043_v37, 30.0  ;;  %v6466_v63 = vadd.f32 %v6259_v5, %v6052_v3  ;;  %v9288_v34 = vpop.f32.mrf.mxu1  ;;  %v14349_v9 = vld [vmem:[#allocation142_spill] sm:$0xff] }
 0x2cb   : > { %v6910_v13 = vadd.f32 1.0, %v9596_v56  ;;  %9619 = vpow2.f32 %v6801_v22  ;;  %v8328_v27 = vclamps-f32 %v13047_v26, 30.0  ;;  %v6469_v57 = vadd.f32 %v9351_v52, %v6055_v21  ;;  %v13054_v29 = vpop.f32.mrf.mxu0 }
 0x2cc   : > { %v9598_v18 = vpop.eup %9597  ;;  %9621 = vrcp.f32 %v6912_v17  ;;  %v6726_v30 = vsub.f32 0.0, %v8323_v2  ;;  %v13057_v38 = vadd.f32 %v12940_v35, %v6466_v63  ;;  %v6053_v28 = vadd.f32 %v5848_v12, %v14349_v9  ;;  %v5861_v44 = vpop.f32.mrf.mxu1 }
 0x2cd   : > { %v9600_v14 = vpop.eup %9599  ;;  %v7099_v3 = vmul.f32 %v9598_v18, %v12944_v0  ;;  %9623 = vrcp.f32 %v6910_v13  ;;  %v6731_v5 = vsub.f32 0.0, %v8328_v27  ;;  %v13062_v22 = vadd.f32 %v12940_v35, %v6469_v57  ;;  %v13064_v52 = vpop.f32.mrf.mxu0 }
 0x2ce   : > { %v9602_v21 = vpop.eup %9601  ;;  %v6915_v56 = vadd.f32 1.0, %v9600_v14  ;;  %9625 = vpow2.f32 %v6807_v31  ;;  %v6803_v12 = vmul.f32 1.442695, %v6726_v30  ;;  %v8326_v17 = vclamps-f32 %v13057_v38, 30.0  ;;  %v9289_v0 = vpop.f32.mrf.mxu1 }
 0x2cf   : > { %v9604_v2 = vpop.eup %9603  ;;  %v8443_v63 = vpack.c.bf16 %v7099_v3, %v7099_v3  ;;  %v7097_v13 = vmul.f32 %v9602_v21, %v12949_v47  ;;  %v6813_v27 = vmul.f32 1.442695, %v6731_v5  ;;  %v8329_v57 = vclamps-f32 %v13062_v22, 30.0  ;;  %v13074_v18 = vpop.f32.mrf.mxu0 }
 0x2d0   : > { %v9606_v9 = vpop.eup %9605  ;;  %9627 = vrcp.f32 %v6915_v56  ;;  %v6913_v25 = vadd.f32 1.0, %v9604_v2  ;;  %v6729_v7 = vsub.f32 0.0, %v8326_v17  ;;  %v6467_v14 = vadd.f32 %v6262_v59, %v6053_v28  ;;  %v13076_v31 = vpop.f32.mrf.mxu1 }
 0x2d1   : > { %v9608_v30 = vpop.eup %9607  ;;  %7420 = vst.msk [vmem:[%s13069_s11 + $0x8] sm:$0xf] %vm7417_vm5, %v8443_v63  ;;  %v8441_v40 = vpack.c.bf16 %v7097_v13, %v7097_v13  ;;  %v7100_v3 = vmul.f32 %v9606_v9, %v12954_v16  ;;  %9629 = vpow2.f32 %v6803_v12  ;;  %v6732_v47 = vsub.f32 0.0, %v8329_v57  ;;  %v13081_v5 = vpop.f32.mrf.mxu0 }
 0x2d2   : > { %v9610_v21 = vpop.eup %9609  ;;  %9631 = vrcp.f32 %v6913_v25  ;;  %v6916_v24 = vadd.f32 1.0, %v9608_v30  ;;  %v6809_v56 = vmul.f32 1.442695, %v6729_v7  ;;  %v13084_v59 = vadd.f32 %v12940_v35, %v6467_v14  ;;  %v13086_v28 = vpop.f32.mrf.mxu1 }
 0x2d3   : > { %v9612_v17 = vpop.eup %9611  ;;  %7418 = vst.msk [vmem:[%s13069_s11] sm:$0xf] %vm7417_vm5, %v8441_v40  ;;  %v8444_v2 = vpack.c.bf16 %v7100_v3, %v7100_v3  ;;  %v7098_v16 = vmul.f32 %v9610_v21, %v12959_v45  ;;  %9633 = vpow2.f32 %v6813_v27  ;;  %v6815_v12 = vmul.f32 1.442695, %v6732_v47  ;;  %v13091_v63 = vpop.f32.mrf.mxu0 }
 0x2d4   : > { %9635 = vrcp.f32 %v6916_v24  ;;  %v6914_v25 = vadd.f32 1.0, %v9612_v17  ;;  %v8327_v7 = vclamps-f32 %v13084_v59, 30.0  ;;  %v6058_v13 = vadd.f32 %v9288_v34, %v12790_v20  ;;  %v13095_v57 = vpop.f32.mrf.mxu1 }
 0x2d5   : > { %v9614_v9 = vpop.eup %9613  ;;  %7421 = vst.msk [vmem:[%s13069_s11 + $0xc] sm:$0xf] %vm7417_vm5, %v8444_v2  ;;  %v8442_v40 = vpack.c.bf16 %v7098_v16, %v7098_v16  ;;  %9637 = vpow2.f32 %v6809_v56  ;;  %v6056_v45 = vadd.f32 %v5861_v44, %v12793_v33  ;;  %v6059_v27 = vadd.f32 %v9289_v0, %v12797_v46  ;;  %v13101_v14 = vpop.f32.mrf.mxu0 }
 0x2d6   : > { %v9616_v24 = vpop.eup %9615  ;;  %v7103_v30 = vmul.f32 %v9614_v9, %v12964_v62  ;;  %9639 = vrcp.f32 %v6914_v25  ;;  %v6730_v3 = vsub.f32 0.0, %v8327_v7  ;;  %v6472_v20 = vadd.f32 %v13049_v10, %v6058_v13  ;;  %v13105_v34 = vpop.f32.mrf.mxu1 }
 0x2d7   : > { %v9618_v47 = vpop.eup %9617  ;;  %7419 = vst.msk [vmem:[%s13069_s11 + $0x4] sm:$0xf] %vm7417_vm5, %v8442_v40  ;;  %v6919_v21 = vadd.f32 1.0, %v9616_v24  ;;  %9641 = vpow2.f32 %v6815_v12  ;;  %v6470_v33 = vadd.f32 %v13054_v29, %v6056_v45  ;;  %v6473_v46 = vadd.f32 %v13064_v52, %v6059_v27  ;;  %v13111_v44 = vpop.f32.mrf.mxu0 }
 0x2d8   : > { %v9620_v0 = vpop.eup %9619  ;;  %v8447_v62 = vpack.c.bf16 %v7103_v30, %v7103_v30  ;;  %v7101_v56 = vmul.f32 %v9618_v47, %v12970_v58  ;;  %v6811_v17 = vmul.f32 1.442695, %v6730_v3  ;;  %v13115_v10 = vadd.f32 %v12940_v35, %v6472_v20  ;;  %v13117_v2 = vpop.f32.mrf.mxu1 }
 0x2d9   : > { %v9622_v16 = vpop.eup %9621  ;;  %9643 = vrcp.f32 %v6919_v21  ;;  %v6917_v12 = vadd.f32 1.0, %v9620_v0  ;;  %v13120_v29 = vadd.f32 %v12940_v35, %v6470_v33  ;;  %v13123_v52 = vadd.f32 %v12940_v35, %v6473_v46  ;;  %v13125_v25 = vpop.f32.mrf.mxu0 }
 0x2da   : > { %v9624_v7 = vpop.eup %9623  ;;  %7424 = vst.msk [vmem:[%s13069_s11 + $0x18] sm:$0xf] %vm7417_vm5, %v8447_v62  ;;  %v8445_v58 = vpack.c.bf16 %v7101_v56, %v7101_v56  ;;  %v7104_v13 = vmul.f32 %v9622_v16, %v12975_v41  ;;  %9645 = vpow2.f32 %v6811_v17  ;;  %v8332_v9 = vclamps-f32 %v13115_v10, 30.0  ;;  %v13131_v40 = vpop.f32.mrf.mxu1 }
 0x2db   : > { %v9626_v45 = vpop.eup %9625  ;;  %v7102_v27 = vmul.f32 %v9624_v7, %v12978_v50  ;;  %9647 = vrcp.f32 %v6917_v12  ;;  %v8330_v24 = vclamps-f32 %v13120_v29, 30.0  ;;  %v8333_v30 = vclamps-f32 %v13123_v52, 30.0  ;;  %v13136_v3 = vpop.f32.mrf.mxu0 }
 0x2dc   : > { %7422 = vst.msk [vmem:[%s13069_s11 + $0x10] sm:$0xf] %vm7417_vm5, %v8445_v58  ;;  %v8448_v20 = vpack.c.bf16 %v7104_v13, %v7104_v13  ;;  %v6920_v41 = vadd.f32 1.0, %v9626_v45  ;;  %v6735_v47 = vsub.f32 0.0, %v8332_v9  ;;  %v6057_v21 = vadd.f32 %v13076_v31, %v12810_v39  ;;  %v13142_v33 = vpop.f32.mrf.mxu1 }
 0x2dd   : > { %v9628_v50 = vpop.eup %9627  ;;  %v8446_v46 = vpack.c.bf16 %v7102_v27, %v7102_v27  ;;  %v6733_v0 = vsub.f32 0.0, %v8330_v24  ;;  %v6736_v62 = vsub.f32 0.0, %v8333_v30  ;;  %v6062_v56 = vadd.f32 %v13086_v28, %v12814_v36  ;;  %v13146_v17 = vpop.f32.mrf.mxu0 }
 0x2de   : > { %v9630_v16 = vpop.eup %9629  ;;  %7425 = vst.msk [vmem:[%s13069_s11 + $0x1c] sm:$0xf] %vm7417_vm5, %v8448_v20  ;;  %v7107_v12 = vmul.f32 %v9628_v50, %v12984_v42  ;;  %9649 = vrcp.f32 %v6920_v41  ;;  %v6821_v7 = vmul.f32 1.442695, %v6735_v47  ;;  %v6471_v39 = vadd.f32 %v13074_v18, %v6057_v21  ;;  %v13152_v31 = vpop.f32.mrf.mxu1 }
 0x2df   : > { %v9632_v58 = vpop.eup %9631  ;;  %7423 = vst.msk [vmem:[%s13069_s11 + $0x14] sm:$0xf] %vm7417_vm5, %v8446_v46  ;;  %v6918_v13 = vadd.f32 1.0, %v9630_v16  ;;  %v6817_v9 = vmul.f32 1.442695, %v6733_v0  ;;  %v6476_v36 = vadd.f32 %v13081_v5, %v6062_v56  ;;  %v13157_v28 = vpop.f32.mrf.mxu0  ;;  %v6060_v5 = vadd.f32 %v13095_v57, %v12818_v6 }
 0x2e0   : > { %v6823_v45 = vmul.f32 1.442695, %v6736_v62  ;;  %v9634_v27 = vpop.eup %9633  ;;  %v8451_v24 = vpack.c.bf16 %v7107_v12, %v7107_v12  ;;  %v7105_v42 = vmul.f32 %v9632_v58, %v12989_v4  ;;  %9651 = vpow2.f32 %v6821_v7  ;;  %v13163_v30 = vpop.f32.mrf.mxu1 }
 0x2e1   : > { %v13161_v18 = vadd.f32 %v12940_v35, %v6471_v39  ;;  %v9636_v20 = vpop.eup %9635  ;;  %9653 = vrcp.f32 %v6918_v13  ;;  %v6923_v41 = vadd.f32 1.0, %v9634_v27  ;;  %v13166_v47 = vadd.f32 %v12940_v35, %v6476_v36  ;;  %v13170_v21 = vpop.f32.mrf.mxu0 }
 0x2e2   : > { %v9638_v50 = vpop.eup %9637  ;;  %7428 = vst.msk [vmem:[%s13069_s11 + $0x28] sm:$0xf] %vm7417_vm5, %v8451_v24  ;;  %v8449_v4 = vpack.c.bf16 %v7105_v42, %v7105_v42  ;;  %v7108_v46 = vmul.f32 %v9636_v20, %v12995_v48  ;;  %9655 = vpow2.f32 %v6817_v9  ;;  %v13176_v62 = vpop.f32.mrf.mxu1  ;;  %v6474_v6 = vadd.f32 %v13091_v63, %v6060_v5 }
 0x2e3   : > { %v8331_v0 = vclamps-f32 %v13161_v18, 30.0  ;;  %v9640_v56 = vpop.eup %9639  ;;  %9657 = vrcp.f32 %v6923_v41  ;;  %v6921_v16 = vadd.f32 1.0, %v9638_v50  ;;  %v8336_v12 = vclamps-f32 %v13166_v47, 30.0  ;;  %v13180_v57 = vpop.f32.mrf.mxu0 }
 0x2e4   : > { %v9642_v7 = vpop.eup %9641  ;;  %7426 = vst.msk [vmem:[%s13069_s11 + $0x20] sm:$0xf] %vm7417_vm5, %v8449_v4  ;;  %v8452_v39 = vpack.c.bf16 %v7108_v46, %v7108_v46  ;;  %v7106_v48 = vmul.f32 %v9640_v56, %v13007_v11  ;;  %9659 = vpow2.f32 %v6823_v45  ;;  %v13185_v13 = vpop.f32.mrf.mxu1  ;;  %v13188_v27 = vadd.f32 %v12940_v35, %v6474_v6 }
 0x2e5   : > { %v6734_v58 = vsub.f32 0.0, %v8331_v0  ;;  %9661 = vrcp.f32 %v6921_v16  ;;  %v6924_v9 = vadd.f32 1.0, %v9642_v7  ;;  %v6739_v36 = vsub.f32 0.0, %v8336_v12  ;;  %v13190_v63 = vpop.f32.mrf.mxu0 }
 0x2e6   : > { %v9644_v24 = vpop.eup %9643  ;;  %7429 = vst.msk [vmem:[%s13069_s11 + $0x2c] sm:$0xf] %vm7417_vm5, %v8452_v39  ;;  %v8450_v42 = vpack.c.bf16 %v7106_v48, %v7106_v48  ;;  %v6063_v11 = vadd.f32 %v13105_v34, %v12821_v1  ;;  %v6061_v45 = vadd.f32 %v13117_v2, %v12826_v15  ;;  %v13198_v41 = vpop.f32.mrf.mxu1  ;;  %v8334_v46 = vclamps-f32 %v13188_v27, 30.0 }
 0x2e7   : > { %v6819_v20 = vmul.f32 1.442695, %v6734_v58  ;;  %v9646_v5 = vpop.eup %9645  ;;  %v7111_v50 = vmul.f32 %v9644_v24, %v13018_v53  ;;  %9663 = vrcp.f32 %v6924_v9  ;;  %v6829_v4 = vmul.f32 1.442695, %v6739_v36  ;;  %v13202_v0 = vpop.f32.mrf.mxu0 }
 0x2e8   : > { %v9648_v56 = vpop.eup %9647  ;;  %7427 = vst.msk [vmem:[%s13069_s11 + $0x24] sm:$0xf] %vm7417_vm5, %v8450_v42  ;;  %v6922_v16 = vadd.f32 1.0, %v9646_v5  ;;  %v6477_v1 = vadd.f32 %v13101_v14, %v6063_v11  ;;  %v6475_v15 = vadd.f32 %v13111_v44, %v6061_v45  ;;  %v13208_v34 = vpop.f32.mrf.mxu1  ;;  %v6737_v12 = vsub.f32 0.0, %v8334_v46 }
 0x2e9   : > { %9665 = vpow2.f32 %v6819_v20  ;;  %v8455_v2 = vpack.c.bf16 %v7111_v50, %v7111_v50  ;;  %v7109_v53 = vmul.f32 %v9648_v56, %v13028_v43  ;;  %v13211_v6 = vpop.f32.mrf.mxu0  ;;  %v6066_v14 = vadd.f32 %v13131_v40, %v12829_v60 }
 0x2ea   : > { %9667 = vpow2.f32 %v6829_v4  ;;  %v13214_v7 = vadd.f32 %v12940_v35, %v6477_v1  ;;  %v13217_v39 = vadd.f32 %v12940_v35, %v6475_v15  ;;  %v13221_v44 = vpop.f32.mrf.mxu1  ;;  %v6825_v58 = vmul.f32 1.442695, %v6737_v12 }
 0x2eb   : > { %9669 = vrcp.f32 %v6922_v16  ;;  %v9650_v48 = vpop.eup %9649  ;;  %7432 = vst.msk [vmem:[%s13069_s11 + $0x38] sm:$0xf] %vm7417_vm5, %v8455_v2  ;;  %v8453_v43 = vpack.c.bf16 %v7109_v53, %v7109_v53  ;;  %v6064_v9 = vadd.f32 %v13142_v33, %v12832_v51  ;;  %v6067_v36 = vadd.f32 %v13152_v31, %v12835_v55  ;;  %v13229_v24 = vpop.f32.mrf.mxu0 }
 0x2ec   : > { %v7112_v42 = vmul.f32 %v9650_v48, %v13031_v54  ;;  %v8337_v20 = vclamps-f32 %v13214_v7, 30.0  ;;  %v8335_v60 = vclamps-f32 %v13217_v39, 30.0  ;;  %v6480_v40 = vadd.f32 %v13125_v25, %v6066_v14  ;;  %v13235_v11 = vpop.f32.mrf.mxu1 }
 0x2ed   : > { %v9652_v45 = vpop.eup %9651  ;;  %7430 = vst.msk [vmem:[%s13069_s11 + $0x30] sm:$0xf] %vm7417_vm5, %v8453_v43  ;;  %9671 = vpow2.f32 %v6825_v58  ;;  %v6478_v51 = vadd.f32 %v13136_v3, %v6064_v9  ;;  %v6481_v55 = vadd.f32 %v13146_v17, %v6067_v36  ;;  %v6065_v54 = vadd.f32 %v13163_v30, %v12838_v23  ;;  %v13243_v33 = vpop.f32.mrf.mxu0 }
 0x2ee   : > { %v9654_v31 = vpop.eup %9653  ;;  %v8456_v5 = vpack.c.bf16 %v7112_v42, %v7112_v42  ;;  %v6927_v50 = vadd.f32 1.0, %v9652_v45  ;;  %v6740_v25 = vsub.f32 0.0, %v8337_v20  ;;  %v6738_v4 = vsub.f32 0.0, %v8335_v60  ;;  %v13245_v46 = vpop.f32.mrf.mxu1 }
 0x2ef   : > { %v9656_v56 = vpop.eup %9655  ;;  %v7110_v16 = vmul.f32 %v9654_v31, %v13043_v37  ;;  %v13249_v3 = vadd.f32 %v12940_v35, %v6480_v40  ;;  %v13252_v17 = vadd.f32 %v12940_v35, %v6478_v51  ;;  %v13255_v23 = vadd.f32 %v12940_v35, %v6481_v55  ;;  %v13257_v30 = vpop.f32.mrf.mxu0 }
 0x2f0   : > { %v9658_v1 = vpop.eup %9657  ;;  %7433 = vst.msk [vmem:[%s13069_s11 + $0x3c] sm:$0xf] %vm7417_vm5, %v8456_v5  ;;  %9673 = vrcp.f32 %v6927_v50  ;;  %v6925_v15 = vadd.f32 1.0, %v9656_v56  ;;  %v6831_v2 = vmul.f32 1.442695, %v6740_v25  ;;  %v13261_v37 = vpop.f32.mrf.mxu1  ;;  %v6479_v60 = vadd.f32 %v13157_v28, %v6065_v54 }
 0x2f1   : > { %v6827_v53 = vmul.f32 1.442695, %v6738_v4  ;;  %v9660_v12 = vpop.eup %9659  ;;  %v8454_v14 = vpack.c.bf16 %v7110_v16, %v7110_v16  ;;  %v7115_v48 = vmul.f32 %v9658_v1, %v13047_v26  ;;  %v8340_v43 = vclamps-f32 %v13249_v3, 30.0  ;;  %v13266_v9 = vpop.f32.mrf.mxu0 }
 0x2f2   : > { %v8338_v58 = vclamps-f32 %v13252_v17, 30.0  ;;  %v9662_v36 = vpop.eup %9661  ;;  %9675 = vrcp.f32 %v6925_v15  ;;  %v6928_v42 = vadd.f32 1.0, %v9660_v12  ;;  %v8341_v20 = vclamps-f32 %v13255_v23, 30.0  ;;  %v13270_v40 = vpop.f32.mrf.mxu1 }
 0x2f3   : > { %7431 = vst.msk [vmem:[%s13069_s11 + $0x34] sm:$0xf] %vm7417_vm5, %v8454_v14  ;;  %v8459_v45 = vpack.c.bf16 %v7115_v48, %v7115_v48  ;;  %v7113_v26 = vmul.f32 %v9662_v36, %v13057_v38  ;;  %9677 = vpow2.f32 %v6831_v2  ;;  %v6743_v51 = vsub.f32 0.0, %v8340_v43  ;;  %v13275_v55 = vpop.f32.mrf.mxu0 }
 0x2f4   : > { %v9664_v31 = vpop.eup %9663  ;;  %9679 = vrcp.f32 %v6928_v42  ;;  %v6741_v5 = vsub.f32 0.0, %v8338_v58  ;;  %v6744_v50 = vsub.f32 0.0, %v8341_v20  ;;  %v13278_v25 = vadd.f32 %v12940_v35, %v6479_v60  ;;  %v13280_v28 = vpop.f32.mrf.mxu1 }
 0x2f5   : > { %7436 = vst.msk [vmem:[%s13069_s11 + $0x48] sm:$0xf] %vm7417_vm5, %v8459_v45  ;;  %v8457_v4 = vpack.c.bf16 %v7113_v26, %v7113_v26  ;;  %v7116_v38 = vmul.f32 %v9664_v31, %v13062_v22  ;;  %9681 = vpow2.f32 %v6827_v53  ;;  %v6837_v56 = vmul.f32 1.442695, %v6743_v51  ;;  %v13285_v16 = vpop.f32.mrf.mxu0 }
 0x2f6   : > { %v9666_v54 = vpop.eup %9665  ;;  %v6833_v2 = vmul.f32 1.442695, %v6741_v5  ;;  %v6839_v12 = vmul.f32 1.442695, %v6744_v50  ;;  %v8339_v14 = vclamps-f32 %v13278_v25, 30.0  ;;  %v13288_v48 = vpop.f32.mrf.mxu1  ;;  %v6070_v22 = vadd.f32 %v13176_v62, %v12841_v8 }
 0x2f7   : > { %v9668_v1 = vpop.eup %9667  ;;  %v6926_v15 = vadd.f32 1.0, %v9666_v54  ;;  %7434 = vst.msk [vmem:[%s13069_s11 + $0x40] sm:$0xf] %vm7417_vm5, %v8457_v4  ;;  %v8460_v58 = vpack.c.bf16 %v7116_v38, %v7116_v38  ;;  %9683 = vpow2.f32 %v6837_v56  ;;  %v6068_v20 = vadd.f32 %v13185_v13, %v12844_v61 }
 0x2f8   : > { %v9670_v43 = vpop.eup %9669  ;;  %v6931_v36 = vadd.f32 1.0, %v9668_v1  ;;  %v6742_v42 = vsub.f32 0.0, %v8339_v14  ;;  %v13297_v60 = vpop.f32.mrf.mxu1  ;;  %v6484_v45 = vadd.f32 %v13170_v21, %v6070_v22  ;;  %v6071_v26 = vadd.f32 %v13198_v41, %v12847_v19 }
 0x2f9   : > { %v7114_v53 = vmul.f32 %v9670_v43, %v13084_v59  ;;  %9685 = vrcp.f32 %v6926_v15  ;;  %7437 = vst.msk [vmem:[%s13069_s11 + $0x4c] sm:$0xf] %vm7417_vm5, %v8460_v58  ;;  %v6069_v8 = vadd.f32 %v13208_v34, %v12850_v32  ;;  %v13306_v59 = vpop.f32.mrf.mxu0  ;;  %v6482_v13 = vadd.f32 %v13180_v57, %v6068_v20  ;;  %v14351_v43 = vld [vmem:[#allocation143_spill] sm:$0xff] }
 0x2fa   : > { %9687 = vrcp.f32 %v6931_v36  ;;  %v9672_v62 = vpop.eup %9671  ;;  %v6835_v61 = vmul.f32 1.442695, %v6742_v42  ;;  %v13309_v31 = vpop.f32.mrf.mxu1  ;;  %v13312_v21 = vadd.f32 %v12940_v35, %v6484_v45  ;;  %v6485_v19 = vadd.f32 %v13190_v63, %v6071_v26  ;;  %v14350_v63 = vld [vmem:[#allocation101_spill] sm:$0xff] }
 0x2fb   : > { %v8458_v51 = vpack.c.bf16 %v7114_v53, %v7114_v53  ;;  %9689 = vpow2.f32 %v6833_v2  ;;  %v6929_v5 = vadd.f32 1.0, %v9672_v62  ;;  %v13318_v32 = vadd.f32 %v12940_v35, %v6482_v13  ;;  %v13331_v56 = vpop.f32.mrf.mxu0 }
 0x2fc   : > { %9691 = vpow2.f32 %v6839_v12  ;;  %v6483_v41 = vadd.f32 %v13202_v0, %v6069_v8  ;;  %v6074_v57 = vadd.f32 %v13221_v44, %v12853_v49  ;;  %v13323_v34 = vpop.f32.mrf.mxu1  ;;  %v8344_v54 = vclamps-f32 %v13312_v21, 30.0 }
 0x2fd   : > { %7435 = vst.msk [vmem:[%s13069_s11 + $0x44] sm:$0xf] %vm7417_vm5, %v8458_v51  ;;  %9693 = vpow2.f32 %v6835_v61  ;;  %v9674_v50 = vpop.eup %9673  ;;  %v13327_v4 = vadd.f32 %v12940_v35, %v6485_v19  ;;  %v6072_v38 = vadd.f32 %v13235_v11, %v14350_v63  ;;  %v8342_v0 = vclamps-f32 %v13318_v32, 30.0  ;;  %v13355_v26 = vpop.f32.mrf.mxu0 }
 0x2fe   : > { %9695 = vrcp.f32 %v6929_v5  ;;  %v7119_v1 = vmul.f32 %v9674_v50, %v13115_v10  ;;  %v13336_v49 = vadd.f32 %v12940_v35, %v6483_v41  ;;  %v6488_v44 = vadd.f32 %v13211_v6, %v6074_v57  ;;  %v13345_v53 = vpop.f32.mrf.mxu1 }
 0x2ff   : > { %v9676_v15 = vpop.eup %9675  ;;  %v6747_v2 = vsub.f32 0.0, %v8344_v54  ;;  %v8345_v12 = vclamps-f32 %v13327_v4, 30.0  ;;  %v6486_v14 = vadd.f32 %v13229_v24, %v6072_v38  ;;  %v6075_v11 = vadd.f32 %v13245_v46, %v14351_v43  ;;  %v13350_v24 = vld [vmem:[%s13714_s2] ss:$0 sm:$0xff] }
 0x300   : > { %v9678_v58 = vpop.eup %9677  ;;  %v8463_v36 = vpack.c.bf16 %v7119_v1, %v7119_v1  ;;  %v7117_v10 = vmul.f32 %v9676_v15, %v13120_v29  ;;  %v6745_v22 = vsub.f32 0.0, %v8342_v0  ;;  %v8343_v35 = vclamps-f32 %v13336_v49, 30.0  ;;  %v13366_v63 = vpop.f32.mrf.mxu1 }
 0x301   : > { %v9680_v6 = vpop.eup %9679  ;;  %v6932_v42 = vadd.f32 1.0, %v9678_v58  ;;  %v6845_v20 = vmul.f32 1.442695, %v6747_v2  ;;  %v6748_v45 = vsub.f32 0.0, %v8345_v12  ;;  %v13353_v46 = vadd.f32 %v13350_v24, %v6488_v44  ;;  %v13369_v44 = vpop.f32.mrf.mxu0 }
 0x302   : > { %v9682_v29 = vpop.eup %9681  ;;  %7440 = vst.msk [vmem:[%s13069_s11 + $0x58] sm:$0xf] %vm7417_vm5, %v8463_v36  ;;  %v8461_v8 = vpack.c.bf16 %v7117_v10, %v7117_v10  ;;  %v7120_v62 = vmul.f32 %v9680_v6, %v13123_v52  ;;  %v6841_v51 = vmul.f32 1.442695, %v6745_v22  ;;  %v6746_v61 = vsub.f32 0.0, %v8343_v35  ;;  %v13381_v6 = vpop.f32.mrf.mxu1 }
 0x303   : > { %9697 = vrcp.f32 %v6932_v42  ;;  %v6930_v13 = vadd.f32 1.0, %v9682_v29  ;;  %v6847_v5 = vmul.f32 1.442695, %v6748_v45  ;;  %v8348_v19 = vclamps-f32 %v13353_v46, 30.0  ;;  %v13384_v45 = vpop.f32.mrf.mxu0 }
 0x304   : > { %v9684_v41 = vpop.eup %9683  ;;  %7438 = vst.msk [vmem:[%s13069_s11 + $0x50] sm:$0xf] %vm7417_vm5, %v8461_v8  ;;  %v8464_v57 = vpack.c.bf16 %v7120_v62, %v7120_v62  ;;  %9699 = vpow2.f32 %v6845_v20  ;;  %v6843_v50 = vmul.f32 1.442695, %v6746_v61  ;;  %v13364_v54 = vadd.f32 %v13350_v24, %v6486_v14  ;;  %v14352_v14 = vld [vmem:[#allocation144_spill] sm:$0xff] }
 0x305   : > { %9701 = vrcp.f32 %v6930_v13  ;;  %v6935_v38 = vadd.f32 1.0, %v9684_v41  ;;  %v6751_v1 = vsub.f32 0.0, %v8348_v19  ;;  %v6489_v0 = vadd.f32 %v13243_v33, %v6075_v11 }
 0x306   : > { %v9686_v52 = vpop.eup %9685  ;;  %7441 = vst.msk [vmem:[%s13069_s11 + $0x5c] sm:$0xf] %vm7417_vm5, %v8464_v57  ;;  %9703 = vpow2.f32 %v6841_v51  ;;  %v8346_v12 = vclamps-f32 %v13364_v54, 30.0  ;;  %v6073_v43 = vadd.f32 %v13261_v37, %v14352_v14  ;;  %v14354_v57 = vld [vmem:[#allocation27_spill] sm:$0xff] }
 0x307   : > { %v9688_v15 = vpop.eup %9687  ;;  %v7118_v2 = vmul.f32 %v9686_v52, %v13161_v18  ;;  %9705 = vrcp.f32 %v6935_v38  ;;  %v6853_v10 = vmul.f32 1.442695, %v6751_v1  ;;  %v13379_v33 = vadd.f32 %v13350_v24, %v6489_v0  ;;  %v14355_v52 = vld [vmem:[#allocation29_spill] sm:$0xff]  ;;  %v13401_v38 = vpop.f32.mrf.mxu1 }
 0x308   : > { %v9690_v58 = vpop.eup %9689  ;;  %v7123_v36 = vmul.f32 %v9688_v15, %v13166_v47  ;;  %9707 = vpow2.f32 %v6847_v5  ;;  %v6749_v18 = vsub.f32 0.0, %v8346_v12  ;;  %v6487_v51 = vadd.f32 %v13257_v30, %v6073_v43  ;;  %v14353_v5 = vld [vmem:[#allocation145_spill] sm:$0xff]  ;;  %v13404_v15 = vpop.f32.mrf.mxu0  ;;  %v14357_v43 = vld [vmem:[#allocation82_spill] sm:$0xff] }
 0x309   : > { %v9692_v11 = vpop.eup %9691  ;;  %v8462_v22 = vpack.c.bf16 %v7118_v2, %v7118_v2  ;;  %v6933_v35 = vadd.f32 1.0, %v9690_v58  ;;  %9709 = vpow2.f32 %v6843_v50  ;;  %v8349_v47 = vclamps-f32 %v13379_v33, 30.0 }
 0x30a   : > { %v9694_v42 = vpop.eup %9693  ;;  %v8467_v20 = vpack.c.bf16 %v7123_v36, %v7123_v36  ;;  %v6936_v37 = vadd.f32 1.0, %v9692_v11  ;;  %v6849_v62 = vmul.f32 1.442695, %v6749_v18  ;;  %v6078_v19 = vadd.f32 %v13270_v40, %v14353_v5 }
 0x30b   : > { %v9696_v29 = vpop.eup %9695  ;;  %7439 = vst.msk [vmem:[%s13069_s11 + $0x54] sm:$0xf] %vm7417_vm5, %v8462_v22  ;;  %9711 = vrcp.f32 %v6933_v35  ;;  %v6934_v8 = vadd.f32 1.0, %v9694_v42  ;;  %v6752_v13 = vsub.f32 0.0, %v8349_v47  ;;  %v13395_v41 = vadd.f32 %v13350_v24, %v6487_v51  ;;  %v13426_v22 = vpop.f32.mrf.mxu1 }
 0x30c   : > { %7444 = vst.msk [vmem:[%s13069_s11 + $0x68] sm:$0xf] %vm7417_vm5, %v8467_v20  ;;  %v7121_v61 = vmul.f32 %v9696_v29, %v13188_v27  ;;  %9713 = vrcp.f32 %v6936_v37  ;;  %v6076_v50 = vadd.f32 %v13280_v28, %v14354_v57  ;;  %v6079_v30 = vadd.f32 %v13288_v48, %v14355_v52  ;;  %v14356_v48 = vld [vmem:[#allocation146_spill] sm:$0xff]  ;;  %v13432_v20 = vpop.f32.mrf.mxu0 }
 0x30d   : > { %9715 = vrcp.f32 %v6934_v8  ;;  %v6855_v27 = vmul.f32 1.442695, %v6752_v13  ;;  %v6492_v0 = vadd.f32 %v13266_v9, %v6078_v19  ;;  %v8347_v40 = vclamps-f32 %v13395_v41, 30.0  ;;  %v13440_v57 = vpop.f32.mrf.mxu1 }
 0x30e   : > { %v8465_v1 = vpack.c.bf16 %v7121_v61, %v7121_v61  ;;  %9717 = vpow2.f32 %v6853_v10  ;;  %v6490_v2 = vadd.f32 %v13275_v55, %v6076_v50  ;;  %v6493_v12 = vadd.f32 %v13285_v16, %v6079_v30  ;;  %v14358_v16 = vld [vmem:[#allocation84_spill] sm:$0xff] }
 0x30f   : > { %9719 = vpow2.f32 %v6849_v62  ;;  %v13412_v28 = vadd.f32 %v13350_v24, %v6492_v0  ;;  %v6077_v14 = vadd.f32 %v13297_v60, %v14356_v48  ;;  %v6082_v9 = vadd.f32 %v13309_v31, %v14357_v43 }
 0x310   : > { %7442 = vst.msk [vmem:[%s13069_s11 + $0x60] sm:$0xf] %vm7417_vm5, %v8465_v1  ;;  %9721 = vpow2.f32 %v6855_v27  ;;  %v9698_v58 = vpop.eup %9697  ;;  %v6750_v36 = vsub.f32 0.0, %v8347_v40  ;;  %v13419_v10 = vadd.f32 %v13350_v24, %v6490_v2  ;;  %v13422_v55 = vadd.f32 %v13350_v24, %v6493_v12  ;;  %v13445_v1 = vpop.f32.mrf.mxu0 }
 0x311   : > { %v6080_v11 = vadd.f32 %v13323_v34, %v14358_v16  ;;  %v9700_v35 = vpop.eup %9699  ;;  %v7124_v18 = vmul.f32 %v9698_v58, %v13214_v7  ;;  %v8352_v60 = vclamps-f32 %v13412_v28, 30.0  ;;  %v6491_v31 = vadd.f32 %v13306_v59, %v6077_v14  ;;  %v13455_v16 = vpop.f32.mrf.mxu1 }
 0x312   : > { %v6496_v42 = vadd.f32 %v13331_v56, %v6082_v9  ;;  %v9702_v37 = vpop.eup %9701  ;;  %v6939_v47 = vadd.f32 1.0, %v9700_v35  ;;  %v6851_v29 = vmul.f32 1.442695, %v6750_v36  ;;  %v8350_v8 = vclamps-f32 %v13419_v10, 30.0 }
 0x313   : > { %v8353_v34 = vclamps-f32 %v13422_v55, 30.0  ;;  %v9704_v62 = vpop.eup %9703  ;;  %v8468_v51 = vpack.c.bf16 %v7124_v18, %v7124_v18  ;;  %v7122_v7 = vmul.f32 %v9702_v37, %v13217_v39  ;;  %v6755_v61 = vsub.f32 0.0, %v8352_v60 }
 0x314   : > { %v13438_v13 = vadd.f32 %v13350_v24, %v6491_v31  ;;  %v9706_v59 = vpop.eup %9705  ;;  %9723 = vrcp.f32 %v6939_v47  ;;  %v6937_v56 = vadd.f32 1.0, %v9704_v62  ;;  %v6753_v5 = vsub.f32 0.0, %v8350_v8  ;;  %v14359_v31 = vld [vmem:[#allocation89_spill] sm:$0xff] }
 0x315   : > { %v6756_v19 = vsub.f32 0.0, %v8353_v34  ;;  %v9708_v50 = vpop.eup %9707  ;;  %7445 = vst.msk [vmem:[%s13069_s11 + $0x6c] sm:$0xf] %vm7417_vm5, %v8468_v51  ;;  %v8466_v52 = vpack.c.bf16 %v7122_v7, %v7122_v7  ;;  %v7127_v30 = vmul.f32 %v9706_v59, %v13249_v3  ;;  %9725 = vpow2.f32 %v6851_v29  ;;  %v13471_v59 = vpop.f32.mrf.mxu1 }
 0x316   : > { %v6861_v39 = vmul.f32 1.442695, %v6755_v61  ;;  %v9710_v27 = vpop.eup %9709  ;;  %9727 = vrcp.f32 %v6937_v56  ;;  %v6940_v0 = vadd.f32 1.0, %v9708_v50  ;;  %v6857_v40 = vmul.f32 1.442695, %v6753_v5  ;;  %v14360_v5 = vld [vmem:[#allocation30_spill] sm:$0xff] }
 0x317   : > { %v6863_v2 = vmul.f32 1.442695, %v6756_v19  ;;  %7443 = vst.msk [vmem:[%s13069_s11 + $0x64] sm:$0xf] %vm7417_vm5, %v8466_v52  ;;  %v8471_v48 = vpack.c.bf16 %v7127_v30, %v7127_v30  ;;  %v6938_v14 = vadd.f32 1.0, %v9710_v27  ;;  %v8351_v43 = vclamps-f32 %v13438_v13, 30.0 }
 0x318   : > { %v9712_v12 = vpop.eup %9711  ;;  %9729 = vpow2.f32 %v6861_v39  ;;  %v13452_v58 = vadd.f32 %v13350_v24, %v6496_v42  ;;  %v6494_v36 = vadd.f32 %v13355_v26, %v6080_v11  ;;  %v6083_v37 = vadd.f32 %v13345_v53, %v14359_v31  ;;  %v14361_v39 = vld [vmem:[#allocation110_spill] sm:$0xff] }
 0x319   : > { %v9714_v9 = vpop.eup %9713  ;;  %v7125_v3 = vmul.f32 %v9712_v12, %v13252_v17  ;;  %9731 = vrcp.f32 %v6940_v0  ;;  %7448 = vst.msk [vmem:[%s13069_s11 + $0x78] sm:$0xf] %vm7417_vm5, %v8471_v48  ;;  %v6754_v60 = vsub.f32 0.0, %v8351_v43  ;;  %v13462_v17 = vpop.f32.mrf.mxu0  ;;  %v6081_v19 = vadd.f32 %v13366_v63, %v14360_v5  ;;  %v14363_v48 = vld [vmem:[#allocation75_spill] sm:$0xff] }
 0x31a   : > { %v9716_v35 = vpop.eup %9715  ;;  %v7128_v18 = vmul.f32 %v9714_v9, %v13255_v23  ;;  %9733 = vrcp.f32 %v6938_v14  ;;  %v8356_v11 = vclamps-f32 %v13452_v58, 30.0  ;;  %v13469_v61 = vadd.f32 %v13350_v24, %v6494_v36  ;;  %v13494_v43 = vpop.f32.mrf.mxu1 }
 0x31b   : > { %v9718_v47 = vpop.eup %9717  ;;  %v8469_v42 = vpack.c.bf16 %v7125_v3, %v7125_v3  ;;  %v7126_v26 = vmul.f32 %v9716_v35, %v13278_v25  ;;  %9735 = vpow2.f32 %v6857_v40  ;;  %v6859_v23 = vmul.f32 1.442695, %v6754_v60  ;;  %v13478_v50 = vpop.f32.mrf.mxu0  ;;  %v14362_v40 = vld [vmem:[#allocation33_spill] sm:$0xff] }
 0x31c   : > { %v9720_v29 = vpop.eup %9719  ;;  %v8472_v8 = vpack.c.bf16 %v7128_v18, %v7128_v18  ;;  %v6943_v34 = vadd.f32 1.0, %v9718_v47  ;;  %9737 = vpow2.f32 %v6863_v2  ;;  %v6759_v7 = vsub.f32 0.0, %v8356_v11 }
 0x31d   : > { %v9722_v62 = vpop.eup %9721  ;;  %7446 = vst.msk [vmem:[%s13069_s11 + $0x70] sm:$0xf] %vm7417_vm5, %v8469_v42  ;;  %v8470_v53 = vpack.c.bf16 %v7126_v26, %v7126_v26  ;;  %v6941_v51 = vadd.f32 1.0, %v9720_v29  ;;  %v6497_v56 = vadd.f32 %v13369_v44, %v6083_v37  ;;  %v8354_v30 = vclamps-f32 %v13469_v61, 30.0  ;;  %v13501_v36 = vpop.f32.mrf.mxu0 }
 0x31e   : > { %7449 = vst.msk [vmem:[%s13069_s11 + $0x7c] sm:$0xf] %vm7417_vm5, %v8472_v8  ;;  %9739 = vrcp.f32 %v6943_v34  ;;  %v6944_v25 = vadd.f32 1.0, %v9722_v62  ;;  %v6869_v52 = vmul.f32 1.442695, %v6759_v7  ;;  %v6086_v27 = vadd.f32 %v13381_v6, %v14361_v39  ;;  %v13514_v29 = vpop.f32.mrf.mxu1 }
 0x31f   : > { %7447 = vst.msk [vmem:[%s13069_s11 + $0x74] sm:$0xf] %vm7417_vm5, %v8470_v53  ;;  %9741 = vrcp.f32 %v6941_v51  ;;  %v13486_v0 = vadd.f32 %v13350_v24, %v6497_v56  ;;  %v6495_v44 = vadd.f32 %v13384_v45, %v6081_v19  ;;  %v6084_v63 = vadd.f32 %v13401_v38, %v14362_v40  ;;  %v13516_v62 = vpop.f32.mrf.mxu0 }
 0x320   : > { %9743 = vrcp.f32 %v6944_v25  ;;  %v6757_v2 = vsub.f32 0.0, %v8354_v30  ;;  %v6500_v12 = vadd.f32 %v13404_v15, %v6086_v27  ;;  %v6087_v14 = vadd.f32 %v13426_v22, %v14363_v48 }
 0x321   : > { %9745 = vpow2.f32 %v6859_v23  ;;  %v9724_v9 = vpop.eup %9723  ;;  %v8357_v6 = vclamps-f32 %v13486_v0, 30.0  ;;  %v13498_v3 = vadd.f32 %v13350_v24, %v6495_v44  ;;  %v6498_v45 = vadd.f32 %v13432_v20, %v6084_v63  ;;  %v9324_v44 = vpop.f32.mrf.mxu1 }
 0x322   : > { %9747 = vpow2.f32 %v6869_v52  ;;  %v9726_v38 = vpop.eup %9725  ;;  %v7131_v35 = vmul.f32 %v9724_v9, %v13312_v21  ;;  %v6865_v15 = vmul.f32 1.442695, %v6757_v2  ;;  %v13505_v18 = vadd.f32 %v13350_v24, %v6500_v12 }
 0x323   : > { %v6501_v22 = vadd.f32 %v13445_v1, %v6087_v14  ;;  %v9728_v60 = vpop.eup %9727  ;;  %v6942_v31 = vadd.f32 1.0, %v9726_v38  ;;  %v6760_v37 = vsub.f32 0.0, %v8357_v6  ;;  %v8355_v47 = vclamps-f32 %v13498_v3, 30.0  ;;  %v14364_v14 = vld [vmem:[#allocation91_spill] sm:$0xff]  ;;  %v14365_v6 = vld [vmem:[#allocation93_spill] sm:$0xff] }
 0x324   : > { %v13510_v42 = vadd.f32 %v13350_v24, %v6498_v45  ;;  %v8475_v26 = vpack.c.bf16 %v7131_v35, %v7131_v35  ;;  %v7129_v11 = vmul.f32 %v9728_v60, %v13318_v32  ;;  %9749 = vpow2.f32 %v6865_v15 }
 0x325   : > { %v9730_v20 = vpop.eup %9729  ;;  %v8360_v21 = vclamps-f32 %v13505_v18, 30.0  ;;  %9751 = vrcp.f32 %v6942_v31  ;;  %v6871_v34 = vmul.f32 1.442695, %v6760_v37  ;;  %v6758_v23 = vsub.f32 0.0, %v8355_v47 }
 0x326   : > { %v9732_v8 = vpop.eup %9731  ;;  %v6947_v1 = vadd.f32 1.0, %v9730_v20  ;;  %7452 = vst.msk [vmem:[%s13069_s11 + $0x88] sm:$0xf] %vm7417_vm5, %v8475_v26  ;;  %v8473_v51 = vpack.c.bf16 %v7129_v11, %v7129_v11  ;;  %v8358_v25 = vclamps-f32 %v13510_v42, 30.0  ;;  %v13524_v52 = vadd.f32 %v13350_v24, %v6501_v22  ;;  %v14366_v22 = vld [vmem:[#allocation98_spill] sm:$0xff]  ;;  %v13542_v20 = vpop.f32.mrf.mxu1 }
 0x327   : > { %v9734_v53 = vpop.eup %9733  ;;  %v7132_v7 = vmul.f32 %v9732_v8, %v13327_v4  ;;  %v6763_v32 = vsub.f32 0.0, %v8360_v21  ;;  %v6867_v19 = vmul.f32 1.442695, %v6758_v23  ;;  %v6085_v9 = vadd.f32 %v13440_v57, %v14364_v14 }
 0x328   : > { %v9736_v56 = vpop.eup %9735  ;;  %v7130_v5 = vmul.f32 %v9734_v53, %v13336_v49  ;;  %9753 = vrcp.f32 %v6947_v1  ;;  %7450 = vst.msk [vmem:[%s13069_s11 + $0x80] sm:$0xf] %vm7417_vm5, %v8473_v51  ;;  %v6761_v2 = vsub.f32 0.0, %v8358_v25  ;;  %v6406_v49 = vpop.f32.mrf.mxu0  ;;  %v8361_v48 = vclamps-f32 %v13524_v52, 30.0  ;;  %v14367_v51 = vld [vmem:[#allocation34_spill] sm:$0xff] }
 0x329   : > { %v9738_v30 = vpop.eup %9737  ;;  %v8476_v39 = vpack.c.bf16 %v7132_v7, %v7132_v7  ;;  %v6945_v27 = vadd.f32 1.0, %v9736_v56  ;;  %9755 = vpow2.f32 %v6871_v34  ;;  %v6877_v4 = vmul.f32 1.442695, %v6763_v32  ;;  %v14368_v32 = vld [vmem:[#allocation111_spill] sm:$0xff]  ;;  %v13562_v56 = vpop.f32.mrf.mxu1 }
 0x32a   : > { %v8474_v40 = vpack.c.bf16 %v7130_v5, %v7130_v5  ;;  %v6948_v63 = vadd.f32 1.0, %v9738_v30  ;;  %9757 = vpow2.f32 %v6867_v19  ;;  %v6090_v45 = vadd.f32 %v13455_v16, %v14365_v6  ;;  %v9390_v21 = vpop.f32.mrf.mxu0  ;;  %v14369_v30 = vld [vmem:[#allocation36_spill] sm:$0xff] }
 0x32b   : > { %v9740_v12 = vpop.eup %9739  ;;  %7453 = vst.msk [vmem:[%s13069_s11 + $0x8c] sm:$0xf] %vm7417_vm5, %v8476_v39  ;;  %9759 = vrcp.f32 %v6945_v27  ;;  %v6873_v15 = vmul.f32 1.442695, %v6761_v2  ;;  %v6088_v60 = vadd.f32 %v13471_v59, %v14366_v22  ;;  %v6764_v47 = vsub.f32 0.0, %v8361_v48 }
 0x32c   : > { %v9742_v38 = vpop.eup %9741  ;;  %7451 = vst.msk [vmem:[%s13069_s11 + $0x84] sm:$0xf] %vm7417_vm5, %v8474_v40  ;;  %v7135_v35 = vmul.f32 %v9740_v12, %v13353_v46  ;;  %9761 = vrcp.f32 %v6948_v63  ;;  %v6499_v57 = vadd.f32 %v13462_v17, %v6085_v9  ;;  %v6504_v11 = vadd.f32 %v13478_v50, %v6090_v45  ;;  %v6419_v27 = vpop.f32.mrf.mxu0 }
 0x32d   : > { %v9744_v31 = vpop.eup %9743  ;;  %v7133_v37 = vmul.f32 %v9742_v38, %v13364_v54  ;;  %9763 = vpow2.f32 %v6877_v4  ;;  %v6879_v1 = vmul.f32 1.442695, %v6764_v47  ;;  %v6091_v7 = vadd.f32 %v13494_v43, %v14367_v51  ;;  %v6008_v45 = vpop.f32.mrf.mxu1 }
 0x32e   : > { %v9746_v16 = vpop.eup %9745  ;;  %v8479_v26 = vpack.c.bf16 %v7135_v35, %v7135_v35  ;;  %v7136_v46 = vmul.f32 %v9744_v31, %v13379_v33  ;;  %9765 = vpow2.f32 %v6873_v15  ;;  %v13547_v34 = vadd.f32 %v13350_v24, %v6499_v57 }
 0x32f   : > { %v9748_v59 = vpop.eup %9747  ;;  %v8477_v8 = vpack.c.bf16 %v7133_v37, %v7133_v37  ;;  %v6946_v54 = vadd.f32 1.0, %v9746_v16  ;;  %v13552_v53 = vadd.f32 %v13350_v24, %v6504_v11  ;;  %v6502_v33 = vadd.f32 %v13501_v36, %v6088_v60 }
 0x330   : > { %7456 = vst.msk [vmem:[%s13069_s11 + $0x98] sm:$0xf] %vm7417_vm5, %v8479_v26  ;;  %v8480_v17 = vpack.c.bf16 %v7136_v46, %v7136_v46  ;;  %v6951_v23 = vadd.f32 1.0, %v9748_v59  ;;  %v8359_v50 = vclamps-f32 %v13547_v34, 30.0  ;;  %v6089_v25 = vadd.f32 %v13514_v29, %v14368_v32  ;;  %v9328_v59 = vpop.f32.mrf.mxu1 }
 0x331   : > { %7454 = vst.msk [vmem:[%s13069_s11 + $0x90] sm:$0xf] %vm7417_vm5, %v8477_v8  ;;  %9767 = vrcp.f32 %v6946_v54  ;;  %v9750_v5 = vpop.eup %9749  ;;  %v8364_v19 = vclamps-f32 %v13552_v53, 30.0  ;;  %v13568_v36 = vadd.f32 %v13350_v24, %v6502_v33  ;;  %v6094_v39 = vadd.f32 %v9324_v44, %v14369_v30  ;;  %v14371_v30 = vld [vmem:[#allocation102_spill] sm:$0xff] }
 0x332   : > { %7457 = vst.msk [vmem:[%s13069_s11 + $0x9c] sm:$0xf] %vm7417_vm5, %v8480_v17  ;;  %9769 = vrcp.f32 %v6951_v23  ;;  %v9752_v4 = vpop.eup %9751  ;;  %v6949_v40 = vadd.f32 1.0, %v9750_v5  ;;  %v6762_v43 = vsub.f32 0.0, %v8359_v50  ;;  %v6505_v29 = vadd.f32 %v13516_v62, %v6091_v7  ;;  %v14370_v17 = vld [vmem:[#allocation122_spill] sm:$0xff] }
 0x333   : > { %9771 = vpow2.f32 %v6879_v1  ;;  %v7134_v63 = vmul.f32 %v9752_v4, %v13395_v41  ;;  %v6767_v2 = vsub.f32 0.0, %v8364_v19  ;;  %v8362_v12 = vclamps-f32 %v13568_v36, 30.0  ;;  %v9391_v41 = vpop.f32.mrf.mxu0 }
 0x334   : > { %v6503_v48 = vadd.f32 %v6406_v49, %v6089_v25  ;;  %9773 = vrcp.f32 %v6949_v40  ;;  %v6875_v9 = vmul.f32 1.442695, %v6762_v43  ;;  %v13575_v6 = vadd.f32 %v13350_v24, %v6505_v29  ;;  %v6021_v40 = vpop.f32.mrf.mxu1 }
 0x335   : > { %v9754_v14 = vpop.eup %9753  ;;  %v6508_v44 = vadd.f32 %v9390_v21, %v6094_v39  ;;  %v8478_v35 = vpack.c.bf16 %v7134_v63, %v7134_v63  ;;  %v6885_v62 = vmul.f32 1.442695, %v6767_v2  ;;  %v6765_v22 = vsub.f32 0.0, %v8362_v12  ;;  %v6422_v33 = vpop.f32.mrf.mxu0  ;;  %v14373_v2 = vld [vmem:[#allocation104_spill] sm:$0xff] }
 0x336   : > { %v9756_v38 = vpop.eup %9755  ;;  %v7139_v15 = vmul.f32 %v9754_v14, %v13412_v28  ;;  %9775 = vpow2.f32 %v6875_v9  ;;  %v8365_v49 = vclamps-f32 %v13575_v6, 30.0  ;;  %v13580_v37 = vadd.f32 %v13350_v24, %v6503_v48 }
 0x337   : > { %v9758_v60 = vpop.eup %9757  ;;  %v6952_v31 = vadd.f32 1.0, %v9756_v38  ;;  %7455 = vst.msk [vmem:[%s13069_s11 + $0x94] sm:$0xf] %vm7417_vm5, %v8478_v35  ;;  %9777 = vpow2.f32 %v6885_v62  ;;  %v6881_v26 = vmul.f32 1.442695, %v6765_v22  ;;  %v13590_v1 = vadd.f32 %v13350_v24, %v6508_v44  ;;  %v9394_v48 = vpop.f32.mrf.mxu0 }
 0x338   : > { %v9760_v47 = vpop.eup %9759  ;;  %v8483_v57 = vpack.c.bf16 %v7139_v15, %v7139_v15  ;;  %v6950_v16 = vadd.f32 1.0, %v9758_v60  ;;  %v6768_v11 = vsub.f32 0.0, %v8365_v49  ;;  %v8363_v21 = vclamps-f32 %v13580_v37, 30.0 }
 0x339   : > { %v9762_v28 = vpop.eup %9761  ;;  %v7137_v46 = vmul.f32 %v9760_v47, %v13419_v10  ;;  %9779 = vrcp.f32 %v6952_v31  ;;  %v6092_v23 = vadd.f32 %v13542_v20, %v14370_v17  ;;  %v8368_v19 = vclamps-f32 %v13590_v1, 30.0  ;;  %v14372_v20 = vld [vmem:[#allocation63_spill] sm:$0xff] }
 0x33a   : > { %v9764_v8 = vpop.eup %9763  ;;  %7460 = vst.msk [vmem:[%s13069_s11 + $0xa8] sm:$0xf] %vm7417_vm5, %v8483_v57  ;;  %v7140_v54 = vmul.f32 %v9762_v28, %v13422_v55  ;;  %9781 = vrcp.f32 %v6950_v16  ;;  %v6887_v7 = vmul.f32 1.442695, %v6768_v11  ;;  %v6766_v5 = vsub.f32 0.0, %v8363_v21  ;;  %v14374_v21 = vld [vmem:[#allocation105_spill] sm:$0xff] }
 0x33b   : > { %v9766_v10 = vpop.eup %9765  ;;  %v8481_v50 = vpack.c.bf16 %v7137_v46, %v7137_v46  ;;  %v6955_v51 = vadd.f32 1.0, %v9764_v8  ;;  %9783 = vpow2.f32 %v6881_v26  ;;  %v6506_v55 = vadd.f32 %v6419_v27, %v6092_v23  ;;  %v14375_v8 = vld [vmem:[#allocation123_spill] sm:$0xff] }
 0x33c   : > { %v8484_v32 = vpack.c.bf16 %v7140_v54, %v7140_v54  ;;  %v6953_v25 = vadd.f32 1.0, %v9766_v10  ;;  %v6095_v39 = vadd.f32 %v13562_v56, %v14371_v30  ;;  %v6093_v4 = vadd.f32 %v6008_v45, %v14372_v20 }
 0x33d   : > { %7458 = vst.msk [vmem:[%s13069_s11 + $0xa0] sm:$0xf] %vm7417_vm5, %v8481_v50  ;;  %9785 = vrcp.f32 %v6955_v51  ;;  %v6883_v29 = vmul.f32 1.442695, %v6766_v5  ;;  %v6771_v63 = vsub.f32 0.0, %v8368_v19  ;;  %v6098_v12 = vadd.f32 %v9328_v59, %v14373_v2 }
 0x33e   : > { %v9768_v43 = vpop.eup %9767  ;;  %7461 = vst.msk [vmem:[%s13069_s11 + $0xac] sm:$0xf] %vm7417_vm5, %v8484_v32  ;;  %9787 = vrcp.f32 %v6953_v25  ;;  %v13605_v27 = vadd.f32 %v13350_v24, %v6506_v55  ;;  %v6509_v56 = vadd.f32 %v9391_v41, %v6095_v39  ;;  %v6507_v35 = vadd.f32 %v6422_v33, %v6093_v4 }
 0x33f   : > { %v9770_v14 = vpop.eup %9769  ;;  %v7138_v9 = vmul.f32 %v9768_v43, %v13438_v13  ;;  %9789 = vpow2.f32 %v6887_v7  ;;  %v6893_v38 = vmul.f32 1.442695, %v6771_v63  ;;  %v9329_v13 = vpop.f32.mrf.mxu1  ;;  %v6512_v47 = vadd.f32 %v9394_v48, %v6098_v12 }
 0x340   : > { %v9772_v44 = vpop.eup %9771  ;;  %v7143_v45 = vmul.f32 %v9770_v14, %v13452_v58  ;;  %9791 = vpow2.f32 %v6883_v29  ;;  %v8366_v22 = vclamps-f32 %v13605_v27, 30.0  ;;  %v13610_v60 = vadd.f32 %v13350_v24, %v6509_v56  ;;  %v6435_v58 = vpop.f32.mrf.mxu0 }
 0x341   : > { %v8482_v15 = vpack.c.bf16 %v7138_v9, %v7138_v9  ;;  %v6956_v62 = vadd.f32 1.0, %v9772_v44  ;;  %v9774_v31 = vpop.eup %9773  ;;  %9793 = vpow2.f32 %v6893_v38  ;;  %v13613_v41 = vadd.f32 %v13350_v24, %v6507_v35  ;;  %v6024_v29 = vpop.f32.mrf.mxu1 }
 0x342   : > { %v8487_v49 = vpack.c.bf16 %v7143_v45, %v7143_v45  ;;  %v7141_v57 = vmul.f32 %v9774_v31, %v13469_v61  ;;  %v6769_v16 = vsub.f32 0.0, %v8366_v22  ;;  %v8369_v26 = vclamps-f32 %v13610_v60, 30.0  ;;  %v9395_v5 = vpop.f32.mrf.mxu0  ;;  %v14376_v45 = vld [vmem:[#allocation107_spill] sm:$0xff] }
 0x343   : > { %7459 = vst.msk [vmem:[%s13069_s11 + $0xa4] sm:$0xf] %vm7417_vm5, %v8482_v15  ;;  %9795 = vrcp.f32 %v6956_v62  ;;  %v9776_v28 = vpop.eup %9775  ;;  %v8367_v46 = vclamps-f32 %v13613_v41, 30.0  ;;  %v13623_v11 = vadd.f32 %v13350_v24, %v6512_v47  ;;  %v6096_v59 = vadd.f32 %v6021_v40, %v14374_v21 }
 0x344   : > { %7464 = vst.msk [vmem:[%s13069_s11 + $0xb8] sm:$0xf] %vm7417_vm5, %v8487_v49  ;;  %v6099_v54 = vadd.f32 %v9329_v13, %v14375_v8  ;;  %v9778_v17 = vpop.eup %9777  ;;  %v8485_v23 = vpack.c.bf16 %v7141_v57, %v7141_v57  ;;  %v6954_v61 = vadd.f32 1.0, %v9776_v28  ;;  %v6889_v33 = vmul.f32 1.442695, %v6769_v16  ;;  %v6438_v49 = vpop.f32.mrf.mxu0 }
 0x345   : > { %v6772_v10 = vsub.f32 0.0, %v8369_v26  ;;  %v6959_v51 = vadd.f32 1.0, %v9778_v17  ;;  %v6770_v7 = vsub.f32 0.0, %v8367_v46  ;;  %v8372_v32 = vclamps-f32 %v13623_v11, 30.0 }
 0x346   : > { %v9780_v50 = vpop.eup %9779  ;;  %v6510_v25 = vadd.f32 %v6435_v58, %v6096_v59  ;;  %7462 = vst.msk [vmem:[%s13069_s11 + $0xb0] sm:$0xf] %vm7417_vm5, %v8485_v23  ;;  %9797 = vrcp.f32 %v6954_v61  ;;  %v6513_v39 = vadd.f32 %v9395_v5, %v6099_v54  ;;  %v6097_v38 = vadd.f32 %v6024_v29, %v14376_v45 }
 0x347   : > { %v9782_v19 = vpop.eup %9781  ;;  %v7144_v55 = vmul.f32 %v9780_v50, %v13486_v0  ;;  %v6895_v30 = vmul.f32 1.442695, %v6772_v10  ;;  %9799 = vrcp.f32 %v6959_v51  ;;  %v6891_v40 = vmul.f32 1.442695, %v6770_v7 }
 0x348   : > { %v9784_v20 = vpop.eup %9783  ;;  %v7142_v4 = vmul.f32 %v9782_v19, %v13498_v3  ;;  %v6775_v43 = vsub.f32 0.0, %v8372_v32  ;;  %9801 = vpow2.f32 %v6889_v33  ;;  %v13633_v12 = vadd.f32 %v13350_v24, %v6510_v25 }
 0x349   : > { %v8488_v63 = vpack.c.bf16 %v7144_v55, %v7144_v55  ;;  %v6957_v2 = vadd.f32 1.0, %v9784_v20  ;;  %9803 = vpow2.f32 %v6895_v30  ;;  %v13636_v9 = vadd.f32 %v13350_v24, %v6513_v39 }
 0x34a   : > { %v9786_v48 = vpop.eup %9785  ;;  %v8486_v0 = vpack.c.bf16 %v7142_v4, %v7142_v4  ;;  %v6901_v14 = vmul.f32 1.442695, %v6775_v43  ;;  %v8370_v44 = vclamps-f32 %v13633_v12, 30.0  ;;  %v6511_v16 = vadd.f32 %v6438_v49, %v6097_v38 }
 0x34b   : > { %v9788_v56 = vpop.eup %9787  ;;  %7465 = vst.msk [vmem:[%s13069_s11 + $0xbc] sm:$0xf] %vm7417_vm5, %v8488_v63  ;;  %v7147_v3 = vmul.f32 %v9786_v48, %v13505_v18  ;;  %9805 = vrcp.f32 %v6957_v2  ;;  %v8373_v62 = vclamps-f32 %v13636_v9, 30.0 }
 0x34c   : > { %v9790_v35 = vpop.eup %9789  ;;  %7463 = vst.msk [vmem:[%s13069_s11 + $0xb4] sm:$0xf] %vm7417_vm5, %v8486_v0  ;;  %v7145_v15 = vmul.f32 %v9788_v56, %v13510_v42  ;;  %9807 = vpow2.f32 %v6891_v40  ;;  %v6773_v18 = vsub.f32 0.0, %v8370_v44  ;;  %v13652_v59 = vadd.f32 %v13350_v24, %v6511_v16 }
 0x34d   : > { %v9792_v22 = vpop.eup %9791  ;;  %v8491_v13 = vpack.c.bf16 %v7147_v3, %v7147_v3  ;;  %v6960_v31 = vadd.f32 1.0, %v9790_v35  ;;  %9809 = vpow2.f32 %v6901_v14  ;;  %v6776_v57 = vsub.f32 0.0, %v8373_v62 }
 0x34e   : > { %v8489_v47 = vpack.c.bf16 %v7145_v15, %v7145_v15  ;;  %v6958_v58 = vadd.f32 1.0, %v9792_v22  ;;  %v9794_v26 = vpop.eup %9793  ;;  %v6897_v28 = vmul.f32 1.442695, %v6773_v18  ;;  %v8371_v54 = vclamps-f32 %v13652_v59, 30.0 }
 0x34f   : > { %7468 = vst.msk [vmem:[%s13069_s11 + $0xc8] sm:$0xf] %vm7417_vm5, %v8491_v13  ;;  %9811 = vrcp.f32 %v6960_v31  ;;  %v6963_v46 = vadd.f32 1.0, %v9794_v26  ;;  %v6903_v21 = vmul.f32 1.442695, %v6776_v57 }
 0x350   : > { %v9796_v42 = vpop.eup %9795  ;;  %7466 = vst.msk [vmem:[%s13069_s11 + $0xc0] sm:$0xf] %vm7417_vm5, %v8489_v47  ;;  %9813 = vrcp.f32 %v6958_v58  ;;  %v6774_v61 = vsub.f32 0.0, %v8371_v54 }
 0x351   : > { %v7148_v8 = vmul.f32 %v9796_v42, %v13524_v52  ;;  %9815 = vpow2.f32 %v6897_v28 }
 0x352   : > { %9817 = vrcp.f32 %v6963_v46  ;;  %v6899_v51 = vmul.f32 1.442695, %v6774_v61 }
 0x353   : > { %v8492_v17 = vpack.c.bf16 %v7148_v8, %v7148_v8  ;;  %9819 = vpow2.f32 %v6903_v21  ;;  %v9798_v23 = vpop.eup %9797 }
 0x354   : > { %v9800_v33 = vpop.eup %9799  ;;  %v7146_v10 = vmul.f32 %v9798_v23, %v13547_v34  ;;  %9821 = vpow2.f32 %v6899_v51 }
 0x355   : > { %7469 = vst.msk [vmem:[%s13069_s11 + $0xcc] sm:$0xf] %vm7417_vm5, %v8492_v17  ;;  %v9802_v50 = vpop.eup %9801  ;;  %v7151_v24 = vmul.f32 %v9800_v33, %v13552_v53 }
 0x356   : > { %v9804_v52 = vpop.eup %9803  ;;  %v8490_v7 = vpack.c.bf16 %v7146_v10, %v7146_v10  ;;  %v6961_v32 = vadd.f32 1.0, %v9802_v50 }
 0x357   : > { %v8495_v5 = vpack.c.bf16 %v7151_v24, %v7151_v24  ;;  %v6964_v19 = vadd.f32 1.0, %v9804_v52 }
 0x358   : > { %v9806_v25 = vpop.eup %9805  ;;  %7467 = vst.msk [vmem:[%s13069_s11 + $0xc4] sm:$0xf] %vm7417_vm5, %v8490_v7  ;;  %9823 = vrcp.f32 %v6961_v32 }
 0x359   : > { %v9808_v55 = vpop.eup %9807  ;;  %v7149_v30 = vmul.f32 %v9806_v25, %v13568_v36  ;;  %7472 = vst.msk [vmem:[%s13069_s11 + $0xd8] sm:$0xf] %vm7417_vm5, %v8495_v5  ;;  %9825 = vrcp.f32 %v6964_v19 }
 0x35a   : > { %v9810_v34 = vpop.eup %9809  ;;  %v6962_v53 = vadd.f32 1.0, %v9808_v55 }
 0x35b   : > { %v8493_v39 = vpack.c.bf16 %v7149_v30, %v7149_v30  ;;  %v6967_v20 = vadd.f32 1.0, %v9810_v34 }
 0x35c   : > { %v9812_v4 = vpop.eup %9811  ;;  %9827 = vrcp.f32 %v6962_v53 }
 0x35d   : > { %v9814_v40 = vpop.eup %9813  ;;  %7470 = vst.msk [vmem:[%s13069_s11 + $0xd0] sm:$0xf] %vm7417_vm5, %v8493_v39  ;;  %v7152_v43 = vmul.f32 %v9812_v4, %v13575_v6  ;;  %9829 = vrcp.f32 %v6967_v20 }
 0x35e   : > { %v9816_v36 = vpop.eup %9815  ;;  %v7150_v29 = vmul.f32 %v9814_v40, %v13580_v37 }
 0x35f   : > { %v9818_v63 = vpop.eup %9817  ;;  %v8496_v2 = vpack.c.bf16 %v7152_v43, %v7152_v43  ;;  %v6965_v48 = vadd.f32 1.0, %v9816_v36 }
 0x360   : > { %v9820_v0 = vpop.eup %9819  ;;  %v8494_v14 = vpack.c.bf16 %v7150_v29, %v7150_v29  ;;  %v7155_v56 = vmul.f32 %v9818_v63, %v13590_v1 }
 0x361   : > { %7473 = vst.msk [vmem:[%s13069_s11 + $0xdc] sm:$0xf] %vm7417_vm5, %v8496_v2  ;;  %9831 = vrcp.f32 %v6965_v48  ;;  %v6968_v3 = vadd.f32 1.0, %v9820_v0  ;;  %v9822_v37 = vpop.eup %9821 }
 0x362   : > { %7471 = vst.msk [vmem:[%s13069_s11 + $0xd4] sm:$0xf] %vm7417_vm5, %v8494_v14  ;;  %v8499_v6 = vpack.c.bf16 %v7155_v56, %v7155_v56  ;;  %v6966_v45 = vadd.f32 1.0, %v9822_v37 }
 0x363   : > { %9833 = vrcp.f32 %v6968_v3 }
 0x364   : > { %7476 = vst.msk [vmem:[%s13069_s11 + $0xe8] sm:$0xf] %vm7417_vm5, %v8499_v6  ;;  %9835 = vrcp.f32 %v6966_v45 }
 0x365   : > { %v9824_v44 = vpop.eup %9823 }
 0x366   : > { %v9826_v38 = vpop.eup %9825  ;;  %v7153_v1 = vmul.f32 %v9824_v44, %v13605_v27 }
 0x367   : > { %v7156_v35 = vmul.f32 %v9826_v38, %v13610_v60 }
 0x368   : > { %v8497_v62 = vpack.c.bf16 %v7153_v1, %v7153_v1 }
 0x369   : > { %v9828_v15 = vpop.eup %9827  ;;  %v8500_v13 = vpack.c.bf16 %v7156_v35, %v7156_v35 }
 0x36a   : > { %v9830_v22 = vpop.eup %9829  ;;  %v7154_v31 = vmul.f32 %v9828_v15, %v13613_v41  ;;  %7474 = vst.msk [vmem:[%s13069_s11 + $0xe0] sm:$0xf] %vm7417_vm5, %v8497_v62 }
 0x36b   : > { %v7159_v18 = vmul.f32 %v9830_v22, %v13623_v11  ;;  %7477 = vst.msk [vmem:[%s13069_s11 + $0xec] sm:$0xf] %vm7417_vm5, %v8500_v13 }
 0x36c   : > { %v8498_v49 = vpack.c.bf16 %v7154_v31, %v7154_v31 }
 0x36d   : > { %v8503_v27 = vpack.c.bf16 %v7159_v18, %v7159_v18 }
 0x36e   : > { %v9832_v47 = vpop.eup %9831  ;;  %7475 = vst.msk [vmem:[%s13069_s11 + $0xe4] sm:$0xf] %vm7417_vm5, %v8498_v49 }
 0x36f   : > { %7480 = vst.msk [vmem:[%s13069_s11 + $0xf8] sm:$0xf] %vm7417_vm5, %v8503_v27  ;;  %v7157_v60 = vmul.f32 %v9832_v47, %v13633_v12 }
 0x370   : > { %v9834_v58 = vpop.eup %9833 }
 0x371   : > { %v8501_v57 = vpack.c.bf16 %v7157_v60, %v7157_v60  ;;  %v7160_v41 = vmul.f32 %v9834_v58, %v13636_v9  ;;  %v9836_v11 = vpop.eup %9835 }
 0x372   : > { %v7158_v26 = vmul.f32 %v9836_v11, %v13652_v59 }
 0x373   : > { %7478 = vst.msk [vmem:[%s13069_s11 + $0xf0] sm:$0xf] %vm7417_vm5, %v8501_v57  ;;  %v8504_v16 = vpack.c.bf16 %v7160_v41, %v7160_v41 }
 0x374   : > { %v8502_v28 = vpack.c.bf16 %v7158_v26, %v7158_v26 }
 0x375   : > { %7481 = vst.msk [vmem:[%s13069_s11 + $0xfc] sm:$0xf] %vm7417_vm5, %v8504_v16 }
 0x376   : > { %7479 = vst.msk [vmem:[%s13069_s11 + $0xf4] sm:$0xf] %vm7417_vm5, %v8502_v28 }
 0x377 PF: > { %s13_s16 = sadd.s32 1, %s9914_s16   ;;  %s14377_s12 = smov %s9906_s14 }
 0x378   : > { %p10_p8 = scmp.ge.s32.totalorder %s13_s16, 6   ;;  %s14378_s13 = smov %s9910_s15 }
 0x379   : > { %s14379_s14 = smov %s14382_s17  ;;  %s14380_s15 = smov %s14386_s18 }
 0x37a   :  { %12 = sbr.rel (!%p10_p8) target bundleno = 3 (0x3), region = 74 }

</bundles_post_ra>
